<compile_context>
chip_gen: v5e
topology: v5e:2x2
jax: 0.10.0
libtpu: 0.0.40
codegen_flags: <defaults>
</compile_context>

<pallas_src>
import functools

import jax
import jax.numpy as jnp
from jax import lax
from jax.experimental import pallas as pl
from jax.experimental.pallas import tpu as pltpu

# ---------------- fixed module hyper-parameters (Conv-4 branch) ------------
D = 64           # num_channel
RESOLUTION = 25  # 5x5 feature map
WAY = 2
SHOT = 1
QUERY_SHOT = 2
NUM_CLASS = 10   # args.num_class
CL_SCALE = 0.1   # args.cL_scale


# =========================== Pallas kernel =================================
def _dist_kernel(q_ref, hat_ref, wt_ref, out_ref):
    """One reconstruction branch per grid step.

    blocks: q (1, Q, d), hat (1, d, way*d), wt (1, qn, way*d),
            out (1, qn, way).
    """
    q = q_ref[0]                    # (Q, d)
    hat = hat_ref[0]                # (d, way*d) == rho * (I - lam * M^-1) per way
    w = wt_ref[0]                   # (qn, way*d) TDM channel weight

    Q, d = q.shape
    qn, d2 = w.shape
    way = d2 // d
    res = Q // qn

    # Q_bar for both ways in one full-width MXU matmul (way packed in lanes).
    qb = jnp.dot(q, hat, preferred_element_type=jnp.float32)       # (Q, way*d)
    diff = qb - jnp.concatenate([q] * way, axis=-1)                 # (Q, way*d)
    sq = diff * diff

    # Mean over the resolution axis via a pooling matmul: rows of Q are
    # (qn, res) in row-major order.  Avoids an unaligned sublane reshape.
    col = lax.broadcasted_iota(jnp.int32, (qn, Q), 1)
    row = lax.broadcasted_iota(jnp.int32, (qn, Q), 0)
    lo = row * res
    pool = jnp.where((col >= lo) & (col < lo + res),
                     1.0 / res, 0.0).astype(jnp.float32)            # (qn, Q)
    pooled = jnp.dot(pool, sq, preferred_element_type=jnp.float32)  # (qn, way*d)

    # TDM weight is constant over res: (diff*w)^2 == diff^2 * w^2, so it
    # commutes with the resolution mean and is applied on the pooled tile.
    pooled = pooled * (w * w)

    # Per-way channel sums: reduce each d-lane half -> (qn, way).
    parts = [jnp.sum(pooled[:, i * d:(i + 1) * d], axis=-1, keepdims=True)
             for i in range(way)]
    out_ref[0] = jnp.concatenate(parts, axis=-1)


def dist_pallas(q_pair, hat_packed, wt_packed):
    """q_pair (2, Q, d), hat_packed (4, d, way*d), wt_packed (4, qn, way*d)
    -> dist (4, qn, way):  mean_res sum_d ((Q@hat - Q) * w)^2."""
    nb, d, d2 = hat_packed.shape
    Q = q_pair.shape[1]
    qn = wt_packed.shape[1]
    way = d2 // d
    return pl.pallas_call(
        _dist_kernel,
        out_shape=jax.ShapeDtypeStruct((nb, qn, way), jnp.float32),
        grid=(nb,),
        in_specs=[
            # q1/q2 deduplicated: branches (q1,s1),(q2,s2),(q1,s2),(q2,s1)
            pl.BlockSpec((1, Q, d), lambda b: (b % 2, 0, 0)),
            pl.BlockSpec((1, d, d2), lambda b: (b, 0, 0)),
            pl.BlockSpec((1, qn, d2), lambda b: (b, 0, 0)),
        ],
        out_specs=pl.BlockSpec((1, qn, way), lambda b: (b, 0, 0)),
        compiler_params=pltpu.CompilerParams(
            dimension_semantics=("parallel",)),   # branches independent (v7x 2 TC)
    )(q_pair, hat_packed, wt_packed)


# =========================== JAX glue (backbone etc.) ======================
def _conv_block(x, w, gamma, beta):
    y = lax.conv_general_dilated(
        x, w, window_strides=(1, 1), padding='SAME',
        dimension_numbers=('NCHW', 'OIHW', 'NCHW'))
    mean = jnp.mean(y, axis=(0, 2, 3), keepdims=True)
    var = jnp.var(y, axis=(0, 2, 3), keepdims=True)
    y = (y - mean) * lax.rsqrt(var + 1e-5)
    y = y * gamma[None, :, None, None] + beta[None, :, None, None]
    y = jnp.maximum(y, 0.0)
    y = lax.reduce_window(y, -jnp.inf, lax.max,
                          (1, 1, 2, 2), (1, 1, 2, 2), 'VALID')
    return y


def backbone(x, params):
    # TODO(synk): Conv_4.BackBone source not provided; standard
    # 4 x (conv3x3 -> BN(batch stats) -> ReLU -> maxpool2) backbone used.
    for (w, g, b) in params:
        x = _conv_block(x, w, g, b)
    return x


def l2norm_channel(x):
    n = jnp.sqrt(jnp.sum(x * x, axis=1, keepdims=True))
    return x / jnp.maximum(n, 1e-12)


def custom_loss(f1, f2, lambda_orth):
    B, C = f1.shape[0], f1.shape[1]
    a = f1.reshape(B, C, -1).mean(-1)
    b = f2.reshape(B, C, -1).mean(-1)
    eps = 1e-7
    num = jnp.sum(a * b, axis=1)
    na = jnp.maximum(jnp.sqrt(jnp.sum(a * a, axis=1)), eps)
    nb = jnp.maximum(jnp.sqrt(jnp.sum(b * b, axis=1)), eps)
    return lambda_orth * jnp.mean(num / (na * nb))


# =========================== full forward ==================================
def bifi_tdm_forward(inp, params, way, shot, query_shot):
    d, res = D, RESOLUTION
    B = inp.shape[0]

    # feature maps (B, d, 5, 5), L2-normalized over channels
    fm1 = l2norm_channel(backbone(inp, params['fe1']))
    fm2 = l2norm_channel(backbone(inp, params['fe2']))
    cl = custom_loss(fm1, fm2, CL_SCALE)

    fm1_flat = jnp.transpose(fm1.reshape(B, d, -1), (0, 2, 1))     # (B, res, d)
    self_map = l2norm_channel(fm2)                                 # re-normalize, as in torch
    fm2_flat = jnp.transpose(self_map.reshape(B, d, -1), (0, 2, 1))

    ns = way * shot
    qn = way * query_shot
    Q = qn * res
    sup1 = fm1_flat[:ns].reshape(way, shot * res, d)
    sup2 = fm2_flat[:ns].reshape(way, shot * res, d)
    q1 = fm1_flat[ns:].reshape(Q, d)
    q2 = fm2_flat[ns:].reshape(Q, d)

    alpha = params['r'][:4]
    beta = params['r'][4:]
    reg = (shot * res) / d
    lam = reg * jnp.exp(alpha) + 1e-6                              # (4,)
    rho = jnp.exp(beta)                                            # (4,)

    # S^T S is tiny (two 25x64 -> 64x64 matmuls); keep it in XLA where it
    # fuses with the surrounding transposes and feeds jnp.linalg.inv anyway.
    sts1 = jnp.einsum('wrd,wre->wde', sup1, sup1)                  # (way, d, d)
    sts2 = jnp.einsum('wrd,wre->wde', sup2, sup2)
    # branches: (q1,s1,a0), (q2,s2,a1), (q1,s2,a2), (q2,s1,a3)
    sts_branch = jnp.stack([sts1, sts2, sts2, sts1], axis=0)       # (4, way, d, d)

    eye = jnp.eye(d, dtype=jnp.float32)
    m_inv = jnp.linalg.inv(sts_branch + lam[:, None, None, None] * eye)
    # Exact identity (M = S^T S + lam I):  M^-1 @ S^T S = I - lam * M^-1,
    # with the rho that PyTorch applies to Q_bar folded in -> purely
    # elementwise; no matmul and no S^T S input for the kernel.
    hat = rho[:, None, None, None] * (eye - lam[:, None, None, None] * m_inv)
    # Pack way into the lane axis: (4, way, d, d) -> (4, d, way*d).
    hat_packed = jnp.transpose(hat, (0, 2, 1, 3)).reshape(4, d, way * d)

    # TODO(synk): TDM module source not provided; its per-channel attention
    # weight (way, qn, d) is stubbed as ones with identical broadcasting.
    weight = jnp.ones((4, way, qn, d), jnp.float32)
    wt_packed = jnp.transpose(weight, (0, 2, 1, 3)).reshape(4, qn, way * d)

    q_pair = jnp.stack([q1, q2], axis=0)                           # (2, Q, d)

    # --- Pallas kernel: Q_bar + weighted squared distances + res-mean ------
    dist = dist_pallas(q_pair, hat_packed, wt_packed)              # (4, qn, way)

    W = params['W']                                                # (4, 1)
    neg_l2 = -jnp.sum(W[:, 0][:, None, None] * dist, axis=0)       # (qn, way)

    logits = neg_l2 * params['scale']
    log_pred = jax.nn.log_softmax(logits, axis=1)

    h1 = jnp.maximum(fm1_flat.mean(axis=1), 0.0)
    h2 = jnp.maximum(fm2_flat.mean(axis=1), 0.0)
    fc1 = h1 @ params['fc1_w'].T + params['fc1_b']
    fc2 = h2 @ params['fc2_w'].T + params['fc2_b']

    return log_pred, (sup1, sup2), fc1, fc2, params['M'], cl


# =========================== deterministic params ==========================
def init_params(key):
    keys = jax.random.split(key, 12)

    def conv_params(ks):
        ps, cin = [], 3
        for i in range(4):
            w = (jax.random.normal(ks[i], (D, cin, 3, 3), jnp.float32) * 0.05)
            ps.append((w, jnp.ones((D,), jnp.float32),
                       jnp.zeros((D,), jnp.float32)))
            cin = D
        return ps

    return {
        'fe1': conv_params(keys[0:4]),
        'fe2': conv_params(keys[4:8]),
        'scale': jnp.ones((1,), jnp.float32),
        'W': jnp.full((4, 1), 0.25, jnp.float32),
        'r': jnp.zeros((8,), jnp.float32),
        'M': jnp.array([0.5], jnp.float32),
        'fc1_w': jax.random.normal(keys[8], (NUM_CLASS, D), jnp.float32) * 0.05,
        'fc1_b': jnp.zeros((NUM_CLASS,), jnp.float32),
        'fc2_w': jax.random.normal(keys[9], (NUM_CLASS, D), jnp.float32) * 0.05,
        'fc2_b': jnp.zeros((NUM_CLASS,), jnp.float32),
    }


if __name__ == "__main__":
    key = jax.random.PRNGKey(0)
    pkey, xkey = jax.random.split(key)
    params = init_params(pkey)

    # batch = way*shot (support) + way*query_shot (query); 80x80 -> 5x5 = 25 = resolution
    B = WAY * SHOT + WAY * QUERY_SHOT
    x = jax.random.normal(xkey, (B, 3, 80, 80), jnp.float32)

    fwd = jax.jit(functools.partial(
        bifi_tdm_forward, way=WAY, shot=SHOT, query_shot=QUERY_SHOT))
    out = fwd(x, params)
    jax.block_until_ready(out)
    print("KERNEL_OK")
</pallas_src>

<mosaic_0001>
module attributes {stable_mosaic.version = 11 : i64} {
  func.func @_dist_kernel(%arg0: i32, %arg1: memref<1x100x64xf32, #tpu.memory_space<vmem>>, %arg2: memref<1x64x128xf32, #tpu.memory_space<vmem>>, %arg3: memref<1x4x128xf32, #tpu.memory_space<vmem>>, %arg4: memref<1x4x2xf32, #tpu.memory_space<vmem>>) attributes {dimension_semantics = [#tpu.dimension_semantics<parallel>], iteration_bounds = array<i64: 4>, scalar_prefetch = 0 : i64, scratch_operands = 0 : i64, tpu.core_type = #tpu.core_type<tc>, window_params = [{transform_indices = @transform_0, window_bounds = array<i64: 1, 100, 64>}, {transform_indices = @transform_1, window_bounds = array<i64: 1, 64, 128>}, {transform_indices = @transform_2, window_bounds = array<i64: 1, 4, 128>}, {transform_indices = @transform_3, window_bounds = array<i64: 1, 4, 2>}]} {
    %c0 = arith.constant 0 : index
    %c0_0 = arith.constant 0 : index
    %c0_1 = arith.constant 0 : index
    %0 = vector.load %arg1[%c0, %c0_0, %c0_1] : memref<1x100x64xf32, #tpu.memory_space<vmem>>, vector<1x100x64xf32>
    %1 = vector.shape_cast %0 : vector<1x100x64xf32> to vector<100x64xf32>
    %c0_2 = arith.constant 0 : index
    %c0_3 = arith.constant 0 : index
    %c0_4 = arith.constant 0 : index
    %2 = vector.load %arg2[%c0_2, %c0_3, %c0_4] : memref<1x64x128xf32, #tpu.memory_space<vmem>>, vector<1x64x128xf32>
    %3 = vector.shape_cast %2 : vector<1x64x128xf32> to vector<64x128xf32>
    %c0_5 = arith.constant 0 : index
    %c0_6 = arith.constant 0 : index
    %c0_7 = arith.constant 0 : index
    %4 = vector.load %arg3[%c0_5, %c0_6, %c0_7] : memref<1x4x128xf32, #tpu.memory_space<vmem>>, vector<1x4x128xf32>
    %5 = vector.shape_cast %4 : vector<1x4x128xf32> to vector<4x128xf32>
    %cst = arith.constant dense<0.000000e+00> : vector<100x128xf32>
    %6 = tpu.matmul %1, %3, %cst {dimension_numbers = #tpu.dot_dimension_numbers<[1], [0], [0], [1], [0, 0, 1, 1], [], []>} : vector<100x64xf32>, vector<64x128xf32>, vector<100x128xf32> -> vector<100x128xf32>
    %7 = tpu.concatenate %1, %1 in 1 : vector<100x64xf32>, vector<100x64xf32> -> vector<100x128xf32>
    %8 = arith.subf %6, %7 : vector<100x128xf32>
    %9 = arith.mulf %8, %8 : vector<100x128xf32>
    %10 = tpu.iota {dimensions = array<i32: 1>} : vector<4x100xi32>
    %11 = tpu.iota {dimensions = array<i32: 0>} : vector<4x100xi32>
    %c25_i32 = arith.constant 25 : i32
    %12 = vector.broadcast %c25_i32 : i32 to vector<4x100xi32>
    %13 = arith.muli %11, %12 : vector<4x100xi32>
    %14 = arith.cmpi sge, %10, %13 : vector<4x100xi32>
    %c25_i32_8 = arith.constant 25 : i32
    %15 = vector.broadcast %c25_i32_8 : i32 to vector<4x100xi32>
    %16 = arith.addi %13, %15 : vector<4x100xi32>
    %17 = arith.cmpi slt, %10, %16 : vector<4x100xi32>
    %18 = arith.andi %14, %17 : vector<4x100xi1>
    %cst_9 = arith.constant 4.000000e-02 : f32
    %cst_10 = arith.constant 0.000000e+00 : f32
    %19 = vector.broadcast %cst_9 : f32 to vector<4x100xf32>
    %20 = vector.broadcast %cst_10 : f32 to vector<4x100xf32>
    %21 = arith.select %18, %19, %20 : vector<4x100xi1>, vector<4x100xf32>
    %cst_11 = arith.constant dense<0.000000e+00> : vector<4x128xf32>
    %22 = tpu.matmul %21, %9, %cst_11 {dimension_numbers = #tpu.dot_dimension_numbers<[1], [0], [0], [1], [0, 0, 1, 1], [], []>} : vector<4x100xf32>, vector<100x128xf32>, vector<4x128xf32> -> vector<4x128xf32>
    %23 = arith.mulf %5, %5 : vector<4x128xf32>
    %24 = arith.mulf %22, %23 : vector<4x128xf32>
    %25 = vector.extract_strided_slice %24 {offsets = [0, 0], sizes = [4, 64], strides = [1, 1]} : vector<4x128xf32> to vector<4x64xf32>
    %cst_12 = arith.constant dense<0.000000e+00> : vector<4xf32>
    %26 = vector.multi_reduction <add>, %25, %cst_12 [1] : vector<4x64xf32> to vector<4xf32>
    %27 = vector.shape_cast %26 : vector<4xf32> to vector<4x1xf32>
    %28 = vector.extract_strided_slice %24 {offsets = [0, 64], sizes = [4, 64], strides = [1, 1]} : vector<4x128xf32> to vector<4x64xf32>
    %cst_13 = arith.constant dense<0.000000e+00> : vector<4xf32>
    %29 = vector.multi_reduction <add>, %28, %cst_13 [1] : vector<4x64xf32> to vector<4xf32>
    %30 = vector.shape_cast %29 : vector<4xf32> to vector<4x1xf32>
    %31 = tpu.concatenate %27, %30 in 1 : vector<4x1xf32>, vector<4x1xf32> -> vector<4x2xf32>
    %c0_14 = arith.constant 0 : index
    %c0_15 = arith.constant 0 : index
    %c0_16 = arith.constant 0 : index
    %32 = vector.load %arg4[%c0_14, %c0_15, %c0_16] : memref<1x4x2xf32, #tpu.memory_space<vmem>>, vector<1x4x2xf32>
    %33 = vector.shape_cast %32 : vector<1x4x2xf32> to vector<4x2xf32>
    %34 = vector.shape_cast %31 : vector<4x2xf32> to vector<1x4x2xf32>
    tpu.vector_store %arg4[%c0_14, %c0_15, %c0_16], %34 {strides = array<i32>} : memref<1x4x2xf32, #tpu.memory_space<vmem>>, vector<1x4x2xf32>,
    return
  }
  func.func @transform_0(%arg0: i32) -> (i32, i32, i32) {
    %c2_i32 = arith.constant 2 : i32
    %c0_i32 = arith.constant 0 : i32
    %0 = arith.cmpi eq, %c2_i32, %c0_i32 : i32
    %c1_i32 = arith.constant 1 : i32
    %1 = arith.select %0, %c1_i32, %c2_i32 : i32
    %2 = arith.remsi %arg0, %1 : i32
    %c0_i32_0 = arith.constant 0 : i32
    %3 = arith.cmpi ne, %2, %c0_i32_0 : i32
    %c0_i32_1 = arith.constant 0 : i32
    %4 = arith.cmpi slt, %2, %c0_i32_1 : i32
    %c0_i32_2 = arith.constant 0 : i32
    %5 = arith.cmpi slt, %1, %c0_i32_2 : i32
    %6 = arith.xori %4, %5 : i1
    %7 = arith.andi %6, %3 : i1
    %8 = arith.addi %2, %1 : i32
    %9 = arith.select %7, %8, %2 : i32
    %c0_i32_3 = arith.constant 0 : i32
    %c0_i32_4 = arith.constant 0 : i32
    %c0_i32_5 = arith.constant 0 : i32
    return %9, %c0_i32_3, %c0_i32_4 : i32, i32, i32
  }
  func.func @transform_1(%arg0: i32) -> (i32, i32, i32) {
    %c0_i32 = arith.constant 0 : i32
    %c0_i32_0 = arith.constant 0 : i32
    %c0_i32_1 = arith.constant 0 : i32
    return %arg0, %c0_i32, %c0_i32_0 : i32, i32, i32
  }
  func.func @transform_2(%arg0: i32) -> (i32, i32, i32) {
    %c0_i32 = arith.constant 0 : i32
    %c0_i32_0 = arith.constant 0 : i32
    %c0_i32_1 = arith.constant 0 : i32
    return %arg0, %c0_i32, %c0_i32_0 : i32, i32, i32
  }
  func.func @transform_3(%arg0: i32) -> (i32, i32, i32) {
    %c0_i32 = arith.constant 0 : i32
    %c0_i32_0 = arith.constant 0 : i32
    %c0_i32_1 = arith.constant 0 : i32
    return %arg0, %c0_i32, %c0_i32_0 : i32, i32, i32
  }
}

</mosaic_0001>

<bundles_post_ra>
// kernel: custom-call.11
= control target key start
LH: loop header
LB: loop body
LE: loop exit
PB: predicated region body
PF: predicated region fallthrough
CT: control target
= control target key end

     0   :  { %s1786_s0 = inlined_call_operand.vmem [shape: f32[4,2,64,64], index: 0, kind: input, shape index: {}]   ;;  %s1787_s1 = inlined_call_operand.vmem [shape: f32[4,2,64,64], index: 1, kind: output, shape index: {0}]   ;;  %s1788_s2 = inlined_call_operand.hbm [shape: s32[4,2,64], index: 2, kind: output, shape index: {1}]   ;;  %s1789_s3 = inlined_call_operand.vmem [shape: s32[4,2,64], index: 3, kind: output, shape index: {2}]  }
   0x1   :  { %1798 = sst [smem:[#allocation11_spill]] %s1786_s0 }
   0x2   :  { %5 = vsyncpa [#allocation4], 0 }
   0x3   :  { %7 = vsyncpa [#allocation4 + $0x1], 0  ;;  %s1226_s12 = smov 0   ;;  %s1228_s13 = smov 0  }
   0x4   :  { %s1230_s14 = smov 0   ;;  %s1232_s15 = smov 0  }
   0x5   :  { %s1234_s16 = smov 0   ;;  %s1236_s17 = smov 0  }
   0x6   :  { %s1238_s18 = smov 0   ;;  %s1240_s19 = smov 0  }
   0x7 LB: > { %s928_s20 = sadd.s32 4294967295, %s1195_s19   ;;  %s929_s21 = sadd.s32 4294967294, %s1195_s19   ;;  %s1195_s19 = sphi %s1240_s19, %s13_s19   ;;  %s1191_s18 = sphi %s1238_s18, %s1847_s18   ;;  %s1187_s17 = sphi %s1236_s17, %s1846_s17   ;;  %s1183_s16 = sphi %s1234_s16, %s1845_s16   ;;  %s1179_s15 = sphi %s1232_s15, %s1844_s15   ;;  %s1175_s14 = sphi %s1230_s14, %s1843_s14   ;;  %s1171_s13 = sphi %s1228_s13, %s1842_s13   ;;  %s1167_s12 = sphi %s1226_s12, %s1841_s12  }
   0x8   : > { %s22_s22 = sadd.s32 1, %s1187_s17  ;;  %s25_s23 = sadd.s32 1, %s1191_s18 }
   0x9   : > { %p23_p0 = scmp.ge.s32.totalorder %s22_s22, 2  ;;  %s29_s24 = sshrl.u32 %s1187_s17, 3 }
   0xa   : > { %p46_p1 = scmp.ne.s32.totalorder %s1175_s14, %s1171_s13  ;;  %p47_p2 = scmp.eq.s32.totalorder %s928_s20, 7 }
   0xb   : > { %s1849_s22 = smov (%p23_p0, %s22_s22), 0  ;;  %s1851_s23 = smov (!%p23_p0, %s25_s23), %s1191_s18 }
   0xc   : > { %1799 = sst [smem:[#allocation9_spill]] %s1849_s22  ;;  %s30_s25 = sshrl.u32 %s1849_s22, 3 }
   0xd   : > { %p27_p3 = scmp.ge.s32.totalorder %s1851_s23, 4  ;;  %s32_s26 = ssub.s32 %s29_s24, %s30_s25 }
   0xe   : > { %p1279_p4 = por %p47_p2, %p46_p1  ;;  %p52_p5 = scmp.ne.s32.totalorder %s1171_s13, %s1167_s12 }
   0xf   : > { %s1853_s23 = smov (%p27_p3, %s1851_s23), 0  ;;  %p53_p6 = scmp.eq.s32.totalorder %s929_s21, 7 }
  0x10   : > { %1801 = sst [smem:[#allocation10_spill]] %s1853_s23  ;;  %s31_s28 = ssub.s32 %s1191_s18, %s1853_s23 }
  0x11   : > { %s36_s29 = sadd.s32 1, %s1175_s14  ;;  %s33_s30 = sor.u32 %s32_s26, %s31_s28 }
  0x12   : > { %p1290_p7 = por %p53_p6, %p52_p5  ;;  %p34_p8 = scmp.eq.s32.totalorder %s33_s30, 0 }
  0x13   : > { %p931_p9 = scmp.ge.s32.totalorder %s1195_s19, 8 }
  0x14   : > { %s1295_s5 = scalar_select %p34_p8, %s1175_s14, %s36_s29  }
  0x15   : > { %99 = sbr.rel (%p931_p9) target bundleno = 39 (0x27), region = 16  ;;  %s101_s6 = sand.u32 (!%p931_p9), 1, %s1195_s19  }
  0x16   : > { %s933_s7 = sshll.u32 (!%p931_p9), %s1191_s18, 1  ;;  %s932_s8 = sshll.u32 (!%p931_p9), %s101_s6, 6 }
  0x17   : > { %s105_s9 = sadd.s32 (!%p931_p9), %s1187_s17, %s933_s7  ;;  %s1803_s0 = sld [smem:[#allocation11_spill]] (!%p931_p9) }
  0x18   : > { %s934_s10 = sshll.u32 (!%p931_p9), %s105_s9, 6  ;;  %s103_s25 = scalar_lea.vmem (!%p931_p9), [#allocation0], %s932_s8 }
  0x1d   : > { %s107_s24 = scalar_lea.vmem %s1803_s0, %s934_s10 }
  0x1e   : > { %v120_v0 = vld [vmem:[%s107_s24] sm:$0xff]  ;;  %v122_v1 = vld [vmem:[%s107_s24 + $0x8] sm:$0xff]  ;;  %v124_v2 = vld [vmem:[%s107_s24 + $0x10] sm:$0xff] }
  0x1f   : > { %121 = vst [vmem:[%s103_s25] sm:$0xff] %v120_v0  ;;  %v126_v3 = vld [vmem:[%s107_s24 + $0x18] sm:$0xff]  ;;  %v128_v4 = vld [vmem:[%s107_s24 + $0x20] sm:$0xff]  ;;  %v130_v5 = vld [vmem:[%s107_s24 + $0x28] sm:$0xff] }
  0x20   : > { %123 = vst [vmem:[%s103_s25 + $0x8] sm:$0xff] %v122_v1  ;;  %v132_v6 = vld [vmem:[%s107_s24 + $0x30] sm:$0xff]  ;;  %v134_v7 = vld [vmem:[%s107_s24 + $0x38] sm:$0xff] }
  0x21   : > { %125 = vst [vmem:[%s103_s25 + $0x10] sm:$0xff] %v124_v2 }
  0x22   : > { %127 = vst [vmem:[%s103_s25 + $0x18] sm:$0xff] %v126_v3 }
  0x23   : > { %129 = vst [vmem:[%s103_s25 + $0x20] sm:$0xff] %v128_v4 }
  0x24   : > { %131 = vst [vmem:[%s103_s25 + $0x28] sm:$0xff] %v130_v5 }
  0x25   : > { %133 = vst [vmem:[%s103_s25 + $0x30] sm:$0xff] %v132_v6 }
  0x26   : > { %135 = vst [vmem:[%s103_s25 + $0x38] sm:$0xff] %v134_v7 }
  0x27 PF: > { %p935_p10 = scmp.ge.s32.totalorder %s1195_s19, 1  ;;  %p140_p11 = scmp.lt.s32.totalorder %s1195_s19, 9 }
  0x29   : > { %p141_p12 = pnand %p935_p10, %p140_p11 }
  0x2b   : > { %144 = sbr.rel (%p141_p12) target bundleno = 612 (0x264), region = 39 }
  0x30   : > { %s147_s26 = sand.u32 1, %s928_s20   ;;  %s1795_s28 = sand.u32 1, %s1171_s13   ;;  %v208_v8 = vlaneseq  ;;  %v1205_v18 = vmov 0  }
  0x31   : > { %s936_s29 = sshll.u32 %s147_s26, 6  ;;  %s1311_s30 = sshll.u32 %s1795_s28, 1 }
  0x32   : > { %v1314_v9 = vshrl.u32 %v208_v8, 7  ;;  %s149_s6 = scalar_lea.vmem [#allocation0], %s936_s29  ;;  %s1316_s7 = scalar_lea.vmem [#allocation1], %s936_s29 }
  0x33   : > { %v173_v10 = vld [vmem:[%s149_s6] sm:$0xff]  ;;  %v940_v11 = vld [vmem:[%s149_s6 + $0x8] sm:$0xff]  ;;  %v942_v12 = vld [vmem:[%s149_s6 + $0x10] sm:$0xff]  ;;  %s203_s20 = sand.u32 7, %s1179_s15   ;;  %s164_s9 = scalar_lea.vmem [#allocation3], %s1311_s30 }
  0x34   : > { %174 = vst [vmem:[%s1316_s7] sm:$0xff] %v173_v10  ;;  %v944_v13 = vld [vmem:[%s149_s6 + $0x18] sm:$0xff]  ;;  %v946_v14 = vld [vmem:[%s149_s6 + $0x20] sm:$0xff]  ;;  %v948_v15 = vld [vmem:[%s149_s6 + $0x28] sm:$0xff]  ;;  %s1327_s8 = scalar_lea.vmem [#allocation2], %s203_s20  ;;  %s1332_s11 = scalar_lea.vmem [#allocation5], %s203_s20 }
  0x35   : > { %941 = vst [vmem:[%s1316_s7 + $0x8] sm:$0xff] %v940_v11  ;;  %v950_v16 = vld [vmem:[%s149_s6 + $0x30] sm:$0xff]  ;;  %v952_v17 = vld [vmem:[%s149_s6 + $0x38] sm:$0xff]  ;;  %s1197_s21 = smov 0  }
  0x36   : > { %943 = vst [vmem:[%s1316_s7 + $0x10] sm:$0xff] %v942_v12 }
  0x37   : > { %945 = vst [vmem:[%s1316_s7 + $0x18] sm:$0xff] %v944_v13 }
  0x38   : > { %947 = vst [vmem:[%s1316_s7 + $0x20] sm:$0xff] %v946_v14 }
  0x39   : > { %949 = vst [vmem:[%s1316_s7 + $0x28] sm:$0xff] %v948_v15 }
  0x3a   : > { %951 = vst [vmem:[%s1316_s7 + $0x30] sm:$0xff] %v950_v16 }
  0x3b   : > { %953 = vst [vmem:[%s1316_s7 + $0x38] sm:$0xff] %v952_v17 }
  0x3c   : > { %207 = vst [vmem:[%s1327_s8] sm:$0x1] %v1205_v18 }
  0x3d LB: >> { %s954_s24 = sshll.u32 %s1199_s21, 3  ;;  %s216_s21 = sadd.s32 1, %s1199_s21   ;;  %s1199_s21 = sphi %s1197_s21, %s216_s21  }
  0x3e   : >> { %v220_v19 = vstv %s954_s24  ;;  %s218_s25 = scalar_lea.vmem [#allocation7], %s954_s24  ;;  %p213_p13 = scmp.ge.s32.totalorder %s216_s21, 8  }
  0x3f   : >> { %v221_v20 = vadd.s32 %v220_v19, %v1314_v9  ;;  %s1335_s26 = smov (%p213_p13), 0  }
  0x40   : > { %215 = sbr.rel (!%p213_p13) target bundleno = 61 (0x3d), region = 215 }
  0x41   : >> { %222 = vst [vmem:[%s218_s25] sm:$0xff] %v221_v20 }
  0x45 LB: >> { %v233_v21 = vld [vmem:[%s1316_s7] sm:$0xff]  ;;  %v957_v22 = vld [vmem:[%s1316_s7 + $0x8] sm:$0xff]  ;;  %v1343_v23 = vadd.s32 8, %v1314_v9  ;;  %v1346_v25 = vstv %s1203_s26  ;;  %v958_v27 = vld [vmem:[%s1316_s7 + $0x10] sm:$0xff]  ;;  %v1352_v28 = vadd.s32 16, %v1314_v9  ;;  %v1360_v33 = vadd.s32 24, %v1314_v9  ;;  %s375_s6 = scalar_lea.vmem %s1316_s7, %s1203_s26 [#allocation1]  ;;  %s1203_s26 = sphi %s1335_s26, %s228_s26  }
  0x46   : >> { %v234_v24 = vand.u32 2147483647, %v233_v21  ;;  %v246_v26 = vand.u32 2147483647, %v957_v22  ;;  %vm237_vm0 = vcmp.ge.s32.totalorder %v1314_v9, %v1346_v25  ;;  %v258_v31 = vand.u32 2147483647, %v958_v27 }
  0x47   : >> { %vm249_vm3 = vcmp.ge.s32.totalorder %v1343_v23, %v1346_v25  ;;  %v959_v32 = vld [vmem:[%s1316_s7 + $0x18] sm:$0xff]  ;;  %vm261_vm6 = vcmp.ge.s32.totalorder %v1352_v28, %v1346_v25  ;;  %v960_v37 = vld [vmem:[%s1316_s7 + $0x20] sm:$0xff]  ;;  %v1367_v38 = vadd.s32 32, %v1314_v9  ;;  %vm273_vm9 = vcmp.ge.s32.totalorder %v1360_v33, %v1346_v25  ;;  %v961_v42 = vld [vmem:[%s1316_s7 + $0x28] sm:$0xff]  ;;  %s363_s29 = ssub.s32 128, %s1203_s26  ;;  %s381_s24 = scalar_lea.vmem [#allocation7], %s1203_s26 }
  0x48   : >> { %vm956_vm1 = vcmp.gt.f32.partialorder %v234_v24, -inf  ;;  %v270_v36 = vand.u32 2147483647, %v959_v32  ;;  %v282_v41 = vand.u32 2147483647, %v960_v37  ;;  %v1374_v43 = vadd.s32 40, %v1314_v9 }
  0x49   : >> { %vm241_vm2 = vmand %vm237_vm0, %vm956_vm1  ;;  %vm285_vm12 = vcmp.ge.s32.totalorder %v1367_v38, %v1346_v25  ;;  %v294_v46 = vand.u32 2147483647, %v961_v42  ;;  %v962_v47 = vld [vmem:[%s1316_s7 + $0x30] sm:$0xff]  ;;  %v1381_v48 = vadd.s32 48, %v1314_v9  ;;  %v963_v52 = vld [vmem:[%s1316_s7 + $0x38] sm:$0xff]  ;;  %v1388_v53 = vadd.s32 56, %v1314_v9 }
  0x4a   : >> { %v242_v29 = vsel %vm241_vm2, %v1314_v9, %v1346_v25  ;;  %v243_v30 = vsel %vm241_vm2, %v234_v24, -inf  ;;  %vm297_vm15 = vcmp.ge.s32.totalorder %v1374_v43, %v1346_v25  ;;  %v306_v51 = vand.u32 2147483647, %v962_v47  ;;  %v372_v32 = vld [vmem:[%s1327_s8] ss:$0 sm:$0xff]  ;;  %s228_s26 = sadd.s32 1, %s1203_s26  }
  0x4b   : >> { %vm252_vm4 = vcmp.lt.f32.partialorder %v243_v30, %v246_v26  ;;  %vm309_vm2 = vcmp.ge.s32.totalorder %v1381_v48, %v1346_v25  ;;  %v318_v56 = vand.u32 2147483647, %v963_v52  ;;  %p225_p0 = scmp.ge.s32.totalorder %s228_s26, 64  }
  0x4c   : >> { %vm253_vm5 = vmand %vm249_vm3, %vm252_vm4  ;;  %s747_s28 = sshll.u32 (%p225_p0), %s164_s9, 4  ;;  %s748_s28 = int_to_ptr.vmem [resolvable:$true] %s747_s28 }
  0x4d   : >> { %v254_v34 = vsel %vm253_vm5, %v1343_v23, %v242_v29  ;;  %v255_v35 = vsel %vm253_vm5, %v246_v26, %v243_v30  ;;  %vm321_vm5 = vcmp.ge.s32.totalorder %v1388_v53, %v1346_v25  ;;  %v1399_v30 = vand.u32 127, %v208_v8 }
  0x4e   : >> { %vm264_vm7 = vcmp.lt.f32.partialorder %v255_v35, %v258_v31 }
  0x4f   : >> { %vm265_vm8 = vmand %vm261_vm6, %vm264_vm7 }
  0x50   : >> { %v266_v39 = vsel %vm265_vm8, %v1352_v28, %v254_v34  ;;  %v267_v40 = vsel %vm265_vm8, %v258_v31, %v255_v35  ;;  %v377_v34 = vld [vmem:[%s375_s6] ss:$0 sm:$0xff] }
  0x51   : >> { %vm276_vm10 = vcmp.lt.f32.partialorder %v267_v40, %v270_v36 }
  0x52   : >> { %vm277_vm11 = vmand %vm273_vm9, %vm276_vm10 }
  0x53   : >> { %v278_v44 = vsel %vm277_vm11, %v1360_v33, %v266_v39  ;;  %v279_v45 = vsel %vm277_vm11, %v270_v36, %v267_v40  ;;  %v383_v39 = vld [vmem:[%s381_s24] ss:$0 sm:$0xff] }
  0x54   : >> { %vm288_vm13 = vcmp.lt.f32.partialorder %v279_v45, %v282_v41 }
  0x55   : >> { %vm289_vm14 = vmand %vm285_vm12, %vm288_vm13 }
  0x56   : >> { %v290_v49 = vsel %vm289_vm14, %v1367_v38, %v278_v44  ;;  %v291_v50 = vsel %vm289_vm14, %v282_v41, %v279_v45 }
  0x57   : >> { %vm300_vm0 = vcmp.lt.f32.partialorder %v291_v50, %v294_v46 }
  0x58   : >> { %vm301_vm1 = vmand %vm297_vm15, %vm300_vm0  ;;  %vm1405_vm15 = vcmp.eq.s32.totalorder %v1399_v30, %v1346_v25 }
  0x59   : >> { %v302_v54 = vsel %vm301_vm1, %v1374_v43, %v290_v49  ;;  %v303_v55 = vsel %vm301_vm1, %v294_v46, %v291_v50  ;;  %vm485_vm1 = vcmp.gt.s32.totalorder %v1360_v33, %v1346_v25 }
  0x5a   : >> { %vm312_vm3 = vcmp.lt.f32.partialorder %v303_v55, %v306_v51 }
  0x5b   : >> { %vm313_vm4 = vmand %vm309_vm2, %vm312_vm3  ;;  %vm429_vm2 = vcmp.gt.s32.totalorder %v1343_v23, %v1346_v25  ;;  %vm1793_vm3 = vcmp.gt.s32.totalorder %v1314_v9, %v1346_v25 }
  0x5c   : >> { %v314_v57 = vsel %vm313_vm4, %v1381_v48, %v302_v54  ;;  %v315_v58 = vsel %vm313_vm4, %v306_v51, %v303_v55 }
  0x5d   : >> { %vm324_vm6 = vcmp.lt.f32.partialorder %v315_v58, %v318_v56 }
  0x5e   : >> { %vm325_vm7 = vmand %vm321_vm5, %vm324_vm6  ;;  %vm1792_vm5 = vcmp.gt.s32.totalorder %v1367_v38, %v1346_v25  ;;  %vm1791_vm6 = vcmp.gt.s32.totalorder %v1352_v28, %v1346_v25 }
  0x5f   : >> { %v326_v59 = vsel %vm325_vm7, %v1388_v53, %v314_v57  ;;  %v327_v60 = vsel %vm325_vm7, %v318_v56, %v315_v58  ;;  %vm1790_vm7 = vcmp.gt.s32.totalorder %v1381_v48, %v1346_v25 }
  0x60   : >> { %v328_v61 = vrot.slane %v327_v60, 1  ;;  %v329_v62 = vrot.slane %v326_v59, 1 }
  0x62   : >> { %vm330_vm8 = vcmp.ge.f32.partialorder %v328_v61, %v327_v60  ;;  %v333_v63 = vrot.slane %v328_v61, 1  ;;  %v334_v0 = vrot.slane %v329_v62, 1 }
  0x63   : >> { %v331_v1 = vsel %vm330_vm8, %v328_v61, %v327_v60  ;;  %v332_v2 = vsel %vm330_vm8, %v329_v62, %v326_v59  ;;  %vm1794_vm8 = vcmp.gt.s32.totalorder %v1374_v43, %v1346_v25 }
  0x64   : >> { %vm335_vm9 = vcmp.ge.f32.partialorder %v333_v63, %v331_v1  ;;  %v338_v3 = vrot.slane %v333_v63, 1  ;;  %v339_v4 = vrot.slane %v334_v0, 1 }
  0x65   : >> { %v336_v5 = vsel %vm335_vm9, %v333_v63, %v331_v1  ;;  %v337_v6 = vsel %vm335_vm9, %v334_v0, %v332_v2 }
  0x66   : >> { %vm340_vm10 = vcmp.ge.f32.partialorder %v338_v3, %v336_v5  ;;  %v343_v7 = vrot.slane %v338_v3, 1  ;;  %v344_v10 = vrot.slane %v339_v4, 1 }
  0x67   : >> { %v341_v11 = vsel %vm340_vm10, %v338_v3, %v336_v5  ;;  %v342_v12 = vsel %vm340_vm10, %v339_v4, %v337_v6 }
  0x68   : >> { %vm345_vm11 = vcmp.ge.f32.partialorder %v343_v7, %v341_v11  ;;  %v348_v13 = vrot.slane %v343_v7, 1  ;;  %v349_v14 = vrot.slane %v344_v10, 1 }
  0x69   : >> { %v346_v15 = vsel %vm345_vm11, %v343_v7, %v341_v11  ;;  %v347_v16 = vsel %vm345_vm11, %v344_v10, %v342_v12 }
  0x6a   : >> { %vm350_vm12 = vcmp.ge.f32.partialorder %v348_v13, %v346_v15  ;;  %v353_v17 = vrot.slane %v348_v13, 1  ;;  %v354_v18 = vrot.slane %v349_v14, 1 }
  0x6b   : >> { %v351_v19 = vsel %vm350_vm12, %v348_v13, %v346_v15  ;;  %v352_v20 = vsel %vm350_vm12, %v349_v14, %v347_v16 }
  0x6c   : >> { %vm355_vm13 = vcmp.ge.f32.partialorder %v353_v17, %v351_v19  ;;  %v358_v21 = vrot.slane %v353_v17, 1  ;;  %v359_v22 = vrot.slane %v354_v18, 1 }
  0x6d   : >> { %v356_v24 = vsel %vm355_vm13, %v353_v17, %v351_v19  ;;  %v357_v26 = vsel %vm355_vm13, %v354_v18, %v352_v20 }
  0x6e   : >> { %vm360_vm14 = vcmp.ge.f32.partialorder %v358_v21, %v356_v24 }
  0x6f   : >> { %v362_v27 = vsel %vm360_vm14, %v359_v22, %v357_v26 }
  0x70   : >> { %364 = vrot.lane.b32.xlu0 %v362_v27, %s363_s29  ;;  %s981_s29 = sshll.u32 (%p225_p0), %s1183_s16, 1 }
  0xe2   : >> { %v365_v29 = vpop.permute.xlu0 %364 }
  0xe3   : >> { %987 = vpush %v365_v29 }
 0x114   : >> { %s988_s20 = spop %987 }
 0x115   : >> { %v371_v35 = vstv %s988_s20  ;;  %s376_s21 = scalar_lea.vmem %s1316_s7, %s988_s20 [#allocation1]  ;;  %s382_s25 = scalar_lea.vmem [#allocation7], %s988_s20 }
 0x116   : >> { %v373_v36 = vsel %vm1405_vm15, %v371_v35, %v372_v32  ;;  %v1413_v37 = vld [vmem:[%s376_s21] ss:$0 sm:$0xff]  ;;  %s703_s20 = sadd.s32 (%p225_p0), %s1179_s15, %s981_s29 }
 0x117   : >> { %v384_v40 = vld [vmem:[%s382_s25] ss:$0 sm:$0xff]  ;;  %374 = vst [vmem:[%s1327_s8] sm:$0x1] %v373_v36  ;;  %vm387_vm0 = vcmp.ne.f32.partialorder %v1413_v37, 0.0  ;;  %s740_s8 = sshrl.u32 (%p225_p0), %s1179_s15, 3  ;;  %s982_s10 = sshll.u32 (%p225_p0), %s703_s20, 6 }
 0x118   : >> { %379 = vst [vmem:[%s376_s21] sm:$0x1] %v377_v34  ;;  %vm388_vm4 = vmand %vm1405_vm15, %vm387_vm0  ;;  %s1699_s26 = sadd.s32 (%p225_p0), %s1183_s16, %s740_s8  ;;  %s1714_s8 = scalar_lea.vmem (%p225_p0), %s1787_s1, %s982_s10 }
 0x119   : >> { %385 = vst [vmem:[%s382_s25] sm:$0x1] %v383_v39  ;;  %v1427_v41 = vsel %vm388_vm4, %v1413_v37, 1.0  ;;  %s1836_s15 = sand.u32 (%p225_p0), 1, %s1171_s13   ;;  %s1113_s10 = scalar_lea.hbm (%p225_p0), %s1788_s2, 8 }
 0x11a   : >> { %386 = vst [vmem:[%s381_s24] sm:$0x1] %v384_v40  ;;  %v1435_v42 = vsel %vm485_vm1, %v1427_v41, 1.0  ;;  %v1441_v44 = vsel %vm429_vm2, %v1427_v41, 1.0  ;;  %v1447_v45 = vsel %vm1793_vm3, %v1427_v41, 1.0  ;;  %v1456_v46 = vsel %vm1792_vm5, %v1427_v41, 1.0  ;;  %s694_s16 = scalar_lea.sflag (%p225_p0), [#allocation4], %s1836_s15 }
 0x11b   : >> { %380 = vst [vmem:[%s375_s6] sm:$0x1] %v1413_v37  ;;  %1077 = vrcp.f32 %v1435_v42  ;;  %v496_v47 = vand.u32 2147483647, %v1435_v42  ;;  %v498_v49 = vand.u32 2147483648, %v1435_v42  ;;  %v440_v50 = vand.u32 2147483647, %v1441_v44 }
 0x11c   : >> { %1079 = vrcp.f32 %v1441_v44  ;;  %v442_v51 = vand.u32 2147483648, %v1441_v44  ;;  %vm492_vm9 = vweird.f32 %v1435_v42  ;;  %v412_v52 = vand.u32 2147483647, %v1447_v45  ;;  %s983_s6 = sshll.u32 (%p225_p0), %s1699_s26, 1 }
 0x11d   : >> { %1081 = vrcp.f32 %v1447_v45  ;;  %v1476_v54 = vsel %vm1791_vm6, %v1427_v41, 1.0  ;;  %v1482_v55 = vsel %vm1790_vm7, %v1427_v41, 1.0  ;;  %vm436_vm10 = vweird.f32 %v1441_v44  ;;  %vm1520_vm6 = vmand %vm485_vm1, %vm1405_vm15  ;;  %s745_s25 = scalar_lea.hbm (%p225_p0), %s1788_s2, %s983_s6 }
 0x11e   : >> { %1083 = vrcp.f32 %v1456_v46  ;;  %v414_v57 = vand.u32 2147483648, %v1447_v45  ;;  %v526_v58 = vand.u32 2147483648, %v1456_v46  ;;  %vm1489_vm11 = vcmp.eq.f32.partialorder %v496_v47, 8.507059e+37  ;;  %vm1538_vm1 = vmand %vm429_vm2, %vm1405_vm15  ;;  %s749_s0 = sshll.u32 (%p225_p0), %s745_s25, 4  ;;  %s750_s0 = int_to_ptr.hbm [resolvable:$true] %s749_s0 }
 0x11f   : >> { %1085 = vrcp.f32 %v1476_v54  ;;  %v499_v62 = vor.u32 1.1754944e-38, %v498_v49  ;;  %v524_v63 = vand.u32 2147483647, %v1456_v46  ;;  %vm1496_vm13 = vcmp.eq.f32.partialorder %v440_v50, 8.507059e+37  ;;  %s1107_s29 = sshra.s32 (%p225_p0), %s750_s0, 4  ;;  %s1108_s29 = int_to_ptr.hbm [resolvable:$true] %s1107_s29 }
 0x120   : >> { %v443_v3 = vor.u32 1.1754944e-38, %v442_v51  ;;  %1087 = vrcp.f32 %v1482_v55  ;;  %vm1502_vm14 = vcmp.eq.f32.partialorder %v412_v52, 8.507059e+37  ;;  %v415_v11 = vor.u32 1.1754944e-38, %v414_v57  ;;  %s1109_s20 = scalar_lea.hbm (%p225_p0), %s1108_s29, 2  ;;  %p1114_p5 = scmp.lt.s32.totalorder (%p225_p0), %s1108_s29, %s1788_s2 }
 0x121   : >> { %v1078_v56 = vpop.eup %1077  ;;  %v527_v12 = vor.u32 1.1754944e-38, %v526_v58  ;;  %vm1508_vm7 = vcmp.eq.f32.partialorder %v524_v63, 8.507059e+37  ;;  %v468_v17 = vand.u32 2147483647, %v1476_v54  ;;  %v1529_v21 = vsel %vm1794_vm8, %v1427_v41, 1.0  ;;  %v635_v8 = vld [vmem:[#allocation7 + $0x38] sm:$0xff] (%p225_p0)  ;;  %p1110_p1 = scmp.ne.s32.totalorder (%p225_p0), %s1108_s29, %s1109_s20  ;;  %p1115_p6 = scmp.lt.s32.totalorder (%p225_p0), %s1113_s10, %s1109_s20 }
 0x122   : >> { %v1080_v59 = vpop.eup %1079  ;;  %v488_v60 = vmul.f32 %v1078_v56, %v1435_v42  ;;  %vm493_vm4 = vweird.f32 %v1078_v56  ;;  %v470_v23 = vand.u32 2147483648, %v1476_v54  ;;  %1089 = vrcp.f32 %v1529_v21  ;;  %v968_v40 = vld [vmem:[%s1316_s7 + $0x18] sm:$0xff]  ;;  %v964_v50 = vld [vmem:[%s1316_s7 + $0x8] sm:$0xff]  ;;  %v398_v58 = vld [vmem:[%s1316_s7] sm:$0xff] }
 0x123   : >> { %v1082_v0 = vpop.eup %1081  ;;  %v432_v1 = vmul.f32 %v1080_v59, %v1441_v44  ;;  %vm437_vm5 = vweird.f32 %v1080_v59  ;;  %vm494_vm8 = vmor %vm492_vm9, %vm493_vm4  ;;  %vm576_vm3 = vweird.f32 %v1482_v55  ;;  %vm1818_vm9 = vweird.f32 %v1447_v45  ;;  %p1111_p2 = pnand (%p225_p0), %p1110_p1, %p1279_p4  ;;  %p1116_p8 = por (%p225_p0), %p1115_p6, %p1114_p5 }
 0x124   : >> { %v489_v4 = vsub.f32 1.0, %v488_v60  ;;  %v404_v5 = vmul.f32 %v1082_v0, %v1447_v45  ;;  %v1084_v7 = vpop.eup %1083  ;;  %vm409_vm0 = vweird.f32 %v1082_v0  ;;  %vm438_vm2 = vmor %vm436_vm10, %vm437_vm5  ;;  %vm1819_vm5 = vcmp.gt.s32.totalorder %v1314_v9, %v1346_v25  ;;  %v679_v9 = vld [vmem:[#allocation2] sm:$0x3] (%p225_p0) }
 0x125   : >> { %v433_v10 = vsub.f32 1.0, %v432_v1  ;;  %v516_v15 = vmul.f32 %v1084_v7, %v1456_v46  ;;  %v1513_v18 = vpop.eup %1085  ;;  %vm521_vm12 = vweird.f32 %v1084_v7  ;;  %vm410_vm4 = vmor %vm1818_vm9, %vm409_vm0  ;;  %vm1592_vm0 = vcmp.eq.f32.partialorder %v468_v17, 8.507059e+37  ;;  %v966_v17 = vld [vmem:[%s1316_s7 + $0x10] sm:$0xff]  ;;  %682 = vst [vmem:[%s164_s9] sm:$0x3] (%p225_p0), %v679_v9  ;;  %p1112_p3 = pneg (%p225_p0), %p1111_p2 }
 0x126   : >> { %v490_v13 = vmul.f32 %v1078_v56, %v489_v4  ;;  %v405_v14 = vsub.f32 1.0, %v404_v5  ;;  %v460_v27 = vmul.f32 %v1513_v18, %v1476_v54  ;;  %v1544_v29 = vpop.eup %1087  ;;  %vm1574_vm10 = vmand %vm1819_vm5, %vm1405_vm15  ;;  %v554_v33 = vand.u32 2147483648, %v1529_v21 }
 0x127   : >> { %v434_v20 = vmul.f32 %v1080_v59, %v433_v10  ;;  %v517_v26 = vsub.f32 1.0, %v516_v15  ;;  %v572_v44 = vmul.f32 %v1544_v29, %v1482_v55  ;;  %v582_v15 = vand.u32 2147483648, %v1482_v55  ;;  %p1117_p9 = pnand (%p225_p0), %p1116_p8, %p1112_p3 }
 0x128   : >> { %v491_v22 = vadd.f32 %v1078_v56, %v490_v13  ;;  %v406_v24 = vmul.f32 %v1082_v0, %v405_v14  ;;  %v461_v39 = vsub.f32 1.0, %v460_v27  ;;  %v1090_v2 = vpop.eup %1089  ;;  %v580_v14 = vand.u32 2147483647, %v1482_v55 }
 0x129   : >> { %v435_v32 = vadd.f32 %v1080_v59, %v434_v20  ;;  %v518_v36 = vmul.f32 %v1084_v7, %v517_v26  ;;  %v573_v61 = vsub.f32 1.0, %v572_v44  ;;  %v544_v10 = vmul.f32 %v1090_v2, %v1529_v21 }
 0x12a   : >> { %v495_v34 = vsel %vm494_vm8, %v1078_v56, %v491_v22  ;;  %v407_v35 = vadd.f32 %v1082_v0, %v406_v24  ;;  %vm465_vm8 = vweird.f32 %v1513_v18  ;;  %v462_v60 = vmul.f32 %v1513_v18, %v461_v39 }
 0x12b   : >> { %v500_v42 = vsel %vm1489_vm11, %v499_v62, %v495_v34  ;;  %v439_v47 = vsel %vm438_vm2, %v1080_v59, %v435_v32  ;;  %v519_v56 = vadd.f32 %v1084_v7, %v518_v36  ;;  %vm1822_vm11 = vweird.f32 %v1456_v46  ;;  %v974_v36 = vld [vmem:[%s1316_s7 + $0x30] sm:$0xff] }
 0x12c   : >> { %v1564_v49 = vmul.f32 %v968_v40, %v500_v42  ;;  %v444_v51 = vsel %vm1496_vm13, %v443_v3, %v439_v47  ;;  %v411_v52 = vsel %vm410_vm4, %v1082_v0, %v407_v35  ;;  %vm522_vm13 = vmor %vm1822_vm11, %vm521_vm12  ;;  %v463_v4 = vadd.f32 %v1513_v18, %v462_v60  ;;  %v972_v42 = vld [vmem:[%s1316_s7 + $0x28] sm:$0xff]  ;;  %v976_v60 = vld [vmem:[%s1316_s7 + $0x38] sm:$0xff] }
 0x12d   : >> { %v1578_v57 = vmul.f32 %v964_v50, %v444_v51  ;;  %v416_v59 = vsel %vm1502_vm14, %v415_v11, %v411_v52  ;;  %v523_v0 = vsel %vm522_vm13, %v1084_v7, %v519_v56  ;;  %v574_v5 = vmul.f32 %v1544_v29, %v573_v61  ;;  %v970_v11 = vld [vmem:[%s1316_s7 + $0x20] sm:$0xff] }
 0x12e   : >> { %v503_v62 = vsel %vm1520_vm6, %v1564_v49, 0.0  ;;  %v1590_v63 = vmul.f32 %v416_v59, %v398_v58  ;;  %v528_v3 = vsel %vm1508_vm7, %v527_v12, %v523_v0  ;;  %vm1825_vm6 = vweird.f32 %v1476_v54 }
 0x12f   : >> { %504 = vadd.xlane.f32.xlu2 %v503_v62  ;;  %v447_v46 = vsel %vm1538_vm1, %v1578_v57, 0.0  ;;  %vm466_vm12 = vmor %vm1825_vm6, %vm465_vm8  ;;  %v471_v7 = vor.u32 1.1754944e-38, %v470_v23  ;;  %vm577_vm14 = vweird.f32 %v1544_v29  ;;  %v575_v13 = vadd.f32 %v1544_v29, %v574_v5 }
 0x130   : >> { %448 = vadd.xlane.f32.xlu1 %v447_v46  ;;  %v419_v6 = vsel %vm1574_vm10, %v1590_v63, 0.0  ;;  %v467_v12 = vsel %vm466_vm12, %v1513_v18, %v463_v4  ;;  %v1617_v16 = vmul.f32 %v970_v11, %v528_v3  ;;  %vm1826_vm7 = vcmp.gt.s32.totalorder %v1367_v38, %v1346_v25  ;;  %vm1641_vm9 = vmor %vm576_vm3, %vm577_vm14  ;;  %v631_v38 = vld [vmem:[#allocation7 + $0x28] sm:$0xff] (%p225_p0) }
 0x131   : >> { %420 = vadd.xlane.f32.xlu0 %v419_v6  ;;  %vm1624_vm1 = vmand %vm1826_vm7, %vm1405_vm15  ;;  %v472_v18 = vsel %vm1592_vm0, %v471_v7, %v467_v12  ;;  %v545_v19 = vsub.f32 1.0, %v544_v10  ;;  %vm1829_vm2 = vcmp.gt.s32.totalorder %v1388_v53, %v1346_v25  ;;  %vm1832_vm4 = vcmp.gt.s32.totalorder %v1352_v28, %v1346_v25 }
 0x132   : >> { %v598_v20 = vsel %vm1829_vm2, %v1427_v41, 1.0  ;;  %v1635_v22 = vmul.f32 %v966_v17, %v472_v18  ;;  %vm474_vm8 = vmand %vm1832_vm4, %vm1405_vm15  ;;  %v579_v41 = vsel %vm1641_vm9, %v1544_v29, %v575_v13  ;;  %vm549_vm5 = vweird.f32 %v1090_v2  ;;  %v623_v18 = vld [vmem:[#allocation7 + $0x8] sm:$0xff] (%p225_p0) }
 0x133   : >> { %1091 = vrcp.f32 %v598_v20  ;;  %v546_v24 = vmul.f32 %v1090_v2, %v545_v19  ;;  %v552_v55 = vand.u32 2147483647, %v1529_v21  ;;  %v583_v26 = vor.u32 1.1754944e-38, %v582_v15  ;;  %v625_v19 = vld [vmem:[#allocation7 + $0x10] sm:$0xff] (%p225_p0) }
 0x134   : >> { %v531_v27 = vsel %vm1624_vm1, %v1617_v16, 0.0  ;;  %vm581_vm3 = vcmp.eq.f32.partialorder %v580_v14, 8.507059e+37  ;;  %vm548_vm10 = vweird.f32 %v1529_v21  ;;  %v475_v28 = vsel %vm474_vm8, %v1635_v22, 0.0 }
 0x135   : >> { %v547_v32 = vadd.f32 %v1090_v2, %v546_v24  ;;  %v584_v23 = vsel %vm581_vm3, %v583_v26, %v579_v41  ;;  %vm550_vm11 = vmor %vm548_vm10, %vm549_vm5  ;;  %v555_v29 = vor.u32 1.1754944e-38, %v554_v33  ;;  %vm553_vm13 = vcmp.eq.f32.partialorder %v552_v55, 8.507059e+37  ;;  %v633_v33 = vld [vmem:[#allocation7 + $0x30] sm:$0xff] (%p225_p0) }
 0x136   : >> { %v585_v40 = vmul.f32 %v974_v36, %v584_v23  ;;  %vm1833_vm0 = vcmp.gt.s32.totalorder %v1381_v48, %v1346_v25  ;;  %vm1834_vm12 = vcmp.gt.s32.totalorder %v1374_v43, %v1346_v25  ;;  %v610_v50 = vand.u32 2147483648, %v598_v20 }
 0x137   : >> { %532 = vadd.xlane.f32.xlu2 %v531_v27  ;;  %v551_v34 = vsel %vm550_vm11, %v1090_v2, %v547_v32  ;;  %vm586_vm6 = vmand %vm1833_vm0, %vm1405_vm15  ;;  %v608_v45 = vand.u32 2147483647, %v598_v20  ;;  %vm604_vm1 = vweird.f32 %v598_v20  ;;  %vm1835_vm4 = vcmp.gt.s32.totalorder %v1388_v53, %v1346_v25 }
 0x138   : >> { %476 = vadd.xlane.f32.xlu1 %v475_v28  ;;  %v556_v39 = vsel %vm553_vm13, %v555_v29, %v551_v34  ;;  %vm558_vm14 = vmand %vm1834_vm12, %vm1405_vm15  ;;  %v587_v51 = vsel %vm586_vm6, %v585_v40, 0.0  ;;  %v611_v48 = vor.u32 1.1754944e-38, %v610_v50  ;;  %vm393_vm5 = vcmp.gt.s32.totalorder %v1399_v30, %v1346_v25 }
 0x139   : >> { %v1092_v35 = vpop.eup %1091  ;;  %v557_v21 = vmul.f32 %v972_v42, %v556_v39  ;;  %vm609_vm9 = vcmp.eq.f32.partialorder %v608_v45, 8.507059e+37  ;;  %vm614_vm8 = vmand %vm1835_vm4, %vm1405_vm15  ;;  %v394_v0 = vsel %vm393_vm5, %v1413_v37, 0.0 }
 0x13a   : >> { %v600_v47 = vmul.f32 %v1092_v35, %v598_v20  ;;  %vm605_vm7 = vweird.f32 %v1092_v35  ;;  %v627_v20 = vld [vmem:[#allocation7 + $0x18] sm:$0xff] (%p225_p0) }
 0x13b   : >> { %v559_v56 = vsel %vm558_vm14, %v557_v21, 0.0  ;;  %vm606_vm2 = vmor %vm604_vm1, %vm605_vm7 }
 0x13c   : >> { %v601_v44 = vsub.f32 1.0, %v600_v47 }
 0x13e   : >> { %v602_v52 = vmul.f32 %v1092_v35, %v601_v44 }
 0x13f   : >> { %588 = vadd.xlane.f32.xlu2 %v587_v51 }
 0x140   : >> { %560 = vadd.xlane.f32.xlu1 %v559_v56  ;;  %v603_v58 = vadd.f32 %v1092_v35, %v602_v52 }
 0x142   : >> { %v607_v59 = vsel %vm606_vm2, %v1092_v35, %v603_v58 }
 0x143   : >> { %v612_v43 = vsel %vm609_vm9, %v611_v48, %v607_v59 }
 0x144   : >> { %v613_v61 = vmul.f32 %v976_v60, %v612_v43 }
 0x146   : >> { %v615_v62 = vsel %vm614_vm8, %v613_v61, 0.0 }
 0x148   : >> { %616 = vadd.xlane.f32.xlu1 %v615_v62 }
 0x1a2   : >> { %v505_v1 = vpop.xlane.xlu2 %504 }
 0x1a3   : >> { %v506_v2 = vmul.f32 %v505_v1, %v394_v0  ;;  %v449_v46 = vpop.xlane.xlu1 %448 }
 0x1a4   : >> { %v450_v3 = vmul.f32 %v449_v46, %v394_v0  ;;  %v421_v31 = vpop.xlane.xlu0 %420 }
 0x1a5   : >> { %v507_v4 = vsub.f32 %v1564_v49, %v506_v2  ;;  %v422_v53 = vmul.f32 %v421_v31, %v394_v0 }
 0x1a6   : >> { %v451_v5 = vsub.f32 %v1578_v57, %v450_v3 }
 0x1a7   : >> { %969 = vst [vmem:[%s1316_s7 + $0x18] sm:$0xff] %v507_v4  ;;  %v423_v6 = vsub.f32 %v1590_v63, %v422_v53 }
 0x1a8   : >> { %965 = vst [vmem:[%s1316_s7 + $0x8] sm:$0xff] %v451_v5 }
 0x1a9   : >> { %424 = vst [vmem:[%s1316_s7] sm:$0xff] %v423_v6 }
 0x1aa   : >> { %v533_v25 = vpop.xlane.xlu2 %532 }
 0x1ab   : >> { %v534_v30 = vmul.f32 %v533_v25, %v394_v0  ;;  %v477_v37 = vpop.xlane.xlu1 %476 }
 0x1ac   : >> { %v478_v7 = vmul.f32 %v477_v37, %v394_v0 }
 0x1ad   : >> { %v535_v10 = vsub.f32 %v1617_v16, %v534_v30  ;;  %v621_v16 = vld [vmem:[#allocation7] sm:$0xff] (%p225_p0) }
 0x1ae   : >> { %v479_v11 = vsub.f32 %v1635_v22, %v478_v7  ;;  %644 = vxpose.xlu0.b32.start [1/8] (short) (narrow) (%p225_p0), %v621_v16, 8  ;;  %v629_v22 = vld [vmem:[#allocation7 + $0x20] sm:$0xff] (%p225_p0) }
 0x1af   : >> { %971 = vst [vmem:[%s1316_s7 + $0x20] sm:$0xff] %v535_v10  ;;  %v720_v24 = vld [vmem:[%s1316_s7 + $0x8] sm:$0xff] (%p225_p0)  ;;  %v724_v26 = vld [vmem:[%s1316_s7 + $0x18] sm:$0xff] (%p225_p0) }
 0x1b0   : >> { %967 = vst [vmem:[%s1316_s7 + $0x10] sm:$0xff] %v479_v11  ;;  %v718_v41 = vld [vmem:[%s1316_s7] sm:$0xff] (%p225_p0) }
 0x1b1   : > { %719 = vst [vmem:[%s1714_s8] sm:$0xff] (%p225_p0), %v718_v41 }
 0x1b2   : >> { %v589_v49 = vpop.xlane.xlu2 %588 }
 0x1b3   : >> { %v590_v57 = vmul.f32 %v589_v49, %v394_v0  ;;  %v561_v12 = vpop.xlane.xlu1 %560 }
 0x1b4   : >> { %v562_v13 = vmul.f32 %v561_v12, %v394_v0 }
 0x1b5   : >> { %v591_v63 = vsub.f32 %v585_v40, %v590_v57 }
 0x1b6   : >> { %v563_v14 = vsub.f32 %v557_v21, %v562_v13  ;;  %645 = vxpose.xlu0.b32.cont [2/8] (short) (narrow) (%p225_p0), %v623_v18, 8 }
 0x1b7   : >> { %975 = vst [vmem:[%s1316_s7 + $0x30] sm:$0xff] %v591_v63  ;;  %v722_v55 = vld [vmem:[%s1316_s7 + $0x10] sm:$0xff] (%p225_p0) }
 0x1b8   : >> { %973 = vst [vmem:[%s1316_s7 + $0x28] sm:$0xff] %v563_v14 }
 0x1bb   : >> { %v617_v15 = vpop.xlane.xlu1 %616 }
 0x1bc   : >> { %v618_v54 = vmul.f32 %v617_v15, %v394_v0  ;;  %227 = sbr.rel (!%p225_p0) target bundleno = 69 (0x45), region = 226 }
 0x1be   : >> { %v619_v17 = vsub.f32 %v613_v61, %v618_v54  ;;  %646 = vxpose.xlu0.b32.cont [3/8] (short) (narrow) (%p225_p0), %v625_v19, 8 }
 0x1c0   : >> { %977 = vst [vmem:[%s1316_s7 + $0x38] sm:$0xff] %v619_v17 }
 0x1c6   : > { %647 = vxpose.xlu0.b32.cont [4/8] (short) (narrow) %v627_v20, 8 }
 0x1ce   : > { %648 = vxpose.xlu0.b32.cont [5/8] (short) (narrow) %v629_v22, 8 }
 0x1d6   : > { %649 = vxpose.xlu0.b32.cont [6/8] (short) (narrow) %v631_v38, 8 }
 0x1de   : > { %650 = vxpose.xlu0.b32.cont [7/8] (short) (narrow) %v633_v33, 8 }
 0x1e6   : > { %651 = vxpose.xlu0.b32.end [8/8] (short) (narrow) %v635_v8, 8 }
 0x1e7   : > { %1120 = shalt.err (!%p1117_p9)
}
 0x1e8   : > { %989 = dma.vmem_to_hbm [thread:$0]  (%p1279_p4), %s748_s28, 32, %s750_s0, %s694_s16   ;;  %721 = vst [vmem:[%s1714_s8 + $0x8] sm:$0xff] %v720_v24  ;;  %v726_v27 = vld [vmem:[%s1316_s7 + $0x20] sm:$0xff]  ;;  %v728_v32 = vld [vmem:[%s1316_s7 + $0x28] sm:$0xff]  ;;  %v730_v28 = vld [vmem:[%s1316_s7 + $0x30] sm:$0xff] }
 0x1e9   : > { %723 = vst [vmem:[%s1714_s8 + $0x10] sm:$0xff] %v722_v55  ;;  %v732_v23 = vld [vmem:[%s1316_s7 + $0x38] sm:$0xff]  ;;  %s1837_s24 = scalar_lea.vmem [#allocation6], %s1311_s30  ;;  %s759_s25 = scalar_lea.vmem (%p1279_p4), %s1789_s3, %s983_s6 }
 0x1ea   : > { %725 = vst [vmem:[%s1714_s8 + $0x18] sm:$0xff] %v724_v26  ;;  %s1838_s15 = scalar_lea.vmem (%p1279_p4), [#allocation6], %s1311_s30 }
 0x1eb   : > { %727 = vst [vmem:[%s1714_s8 + $0x20] sm:$0xff] %v726_v27 }
 0x1ec   : > { %729 = vst [vmem:[%s1714_s8 + $0x28] sm:$0xff] %v728_v32 }
 0x1ed   : > { %731 = vst [vmem:[%s1714_s8 + $0x30] sm:$0xff] %v730_v28 }
 0x1ee   : > { %733 = vst [vmem:[%s1714_s8 + $0x38] sm:$0xff] %v732_v23 }
 0x252   : > { %v660_v29 = vpop.trf.xlu0 }
 0x253   : > { %676 = vst [vmem:[%s1332_s11] sm:$0x1] %v660_v29 }
 0x257   : > { %755 = sbr.rel (!%p1279_p4) target bundleno = 612 (0x264), region = 80 }
 0x25a   : > { %v685_v34 = vld [vmem:[#allocation5] sm:$0x3] }
 0x25b   : > { %688 = vst [vmem:[%s1837_s24] sm:$0x3] %v685_v34 }
 0x262   : > { %v776_v35 = vld [vmem:[%s1838_s15] sm:$0x3] }
 0x263   : > { %777 = vst [vmem:[%s759_s25] sm:$0x3] %v776_v35 }
 0x264 PF: > { %p995_p10 = scmp.ge.s32.totalorder %s1195_s19, 2  ;;  %s805_s7 = sand.u32 1, %s1167_s12  }
 0x265   : > { %s806_s27 = scalar_lea.sflag [#allocation4], %s805_s7 }
 0x266   : > { %p992_p11 = pnand %p995_p10, %p1290_p7 }
 0x268   : > { %p993_p4 = pneg %p992_p11 }
 0x26a   : > { %1162 = dma.done.wait (%p993_p4), %s806_s27, 32  }
 0x26b   : > { %1164 = vsyncadd (%p993_p4), %s806_s27, 4294967264  ;;  %s13_s19 = sadd.s32 1, %s1195_s19   ;;  %s1839_s30 = sld [smem:[#allocation9_spill]] }
 0x26c   : > { %p10_p12 = scmp.ge.s32.totalorder %s13_s19, 10   ;;  %s1840_s11 = sld [smem:[#allocation10_spill]] }
 0x26d   : > { %s1841_s12 = smov %s1171_s13  ;;  %s1842_s13 = smov %s1175_s14 }
 0x26e   : > { %s1843_s14 = smov %s1295_s5  ;;  %s1844_s15 = smov %s1187_s17 }
 0x26f   : > { %s1845_s16 = smov %s1191_s18  ;;  %12 = sbr.rel (!%p10_p12) target bundleno = 7 (0x7), region = 237 }
 0x271   : > { %s1846_s17 = smov %s1839_s30 }
 0x272   : > { %s1847_s18 = smov %s1840_s11 }
 0x274   :  { %819 = vsyncpa [#allocation4], 1 }
 0x275   :  { %821 = vsyncpa [#allocation4 + $0x1], 1 }

// kernel: custom-call.13
= control target key start
LH: loop header
LB: loop body
LE: loop exit
PB: predicated region body
PF: predicated region fallthrough
CT: control target
= control target key end

     0   :  { %s2405_s6 = smov 0   ;;  %s2407_s7 = smov 0   ;;  %s3229_s0 = inlined_call_operand.vmem [shape: f32[4,2,1,64,64], index: 0, kind: input, shape index: {}]   ;;  %s3230_s1 = inlined_call_operand.vmem [shape: f32[4,2,1,64,64], index: 1, kind: output, shape index: {}]  }
   0x1   :  { %s2409_s8 = smov 0   ;;  %s2411_s9 = smov 0  }
   0x2   :  { %s2413_s10 = smov 0  }
   0x3 LB: > { %s2265_s11 = sadd.s32 4294967295, %s2391_s10   ;;  %s36_s12 = sadd.s32 1, %s2383_s8  ;;  %s2391_s10 = sphi %s2413_s10, %s7_s10   ;;  %s2387_s9 = sphi %s2411_s9, %s3234_s9   ;;  %s2383_s8 = sphi %s2409_s8, %s3233_s8   ;;  %s2379_s7 = sphi %s2407_s7, %s3232_s7   ;;  %s2375_s6 = sphi %s2405_s6, %s3231_s6  }
   0x4   : > { %p38_p0 = scmp.ge.s32.totalorder %s36_s12, 2  ;;  %s40_s13 = sadd.s32 1, %s2387_s9 }
   0x5   : > { %p2267_p2 = scmp.ge.s32.totalorder %s2391_s10, 8 }
   0x6   : > { %s3236_s12 = smov (%p38_p0, %s36_s12), 0  ;;  %s3238_s13 = smov (!%p38_p0, %s40_s13), %s2387_s9 }
   0x7   : > { %p42_p1 = scmp.ge.s32.totalorder %s3238_s13, 4  ;;  %54 = sbr.rel (%p2267_p2) target bundleno = 23 (0x17), region = 16 }
   0x8   : > { %s56_s14 = sand.u32 (!%p2267_p2), 1, %s2391_s10   ;;  %s2269_s15 = sshll.u32 (!%p2267_p2), %s2383_s8, 3 }
   0x9   : > { %s3240_s13 = smov (%p42_p1, %s3238_s13), 0  ;;  %s2268_s16 = sshll.u32 (!%p2267_p2), %s56_s14, 6 }
   0xa   : > { %s2270_s17 = sshll.u32 (!%p2267_p2), %s2387_s9, 4  ;;  %s58_s23 = scalar_lea.vmem (!%p2267_p2), [#allocation0], %s2268_s16 }
   0xb   : > { %s65_s18 = sadd.s32 (!%p2267_p2), %s2270_s17, %s2269_s15 }
   0xc   : > { %s2271_s19 = sshll.u32 %s65_s18, 3 }
   0xd   : > { %s67_s22 = scalar_lea.vmem %s3229_s0, %s2271_s19 }
   0xe   : > { %v110_v0 = vld [vmem:[%s67_s22] sm:$0xff]  ;;  %v112_v1 = vld [vmem:[%s67_s22 + $0x8] sm:$0xff]  ;;  %v114_v2 = vld [vmem:[%s67_s22 + $0x10] sm:$0xff] }
   0xf   : > { %111 = vst [vmem:[%s58_s23] sm:$0xff] %v110_v0  ;;  %v116_v3 = vld [vmem:[%s67_s22 + $0x18] sm:$0xff]  ;;  %v118_v4 = vld [vmem:[%s67_s22 + $0x20] sm:$0xff]  ;;  %v120_v5 = vld [vmem:[%s67_s22 + $0x28] sm:$0xff] }
  0x10   : > { %113 = vst [vmem:[%s58_s23 + $0x8] sm:$0xff] %v112_v1  ;;  %v122_v6 = vld [vmem:[%s67_s22 + $0x30] sm:$0xff]  ;;  %v124_v7 = vld [vmem:[%s67_s22 + $0x38] sm:$0xff] }
  0x11   : > { %115 = vst [vmem:[%s58_s23 + $0x10] sm:$0xff] %v114_v2 }
  0x12   : > { %117 = vst [vmem:[%s58_s23 + $0x18] sm:$0xff] %v116_v3 }
  0x13   : > { %119 = vst [vmem:[%s58_s23 + $0x20] sm:$0xff] %v118_v4 }
  0x14   : > { %121 = vst [vmem:[%s58_s23 + $0x28] sm:$0xff] %v120_v5 }
  0x15   : > { %123 = vst [vmem:[%s58_s23 + $0x30] sm:$0xff] %v122_v6 }
  0x16   : > { %125 = vst [vmem:[%s58_s23 + $0x38] sm:$0xff] %v124_v7 }
  0x17 PF: > { %p2272_p3 = scmp.ge.s32.totalorder %s2391_s10, 1  ;;  %p130_p4 = scmp.lt.s32.totalorder %s2391_s10, 9 }
  0x19   : > { %p131_p5 = pnand %p2272_p3, %p130_p4 }
  0x1b   : > { %134 = sbr.rel (%p131_p5) target bundleno = 7708 (0x1e1c), region = 54 }
  0x20   : > { %s137_s24 = sand.u32 1, %s2265_s11   ;;  %v148_v8 = vlaneseq  ;;  %v2393_v26 = vmov -1.0   ;;  %v2394_v5 = vmov 0.0   ;;  %s2290_s27 = sshll.u32 %s2375_s6, 3 }
  0x21   : > { %s2273_s25 = sshll.u32 %s137_s24, 6  ;;  %s2291_s28 = sshll.u32 %s2379_s7, 4 }
  0x22   : > { %v2449_v9 = vand.u32 127, %v148_v8  ;;  %v2451_v10 = vshrl.u32 %v148_v8, 7  ;;  %s2453_s26 = scalar_lea.vmem [#allocation0], %s2273_s25  ;;  %s2128_s29 = sadd.s32 %s2291_s28, %s2290_s27 }
  0x23   : > { %v155_v11 = vld [vmem:[%s2453_s26] sm:$0xff]  ;;  %v2275_v48 = vld [vmem:[%s2453_s26 + $0x8] sm:$0xff]  ;;  %s2292_s30 = sshll.u32 %s2128_s29, 3 }
  0x24   : > { %vm154_vm0 = vcmp.eq.s32.totalorder %v2451_v10, %v2449_v9  ;;  %vm150_vm1 = vcmp.lt.s32.totalorder %v2449_v9, 64  ;;  %vm159_vm2 = vcmp.ge.s32.totalorder %v2451_v10, %v2449_v9  ;;  %vm389_vm8 = vcmp.eq.s32.totalorder %v2449_v9, 0  ;;  %s3170_s4 = scalar_lea.vmem %s3230_s1, %s2292_s30 }
  0x25   : > { %v156_v12 = vsel %vm154_vm0, %v155_v11, 0.0  ;;  %vm160_vm3 = vmand %vm159_vm2, %vm150_vm1  ;;  %vm386_vm9 = vcmp.eq.s32.totalorder %v2449_v9, %v2451_v10  ;;  %v390_v27 = vsel %vm389_vm8, 1.0, %v2393_v26  ;;  %vm446_vm10 = vcmp.eq.s32.totalorder %v2449_v9, 1 }
  0x26   : > { %157 = vadd.xlane.f32.xlu0 %v156_v12  ;;  %v161_v21 = vsel %vm160_vm3, %v155_v11, 0.0  ;;  %v391_v28 = vsel %vm386_vm9, %v390_v27, 0.0  ;;  %vm456_vm11 = vcmp.eq.s32.totalorder %v2449_v9, 2  ;;  %vm466_vm12 = vcmp.eq.s32.totalorder %v2449_v9, 3 }
  0x27   : > { %v182_v47 = vadd.s32 8, %v2451_v10  ;;  %vm476_vm14 = vcmp.eq.s32.totalorder %v2449_v9, 4  ;;  %vm486_vm8 = vcmp.eq.s32.totalorder %v2449_v9, 5  ;;  %vm496_vm9 = vcmp.eq.s32.totalorder %v2449_v9, 6 }
  0x29   : > { %vm183_vm13 = vcmp.eq.s32.totalorder %v182_v47, %v2449_v9  ;;  %vm188_vm15 = vcmp.ge.s32.totalorder %v182_v47, %v2449_v9 }
  0x2a   : > { %v185_v49 = vsel %vm183_vm13, %v2275_v48, 0.0  ;;  %vm189_vm3 = vmand %vm188_vm15, %vm150_vm1  ;;  %vm544_vm13 = vcmp.eq.s32.totalorder %v2449_v9, 10  ;;  %vm572_vm15 = vcmp.eq.s32.totalorder %v2449_v9, 12 }
  0x2b   : > { %v190_v0 = vsel %vm189_vm3, %v2275_v48, 0.0  ;;  %vm586_vm3 = vcmp.eq.s32.totalorder %v2449_v9, 13 }
  0x99   : > { %v2458_v13 = vpop.xlane.xlu0 %157 }
  0x9a   : > { %2337 = vrcp.f32 %v2458_v13  ;;  %v173_v17 = vand.u32 2147483648, %v2458_v13  ;;  %v171_v19 = vand.u32 2147483647, %v2458_v13  ;;  %vm167_vm5 = vweird.f32 %v2458_v13 }
  0x9c   : > { %v174_v22 = vor.u32 1.1754944e-38, %v173_v17  ;;  %vm172_vm7 = vcmp.eq.f32.partialorder %v171_v19, 8.507059e+37 }
  0xa0   : > { %v2338_v14 = vpop.eup %2337 }
  0xa1   : > { %v163_v15 = vmul.f32 %v2338_v14, %v2458_v13  ;;  %vm168_vm4 = vweird.f32 %v2338_v14 }
  0xa2   : > { %vm169_vm6 = vmor %vm167_vm5, %vm168_vm4 }
  0xa3   : > { %v164_v16 = vsub.f32 1.0, %v163_v15 }
  0xa5   : > { %v165_v18 = vmul.f32 %v2338_v14, %v164_v16 }
  0xa7   : > { %v166_v20 = vadd.f32 %v2338_v14, %v165_v18 }
  0xa9   : > { %v170_v23 = vsel %vm169_vm6, %v2338_v14, %v166_v20 }
  0xaa   : > { %v2472_v24 = vsel %vm172_vm7, %v174_v22, %v170_v23  ;;  %vm397_vm7 = vcmp.eq.s32.totalorder %v2449_v9, %v182_v47 }
  0xab   : > { %v176_v25 = vmul.f32 %v2472_v24, %v161_v21  ;;  %v398_v6 = vsel %vm397_vm7, -1.0, %v2394_v5 }
  0xad   : > { %177 = vst [vmem:[#allocation2] sm:$0xff] %v176_v25 }
  0xb4   : > { %v442_v29 = vld [vmem:[#allocation2 + $0x1] ss:$0 sm:$0xff]  ;;  %v452_v32 = vld [vmem:[#allocation2 + $0x2] ss:$0 sm:$0xff]  ;;  %v462_v37 = vld [vmem:[#allocation2 + $0x3] ss:$0 sm:$0xff] }
  0xb5   : > { %v443_v30 = vxor.u32 2147483648, %v442_v29  ;;  %v453_v34 = vxor.u32 2147483648, %v452_v32  ;;  %v463_v39 = vxor.u32 2147483648, %v462_v37  ;;  %v472_v42 = vld [vmem:[#allocation2 + $0x4] ss:$0 sm:$0xff] }
  0xb6   : > { %v473_v44 = vxor.u32 2147483648, %v472_v42  ;;  %v482_v50 = vld [vmem:[#allocation2 + $0x5] ss:$0 sm:$0xff]  ;;  %v492_v4 = vld [vmem:[#allocation2 + $0x6] ss:$0 sm:$0xff] }
  0xb7   : > { %v447_v31 = vmul.f32 %v443_v30, %v391_v28  ;;  %v483_v52 = vxor.u32 2147483648, %v482_v50  ;;  %v493_v11 = vxor.u32 2147483648, %v492_v4  ;;  %v502_v17 = vld [vmem:[#allocation2 + $0x7] ss:$0 sm:$0xff] }
  0xb8   : > { %v503_v19 = vxor.u32 2147483648, %v502_v17 }
  0xb9   : > { %448 = vadd.xlane.f32.xlu0 %v447_v31 }
 0x12c   : > { %v449_v33 = vpop.xlane.xlu0 %448 }
 0x12d   : > { %v450_v35 = vsel %vm446_vm10, %v449_v33, %v391_v28  ;;  %vm506_vm10 = vcmp.eq.s32.totalorder %v2449_v9, 7 }
 0x12e   : > { %v457_v36 = vmul.f32 %v453_v34, %v450_v35 }
 0x130   : > { %458 = vadd.xlane.f32.xlu1 %v457_v36 }
 0x1a3   : > { %v459_v38 = vpop.xlane.xlu1 %458 }
 0x1a4   : > { %v460_v40 = vsel %vm456_vm11, %v459_v38, %v450_v35  ;;  %vm516_vm11 = vcmp.eq.s32.totalorder %v2449_v9, 8 }
 0x1a5   : > { %v467_v41 = vmul.f32 %v463_v39, %v460_v40 }
 0x1a7   : > { %468 = vadd.xlane.f32.xlu1 %v467_v41 }
 0x1af   : > { %186 = vadd.xlane.f32.xlu1 %v185_v49 }
 0x21a   : > { %v469_v43 = vpop.xlane.xlu1 %468 }
 0x21b   : > { %v470_v45 = vsel %vm466_vm12, %v469_v43, %v460_v40  ;;  %vm530_vm12 = vcmp.eq.s32.totalorder %v2449_v9, 9 }
 0x21c   : > { %v477_v46 = vmul.f32 %v473_v44, %v470_v45 }
 0x21e   : > { %478 = vadd.xlane.f32.xlu2 %v477_v46 }
 0x222   : > { %v2485_v55 = vpop.xlane.xlu1 %186 }
 0x223   : > { %2339 = vrcp.f32 %v2485_v55  ;;  %v202_v58 = vand.u32 2147483648, %v2485_v55  ;;  %vm196_vm0 = vweird.f32 %v2485_v55  ;;  %v200_v60 = vand.u32 2147483647, %v2485_v55 }
 0x225   : > { %v203_v62 = vor.u32 1.1754944e-38, %v202_v58  ;;  %vm201_vm6 = vcmp.eq.f32.partialorder %v200_v60, 8.507059e+37 }
 0x229   : > { %v2340_v56 = vpop.eup %2339 }
 0x22a   : > { %v192_v57 = vmul.f32 %v2340_v56, %v2485_v55  ;;  %vm197_vm2 = vweird.f32 %v2340_v56 }
 0x22b   : > { %vm198_vm4 = vmor %vm196_vm0, %vm197_vm2 }
 0x22c   : > { %v193_v59 = vsub.f32 1.0, %v192_v57 }
 0x22e   : > { %v194_v61 = vmul.f32 %v2340_v56, %v193_v59 }
 0x230   : > { %v195_v63 = vadd.f32 %v2340_v56, %v194_v61 }
 0x232   : > { %v199_v1 = vsel %vm198_vm4, %v2340_v56, %v195_v63 }
 0x233   : > { %v2497_v2 = vsel %vm201_vm6, %v203_v62, %v199_v1  ;;  %v2276_v1 = vld [vmem:[%s2453_s26 + $0x10] sm:$0xff] }
 0x234   : > { %v205_v3 = vmul.f32 %v2497_v2, %v190_v0  ;;  %v211_v0 = vadd.s32 16, %v2451_v10 }
 0x236   : > { %206 = vst [vmem:[#allocation2 + $0x8] sm:$0xff] %v205_v3  ;;  %vm212_vm2 = vcmp.eq.s32.totalorder %v211_v0, %v2449_v9  ;;  %vm217_vm4 = vcmp.ge.s32.totalorder %v211_v0, %v2449_v9 }
 0x237   : > { %v214_v3 = vsel %vm212_vm2, %v2276_v1, 0.0  ;;  %vm664_vm2 = vcmp.eq.s32.totalorder %v2449_v9, 18 }
 0x23d   : > { %v512_v7 = vld [vmem:[#allocation2 + $0x8] ss:$0 sm:$0xff]  ;;  %v526_v26 = vld [vmem:[#allocation2 + $0x9] ss:$0 sm:$0xff]  ;;  %v540_v34 = vld [vmem:[#allocation2 + $0xa] ss:$0 sm:$0xff] }
 0x23e   : > { %v513_v12 = vxor.u32 2147483648, %v512_v7  ;;  %v527_v28 = vxor.u32 2147483648, %v526_v26  ;;  %v541_v36 = vxor.u32 2147483648, %v540_v34  ;;  %v554_v42 = vld [vmem:[#allocation2 + $0xb] ss:$0 sm:$0xff] }
 0x23f   : > { %v555_v44 = vxor.u32 2147483648, %v554_v42  ;;  %v568_v50 = vld [vmem:[#allocation2 + $0xc] ss:$0 sm:$0xff]  ;;  %v582_v59 = vld [vmem:[#allocation2 + $0xd] ss:$0 sm:$0xff] }
 0x240   : > { %v521_v16 = vmul.f32 %v513_v12, %v398_v6  ;;  %v583_v61 = vxor.u32 2147483648, %v582_v59 }
 0x242   : > { %522 = vadd.xlane.f32.xlu1 %v521_v16 }
 0x291   : > { %v479_v51 = vpop.xlane.xlu2 %478 }
 0x292   : > { %v480_v53 = vsel %vm476_vm14, %v479_v51, %v470_v45  ;;  %vm558_vm14 = vcmp.eq.s32.totalorder %v2449_v9, 11 }
 0x293   : > { %v487_v54 = vmul.f32 %v483_v52, %v480_v53  ;;  %v569_v52 = vxor.u32 2147483648, %v568_v50 }
 0x295   : > { %488 = vadd.xlane.f32.xlu2 %v487_v54 }
 0x2b5   : > { %v523_v27 = vpop.xlane.xlu1 %522 }
 0x2b6   : > { %v524_v29 = vsel %vm516_vm11, %v523_v27, %v398_v6 }
 0x2b7   : > { %v535_v30 = vmul.f32 %v527_v28, %v524_v29 }
 0x308   : > { %v489_v8 = vpop.xlane.xlu2 %488 }
 0x309   : > { %v490_v14 = vsel %vm486_vm8, %v489_v8, %v480_v53  ;;  %v596_v8 = vld [vmem:[#allocation2 + $0xe] ss:$0 sm:$0xff]  ;;  %vm218_vm8 = vmand %vm217_vm4, %vm150_vm1  ;;  %vm700_vm4 = vcmp.eq.s32.totalorder %v2449_v9, 20 }
 0x30a   : > { %v497_v15 = vmul.f32 %v493_v11, %v490_v14  ;;  %v219_v26 = vsel %vm218_vm8, %v2276_v1, 0.0 }
 0x30c   : > { %498 = vadd.xlane.f32.xlu0 %v497_v15 }
 0x37f   : > { %v499_v18 = vpop.xlane.xlu0 %498 }
 0x380   : > { %v500_v20 = vsel %vm496_vm9, %v499_v18, %v490_v14 }
 0x381   : > { %v507_v21 = vmul.f32 %v503_v19, %v500_v20 }
 0x383   : > { %508 = vadd.xlane.f32.xlu2 %v507_v21 }
 0x3f6   : > { %v509_v22 = vpop.xlane.xlu2 %508 }
 0x3f7   : > { %v510_v23 = vsel %vm506_vm10, %v509_v22, %v500_v20 }
 0x3f8   : > { %v517_v25 = vmul.f32 %v513_v12, %v510_v23  ;;  %v597_v12 = vxor.u32 2147483648, %v596_v8 }
 0x3fa   : > { %518 = vadd.xlane.f32.xlu0 %v517_v25 }
 0x402   : > { %536 = vadd.xlane.f32.xlu0 %v535_v30 }
 0x46d   : > { %v519_v31 = vpop.xlane.xlu0 %518 }
 0x46e   : > { %v520_v32 = vsel %vm516_vm11, %v519_v31, %v510_v23  ;;  %vm600_vm11 = vcmp.eq.s32.totalorder %v2449_v9, 14 }
 0x46f   : > { %v531_v33 = vmul.f32 %v527_v28, %v520_v32 }
 0x471   : > { %532 = vadd.xlane.f32.xlu2 %v531_v33  ;;  %v610_v33 = vld [vmem:[#allocation2 + $0xf] ss:$0 sm:$0xff] }
 0x475   : > { %v537_v35 = vpop.xlane.xlu0 %536 }
 0x476   : > { %v538_v37 = vsel %vm530_vm12, %v537_v35, %v524_v29  ;;  %v611_v35 = vxor.u32 2147483648, %v610_v33 }
 0x477   : > { %v549_v38 = vmul.f32 %v541_v36, %v538_v37 }
 0x479   : > { %550 = vadd.xlane.f32.xlu2 %v549_v38 }
 0x4e4   : > { %v533_v39 = vpop.xlane.xlu2 %532 }
 0x4e5   : > { %v534_v40 = vsel %vm530_vm12, %v533_v39, %v520_v32  ;;  %vm404_vm12 = vcmp.eq.s32.totalorder %v2449_v9, %v211_v0 }
 0x4e6   : > { %v545_v41 = vmul.f32 %v541_v36, %v534_v40 }
 0x4e8   : > { %546 = vadd.xlane.f32.xlu1 %v545_v41 }
 0x4ec   : > { %v551_v43 = vpop.xlane.xlu2 %550 }
 0x4ed   : > { %v552_v45 = vsel %vm544_vm13, %v551_v43, %v538_v37 }
 0x4ee   : > { %v563_v46 = vmul.f32 %v555_v44, %v552_v45 }
 0x4f0   : > { %564 = vadd.xlane.f32.xlu1 %v563_v46 }
 0x55b   : > { %v547_v47 = vpop.xlane.xlu1 %546 }
 0x55c   : > { %v548_v48 = vsel %vm544_vm13, %v547_v47, %v534_v40  ;;  %v405_v40 = vsel %vm404_vm12, -1.0, %v2394_v5  ;;  %vm614_vm13 = vcmp.eq.s32.totalorder %v2449_v9, 15 }
 0x55d   : > { %v559_v49 = vmul.f32 %v555_v44, %v548_v48 }
 0x55f   : > { %560 = vadd.xlane.f32.xlu0 %v559_v49 }
 0x563   : > { %v565_v51 = vpop.xlane.xlu1 %564 }
 0x564   : > { %v566_v53 = vsel %vm558_vm14, %v565_v51, %v552_v45 }
 0x565   : > { %v577_v54 = vmul.f32 %v569_v52, %v566_v53 }
 0x567   : > { %578 = vadd.xlane.f32.xlu0 %v577_v54 }
 0x5d2   : > { %v561_v56 = vpop.xlane.xlu0 %560 }
 0x5d3   : > { %v562_v57 = vsel %vm558_vm14, %v561_v56, %v548_v48  ;;  %vm628_vm14 = vcmp.eq.s32.totalorder %v2449_v9, 16 }
 0x5d4   : > { %v573_v58 = vmul.f32 %v569_v52, %v562_v57 }
 0x5d6   : > { %574 = vadd.xlane.f32.xlu2 %v573_v58 }
 0x5da   : > { %v579_v60 = vpop.xlane.xlu0 %578 }
 0x5db   : > { %v580_v62 = vsel %vm572_vm15, %v579_v60, %v566_v53 }
 0x5dc   : > { %v591_v63 = vmul.f32 %v583_v61, %v580_v62 }
 0x5de   : > { %592 = vadd.xlane.f32.xlu2 %v591_v63 }
 0x5e6   : > { %215 = vadd.xlane.f32.xlu2 %v214_v3 }
 0x649   : > { %v575_v4 = vpop.xlane.xlu2 %574 }
 0x64a   : > { %v576_v6 = vsel %vm572_vm15, %v575_v4, %v562_v57  ;;  %vm646_vm15 = vcmp.eq.s32.totalorder %v2449_v9, 17 }
 0x64b   : > { %v587_v7 = vmul.f32 %v583_v61, %v576_v6 }
 0x64d   : > { %588 = vadd.xlane.f32.xlu1 %v587_v7 }
 0x651   : > { %v593_v11 = vpop.xlane.xlu2 %592 }
 0x652   : > { %v594_v14 = vsel %vm586_vm3, %v593_v11, %v580_v62 }
 0x653   : > { %v605_v15 = vmul.f32 %v597_v12, %v594_v14 }
 0x655   : > { %606 = vadd.xlane.f32.xlu1 %v605_v15 }
 0x659   : > { %v2516_v16 = vpop.xlane.xlu2 %215 }
 0x65a   : > { %2341 = vrcp.f32 %v2516_v16  ;;  %v231_v19 = vand.u32 2147483648, %v2516_v16  ;;  %vm225_vm6 = vweird.f32 %v2516_v16  ;;  %v229_v21 = vand.u32 2147483647, %v2516_v16 }
 0x65c   : > { %v232_v23 = vor.u32 1.1754944e-38, %v231_v19  ;;  %vm230_vm10 = vcmp.eq.f32.partialorder %v229_v21, 8.507059e+37 }
 0x660   : > { %v2342_v17 = vpop.eup %2341 }
 0x661   : > { %v221_v18 = vmul.f32 %v2342_v17, %v2516_v16  ;;  %vm226_vm7 = vweird.f32 %v2342_v17 }
 0x662   : > { %vm227_vm9 = vmor %vm225_vm6, %vm226_vm7  ;;  %vm718_vm7 = vcmp.eq.s32.totalorder %v2449_v9, 21 }
 0x663   : > { %v222_v20 = vsub.f32 1.0, %v221_v18 }
 0x665   : > { %v223_v22 = vmul.f32 %v2342_v17, %v222_v20 }
 0x667   : > { %v224_v25 = vadd.f32 %v2342_v17, %v223_v22 }
 0x669   : > { %v228_v27 = vsel %vm227_vm9, %v2342_v17, %v224_v25  ;;  %vm736_vm9 = vcmp.eq.s32.totalorder %v2449_v9, 22 }
 0x66a   : > { %v2528_v28 = vsel %vm230_vm10, %v232_v23, %v228_v27 }
 0x66b   : > { %v234_v29 = vmul.f32 %v2528_v28, %v219_v26 }
 0x66d   : > { %235 = vst [vmem:[#allocation2 + $0x10] sm:$0xff] %v234_v29 }
 0x674   : > { %v624_v37 = vld [vmem:[#allocation2 + $0x10] ss:$0 sm:$0xff]  ;;  %v642_v48 = vld [vmem:[#allocation2 + $0x11] ss:$0 sm:$0xff]  ;;  %v660_v60 = vld [vmem:[#allocation2 + $0x12] ss:$0 sm:$0xff] }
 0x675   : > { %v625_v39 = vxor.u32 2147483648, %v624_v37  ;;  %v643_v49 = vxor.u32 2147483648, %v642_v48  ;;  %v661_v62 = vxor.u32 2147483648, %v660_v60  ;;  %v678_v11 = vld [vmem:[#allocation2 + $0x13] ss:$0 sm:$0xff] }
 0x676   : > { %v696_v25 = vld [vmem:[#allocation2 + $0x14] ss:$0 sm:$0xff]  ;;  %v714_v37 = vld [vmem:[#allocation2 + $0x15] ss:$0 sm:$0xff]  ;;  %v732_v48 = vld [vmem:[#allocation2 + $0x16] ss:$0 sm:$0xff] }
 0x677   : > { %v637_v41 = vmul.f32 %v625_v39, %v405_v40  ;;  %v697_v27 = vxor.u32 2147483648, %v696_v25 }
 0x6c0   : > { %v589_v30 = vpop.xlane.xlu1 %588 }
 0x6c1   : > { %v590_v31 = vsel %vm586_vm3, %v589_v30, %v576_v6  ;;  %vm682_vm3 = vcmp.eq.s32.totalorder %v2449_v9, 19 }
 0x6c2   : > { %v601_v32 = vmul.f32 %v597_v12, %v590_v31 }
 0x6c4   : > { %602 = vadd.xlane.f32.xlu0 %v601_v32 }
 0x6c8   : > { %v607_v34 = vpop.xlane.xlu1 %606 }
 0x6c9   : > { %v608_v36 = vsel %vm600_vm11, %v607_v34, %v594_v14  ;;  %v679_v14 = vxor.u32 2147483648, %v678_v11 }
 0x6ca   : > { %v619_v38 = vmul.f32 %v611_v35, %v608_v36 }
 0x6cc   : > { %620 = vadd.xlane.f32.xlu1 %v619_v38 }
 0x6d4   : > { %638 = vadd.xlane.f32.xlu1 %v637_v41 }
 0x737   : > { %v603_v42 = vpop.xlane.xlu0 %602 }
 0x738   : > { %v604_v43 = vsel %vm600_vm11, %v603_v42, %v590_v31 }
 0x739   : > { %v615_v44 = vmul.f32 %v611_v35, %v604_v43 }
 0x73b   : > { %616 = vadd.xlane.f32.xlu0 %v615_v44 }
 0x73f   : > { %v621_v45 = vpop.xlane.xlu1 %620 }
 0x740   : > { %v622_v46 = vsel %vm614_vm13, %v621_v45, %v608_v36 }
 0x741   : > { %v633_v47 = vmul.f32 %v625_v39, %v622_v46 }
 0x743   : > { %634 = vadd.xlane.f32.xlu0 %v633_v47 }
 0x747   : > { %v639_v50 = vpop.xlane.xlu1 %638 }
 0x748   : > { %v640_v51 = vsel %vm628_vm14, %v639_v50, %v405_v40  ;;  %v733_v50 = vxor.u32 2147483648, %v732_v48 }
 0x749   : > { %v655_v52 = vmul.f32 %v643_v49, %v640_v51 }
 0x74b   : > { %656 = vadd.xlane.f32.xlu1 %v655_v52 }
 0x7ae   : > { %v617_v53 = vpop.xlane.xlu0 %616 }
 0x7af   : > { %v618_v54 = vsel %vm614_vm13, %v617_v53, %v604_v43 }
 0x7b0   : > { %v629_v56 = vmul.f32 %v625_v39, %v618_v54  ;;  %v715_v39 = vxor.u32 2147483648, %v714_v37 }
 0x7b2   : > { %630 = vadd.xlane.f32.xlu2 %v629_v56 }
 0x7b6   : > { %v635_v57 = vpop.xlane.xlu0 %634 }
 0x7b7   : > { %v636_v58 = vsel %vm628_vm14, %v635_v57, %v622_v46 }
 0x7b8   : > { %v651_v59 = vmul.f32 %v643_v49, %v636_v58 }
 0x7ba   : > { %652 = vadd.xlane.f32.xlu0 %v651_v59 }
 0x7be   : > { %v657_v61 = vpop.xlane.xlu1 %656 }
 0x7bf   : > { %v658_v63 = vsel %vm646_vm15, %v657_v61, %v640_v51 }
 0x7c0   : > { %v673_v0 = vmul.f32 %v661_v62, %v658_v63 }
 0x7c2   : > { %674 = vadd.xlane.f32.xlu1 %v673_v0  ;;  %v750_v0 = vld [vmem:[#allocation2 + $0x17] ss:$0 sm:$0xff] }
 0x825   : > { %v631_v1 = vpop.xlane.xlu2 %630 }
 0x826   : > { %v632_v3 = vsel %vm628_vm14, %v631_v1, %v618_v54  ;;  %v2277_v1 = vld [vmem:[%s2453_s26 + $0x18] sm:$0xff] }
 0x827   : > { %v647_v4 = vmul.f32 %v643_v49, %v632_v3 }
 0x829   : > { %648 = vadd.xlane.f32.xlu2 %v647_v4  ;;  %v751_v4 = vxor.u32 2147483648, %v750_v0 }
 0x82d   : > { %v653_v6 = vpop.xlane.xlu0 %652 }
 0x82e   : > { %v654_v7 = vsel %vm646_vm15, %v653_v6, %v636_v58 }
 0x82f   : > { %v669_v8 = vmul.f32 %v661_v62, %v654_v7 }
 0x831   : > { %670 = vadd.xlane.f32.xlu0 %v669_v8 }
 0x835   : > { %v675_v12 = vpop.xlane.xlu1 %674 }
 0x836   : > { %v676_v15 = vsel %vm664_vm2, %v675_v12, %v658_v63  ;;  %v240_v63 = vadd.s32 24, %v2451_v10 }
 0x837   : > { %v691_v17 = vmul.f32 %v679_v14, %v676_v15 }
 0x838   : > { %vm241_vm8 = vcmp.eq.s32.totalorder %v240_v63, %v2449_v9  ;;  %vm246_vm10 = vcmp.ge.s32.totalorder %v240_v63, %v2449_v9 }
 0x839   : > { %692 = vadd.xlane.f32.xlu1 %v691_v17  ;;  %vm247_vm13 = vmand %vm246_vm10, %vm150_vm1  ;;  %vm860_vm10 = vcmp.eq.s32.totalorder %v2449_v9, 28 }
 0x89c   : > { %v649_v18 = vpop.xlane.xlu2 %648 }
 0x89d   : > { %v650_v19 = vsel %vm646_vm15, %v649_v18, %v632_v3 }
 0x89e   : > { %v665_v20 = vmul.f32 %v661_v62, %v650_v19 }
 0x8a0   : > { %666 = vadd.xlane.f32.xlu2 %v665_v20 }
 0x8a4   : > { %v671_v21 = vpop.xlane.xlu0 %670 }
 0x8a5   : > { %v672_v22 = vsel %vm664_vm2, %v671_v21, %v654_v7  ;;  %v243_v7 = vsel %vm241_vm8, %v2277_v1, 0.0  ;;  %vm816_vm8 = vcmp.eq.s32.totalorder %v2449_v9, 26 }
 0x8a6   : > { %v687_v23 = vmul.f32 %v679_v14, %v672_v22 }
 0x8a8   : > { %688 = vadd.xlane.f32.xlu0 %v687_v23 }
 0x8ac   : > { %v693_v26 = vpop.xlane.xlu1 %692 }
 0x8ad   : > { %v694_v29 = vsel %vm682_vm3, %v693_v26, %v676_v15 }
 0x8ae   : > { %v709_v30 = vmul.f32 %v697_v27, %v694_v29 }
 0x8b0   : > { %710 = vadd.xlane.f32.xlu1 %v709_v30  ;;  %v248_v30 = vsel %vm247_vm13, %v2277_v1, 0.0 }
 0x913   : > { %v667_v31 = vpop.xlane.xlu2 %666 }
 0x914   : > { %v668_v32 = vsel %vm664_vm2, %v667_v31, %v650_v19  ;;  %vm754_vm2 = vcmp.eq.s32.totalorder %v2449_v9, 23 }
 0x915   : > { %v683_v33 = vmul.f32 %v679_v14, %v668_v32 }
 0x917   : > { %684 = vadd.xlane.f32.xlu2 %v683_v33 }
 0x91b   : > { %v689_v34 = vpop.xlane.xlu0 %688 }
 0x91c   : > { %v690_v35 = vsel %vm682_vm3, %v689_v34, %v672_v22 }
 0x91d   : > { %v705_v36 = vmul.f32 %v697_v27, %v690_v35 }
 0x91f   : > { %706 = vadd.xlane.f32.xlu0 %v705_v36 }
 0x923   : > { %v711_v38 = vpop.xlane.xlu1 %710 }
 0x924   : > { %v712_v40 = vsel %vm700_vm4, %v711_v38, %v694_v29 }
 0x925   : > { %v727_v41 = vmul.f32 %v715_v39, %v712_v40 }
 0x927   : > { %728 = vadd.xlane.f32.xlu1 %v727_v41 }
 0x98a   : > { %v685_v42 = vpop.xlane.xlu2 %684 }
 0x98b   : > { %v686_v43 = vsel %vm682_vm3, %v685_v42, %v668_v32  ;;  %vm411_vm3 = vcmp.eq.s32.totalorder %v2449_v9, %v240_v63 }
 0x98c   : > { %v701_v44 = vmul.f32 %v697_v27, %v686_v43 }
 0x98e   : > { %702 = vadd.xlane.f32.xlu2 %v701_v44 }
 0x992   : > { %v707_v45 = vpop.xlane.xlu0 %706 }
 0x993   : > { %v708_v46 = vsel %vm700_vm4, %v707_v45, %v690_v35  ;;  %v412_v45 = vsel %vm411_vm3, -1.0, %v2394_v5 }
 0x994   : > { %v723_v47 = vmul.f32 %v715_v39, %v708_v46 }
 0x996   : > { %724 = vadd.xlane.f32.xlu0 %v723_v47 }
 0x99a   : > { %v729_v49 = vpop.xlane.xlu1 %728 }
 0x99b   : > { %v730_v51 = vsel %vm718_vm7, %v729_v49, %v712_v40 }
 0x99c   : > { %v745_v52 = vmul.f32 %v733_v50, %v730_v51 }
 0x99e   : > { %746 = vadd.xlane.f32.xlu1 %v745_v52 }
 0xa01   : > { %v703_v53 = vpop.xlane.xlu2 %702 }
 0xa02   : > { %v704_v54 = vsel %vm700_vm4, %v703_v53, %v686_v43  ;;  %vm772_vm4 = vcmp.eq.s32.totalorder %v2449_v9, 24 }
 0xa03   : > { %v719_v56 = vmul.f32 %v715_v39, %v704_v54 }
 0xa05   : > { %720 = vadd.xlane.f32.xlu2 %v719_v56 }
 0xa09   : > { %v725_v57 = vpop.xlane.xlu0 %724 }
 0xa0a   : > { %v726_v58 = vsel %vm718_vm7, %v725_v57, %v708_v46 }
 0xa0b   : > { %v741_v59 = vmul.f32 %v733_v50, %v726_v58 }
 0xa0d   : > { %742 = vadd.xlane.f32.xlu0 %v741_v59 }
 0xa11   : > { %v747_v11 = vpop.xlane.xlu1 %746 }
 0xa12   : > { %v748_v12 = vsel %vm736_vm9, %v747_v11, %v730_v51 }
 0xa13   : > { %v763_v14 = vmul.f32 %v751_v4, %v748_v12 }
 0xa78   : > { %v721_v60 = vpop.xlane.xlu2 %720 }
 0xa79   : > { %v722_v61 = vsel %vm718_vm7, %v721_v60, %v704_v54  ;;  %vm794_vm7 = vcmp.eq.s32.totalorder %v2449_v9, 25 }
 0xa7a   : > { %v737_v62 = vmul.f32 %v733_v50, %v722_v61 }
 0xa7c   : > { %738 = vadd.xlane.f32.xlu2 %v737_v62 }
 0xa80   : > { %v743_v3 = vpop.xlane.xlu0 %742 }
 0xa81   : > { %v744_v6 = vsel %vm736_vm9, %v743_v3, %v726_v58 }
 0xa82   : > { %v759_v8 = vmul.f32 %v751_v4, %v744_v6 }
 0xa84   : > { %244 = vadd.xlane.f32.xlu2 %v243_v7  ;;  %760 = vadd.xlane.f32.xlu1 %v759_v8 }
 0xa8c   : > { %764 = vadd.xlane.f32.xlu2 %v763_v14 }
 0xaef   : > { %v739_v15 = vpop.xlane.xlu2 %738 }
 0xaf0   : > { %v740_v17 = vsel %vm736_vm9, %v739_v15, %v722_v61  ;;  %vm838_vm9 = vcmp.eq.s32.totalorder %v2449_v9, 27 }
 0xaf1   : > { %v755_v18 = vmul.f32 %v751_v4, %v740_v17 }
 0xaf3   : > { %756 = vadd.xlane.f32.xlu0 %v755_v18 }
 0xaf7   : > { %v2577_v19 = vpop.xlane.xlu2 %244  ;;  %v761_v34 = vpop.xlane.xlu1 %760 }
 0xaf8   : > { %2343 = vrcp.f32 %v2577_v19  ;;  %v260_v22 = vand.u32 2147483648, %v2577_v19  ;;  %vm254_vm11 = vweird.f32 %v2577_v19  ;;  %v258_v25 = vand.u32 2147483647, %v2577_v19 }
 0xaf9   : > { %v762_v38 = vsel %vm754_vm2, %v761_v34, %v744_v6 }
 0xafa   : > { %v261_v27 = vor.u32 1.1754944e-38, %v260_v22  ;;  %vm259_vm15 = vcmp.eq.f32.partialorder %v258_v25, 8.507059e+37 }
 0xafe   : > { %v2344_v20 = vpop.eup %2343 }
 0xaff   : > { %v250_v21 = vmul.f32 %v2344_v20, %v2577_v19  ;;  %vm255_vm12 = vweird.f32 %v2344_v20  ;;  %v765_v35 = vpop.xlane.xlu2 %764 }
 0xb00   : > { %vm256_vm14 = vmor %vm254_vm11, %vm255_vm12  ;;  %v766_v39 = vsel %vm754_vm2, %v765_v35, %v748_v12  ;;  %vm882_vm12 = vcmp.eq.s32.totalorder %v2449_v9, 29 }
 0xb01   : > { %v251_v23 = vsub.f32 1.0, %v250_v21 }
 0xb03   : > { %v252_v26 = vmul.f32 %v2344_v20, %v251_v23 }
 0xb05   : > { %v253_v29 = vadd.f32 %v2344_v20, %v252_v26 }
 0xb07   : > { %v257_v31 = vsel %vm256_vm14, %v2344_v20, %v253_v29  ;;  %vm904_vm14 = vcmp.eq.s32.totalorder %v2449_v9, 30 }
 0xb08   : > { %v2589_v32 = vsel %vm259_vm15, %v261_v27, %v257_v31 }
 0xb09   : > { %v263_v33 = vmul.f32 %v2589_v32, %v248_v30 }
 0xb0b   : > { %264 = vst [vmem:[#allocation2 + $0x18] sm:$0xff] %v263_v33 }
 0xb12   : > { %v768_v36 = vld [vmem:[#allocation2 + $0x18] ss:$0 sm:$0xff]  ;;  %v790_v47 = vld [vmem:[#allocation2 + $0x19] ss:$0 sm:$0xff]  ;;  %v812_v62 = vld [vmem:[#allocation2 + $0x1a] ss:$0 sm:$0xff] }
 0xb13   : > { %v769_v37 = vxor.u32 2147483648, %v768_v36  ;;  %v791_v50 = vxor.u32 2147483648, %v790_v47  ;;  %v813_v1 = vxor.u32 2147483648, %v812_v62  ;;  %v834_v18 = vld [vmem:[#allocation2 + $0x1b] ss:$0 sm:$0xff] }
 0xb14   : > { %v835_v22 = vxor.u32 2147483648, %v834_v18  ;;  %v856_v36 = vld [vmem:[#allocation2 + $0x1c] ss:$0 sm:$0xff] }
 0xb15   : > { %v781_v40 = vmul.f32 %v769_v37, %v766_v39  ;;  %v777_v41 = vmul.f32 %v769_v37, %v762_v38  ;;  %v785_v46 = vmul.f32 %v769_v37, %v412_v45 }
 0xb17   : > { %782 = vadd.xlane.f32.xlu2 %v781_v40  ;;  %778 = vadd.xlane.f32.xlu1 %v777_v41 }
 0xb66   : > { %v757_v42 = vpop.xlane.xlu0 %756 }
 0xb67   : > { %v758_v43 = vsel %vm754_vm2, %v757_v42, %v740_v17 }
 0xb68   : > { %v773_v44 = vmul.f32 %v769_v37, %v758_v43 }
 0xb6a   : > { %774 = vadd.xlane.f32.xlu0 %v773_v44 }
 0xb72   : > { %786 = vadd.xlane.f32.xlu0 %v785_v46 }
 0xb8a   : > { %v783_v48 = vpop.xlane.xlu2 %782  ;;  %v779_v49 = vpop.xlane.xlu1 %778 }
 0xb8b   : > { %v784_v51 = vsel %vm772_vm4, %v783_v48, %v766_v39  ;;  %v780_v52 = vsel %vm772_vm4, %v779_v49, %v762_v38  ;;  %v857_v39 = vxor.u32 2147483648, %v856_v36 }
 0xb8c   : > { %v799_v53 = vmul.f32 %v791_v50, %v780_v52  ;;  %v803_v54 = vmul.f32 %v791_v50, %v784_v51 }
 0xb8e   : > { %800 = vadd.xlane.f32.xlu2 %v799_v53  ;;  %804 = vadd.xlane.f32.xlu0 %v803_v54 }
 0xbdd   : > { %v775_v56 = vpop.xlane.xlu0 %774 }
 0xbde   : > { %v776_v57 = vsel %vm772_vm4, %v775_v56, %v758_v43 }
 0xbdf   : > { %v795_v58 = vmul.f32 %v791_v50, %v776_v57 }
 0xbe1   : > { %796 = vadd.xlane.f32.xlu1 %v795_v58 }
 0xbe5   : > { %v787_v59 = vpop.xlane.xlu0 %786 }
 0xbe6   : > { %v788_v60 = vsel %vm772_vm4, %v787_v59, %v412_v45 }
 0xbe7   : > { %v807_v61 = vmul.f32 %v791_v50, %v788_v60  ;;  %v878_v50 = vld [vmem:[#allocation2 + $0x1d] ss:$0 sm:$0xff] }
 0xbe8   : > { %v879_v53 = vxor.u32 2147483648, %v878_v50 }
 0xbe9   : > { %808 = vadd.xlane.f32.xlu1 %v807_v61 }
 0xc01   : > { %v801_v63 = vpop.xlane.xlu2 %800  ;;  %v805_v0 = vpop.xlane.xlu0 %804 }
 0xc02   : > { %v802_v3 = vsel %vm794_vm7, %v801_v63, %v780_v52  ;;  %v806_v4 = vsel %vm794_vm7, %v805_v0, %v784_v51 }
 0xc03   : > { %v821_v6 = vmul.f32 %v813_v1, %v802_v3  ;;  %v825_v7 = vmul.f32 %v813_v1, %v806_v4 }
 0xc05   : > { %822 = vadd.xlane.f32.xlu0 %v821_v6  ;;  %826 = vadd.xlane.f32.xlu1 %v825_v7 }
 0xc54   : > { %v797_v8 = vpop.xlane.xlu1 %796 }
 0xc55   : > { %v798_v11 = vsel %vm794_vm7, %v797_v8, %v776_v57 }
 0xc56   : > { %v817_v12 = vmul.f32 %v813_v1, %v798_v11 }
 0xc58   : > { %818 = vadd.xlane.f32.xlu2 %v817_v12 }
 0xc5c   : > { %v809_v14 = vpop.xlane.xlu1 %808 }
 0xc5d   : > { %v810_v15 = vsel %vm794_vm7, %v809_v14, %v788_v60  ;;  %v2606_v14 = vadd.s32 32, %v2451_v10 }
 0xc5e   : > { %v829_v17 = vmul.f32 %v813_v1, %v810_v15  ;;  %v900_v1 = vld [vmem:[#allocation2 + $0x1e] ss:$0 sm:$0xff] }
 0xc5f   : > { %v901_v6 = vxor.u32 2147483648, %v900_v1  ;;  %vm270_vm13 = vcmp.eq.s32.totalorder %v2606_v14, %v2449_v9  ;;  %vm275_vm15 = vcmp.ge.s32.totalorder %v2606_v14, %v2449_v9 }
 0xc60   : > { %830 = vadd.xlane.f32.xlu2 %v829_v17  ;;  %vm276_vm4 = vmand %vm275_vm15, %vm150_vm1  ;;  %vm1026_vm15 = vcmp.eq.s32.totalorder %v2449_v9, 35 }
 0xc78   : > { %v827_v20 = vpop.xlane.xlu1 %826  ;;  %v823_v21 = vpop.xlane.xlu0 %822 }
 0xc79   : > { %v828_v23 = vsel %vm816_vm8, %v827_v20, %v806_v4  ;;  %v824_v25 = vsel %vm816_vm8, %v823_v21, %v802_v3 }
 0xc7a   : > { %v847_v26 = vmul.f32 %v835_v22, %v828_v23  ;;  %v843_v27 = vmul.f32 %v835_v22, %v824_v25 }
 0xc7c   : > { %848 = vadd.xlane.f32.xlu2 %v847_v26  ;;  %844 = vadd.xlane.f32.xlu1 %v843_v27  ;;  %v922_v26 = vld [vmem:[#allocation2 + $0x1f] ss:$0 sm:$0xff] }
 0xccb   : > { %v819_v29 = vpop.xlane.xlu2 %818 }
 0xccc   : > { %v820_v30 = vsel %vm816_vm8, %v819_v29, %v798_v11 }
 0xccd   : > { %v839_v31 = vmul.f32 %v835_v22, %v820_v30 }
 0xccf   : > { %840 = vadd.xlane.f32.xlu0 %v839_v31 }
 0xcd3   : > { %v831_v33 = vpop.xlane.xlu2 %830 }
 0xcd4   : > { %v832_v34 = vsel %vm816_vm8, %v831_v33, %v810_v15  ;;  %v2278_v15 = vld [vmem:[%s2453_s26 + $0x20] sm:$0xff] }
 0xcd5   : > { %v851_v35 = vmul.f32 %v835_v22, %v832_v34  ;;  %v272_v17 = vsel %vm270_vm13, %v2278_v15, 0.0  ;;  %vm974_vm13 = vcmp.eq.s32.totalorder %v2449_v9, 33 }
 0xcd7   : > { %852 = vadd.xlane.f32.xlu0 %v851_v35 }
 0xcef   : > { %v849_v37 = vpop.xlane.xlu2 %848  ;;  %v845_v38 = vpop.xlane.xlu1 %844 }
 0xcf0   : > { %v850_v40 = vsel %vm838_vm9, %v849_v37, %v828_v23  ;;  %v846_v41 = vsel %vm838_vm9, %v845_v38, %v824_v25 }
 0xcf1   : > { %v869_v42 = vmul.f32 %v857_v39, %v850_v40  ;;  %v865_v43 = vmul.f32 %v857_v39, %v846_v41 }
 0xcf3   : > { %870 = vadd.xlane.f32.xlu0 %v869_v42  ;;  %866 = vadd.xlane.f32.xlu2 %v865_v43 }
 0xd42   : > { %v841_v44 = vpop.xlane.xlu0 %840 }
 0xd43   : > { %v842_v45 = vsel %vm838_vm9, %v841_v44, %v820_v30  ;;  %v923_v30 = vxor.u32 2147483648, %v922_v26 }
 0xd44   : > { %v861_v46 = vmul.f32 %v857_v39, %v842_v45 }
 0xd46   : > { %862 = vadd.xlane.f32.xlu1 %v861_v46 }
 0xd4a   : > { %v853_v47 = vpop.xlane.xlu0 %852 }
 0xd4b   : > { %v854_v48 = vsel %vm838_vm9, %v853_v47, %v832_v34  ;;  %vm926_vm9 = vcmp.eq.s32.totalorder %v2449_v9, 31 }
 0xd4c   : > { %v873_v49 = vmul.f32 %v857_v39, %v854_v48 }
 0xd4e   : > { %874 = vadd.xlane.f32.xlu1 %v873_v49 }
 0xd66   : > { %v867_v51 = vpop.xlane.xlu2 %866  ;;  %v871_v52 = vpop.xlane.xlu0 %870 }
 0xd67   : > { %v868_v54 = vsel %vm860_vm10, %v867_v51, %v846_v41  ;;  %v872_v56 = vsel %vm860_vm10, %v871_v52, %v850_v40 }
 0xd68   : > { %v887_v57 = vmul.f32 %v879_v53, %v868_v54  ;;  %v891_v58 = vmul.f32 %v879_v53, %v872_v56 }
 0xd6a   : > { %888 = vadd.xlane.f32.xlu0 %v887_v57  ;;  %892 = vadd.xlane.f32.xlu1 %v891_v58 }
 0xdb9   : > { %v863_v59 = vpop.xlane.xlu1 %862 }
 0xdba   : > { %v864_v60 = vsel %vm860_vm10, %v863_v59, %v842_v45  ;;  %v277_v45 = vsel %vm276_vm4, %v2278_v15, 0.0  ;;  %vm1078_vm4 = vcmp.eq.s32.totalorder %v2449_v9, 37 }
 0xdbb   : > { %v883_v61 = vmul.f32 %v879_v53, %v864_v60 }
 0xdbd   : > { %884 = vadd.xlane.f32.xlu2 %v883_v61 }
 0xdc1   : > { %v875_v62 = vpop.xlane.xlu1 %874 }
 0xdc2   : > { %v876_v63 = vsel %vm860_vm10, %v875_v62, %v854_v48  ;;  %vm418_vm10 = vcmp.eq.s32.totalorder %v2449_v9, %v2606_v14 }
 0xdc3   : > { %v895_v0 = vmul.f32 %v879_v53, %v876_v63 }
 0xdc5   : > { %896 = vadd.xlane.f32.xlu2 %v895_v0  ;;  %v419_v0 = vsel %vm418_vm10, -1.0, %v2394_v5 }
 0xddd   : > { %v893_v3 = vpop.xlane.xlu1 %892  ;;  %v889_v4 = vpop.xlane.xlu0 %888 }
 0xdde   : > { %v894_v7 = vsel %vm882_vm12, %v893_v3, %v872_v56  ;;  %v890_v8 = vsel %vm882_vm12, %v889_v4, %v868_v54 }
 0xddf   : > { %v913_v11 = vmul.f32 %v901_v6, %v894_v7  ;;  %v909_v12 = vmul.f32 %v901_v6, %v890_v8 }
 0xde1   : > { %914 = vadd.xlane.f32.xlu2 %v913_v11  ;;  %910 = vadd.xlane.f32.xlu1 %v909_v12 }
 0xde9   : > { %273 = vadd.xlane.f32.xlu1 %v272_v17 }
 0xe30   : > { %v885_v18 = vpop.xlane.xlu2 %884 }
 0xe31   : > { %v886_v20 = vsel %vm882_vm12, %v885_v18, %v864_v60 }
 0xe32   : > { %v905_v21 = vmul.f32 %v901_v6, %v886_v20 }
 0xe34   : > { %906 = vadd.xlane.f32.xlu0 %v905_v21 }
 0xe38   : > { %v897_v22 = vpop.xlane.xlu2 %896 }
 0xe39   : > { %v898_v23 = vsel %vm882_vm12, %v897_v22, %v876_v63  ;;  %vm948_vm12 = vcmp.eq.s32.totalorder %v2449_v9, 32 }
 0xe3a   : > { %v917_v25 = vmul.f32 %v901_v6, %v898_v23 }
 0xe3c   : > { %918 = vadd.xlane.f32.xlu0 %v917_v25 }
 0xe54   : > { %v915_v27 = vpop.xlane.xlu2 %914  ;;  %v911_v29 = vpop.xlane.xlu1 %910 }
 0xe55   : > { %v916_v31 = vsel %vm904_vm14, %v915_v27, %v894_v7  ;;  %v912_v33 = vsel %vm904_vm14, %v911_v29, %v890_v8 }
 0xe56   : > { %v935_v34 = vmul.f32 %v923_v30, %v916_v31  ;;  %v931_v35 = vmul.f32 %v923_v30, %v912_v33 }
 0xe58   : > { %936 = vadd.xlane.f32.xlu1 %v935_v34  ;;  %932 = vadd.xlane.f32.xlu0 %v931_v35 }
 0xe5c   : > { %v2620_v36 = vpop.xlane.xlu1 %273 }
 0xe5d   : > { %2345 = vrcp.f32 %v2620_v36  ;;  %v289_v39 = vand.u32 2147483648, %v2620_v36  ;;  %vm283_vm2 = vweird.f32 %v2620_v36  ;;  %v287_v41 = vand.u32 2147483647, %v2620_v36 }
 0xe5f   : > { %v290_v43 = vor.u32 1.1754944e-38, %v289_v39  ;;  %vm288_vm8 = vcmp.eq.f32.partialorder %v287_v41, 8.507059e+37 }
 0xe63   : > { %v2346_v37 = vpop.eup %2345 }
 0xe64   : > { %v279_v38 = vmul.f32 %v2346_v37, %v2620_v36  ;;  %vm284_vm3 = vweird.f32 %v2346_v37 }
 0xe65   : > { %vm285_vm7 = vmor %vm283_vm2, %vm284_vm3  ;;  %vm1052_vm3 = vcmp.eq.s32.totalorder %v2449_v9, 36 }
 0xe66   : > { %v280_v40 = vsub.f32 1.0, %v279_v38 }
 0xe68   : > { %v281_v42 = vmul.f32 %v2346_v37, %v280_v40 }
 0xe6a   : > { %v282_v44 = vadd.f32 %v2346_v37, %v281_v42 }
 0xe6c   : > { %v286_v46 = vsel %vm285_vm7, %v2346_v37, %v282_v44 }
 0xe6d   : > { %v2633_v47 = vsel %vm288_vm8, %v290_v43, %v286_v46  ;;  %vm1104_vm8 = vcmp.eq.s32.totalorder %v2449_v9, 38 }
 0xe6e   : > { %v292_v48 = vmul.f32 %v2633_v47, %v277_v45 }
 0xe70   : > { %293 = vst [vmem:[#allocation2 + $0x20] sm:$0xff] %v292_v48 }
 0xe77   : > { %v944_v56 = vld [vmem:[#allocation2 + $0x20] ss:$0 sm:$0xff]  ;;  %v970_v12 = vld [vmem:[#allocation2 + $0x21] ss:$0 sm:$0xff]  ;;  %v996_v35 = vld [vmem:[#allocation2 + $0x22] ss:$0 sm:$0xff] }
 0xe78   : > { %v945_v57 = vxor.u32 2147483648, %v944_v56  ;;  %v971_v17 = vxor.u32 2147483648, %v970_v12  ;;  %v997_v39 = vxor.u32 2147483648, %v996_v35  ;;  %v1048_v12 = vld [vmem:[#allocation2 + $0x24] ss:$0 sm:$0xff] }
 0xe79   : > { %v1074_v35 = vld [vmem:[#allocation2 + $0x25] ss:$0 sm:$0xff] }
 0xe7a   : > { %v965_v1 = vmul.f32 %v945_v57, %v419_v0 }
 0xea7   : > { %v907_v49 = vpop.xlane.xlu0 %906 }
 0xea8   : > { %v908_v50 = vsel %vm904_vm14, %v907_v49, %v886_v20 }
 0xea9   : > { %v927_v51 = vmul.f32 %v923_v30, %v908_v50 }
 0xeab   : > { %928 = vadd.xlane.f32.xlu2 %v927_v51 }
 0xeaf   : > { %v919_v52 = vpop.xlane.xlu0 %918 }
 0xeb0   : > { %v920_v53 = vsel %vm904_vm14, %v919_v52, %v898_v23  ;;  %vm1000_vm14 = vcmp.eq.s32.totalorder %v2449_v9, 34 }
 0xeb1   : > { %v939_v54 = vmul.f32 %v923_v30, %v920_v53 }
 0xeb3   : > { %940 = vadd.xlane.f32.xlu2 %v939_v54  ;;  %v1022_v54 = vld [vmem:[#allocation2 + $0x23] ss:$0 sm:$0xff] }
 0xecb   : > { %v937_v58 = vpop.xlane.xlu1 %936  ;;  %v933_v59 = vpop.xlane.xlu0 %932 }
 0xecc   : > { %v938_v60 = vsel %vm926_vm9, %v937_v58, %v916_v31  ;;  %v934_v61 = vsel %vm926_vm9, %v933_v59, %v912_v33  ;;  %v1023_v58 = vxor.u32 2147483648, %v1022_v54  ;;  %v1100_v54 = vld [vmem:[#allocation2 + $0x26] ss:$0 sm:$0xff] }
 0xecd   : > { %v957_v62 = vmul.f32 %v945_v57, %v938_v60  ;;  %v953_v63 = vmul.f32 %v945_v57, %v934_v61 }
 0xecf   : > { %958 = vadd.xlane.f32.xlu2 %v957_v62  ;;  %954 = vadd.xlane.f32.xlu1 %v953_v63 }
 0xed7   : > { %966 = vadd.xlane.f32.xlu1 %v965_v1 }
 0xf1e   : > { %v929_v3 = vpop.xlane.xlu2 %928 }
 0xf1f   : > { %v930_v4 = vsel %vm926_vm9, %v929_v3, %v908_v50 }
 0xf20   : > { %v949_v6 = vmul.f32 %v945_v57, %v930_v4 }
 0xf22   : > { %950 = vadd.xlane.f32.xlu0 %v949_v6 }
 0xf26   : > { %v941_v7 = vpop.xlane.xlu2 %940 }
 0xf27   : > { %v942_v8 = vsel %vm926_vm9, %v941_v7, %v920_v53 }
 0xf28   : > { %v961_v11 = vmul.f32 %v945_v57, %v942_v8 }
 0xf2a   : > { %962 = vadd.xlane.f32.xlu0 %v961_v11 }
 0xf42   : > { %v959_v14 = vpop.xlane.xlu2 %958  ;;  %v955_v15 = vpop.xlane.xlu1 %954 }
 0xf43   : > { %v960_v18 = vsel %vm948_vm12, %v959_v14, %v938_v60  ;;  %v956_v20 = vsel %vm948_vm12, %v955_v15, %v934_v61 }
 0xf44   : > { %v983_v21 = vmul.f32 %v971_v17, %v960_v18  ;;  %v979_v22 = vmul.f32 %v971_v17, %v956_v20 }
 0xf46   : > { %984 = vadd.xlane.f32.xlu1 %v983_v21  ;;  %980 = vadd.xlane.f32.xlu0 %v979_v22 }
 0xf4a   : > { %v967_v23 = vpop.xlane.xlu1 %966 }
 0xf4b   : > { %v968_v25 = vsel %vm948_vm12, %v967_v23, %v419_v0 }
 0xf4c   : > { %v991_v26 = vmul.f32 %v971_v17, %v968_v25 }
 0xf4e   : > { %992 = vadd.xlane.f32.xlu0 %v991_v26 }
 0xf95   : > { %v951_v27 = vpop.xlane.xlu0 %950 }
 0xf96   : > { %v952_v29 = vsel %vm948_vm12, %v951_v27, %v930_v4 }
 0xf97   : > { %v975_v30 = vmul.f32 %v971_v17, %v952_v29 }
 0xf99   : > { %976 = vadd.xlane.f32.xlu2 %v975_v30 }
 0xf9d   : > { %v963_v31 = vpop.xlane.xlu0 %962 }
 0xf9e   : > { %v964_v33 = vsel %vm948_vm12, %v963_v31, %v942_v8 }
 0xf9f   : > { %v987_v34 = vmul.f32 %v971_v17, %v964_v33  ;;  %v1049_v17 = vxor.u32 2147483648, %v1048_v12 }
 0xfa1   : > { %988 = vadd.xlane.f32.xlu2 %v987_v34 }
 0xfb9   : > { %v985_v37 = vpop.xlane.xlu1 %984  ;;  %v981_v38 = vpop.xlane.xlu0 %980 }
 0xfba   : > { %v986_v40 = vsel %vm974_vm13, %v985_v37, %v960_v18  ;;  %v982_v41 = vsel %vm974_vm13, %v981_v38, %v956_v20 }
 0xfbb   : > { %v1009_v42 = vmul.f32 %v997_v39, %v986_v40  ;;  %v1005_v43 = vmul.f32 %v997_v39, %v982_v41 }
 0xfbd   : > { %1010 = vadd.xlane.f32.xlu0 %v1009_v42  ;;  %1006 = vadd.xlane.f32.xlu2 %v1005_v43 }
 0xfc1   : > { %v993_v44 = vpop.xlane.xlu0 %992 }
 0xfc2   : > { %v994_v45 = vsel %vm974_vm13, %v993_v44, %v968_v25 }
 0xfc3   : > { %v1017_v46 = vmul.f32 %v997_v39, %v994_v45 }
 0xfc5   : > { %1018 = vadd.xlane.f32.xlu2 %v1017_v46 }
0x100c   : > { %v977_v48 = vpop.xlane.xlu2 %976 }
0x100d   : > { %v978_v49 = vsel %vm974_vm13, %v977_v48, %v952_v29 }
0x100e   : > { %v1001_v50 = vmul.f32 %v997_v39, %v978_v49 }
0x1010   : > { %1002 = vadd.xlane.f32.xlu1 %v1001_v50 }
0x1014   : > { %v989_v51 = vpop.xlane.xlu2 %988 }
0x1015   : > { %v990_v52 = vsel %vm974_vm13, %v989_v51, %v964_v33 }
0x1016   : > { %v1013_v53 = vmul.f32 %v997_v39, %v990_v52  ;;  %v1075_v39 = vxor.u32 2147483648, %v1074_v35 }
0x1018   : > { %1014 = vadd.xlane.f32.xlu1 %v1013_v53 }
0x1030   : > { %v1007_v56 = vpop.xlane.xlu2 %1006  ;;  %v1011_v57 = vpop.xlane.xlu0 %1010 }
0x1031   : > { %v1008_v59 = vsel %vm1000_vm14, %v1007_v56, %v982_v41  ;;  %v1012_v60 = vsel %vm1000_vm14, %v1011_v57, %v986_v40 }
0x1032   : > { %v1031_v61 = vmul.f32 %v1023_v58, %v1008_v59  ;;  %v1035_v62 = vmul.f32 %v1023_v58, %v1012_v60 }
0x1034   : > { %1032 = vadd.xlane.f32.xlu1 %v1031_v61  ;;  %1036 = vadd.xlane.f32.xlu2 %v1035_v62 }
0x1038   : > { %v1019_v63 = vpop.xlane.xlu2 %1018 }
0x1039   : > { %v1020_v0 = vsel %vm1000_vm14, %v1019_v63, %v994_v45 }
0x103a   : > { %v1043_v1 = vmul.f32 %v1023_v58, %v1020_v0 }
0x103c   : > { %1044 = vadd.xlane.f32.xlu1 %v1043_v1 }
0x1083   : > { %v1003_v3 = vpop.xlane.xlu1 %1002 }
0x1084   : > { %v1004_v4 = vsel %vm1000_vm14, %v1003_v3, %v978_v49  ;;  %v2715_v3 = vadd.s32 40, %v2451_v10 }
0x1085   : > { %v1027_v6 = vmul.f32 %v1023_v58, %v1004_v4 }
0x1086   : > { %vm299_vm7 = vcmp.eq.s32.totalorder %v2715_v3, %v2449_v9  ;;  %vm304_vm9 = vcmp.ge.s32.totalorder %v2715_v3, %v2449_v9 }
0x1087   : > { %1028 = vadd.xlane.f32.xlu0 %v1027_v6  ;;  %vm305_vm13 = vmand %vm304_vm9, %vm150_vm1  ;;  %vm1216_vm9 = vcmp.eq.s32.totalorder %v2449_v9, 42 }
0x108b   : > { %v1015_v7 = vpop.xlane.xlu1 %1014 }
0x108c   : > { %v1016_v8 = vsel %vm1000_vm14, %v1015_v7, %v990_v52 }
0x108d   : > { %v1039_v11 = vmul.f32 %v1023_v58, %v1016_v8  ;;  %v1101_v58 = vxor.u32 2147483648, %v1100_v54 }
0x108f   : > { %1040 = vadd.xlane.f32.xlu0 %v1039_v11 }
0x10a7   : > { %v1033_v14 = vpop.xlane.xlu1 %1032  ;;  %v1037_v15 = vpop.xlane.xlu2 %1036 }
0x10a8   : > { %v1034_v18 = vsel %vm1026_vm15, %v1033_v14, %v1008_v59  ;;  %v1038_v20 = vsel %vm1026_vm15, %v1037_v15, %v1012_v60 }
0x10a9   : > { %v1057_v21 = vmul.f32 %v1049_v17, %v1034_v18  ;;  %v1061_v22 = vmul.f32 %v1049_v17, %v1038_v20 }
0x10ab   : > { %1058 = vadd.xlane.f32.xlu0 %v1057_v21  ;;  %1062 = vadd.xlane.f32.xlu1 %v1061_v22 }
0x10af   : > { %v1045_v23 = vpop.xlane.xlu1 %1044 }
0x10b0   : > { %v1046_v25 = vsel %vm1026_vm15, %v1045_v23, %v1020_v0 }
0x10b1   : > { %v1069_v26 = vmul.f32 %v1049_v17, %v1046_v25 }
0x10b3   : > { %1070 = vadd.xlane.f32.xlu0 %v1069_v26 }
0x10fa   : > { %v1029_v27 = vpop.xlane.xlu0 %1028 }
0x10fb   : > { %v1030_v29 = vsel %vm1026_vm15, %v1029_v27, %v1004_v4  ;;  %v2279_v4 = vld [vmem:[%s2453_s26 + $0x28] sm:$0xff] }
0x10fc   : > { %v1053_v30 = vmul.f32 %v1049_v17, %v1030_v29  ;;  %v301_v6 = vsel %vm299_vm7, %v2279_v4, 0.0  ;;  %vm1156_vm7 = vcmp.eq.s32.totalorder %v2449_v9, 40 }
0x10fe   : > { %1054 = vadd.xlane.f32.xlu2 %v1053_v30 }
0x1102   : > { %v1041_v31 = vpop.xlane.xlu0 %1040 }
0x1103   : > { %v1042_v33 = vsel %vm1026_vm15, %v1041_v31, %v1016_v8 }
0x1104   : > { %v1065_v34 = vmul.f32 %v1049_v17, %v1042_v33  ;;  %v1126_v17 = vld [vmem:[#allocation2 + $0x27] ss:$0 sm:$0xff] }
0x1105   : > { %v1127_v21 = vxor.u32 2147483648, %v1126_v17 }
0x1106   : > { %1066 = vadd.xlane.f32.xlu2 %v1065_v34 }
0x111e   : > { %v1063_v37 = vpop.xlane.xlu1 %1062  ;;  %v1059_v38 = vpop.xlane.xlu0 %1058 }
0x111f   : > { %v1064_v40 = vsel %vm1052_vm3, %v1063_v37, %v1038_v20  ;;  %v1060_v41 = vsel %vm1052_vm3, %v1059_v38, %v1034_v18 }
0x1120   : > { %v1087_v42 = vmul.f32 %v1075_v39, %v1064_v40  ;;  %v1083_v43 = vmul.f32 %v1075_v39, %v1060_v41 }
0x1122   : > { %1088 = vadd.xlane.f32.xlu0 %v1087_v42  ;;  %1084 = vadd.xlane.f32.xlu2 %v1083_v43  ;;  %v306_v42 = vsel %vm305_vm13, %v2279_v4, 0.0  ;;  %vm1276_vm13 = vcmp.eq.s32.totalorder %v2449_v9, 44 }
0x1126   : > { %v1071_v44 = vpop.xlane.xlu0 %1070 }
0x1127   : > { %v1072_v45 = vsel %vm1052_vm3, %v1071_v44, %v1046_v25 }
0x1128   : > { %v1095_v46 = vmul.f32 %v1075_v39, %v1072_v45 }
0x112a   : > { %1096 = vadd.xlane.f32.xlu2 %v1095_v46 }
0x1171   : > { %v1055_v48 = vpop.xlane.xlu2 %1054 }
0x1172   : > { %v1056_v49 = vsel %vm1052_vm3, %v1055_v48, %v1030_v29 }
0x1173   : > { %v1079_v50 = vmul.f32 %v1075_v39, %v1056_v49 }
0x1175   : > { %1080 = vadd.xlane.f32.xlu1 %v1079_v50 }
0x1179   : > { %v1067_v51 = vpop.xlane.xlu2 %1066 }
0x117a   : > { %v1068_v52 = vsel %vm1052_vm3, %v1067_v51, %v1042_v33  ;;  %vm1130_vm3 = vcmp.eq.s32.totalorder %v2449_v9, 39 }
0x117b   : > { %v1091_v53 = vmul.f32 %v1075_v39, %v1068_v52 }
0x117d   : > { %1092 = vadd.xlane.f32.xlu1 %v1091_v53 }
0x1195   : > { %v1085_v56 = vpop.xlane.xlu2 %1084  ;;  %v1089_v57 = vpop.xlane.xlu0 %1088 }
0x1196   : > { %v1086_v59 = vsel %vm1078_vm4, %v1085_v56, %v1060_v41  ;;  %v1090_v60 = vsel %vm1078_vm4, %v1089_v57, %v1064_v40 }
0x1197   : > { %v1109_v61 = vmul.f32 %v1101_v58, %v1086_v59  ;;  %v1113_v62 = vmul.f32 %v1101_v58, %v1090_v60 }
0x1199   : > { %1110 = vadd.xlane.f32.xlu1 %v1109_v61  ;;  %1114 = vadd.xlane.f32.xlu2 %v1113_v62 }
0x119d   : > { %v1097_v63 = vpop.xlane.xlu2 %1096 }
0x119e   : > { %v1098_v0 = vsel %vm1078_vm4, %v1097_v63, %v1072_v45 }
0x119f   : > { %v1121_v1 = vmul.f32 %v1101_v58, %v1098_v0 }
0x11a1   : > { %1122 = vadd.xlane.f32.xlu1 %v1121_v1  ;;  %302 = vadd.xlane.f32.xlu2 %v301_v6 }
0x11e8   : > { %v1081_v7 = vpop.xlane.xlu1 %1080 }
0x11e9   : > { %v1082_v8 = vsel %vm1078_vm4, %v1081_v7, %v1056_v49 }
0x11ea   : > { %v1105_v11 = vmul.f32 %v1101_v58, %v1082_v8 }
0x11ec   : > { %1106 = vadd.xlane.f32.xlu0 %v1105_v11 }
0x11f0   : > { %v1093_v12 = vpop.xlane.xlu1 %1092 }
0x11f1   : > { %v1094_v14 = vsel %vm1078_vm4, %v1093_v12, %v1068_v52  ;;  %vm425_vm4 = vcmp.eq.s32.totalorder %v2449_v9, %v2715_v3 }
0x11f2   : > { %v1117_v15 = vmul.f32 %v1101_v58, %v1094_v14  ;;  %v426_v62 = vsel %vm425_vm4, -1.0, %v2394_v5 }
0x11f4   : > { %1118 = vadd.xlane.f32.xlu0 %v1117_v15 }
0x120c   : > { %v1111_v18 = vpop.xlane.xlu1 %1110  ;;  %v1115_v20 = vpop.xlane.xlu2 %1114 }
0x120d   : > { %v1112_v22 = vsel %vm1104_vm8, %v1111_v18, %v1086_v59  ;;  %v1116_v23 = vsel %vm1104_vm8, %v1115_v20, %v1090_v60 }
0x120e   : > { %v1135_v25 = vmul.f32 %v1127_v21, %v1112_v22  ;;  %v1139_v26 = vmul.f32 %v1127_v21, %v1116_v23 }
0x1210   : > { %1136 = vadd.xlane.f32.xlu1 %v1135_v25  ;;  %1140 = vadd.xlane.f32.xlu2 %v1139_v26 }
0x1214   : > { %v1123_v27 = vpop.xlane.xlu1 %1122  ;;  %v2731_v31 = vpop.xlane.xlu2 %302 }
0x1215   : > { %v1124_v29 = vsel %vm1104_vm8, %v1123_v27, %v1098_v0  ;;  %2347 = vrcp.f32 %v2731_v31  ;;  %v318_v35 = vand.u32 2147483648, %v2731_v31  ;;  %vm312_vm10 = vweird.f32 %v2731_v31 }
0x1216   : > { %v1147_v30 = vmul.f32 %v1127_v21, %v1124_v29  ;;  %v316_v38 = vand.u32 2147483647, %v2731_v31 }
0x1217   : > { %v319_v40 = vor.u32 1.1754944e-38, %v318_v35 }
0x1218   : > { %1148 = vadd.xlane.f32.xlu1 %v1147_v30  ;;  %vm317_vm15 = vcmp.eq.f32.partialorder %v316_v38, 8.507059e+37 }
0x121b   : > { %v2348_v33 = vpop.eup %2347 }
0x121c   : > { %v308_v34 = vmul.f32 %v2348_v33, %v2731_v31  ;;  %vm313_vm12 = vweird.f32 %v2348_v33 }
0x121d   : > { %vm314_vm14 = vmor %vm312_vm10, %vm313_vm12  ;;  %vm1246_vm12 = vcmp.eq.s32.totalorder %v2449_v9, 43 }
0x121e   : > { %v309_v37 = vsub.f32 1.0, %v308_v34 }
0x1220   : > { %v310_v39 = vmul.f32 %v2348_v33, %v309_v37 }
0x1222   : > { %v311_v41 = vadd.f32 %v2348_v33, %v310_v39 }
0x1224   : > { %v315_v43 = vsel %vm314_vm14, %v2348_v33, %v311_v41  ;;  %vm1306_vm14 = vcmp.eq.s32.totalorder %v2449_v9, 45 }
0x1225   : > { %v2744_v44 = vsel %vm317_vm15, %v319_v40, %v315_v43 }
0x1226   : > { %v321_v45 = vmul.f32 %v2744_v44, %v306_v42 }
0x1228   : > { %322 = vst [vmem:[#allocation2 + $0x28] sm:$0xff] %v321_v45 }
0x122f   : > { %v1152_v53 = vld [vmem:[#allocation2 + $0x28] ss:$0 sm:$0xff]  ;;  %v1212_v41 = vld [vmem:[#allocation2 + $0x2a] ss:$0 sm:$0xff] }
0x1230   : > { %v1153_v54 = vxor.u32 2147483648, %v1152_v53  ;;  %v1213_v45 = vxor.u32 2147483648, %v1212_v41 }
0x1232   : > { %v1177_v0 = vmul.f32 %v1153_v54, %v426_v62 }
0x125f   : > { %v1107_v46 = vpop.xlane.xlu0 %1106 }
0x1260   : > { %v1108_v48 = vsel %vm1104_vm8, %v1107_v46, %v1082_v8 }
0x1261   : > { %v1131_v49 = vmul.f32 %v1127_v21, %v1108_v48 }
0x1263   : > { %1132 = vadd.xlane.f32.xlu0 %v1131_v49 }
0x1267   : > { %v1119_v50 = vpop.xlane.xlu0 %1118 }
0x1268   : > { %v1120_v51 = vsel %vm1104_vm8, %v1119_v50, %v1094_v14  ;;  %v1182_v14 = vld [vmem:[#allocation2 + $0x29] ss:$0 sm:$0xff]  ;;  %vm1186_vm8 = vcmp.eq.s32.totalorder %v2449_v9, 41 }
0x1269   : > { %v1143_v52 = vmul.f32 %v1127_v21, %v1120_v51  ;;  %v1183_v18 = vxor.u32 2147483648, %v1182_v14 }
0x126b   : > { %1144 = vadd.xlane.f32.xlu0 %v1143_v52 }
0x1283   : > { %v1137_v56 = vpop.xlane.xlu1 %1136  ;;  %v1141_v57 = vpop.xlane.xlu2 %1140 }
0x1284   : > { %v1138_v58 = vsel %vm1130_vm3, %v1137_v56, %v1112_v22  ;;  %v1142_v59 = vsel %vm1130_vm3, %v1141_v57, %v1116_v23 }
0x1285   : > { %v1165_v60 = vmul.f32 %v1153_v54, %v1142_v59  ;;  %v1161_v61 = vmul.f32 %v1153_v54, %v1138_v58 }
0x1287   : > { %1166 = vadd.xlane.f32.xlu1 %v1165_v60  ;;  %1162 = vadd.xlane.f32.xlu0 %v1161_v61 }
0x128b   : > { %v1149_v63 = vpop.xlane.xlu1 %1148 }
0x128c   : > { %v1150_v1 = vsel %vm1130_vm3, %v1149_v63, %v1124_v29 }
0x128d   : > { %v1173_v4 = vmul.f32 %v1153_v54, %v1150_v1 }
0x128f   : > { %1178 = vadd.xlane.f32.xlu1 %v1177_v0  ;;  %1174 = vadd.xlane.f32.xlu0 %v1173_v4  ;;  %v1242_v0 = vld [vmem:[#allocation2 + $0x2b] ss:$0 sm:$0xff] }
0x12d6   : > { %v1133_v6 = vpop.xlane.xlu0 %1132 }
0x12d7   : > { %v1134_v7 = vsel %vm1130_vm3, %v1133_v6, %v1108_v48  ;;  %v1243_v6 = vxor.u32 2147483648, %v1242_v0 }
0x12d8   : > { %v1157_v8 = vmul.f32 %v1153_v54, %v1134_v7 }
0x12da   : > { %1158 = vadd.xlane.f32.xlu2 %v1157_v8 }
0x12de   : > { %v1145_v11 = vpop.xlane.xlu0 %1144 }
0x12df   : > { %v1146_v3 = vsel %vm1130_vm3, %v1145_v11, %v1120_v51  ;;  %vm1336_vm3 = vcmp.eq.s32.totalorder %v2449_v9, 46 }
0x12e0   : > { %v1169_v12 = vmul.f32 %v1153_v54, %v1146_v3 }
0x12e2   : > { %1170 = vadd.xlane.f32.xlu2 %v1169_v12 }
0x12fa   : > { %v1167_v15 = vpop.xlane.xlu1 %1166  ;;  %v1163_v17 = vpop.xlane.xlu0 %1162 }
0x12fb   : > { %v1168_v20 = vsel %vm1156_vm7, %v1167_v15, %v1142_v59  ;;  %v1164_v21 = vsel %vm1156_vm7, %v1163_v17, %v1138_v58 }
0x12fc   : > { %v1195_v22 = vmul.f32 %v1183_v18, %v1168_v20  ;;  %v1191_v23 = vmul.f32 %v1183_v18, %v1164_v21 }
0x12fe   : > { %1196 = vadd.xlane.f32.xlu1 %v1195_v22  ;;  %1192 = vadd.xlane.f32.xlu0 %v1191_v23 }
0x1302   : > { %v1179_v25 = vpop.xlane.xlu1 %1178  ;;  %v1175_v26 = vpop.xlane.xlu0 %1174 }
0x1303   : > { %v1180_v27 = vsel %vm1156_vm7, %v1179_v25, %v426_v62  ;;  %v1176_v29 = vsel %vm1156_vm7, %v1175_v26, %v1150_v1 }
0x1304   : > { %v1207_v30 = vmul.f32 %v1183_v18, %v1180_v27  ;;  %v1203_v33 = vmul.f32 %v1183_v18, %v1176_v29 }
0x1306   : > { %1208 = vadd.xlane.f32.xlu1 %v1207_v30  ;;  %1204 = vadd.xlane.f32.xlu0 %v1203_v33 }
0x134d   : > { %v1159_v34 = vpop.xlane.xlu2 %1158 }
0x134e   : > { %v1160_v35 = vsel %vm1156_vm7, %v1159_v34, %v1134_v7 }
0x134f   : > { %v1187_v37 = vmul.f32 %v1183_v18, %v1160_v35 }
0x1351   : > { %1188 = vadd.xlane.f32.xlu2 %v1187_v37 }
0x1355   : > { %v1171_v38 = vpop.xlane.xlu2 %1170 }
0x1356   : > { %v1172_v39 = vsel %vm1156_vm7, %v1171_v38, %v1146_v3 }
0x1357   : > { %v1199_v40 = vmul.f32 %v1183_v18, %v1172_v39 }
0x1359   : > { %1200 = vadd.xlane.f32.xlu2 %v1199_v40 }
0x1371   : > { %v1197_v42 = vpop.xlane.xlu1 %1196  ;;  %v1193_v43 = vpop.xlane.xlu0 %1192 }
0x1372   : > { %v1198_v46 = vsel %vm1186_vm8, %v1197_v42, %v1168_v20  ;;  %v1194_v48 = vsel %vm1186_vm8, %v1193_v43, %v1164_v21 }
0x1373   : > { %v1225_v49 = vmul.f32 %v1213_v45, %v1198_v46  ;;  %v1221_v50 = vmul.f32 %v1213_v45, %v1194_v48 }
0x1375   : > { %1226 = vadd.xlane.f32.xlu1 %v1225_v49  ;;  %1222 = vadd.xlane.f32.xlu0 %v1221_v50 }
0x1379   : > { %v1209_v51 = vpop.xlane.xlu1 %1208  ;;  %v1205_v52 = vpop.xlane.xlu0 %1204 }
0x137a   : > { %v1210_v53 = vsel %vm1186_vm8, %v1209_v51, %v1180_v27  ;;  %v1206_v54 = vsel %vm1186_vm8, %v1205_v52, %v1176_v29  ;;  %v1272_v29 = vld [vmem:[#allocation2 + $0x2c] ss:$0 sm:$0xff] }
0x137b   : > { %v1237_v56 = vmul.f32 %v1213_v45, %v1210_v53  ;;  %v1233_v57 = vmul.f32 %v1213_v45, %v1206_v54  ;;  %v1273_v30 = vxor.u32 2147483648, %v1272_v29 }
0x137d   : > { %1238 = vadd.xlane.f32.xlu1 %v1237_v56  ;;  %1234 = vadd.xlane.f32.xlu0 %v1233_v57 }
0x13c4   : > { %v1189_v58 = vpop.xlane.xlu2 %1188 }
0x13c5   : > { %v1190_v59 = vsel %vm1186_vm8, %v1189_v58, %v1160_v35 }
0x13c6   : > { %v1217_v60 = vmul.f32 %v1213_v45, %v1190_v59 }
0x13c8   : > { %1218 = vadd.xlane.f32.xlu2 %v1217_v60 }
0x13cc   : > { %v1201_v61 = vpop.xlane.xlu2 %1200 }
0x13cd   : > { %v1202_v62 = vsel %vm1186_vm8, %v1201_v61, %v1172_v39 }
0x13ce   : > { %v1229_v63 = vmul.f32 %v1213_v45, %v1202_v62 }
0x13d0   : > { %1230 = vadd.xlane.f32.xlu2 %v1229_v63 }
0x13e8   : > { %v1227_v1 = vpop.xlane.xlu1 %1226  ;;  %v1223_v4 = vpop.xlane.xlu0 %1222 }
0x13e9   : > { %v1228_v7 = vsel %vm1216_vm9, %v1227_v1, %v1198_v46  ;;  %v1224_v8 = vsel %vm1216_vm9, %v1223_v4, %v1194_v48 }
0x13ea   : > { %v1255_v11 = vmul.f32 %v1243_v6, %v1228_v7  ;;  %v1251_v3 = vmul.f32 %v1243_v6, %v1224_v8 }
0x13ec   : > { %1256 = vadd.xlane.f32.xlu1 %v1255_v11  ;;  %1252 = vadd.xlane.f32.xlu0 %v1251_v3 }
0x13f0   : > { %v1239_v12 = vpop.xlane.xlu1 %1238  ;;  %v1235_v14 = vpop.xlane.xlu0 %1234 }
0x13f1   : > { %v1240_v15 = vsel %vm1216_vm9, %v1239_v12, %v1210_v53  ;;  %v1236_v17 = vsel %vm1216_vm9, %v1235_v14, %v1206_v54  ;;  %v1302_v54 = vld [vmem:[#allocation2 + $0x2d] ss:$0 sm:$0xff] }
0x13f2   : > { %v1267_v18 = vmul.f32 %v1243_v6, %v1240_v15  ;;  %v1263_v20 = vmul.f32 %v1243_v6, %v1236_v17  ;;  %v1303_v56 = vxor.u32 2147483648, %v1302_v54 }
0x13f4   : > { %1268 = vadd.xlane.f32.xlu1 %v1267_v18  ;;  %1264 = vadd.xlane.f32.xlu0 %v1263_v20 }
0x143b   : > { %v1219_v21 = vpop.xlane.xlu2 %1218 }
0x143c   : > { %v1220_v22 = vsel %vm1216_vm9, %v1219_v21, %v1190_v59 }
0x143d   : > { %v1247_v23 = vmul.f32 %v1243_v6, %v1220_v22 }
0x143f   : > { %1248 = vadd.xlane.f32.xlu2 %v1247_v23 }
0x1443   : > { %v1231_v25 = vpop.xlane.xlu2 %1230 }
0x1444   : > { %v1232_v26 = vsel %vm1216_vm9, %v1231_v25, %v1202_v62 }
0x1445   : > { %v1259_v27 = vmul.f32 %v1243_v6, %v1232_v26 }
0x1447   : > { %1260 = vadd.xlane.f32.xlu2 %v1259_v27 }
0x145f   : > { %v1257_v33 = vpop.xlane.xlu1 %1256  ;;  %v1253_v34 = vpop.xlane.xlu0 %1252 }
0x1460   : > { %v1258_v35 = vsel %vm1246_vm12, %v1257_v33, %v1228_v7  ;;  %v1254_v37 = vsel %vm1246_vm12, %v1253_v34, %v1224_v8 }
0x1461   : > { %v1285_v38 = vmul.f32 %v1273_v30, %v1258_v35  ;;  %v1281_v39 = vmul.f32 %v1273_v30, %v1254_v37 }
0x1463   : > { %1286 = vadd.xlane.f32.xlu1 %v1285_v38  ;;  %1282 = vadd.xlane.f32.xlu0 %v1281_v39 }
0x1467   : > { %v1269_v40 = vpop.xlane.xlu1 %1268  ;;  %v1265_v41 = vpop.xlane.xlu0 %1264 }
0x1468   : > { %v1270_v42 = vsel %vm1246_vm12, %v1269_v40, %v1240_v15  ;;  %v1266_v43 = vsel %vm1246_vm12, %v1265_v41, %v1236_v17  ;;  %v1332_v17 = vld [vmem:[#allocation2 + $0x2e] ss:$0 sm:$0xff] }
0x1469   : > { %v1297_v45 = vmul.f32 %v1273_v30, %v1270_v42  ;;  %v1293_v46 = vmul.f32 %v1273_v30, %v1266_v43  ;;  %v1333_v18 = vxor.u32 2147483648, %v1332_v17 }
0x146b   : > { %1298 = vadd.xlane.f32.xlu1 %v1297_v45  ;;  %1294 = vadd.xlane.f32.xlu0 %v1293_v46  ;;  %v2280_v45 = vld [vmem:[%s2453_s26 + $0x30] sm:$0xff] }
0x14b2   : > { %v1249_v48 = vpop.xlane.xlu2 %1248 }
0x14b3   : > { %v1250_v49 = vsel %vm1246_vm12, %v1249_v48, %v1220_v22  ;;  %v1362_v48 = vld [vmem:[#allocation2 + $0x2f] ss:$0 sm:$0xff] }
0x14b4   : > { %v1277_v50 = vmul.f32 %v1273_v30, %v1250_v49 }
0x14b6   : > { %1278 = vadd.xlane.f32.xlu2 %v1277_v50 }
0x14ba   : > { %v1261_v51 = vpop.xlane.xlu2 %1260 }
0x14bb   : > { %v1262_v52 = vsel %vm1246_vm12, %v1261_v51, %v1232_v26 }
0x14bc   : > { %v1289_v53 = vmul.f32 %v1273_v30, %v1262_v52 }
0x14be   : > { %1290 = vadd.xlane.f32.xlu2 %v1289_v53 }
0x14d6   : > { %v1287_v57 = vpop.xlane.xlu1 %1286  ;;  %v1283_v58 = vpop.xlane.xlu0 %1282 }
0x14d7   : > { %v1288_v59 = vsel %vm1276_vm13, %v1287_v57, %v1258_v35  ;;  %v1284_v60 = vsel %vm1276_vm13, %v1283_v58, %v1254_v37 }
0x14d8   : > { %v1315_v61 = vmul.f32 %v1303_v56, %v1288_v59  ;;  %v1311_v62 = vmul.f32 %v1303_v56, %v1284_v60 }
0x14da   : > { %1316 = vadd.xlane.f32.xlu1 %v1315_v61  ;;  %1312 = vadd.xlane.f32.xlu0 %v1311_v62 }
0x14de   : > { %v1299_v63 = vpop.xlane.xlu1 %1298  ;;  %v1295_v0 = vpop.xlane.xlu0 %1294 }
0x14df   : > { %v1300_v1 = vsel %vm1276_vm13, %v1299_v63, %v1270_v42  ;;  %v1296_v4 = vsel %vm1276_vm13, %v1295_v0, %v1266_v43  ;;  %v2844_v43 = vadd.s32 48, %v2451_v10 }
0x14e0   : > { %v1327_v6 = vmul.f32 %v1303_v56, %v1300_v1  ;;  %v1323_v7 = vmul.f32 %v1303_v56, %v1296_v4 }
0x14e1   : > { %vm328_vm15 = vcmp.eq.s32.totalorder %v2844_v43, %v2449_v9  ;;  %vm333_vm4 = vcmp.ge.s32.totalorder %v2844_v43, %v2449_v9 }
0x14e2   : > { %1328 = vadd.xlane.f32.xlu1 %v1327_v6  ;;  %1324 = vadd.xlane.f32.xlu0 %v1323_v7  ;;  %v330_v46 = vsel %vm328_vm15, %v2280_v45, 0.0  ;;  %vm334_vm9 = vmand %vm333_vm4, %vm150_vm1  ;;  %vm432_vm15 = vcmp.eq.s32.totalorder %v2449_v9, %v2844_v43  ;;  %vm1430_vm4 = vcmp.eq.s32.totalorder %v2449_v9, 49 }
0x1529   : > { %v1279_v8 = vpop.xlane.xlu2 %1278 }
0x152a   : > { %v1280_v11 = vsel %vm1276_vm13, %v1279_v8, %v1250_v49  ;;  %v1363_v49 = vxor.u32 2147483648, %v1362_v48 }
0x152b   : > { %v1307_v3 = vmul.f32 %v1303_v56, %v1280_v11 }
0x152d   : > { %1308 = vadd.xlane.f32.xlu2 %v1307_v3 }
0x1531   : > { %v1291_v12 = vpop.xlane.xlu2 %1290 }
0x1532   : > { %v1292_v14 = vsel %vm1276_vm13, %v1291_v12, %v1262_v52 }
0x1533   : > { %v1319_v15 = vmul.f32 %v1303_v56, %v1292_v14 }
0x1535   : > { %1320 = vadd.xlane.f32.xlu2 %v1319_v15 }
0x154d   : > { %v1317_v20 = vpop.xlane.xlu1 %1316  ;;  %v1313_v21 = vpop.xlane.xlu0 %1312 }
0x154e   : > { %v1318_v22 = vsel %vm1306_vm14, %v1317_v20, %v1288_v59  ;;  %v1314_v23 = vsel %vm1306_vm14, %v1313_v21, %v1284_v60  ;;  %v335_v21 = vsel %vm334_vm9, %v2280_v45, 0.0  ;;  %vm1498_vm9 = vcmp.eq.s32.totalorder %v2449_v9, 51 }
0x154f   : > { %v1345_v25 = vmul.f32 %v1333_v18, %v1318_v22  ;;  %v1341_v26 = vmul.f32 %v1333_v18, %v1314_v23 }
0x1551   : > { %1346 = vadd.xlane.f32.xlu1 %v1345_v25  ;;  %1342 = vadd.xlane.f32.xlu0 %v1341_v26 }
0x1555   : > { %v1329_v27 = vpop.xlane.xlu1 %1328  ;;  %v1325_v29 = vpop.xlane.xlu0 %1324 }
0x1556   : > { %v1330_v30 = vsel %vm1306_vm14, %v1329_v27, %v1300_v1  ;;  %v1326_v33 = vsel %vm1306_vm14, %v1325_v29, %v1296_v4 }
0x1557   : > { %v1357_v34 = vmul.f32 %v1333_v18, %v1330_v30  ;;  %v1353_v35 = vmul.f32 %v1333_v18, %v1326_v33 }
0x1559   : > { %1358 = vadd.xlane.f32.xlu1 %v1357_v34  ;;  %1354 = vadd.xlane.f32.xlu0 %v1353_v35 }
0x15a0   : > { %v1309_v37 = vpop.xlane.xlu2 %1308 }
0x15a1   : > { %v1310_v38 = vsel %vm1306_vm14, %v1309_v37, %v1280_v11 }
0x15a2   : > { %v1337_v39 = vmul.f32 %v1333_v18, %v1310_v38 }
0x15a4   : > { %1338 = vadd.xlane.f32.xlu2 %v1337_v39 }
0x15a8   : > { %v1321_v40 = vpop.xlane.xlu2 %1320 }
0x15a9   : > { %v1322_v41 = vsel %vm1306_vm14, %v1321_v40, %v1292_v14  ;;  %vm1366_vm14 = vcmp.eq.s32.totalorder %v2449_v9, 47 }
0x15aa   : > { %v1349_v42 = vmul.f32 %v1333_v18, %v1322_v41 }
0x15ac   : > { %1350 = vadd.xlane.f32.xlu2 %v1349_v42 }
0x15b4   : > { %331 = vadd.xlane.f32.xlu2 %v330_v46 }
0x15c4   : > { %v1347_v50 = vpop.xlane.xlu1 %1346  ;;  %v1343_v51 = vpop.xlane.xlu0 %1342 }
0x15c5   : > { %v1348_v52 = vsel %vm1336_vm3, %v1347_v50, %v1318_v22  ;;  %v1344_v53 = vsel %vm1336_vm3, %v1343_v51, %v1314_v23 }
0x15c6   : > { %v1375_v54 = vmul.f32 %v1363_v49, %v1348_v52  ;;  %v1371_v56 = vmul.f32 %v1363_v49, %v1344_v53 }
0x15c8   : > { %1376 = vadd.xlane.f32.xlu2 %v1375_v54  ;;  %1372 = vadd.xlane.f32.xlu1 %v1371_v56 }
0x15cc   : > { %v1359_v57 = vpop.xlane.xlu1 %1358  ;;  %v1355_v58 = vpop.xlane.xlu0 %1354 }
0x15cd   : > { %v1360_v59 = vsel %vm1336_vm3, %v1359_v57, %v1330_v30  ;;  %v1356_v60 = vsel %vm1336_vm3, %v1355_v58, %v1326_v33 }
0x15ce   : > { %v1387_v61 = vmul.f32 %v1363_v49, %v1360_v59  ;;  %v1383_v62 = vmul.f32 %v1363_v49, %v1356_v60 }
0x15d0   : > { %1388 = vadd.xlane.f32.xlu2 %v1387_v61  ;;  %1384 = vadd.xlane.f32.xlu1 %v1383_v62 }
0x1617   : > { %v1339_v63 = vpop.xlane.xlu2 %1338 }
0x1618   : > { %v1340_v0 = vsel %vm1336_vm3, %v1339_v63, %v1310_v38 }
0x1619   : > { %v1367_v1 = vmul.f32 %v1363_v49, %v1340_v0 }
0x161b   : > { %1368 = vadd.xlane.f32.xlu0 %v1367_v1 }
0x161f   : > { %v1351_v4 = vpop.xlane.xlu2 %1350 }
0x1620   : > { %v1352_v6 = vsel %vm1336_vm3, %v1351_v4, %v1322_v41  ;;  %vm1396_vm3 = vcmp.eq.s32.totalorder %v2449_v9, 48 }
0x1621   : > { %v1379_v7 = vmul.f32 %v1363_v49, %v1352_v6 }
0x1623   : > { %1380 = vadd.xlane.f32.xlu0 %v1379_v7 }
0x1627   : > { %v2862_v8 = vpop.xlane.xlu2 %331 }
0x1628   : > { %2349 = vrcp.f32 %v2862_v8  ;;  %v347_v12 = vand.u32 2147483648, %v2862_v8  ;;  %vm341_vm7 = vweird.f32 %v2862_v8  ;;  %v345_v15 = vand.u32 2147483647, %v2862_v8 }
0x162a   : > { %v348_v18 = vor.u32 1.1754944e-38, %v347_v12  ;;  %vm346_vm13 = vcmp.eq.f32.partialorder %v345_v15, 8.507059e+37 }
0x162e   : > { %v2350_v11 = vpop.eup %2349 }
0x162f   : > { %v337_v3 = vmul.f32 %v2350_v11, %v2862_v8  ;;  %vm342_vm8 = vweird.f32 %v2350_v11 }
0x1630   : > { %vm343_vm12 = vmor %vm341_vm7, %vm342_vm8  ;;  %vm1464_vm8 = vcmp.eq.s32.totalorder %v2449_v9, 50 }
0x1631   : > { %v338_v14 = vsub.f32 1.0, %v337_v3 }
0x1633   : > { %v339_v17 = vmul.f32 %v2350_v11, %v338_v14 }
0x1635   : > { %v340_v20 = vadd.f32 %v2350_v11, %v339_v17 }
0x1637   : > { %v344_v22 = vsel %vm343_vm12, %v2350_v11, %v340_v20  ;;  %vm1532_vm12 = vcmp.eq.s32.totalorder %v2449_v9, 52 }
0x1638   : > { %v2875_v23 = vsel %vm346_vm13, %v348_v18, %v344_v22  ;;  %vm1566_vm13 = vcmp.eq.s32.totalorder %v2449_v9, 53 }
0x1639   : > { %v350_v25 = vmul.f32 %v2875_v23, %v335_v21 }
0x163b   : > { %351 = vst [vmem:[#allocation2 + $0x30] sm:$0xff] %v350_v25  ;;  %v1377_v26 = vpop.xlane.xlu2 %1376  ;;  %v1373_v27 = vpop.xlane.xlu1 %1372 }
0x163c   : > { %v1378_v33 = vsel %vm1366_vm14, %v1377_v26, %v1348_v52  ;;  %v1374_v34 = vsel %vm1366_vm14, %v1373_v27, %v1344_v53  ;;  %v433_v53 = vsel %vm432_vm15, -1.0, %v2394_v5  ;;  %vm1600_vm15 = vcmp.eq.s32.totalorder %v2449_v9, 54 }
0x1642   : > { %v1392_v29 = vld [vmem:[#allocation2 + $0x30] ss:$0 sm:$0xff]  ;;  %v1426_v56 = vld [vmem:[#allocation2 + $0x31] ss:$0 sm:$0xff]  ;;  %v1460_v22 = vld [vmem:[#allocation2 + $0x32] ss:$0 sm:$0xff] }
0x1643   : > { %v1393_v30 = vxor.u32 2147483648, %v1392_v29  ;;  %v1389_v38 = vpop.xlane.xlu2 %1388  ;;  %v1385_v39 = vpop.xlane.xlu1 %1384  ;;  %v1427_v57 = vxor.u32 2147483648, %v1426_v56  ;;  %v1461_v25 = vxor.u32 2147483648, %v1460_v22 }
0x1644   : > { %v1390_v40 = vsel %vm1366_vm14, %v1389_v38, %v1360_v59  ;;  %v1386_v41 = vsel %vm1366_vm14, %v1385_v39, %v1356_v60 }
0x1645   : > { %v1405_v35 = vmul.f32 %v1393_v30, %v1378_v33  ;;  %v1401_v37 = vmul.f32 %v1393_v30, %v1374_v34  ;;  %v1417_v42 = vmul.f32 %v1393_v30, %v1390_v40  ;;  %v1413_v45 = vmul.f32 %v1393_v30, %v1386_v41 }
0x1646   : > { %v1421_v54 = vmul.f32 %v1393_v30, %v433_v53 }
0x1647   : > { %1406 = vadd.xlane.f32.xlu2 %v1405_v35  ;;  %1402 = vadd.xlane.f32.xlu1 %v1401_v37 }
0x164f   : > { %1418 = vadd.xlane.f32.xlu2 %v1417_v42  ;;  %1414 = vadd.xlane.f32.xlu1 %v1413_v45 }
0x168e   : > { %v1369_v46 = vpop.xlane.xlu0 %1368 }
0x168f   : > { %v1370_v51 = vsel %vm1366_vm14, %v1369_v46, %v1340_v0 }
0x1690   : > { %v1397_v52 = vmul.f32 %v1393_v30, %v1370_v51 }
0x1696   : > { %v1381_v48 = vpop.xlane.xlu0 %1380 }
0x1697   : > { %v1382_v49 = vsel %vm1366_vm14, %v1381_v48, %v1352_v6 }
0x1698   : > { %v1409_v50 = vmul.f32 %v1393_v30, %v1382_v49 }
0x169a   : > { %1410 = vadd.xlane.f32.xlu0 %v1409_v50 }
0x16a2   : > { %1398 = vadd.xlane.f32.xlu0 %v1397_v52 }
0x16aa   : > { %1422 = vadd.xlane.f32.xlu0 %v1421_v54  ;;  %v1494_v54 = vld [vmem:[#allocation2 + $0x33] ss:$0 sm:$0xff] }
0x16ab   : > { %v1495_v56 = vxor.u32 2147483648, %v1494_v54 }
0x16ba   : > { %v1407_v58 = vpop.xlane.xlu2 %1406  ;;  %v1403_v59 = vpop.xlane.xlu1 %1402 }
0x16bb   : > { %v1408_v60 = vsel %vm1396_vm3, %v1407_v58, %v1378_v33  ;;  %v1404_v61 = vsel %vm1396_vm3, %v1403_v59, %v1374_v34 }
0x16bc   : > { %v1439_v62 = vmul.f32 %v1427_v57, %v1408_v60  ;;  %v1435_v63 = vmul.f32 %v1427_v57, %v1404_v61 }
0x16be   : > { %1436 = vadd.xlane.f32.xlu2 %v1435_v63  ;;  %1440 = vadd.xlane.f32.xlu0 %v1439_v62 }
0x16c2   : > { %v1419_v43 = vpop.xlane.xlu2 %1418  ;;  %v1415_v0 = vpop.xlane.xlu1 %1414 }
0x16c3   : > { %v1420_v1 = vsel %vm1396_vm3, %v1419_v43, %v1390_v40  ;;  %v1416_v4 = vsel %vm1396_vm3, %v1415_v0, %v1386_v41 }
0x16c4   : > { %v1451_v6 = vmul.f32 %v1427_v57, %v1420_v1  ;;  %v1447_v7 = vmul.f32 %v1427_v57, %v1416_v4 }
0x16c6   : > { %1448 = vadd.xlane.f32.xlu2 %v1447_v7  ;;  %1452 = vadd.xlane.f32.xlu0 %v1451_v6 }
0x170d   : > { %v1411_v11 = vpop.xlane.xlu0 %1410 }
0x170e   : > { %v1412_v3 = vsel %vm1396_vm3, %v1411_v11, %v1382_v49 }
0x170f   : > { %v1443_v12 = vmul.f32 %v1427_v57, %v1412_v3 }
0x1711   : > { %1444 = vadd.xlane.f32.xlu1 %v1443_v12 }
0x1715   : > { %v1399_v14 = vpop.xlane.xlu0 %1398 }
0x1716   : > { %v1400_v15 = vsel %vm1396_vm3, %v1399_v14, %v1370_v51 }
0x1717   : > { %v1431_v17 = vmul.f32 %v1427_v57, %v1400_v15 }
0x1719   : > { %1432 = vadd.xlane.f32.xlu1 %v1431_v17 }
0x171d   : > { %v1423_v18 = vpop.xlane.xlu0 %1422 }
0x171e   : > { %v1424_v20 = vsel %vm1396_vm3, %v1423_v18, %v433_v53 }
0x171f   : > { %v1455_v21 = vmul.f32 %v1427_v57, %v1424_v20 }
0x1721   : > { %1456 = vadd.xlane.f32.xlu1 %v1455_v21  ;;  %v1528_v21 = vld [vmem:[#allocation2 + $0x34] ss:$0 sm:$0xff] }
0x1722   : > { %v1529_v22 = vxor.u32 2147483648, %v1528_v21 }
0x1731   : > { %v1437_v26 = vpop.xlane.xlu2 %1436  ;;  %v1441_v27 = vpop.xlane.xlu0 %1440 }
0x1732   : > { %v1438_v29 = vsel %vm1430_vm4, %v1437_v26, %v1404_v61  ;;  %v1442_v30 = vsel %vm1430_vm4, %v1441_v27, %v1408_v60 }
0x1733   : > { %v1469_v33 = vmul.f32 %v1461_v25, %v1438_v29  ;;  %v1473_v34 = vmul.f32 %v1461_v25, %v1442_v30 }
0x1735   : > { %1470 = vadd.xlane.f32.xlu0 %v1469_v33  ;;  %1474 = vadd.xlane.f32.xlu1 %v1473_v34 }
0x1739   : > { %v1449_v35 = vpop.xlane.xlu2 %1448  ;;  %v1453_v37 = vpop.xlane.xlu0 %1452 }
0x173a   : > { %v1450_v38 = vsel %vm1430_vm4, %v1449_v35, %v1416_v4  ;;  %v1454_v39 = vsel %vm1430_vm4, %v1453_v37, %v1420_v1 }
0x173b   : > { %v1481_v40 = vmul.f32 %v1461_v25, %v1450_v38  ;;  %v1485_v41 = vmul.f32 %v1461_v25, %v1454_v39 }
0x173d   : > { %1482 = vadd.xlane.f32.xlu0 %v1481_v40  ;;  %1486 = vadd.xlane.f32.xlu1 %v1485_v41 }
0x1784   : > { %v1445_v42 = vpop.xlane.xlu1 %1444 }
0x1785   : > { %v1446_v45 = vsel %vm1430_vm4, %v1445_v42, %v1412_v3 }
0x1786   : > { %v1477_v46 = vmul.f32 %v1461_v25, %v1446_v45 }
0x1788   : > { %1478 = vadd.xlane.f32.xlu2 %v1477_v46 }
0x178c   : > { %v1433_v48 = vpop.xlane.xlu1 %1432 }
0x178d   : > { %v1434_v49 = vsel %vm1430_vm4, %v1433_v48, %v1400_v15 }
0x178e   : > { %v1465_v50 = vmul.f32 %v1461_v25, %v1434_v49 }
0x1790   : > { %1466 = vadd.xlane.f32.xlu2 %v1465_v50 }
0x1794   : > { %v1457_v51 = vpop.xlane.xlu1 %1456 }
0x1795   : > { %v1458_v52 = vsel %vm1430_vm4, %v1457_v51, %v1424_v20 }
0x1796   : > { %v1489_v53 = vmul.f32 %v1461_v25, %v1458_v52 }
0x1798   : > { %1490 = vadd.xlane.f32.xlu2 %v1489_v53  ;;  %v1562_v53 = vld [vmem:[#allocation2 + $0x35] ss:$0 sm:$0xff] }
0x1799   : > { %v1563_v54 = vxor.u32 2147483648, %v1562_v53 }
0x17a8   : > { %v1475_v57 = vpop.xlane.xlu1 %1474  ;;  %v1471_v58 = vpop.xlane.xlu0 %1470 }
0x17a9   : > { %v1476_v59 = vsel %vm1464_vm8, %v1475_v57, %v1442_v30  ;;  %v1472_v60 = vsel %vm1464_vm8, %v1471_v58, %v1438_v29 }
0x17aa   : > { %v1507_v61 = vmul.f32 %v1495_v56, %v1476_v59  ;;  %v1503_v62 = vmul.f32 %v1495_v56, %v1472_v60 }
0x17ac   : > { %1508 = vadd.xlane.f32.xlu2 %v1507_v61  ;;  %1504 = vadd.xlane.f32.xlu1 %v1503_v62 }
0x17b0   : > { %v1487_v63 = vpop.xlane.xlu1 %1486  ;;  %v1483_v43 = vpop.xlane.xlu0 %1482 }
0x17b1   : > { %v1488_v0 = vsel %vm1464_vm8, %v1487_v63, %v1454_v39  ;;  %v1484_v1 = vsel %vm1464_vm8, %v1483_v43, %v1450_v38 }
0x17b2   : > { %v1519_v4 = vmul.f32 %v1495_v56, %v1488_v0  ;;  %v1515_v6 = vmul.f32 %v1495_v56, %v1484_v1 }
0x17b4   : > { %1520 = vadd.xlane.f32.xlu2 %v1519_v4  ;;  %1516 = vadd.xlane.f32.xlu1 %v1515_v6 }
0x17fb   : > { %v1479_v7 = vpop.xlane.xlu2 %1478 }
0x17fc   : > { %v1480_v11 = vsel %vm1464_vm8, %v1479_v7, %v1446_v45 }
0x17fd   : > { %v1511_v3 = vmul.f32 %v1495_v56, %v1480_v11 }
0x17ff   : > { %1512 = vadd.xlane.f32.xlu0 %v1511_v3 }
0x1803   : > { %v1467_v12 = vpop.xlane.xlu2 %1466 }
0x1804   : > { %v1468_v14 = vsel %vm1464_vm8, %v1467_v12, %v1434_v49 }
0x1805   : > { %v1499_v15 = vmul.f32 %v1495_v56, %v1468_v14 }
0x1807   : > { %1500 = vadd.xlane.f32.xlu0 %v1499_v15 }
0x180b   : > { %v1491_v17 = vpop.xlane.xlu2 %1490 }
0x180c   : > { %v1492_v18 = vsel %vm1464_vm8, %v1491_v17, %v1458_v52 }
0x180d   : > { %v1523_v20 = vmul.f32 %v1495_v56, %v1492_v18 }
0x180f   : > { %1524 = vadd.xlane.f32.xlu0 %v1523_v20  ;;  %v1596_v20 = vld [vmem:[#allocation2 + $0x36] ss:$0 sm:$0xff] }
0x1810   : > { %v1597_v21 = vxor.u32 2147483648, %v1596_v20 }
0x181f   : > { %v1509_v25 = vpop.xlane.xlu2 %1508  ;;  %v1505_v26 = vpop.xlane.xlu1 %1504 }
0x1820   : > { %v1510_v27 = vsel %vm1498_vm9, %v1509_v25, %v1476_v59  ;;  %v1506_v29 = vsel %vm1498_vm9, %v1505_v26, %v1472_v60 }
0x1821   : > { %v1541_v30 = vmul.f32 %v1529_v22, %v1510_v27  ;;  %v1537_v33 = vmul.f32 %v1529_v22, %v1506_v29 }
0x1823   : > { %1542 = vadd.xlane.f32.xlu0 %v1541_v30  ;;  %1538 = vadd.xlane.f32.xlu2 %v1537_v33 }
0x1827   : > { %v1521_v34 = vpop.xlane.xlu2 %1520  ;;  %v1517_v35 = vpop.xlane.xlu1 %1516 }
0x1828   : > { %v1522_v37 = vsel %vm1498_vm9, %v1521_v34, %v1488_v0  ;;  %v1518_v38 = vsel %vm1498_vm9, %v1517_v35, %v1484_v1 }
0x1829   : > { %v1553_v39 = vmul.f32 %v1529_v22, %v1522_v37  ;;  %v1549_v40 = vmul.f32 %v1529_v22, %v1518_v38 }
0x182b   : > { %1554 = vadd.xlane.f32.xlu0 %v1553_v39  ;;  %1550 = vadd.xlane.f32.xlu2 %v1549_v40  ;;  %v2979_v40 = vadd.s32 56, %v2451_v10 }
0x182d   : > { %vm357_vm14 = vcmp.eq.s32.totalorder %v2979_v40, %v2449_v9  ;;  %vm362_vm3 = vcmp.ge.s32.totalorder %v2979_v40, %v2449_v9 }
0x1872   : > { %v1513_v41 = vpop.xlane.xlu0 %1512 }
0x1873   : > { %v1514_v42 = vsel %vm1498_vm9, %v1513_v41, %v1480_v11  ;;  %v2281_v41 = vld [vmem:[%s2453_s26 + $0x38] sm:$0xff] }
0x1874   : > { %v1545_v45 = vmul.f32 %v1529_v22, %v1514_v42 }
0x1876   : > { %1546 = vadd.xlane.f32.xlu1 %v1545_v45 }
0x187a   : > { %v1501_v46 = vpop.xlane.xlu0 %1500 }
0x187b   : > { %v1502_v48 = vsel %vm1498_vm9, %v1501_v46, %v1468_v14 }
0x187c   : > { %v1533_v49 = vmul.f32 %v1529_v22, %v1502_v48 }
0x187e   : > { %1534 = vadd.xlane.f32.xlu1 %v1533_v49 }
0x1882   : > { %v1525_v50 = vpop.xlane.xlu0 %1524 }
0x1883   : > { %v1526_v51 = vsel %vm1498_vm9, %v1525_v50, %v1492_v18  ;;  %vm363_vm9 = vmand %vm362_vm3, %vm150_vm1  ;;  %vm1634_vm1 = vcmp.eq.s32.totalorder %v2449_v9, 55  ;;  %vm1706_vm3 = vcmp.eq.s32.totalorder %v2449_v9, 57 }
0x1884   : > { %v1557_v52 = vmul.f32 %v1529_v22, %v1526_v51 }
0x1886   : > { %1558 = vadd.xlane.f32.xlu1 %v1557_v52 }
0x1896   : > { %v1539_v56 = vpop.xlane.xlu2 %1538  ;;  %v1543_v57 = vpop.xlane.xlu0 %1542 }
0x1897   : > { %v1540_v58 = vsel %vm1532_vm12, %v1539_v56, %v1506_v29  ;;  %v1544_v59 = vsel %vm1532_vm12, %v1543_v57, %v1510_v27 }
0x1898   : > { %v1571_v60 = vmul.f32 %v1563_v54, %v1540_v58  ;;  %v1575_v61 = vmul.f32 %v1563_v54, %v1544_v59 }
0x189a   : > { %1572 = vadd.xlane.f32.xlu0 %v1571_v60  ;;  %1576 = vadd.xlane.f32.xlu1 %v1575_v61 }
0x189e   : > { %v1551_v62 = vpop.xlane.xlu2 %1550  ;;  %v1555_v63 = vpop.xlane.xlu0 %1554 }
0x189f   : > { %v1552_v43 = vsel %vm1532_vm12, %v1551_v62, %v1518_v38  ;;  %v1556_v0 = vsel %vm1532_vm12, %v1555_v63, %v1522_v37 }
0x18a0   : > { %v1583_v1 = vmul.f32 %v1563_v54, %v1552_v43  ;;  %v1587_v4 = vmul.f32 %v1563_v54, %v1556_v0 }
0x18a2   : > { %1584 = vadd.xlane.f32.xlu0 %v1583_v1  ;;  %1588 = vadd.xlane.f32.xlu1 %v1587_v4 }
0x18e9   : > { %v1547_v6 = vpop.xlane.xlu1 %1546 }
0x18ea   : > { %v1548_v7 = vsel %vm1532_vm12, %v1547_v6, %v1514_v42  ;;  %v359_v42 = vsel %vm357_vm14, %v2281_v41, 0.0  ;;  %vm439_vm14 = vcmp.eq.s32.totalorder %v2449_v9, %v2979_v40 }
0x18eb   : > { %v1579_v11 = vmul.f32 %v1563_v54, %v1548_v7 }
0x18ed   : > { %1580 = vadd.xlane.f32.xlu2 %v1579_v11 }
0x18f1   : > { %v1535_v3 = vpop.xlane.xlu1 %1534 }
0x18f2   : > { %v1536_v12 = vsel %vm1532_vm12, %v1535_v3, %v1502_v48 }
0x18f3   : > { %v1567_v14 = vmul.f32 %v1563_v54, %v1536_v12 }
0x18f5   : > { %1568 = vadd.xlane.f32.xlu2 %v1567_v14 }
0x18f9   : > { %v1559_v15 = vpop.xlane.xlu1 %1558 }
0x18fa   : > { %v1560_v17 = vsel %vm1532_vm12, %v1559_v15, %v1526_v51 }
0x18fb   : > { %v1591_v18 = vmul.f32 %v1563_v54, %v1560_v17  ;;  %v1630_v54 = vld [vmem:[#allocation2 + $0x37] ss:$0 sm:$0xff] }
0x18fc   : > { %v1631_v56 = vxor.u32 2147483648, %v1630_v54 }
0x18fd   : > { %1592 = vadd.xlane.f32.xlu2 %v1591_v18 }
0x190d   : > { %v1577_v22 = vpop.xlane.xlu1 %1576  ;;  %v1573_v25 = vpop.xlane.xlu0 %1572 }
0x190e   : > { %v1578_v26 = vsel %vm1566_vm13, %v1577_v22, %v1544_v59  ;;  %v1574_v27 = vsel %vm1566_vm13, %v1573_v25, %v1540_v58 }
0x190f   : > { %v1609_v29 = vmul.f32 %v1597_v21, %v1578_v26  ;;  %v1605_v30 = vmul.f32 %v1597_v21, %v1574_v27 }
0x1911   : > { %1610 = vadd.xlane.f32.xlu2 %v1609_v29  ;;  %1606 = vadd.xlane.f32.xlu1 %v1605_v30 }
0x1915   : > { %v1589_v33 = vpop.xlane.xlu1 %1588  ;;  %v1585_v34 = vpop.xlane.xlu0 %1584 }
0x1916   : > { %v1590_v35 = vsel %vm1566_vm13, %v1589_v33, %v1556_v0  ;;  %v1586_v37 = vsel %vm1566_vm13, %v1585_v34, %v1552_v43 }
0x1917   : > { %v1621_v38 = vmul.f32 %v1597_v21, %v1590_v35  ;;  %v1617_v39 = vmul.f32 %v1597_v21, %v1586_v37 }
0x1919   : > { %1622 = vadd.xlane.f32.xlu2 %v1621_v38  ;;  %1618 = vadd.xlane.f32.xlu1 %v1617_v39 }
0x1921   : > { %360 = vadd.xlane.f32.xlu1 %v359_v42 }
0x1960   : > { %v1581_v45 = vpop.xlane.xlu2 %1580 }
0x1961   : > { %v1582_v46 = vsel %vm1566_vm13, %v1581_v45, %v1548_v7 }
0x1962   : > { %v1613_v48 = vmul.f32 %v1597_v21, %v1582_v46 }
0x1964   : > { %1614 = vadd.xlane.f32.xlu0 %v1613_v48 }
0x1968   : > { %v1569_v49 = vpop.xlane.xlu2 %1568 }
0x1969   : > { %v1570_v50 = vsel %vm1566_vm13, %v1569_v49, %v1536_v12 }
0x196a   : > { %v1601_v51 = vmul.f32 %v1597_v21, %v1570_v50 }
0x196c   : > { %1602 = vadd.xlane.f32.xlu0 %v1601_v51 }
0x1970   : > { %v1593_v10 = vpop.xlane.xlu2 %1592 }
0x1971   : > { %v1594_v52 = vsel %vm1566_vm13, %v1593_v10, %v1560_v17 }
0x1972   : > { %v1625_v53 = vmul.f32 %v1597_v21, %v1594_v52  ;;  %v364_v21 = vsel %vm363_vm9, %v2281_v41, 0.0  ;;  %vm1782_vm9 = vcmp.eq.s32.totalorder %v2449_v9, 59 }
0x1974   : > { %1626 = vadd.xlane.f32.xlu0 %v1625_v53 }
0x1984   : > { %v1611_v57 = vpop.xlane.xlu2 %1610  ;;  %v1607_v58 = vpop.xlane.xlu1 %1606 }
0x1985   : > { %v1612_v59 = vsel %vm1600_vm15, %v1611_v57, %v1578_v26  ;;  %v1608_v60 = vsel %vm1600_vm15, %v1607_v58, %v1574_v27  ;;  %v440_v58 = vsel %vm439_vm14, -1.0, %v2394_v5  ;;  %vm1934_vm14 = vcmp.eq.s32.totalorder %v2449_v9, 63 }
0x1986   : > { %v1643_v61 = vmul.f32 %v1631_v56, %v1612_v59  ;;  %v1639_v62 = vmul.f32 %v1631_v56, %v1608_v60 }
0x1988   : > { %1640 = vadd.xlane.f32.xlu0 %v1639_v62  ;;  %1644 = vadd.xlane.f32.xlu1 %v1643_v61 }
0x198c   : > { %v1623_v63 = vpop.xlane.xlu2 %1622  ;;  %v1619_v43 = vpop.xlane.xlu1 %1618 }
0x198d   : > { %v1624_v0 = vsel %vm1600_vm15, %v1623_v63, %v1590_v35  ;;  %v1620_v1 = vsel %vm1600_vm15, %v1619_v43, %v1586_v37 }
0x198e   : > { %v1655_v4 = vmul.f32 %v1631_v56, %v1624_v0  ;;  %v1651_v6 = vmul.f32 %v1631_v56, %v1620_v1 }
0x1990   : > { %1656 = vadd.xlane.f32.xlu1 %v1655_v4  ;;  %1652 = vadd.xlane.f32.xlu0 %v1651_v6 }
0x1994   : > { %v2999_v7 = vpop.xlane.xlu1 %360 }
0x1995   : > { %2351 = vrcp.f32 %v2999_v7  ;;  %v376_v12 = vand.u32 2147483648, %v2999_v7  ;;  %vm370_vm4 = vweird.f32 %v2999_v7  ;;  %v374_v15 = vand.u32 2147483647, %v2999_v7 }
0x1997   : > { %v377_v18 = vor.u32 1.1754944e-38, %v376_v12  ;;  %vm375_vm13 = vcmp.eq.f32.partialorder %v374_v15, 8.507059e+37 }
0x199b   : > { %v2352_v11 = vpop.eup %2351 }
0x199c   : > { %v366_v3 = vmul.f32 %v2352_v11, %v2999_v7  ;;  %vm371_vm8 = vweird.f32 %v2352_v11 }
0x199d   : > { %vm372_vm12 = vmor %vm370_vm4, %vm371_vm8  ;;  %vm1744_vm8 = vcmp.eq.s32.totalorder %v2449_v9, 58 }
0x199e   : > { %v367_v14 = vsub.f32 1.0, %v366_v3 }
0x19a0   : > { %v368_v17 = vmul.f32 %v2352_v11, %v367_v14 }
0x19a2   : > { %v369_v20 = vadd.f32 %v2352_v11, %v368_v17 }
0x19a4   : > { %v373_v22 = vsel %vm372_vm12, %v2352_v11, %v369_v20  ;;  %vm1820_vm12 = vcmp.eq.s32.totalorder %v2449_v9, 60 }
0x19a5   : > { %v3012_v25 = vsel %vm375_vm13, %v377_v18, %v373_v22  ;;  %vm1858_vm13 = vcmp.eq.s32.totalorder %v2449_v9, 61 }
0x19a6   : > { %v379_v26 = vmul.f32 %v3012_v25, %v364_v21 }
0x19a8   : > { %380 = vst [vmem:[#allocation2 + $0x38] sm:$0xff] %v379_v26 }
0x19af   : > { %v1664_v41 = vld [vmem:[#allocation2 + $0x38] ss:$0 sm:$0xff]  ;;  %v1702_v5 = vld [vmem:[#allocation2 + $0x39] ss:$0 sm:$0xff] }
0x19b0   : > { %v1665_v42 = vxor.u32 2147483648, %v1664_v41  ;;  %v1703_v6 = vxor.u32 2147483648, %v1702_v5 }
0x19d7   : > { %v1615_v27 = vpop.xlane.xlu0 %1614 }
0x19d8   : > { %v1616_v29 = vsel %vm1600_vm15, %v1615_v27, %v1582_v46 }
0x19d9   : > { %v1647_v30 = vmul.f32 %v1631_v56, %v1616_v29 }
0x19db   : > { %1648 = vadd.xlane.f32.xlu2 %v1647_v30 }
0x19df   : > { %v1603_v33 = vpop.xlane.xlu0 %1602 }
0x19e0   : > { %v1604_v34 = vsel %vm1600_vm15, %v1603_v33, %v1570_v50 }
0x19e1   : > { %v1635_v35 = vmul.f32 %v1631_v56, %v1604_v34 }
0x19e3   : > { %1636 = vadd.xlane.f32.xlu2 %v1635_v35 }
0x19e7   : > { %v1627_v37 = vpop.xlane.xlu0 %1626 }
0x19e8   : > { %v1628_v38 = vsel %vm1600_vm15, %v1627_v37, %v1594_v52  ;;  %vm1668_vm15 = vcmp.eq.s32.totalorder %v2449_v9, 56 }
0x19e9   : > { %v1659_v39 = vmul.f32 %v1631_v56, %v1628_v38 }
0x19eb   : > { %1660 = vadd.xlane.f32.xlu2 %v1659_v39 }
0x19fb   : > { %v1645_v45 = vpop.xlane.xlu1 %1644  ;;  %v1641_v46 = vpop.xlane.xlu0 %1640 }
0x19fc   : > { %v1646_v48 = vsel %vm1634_vm1, %v1645_v45, %v1612_v59  ;;  %v1642_v49 = vsel %vm1634_vm1, %v1641_v46, %v1608_v60  ;;  %v1697_v59 = vmul.f32 %v1665_v42, %v440_v58 }
0x19fd   : > { %v1677_v50 = vmul.f32 %v1665_v42, %v1646_v48  ;;  %v1673_v51 = vmul.f32 %v1665_v42, %v1642_v49 }
0x19ff   : > { %1678 = vadd.xlane.f32.xlu2 %v1677_v50  ;;  %1674 = vadd.xlane.f32.xlu1 %v1673_v51 }
0x1a03   : > { %v1657_v10 = vpop.xlane.xlu1 %1656  ;;  %v1653_v52 = vpop.xlane.xlu0 %1652 }
0x1a04   : > { %v1658_v53 = vsel %vm1634_vm1, %v1657_v10, %v1624_v0  ;;  %v1654_v54 = vsel %vm1634_vm1, %v1653_v52, %v1620_v1 }
0x1a05   : > { %v1689_v56 = vmul.f32 %v1665_v42, %v1658_v53  ;;  %v1685_v57 = vmul.f32 %v1665_v42, %v1654_v54 }
0x1a07   : > { %1690 = vadd.xlane.f32.xlu2 %v1689_v56  ;;  %1686 = vadd.xlane.f32.xlu1 %v1685_v57 }
0x1a0f   : > { %1698 = vadd.xlane.f32.xlu1 %v1697_v59 }
0x1a4e   : > { %v1649_v60 = vpop.xlane.xlu2 %1648 }
0x1a4f   : > { %v1650_v61 = vsel %vm1634_vm1, %v1649_v60, %v1616_v29 }
0x1a50   : > { %v1681_v62 = vmul.f32 %v1665_v42, %v1650_v61 }
0x1a52   : > { %1682 = vadd.xlane.f32.xlu0 %v1681_v62 }
0x1a56   : > { %v1637_v63 = vpop.xlane.xlu2 %1636 }
0x1a57   : > { %v1638_v43 = vsel %vm1634_vm1, %v1637_v63, %v1604_v34 }
0x1a58   : > { %v1669_v0 = vmul.f32 %v1665_v42, %v1638_v43 }
0x1a5a   : > { %1670 = vadd.xlane.f32.xlu0 %v1669_v0 }
0x1a5e   : > { %v1661_v1 = vpop.xlane.xlu2 %1660 }
0x1a5f   : > { %v1662_v40 = vsel %vm1634_vm1, %v1661_v1, %v1628_v38  ;;  %vm1896_vm1 = vcmp.eq.s32.totalorder %v2449_v9, 62 }
0x1a60   : > { %v1693_v4 = vmul.f32 %v1665_v42, %v1662_v40 }
0x1a62   : > { %1694 = vadd.xlane.f32.xlu0 %v1693_v4 }
0x1a72   : > { %v1679_v11 = vpop.xlane.xlu2 %1678  ;;  %v1675_v3 = vpop.xlane.xlu1 %1674 }
0x1a73   : > { %v1680_v12 = vsel %vm1668_vm15, %v1679_v11, %v1646_v48  ;;  %v1676_v14 = vsel %vm1668_vm15, %v1675_v3, %v1642_v49  ;;  %v1740_v48 = vld [vmem:[#allocation2 + $0x3a] ss:$0 sm:$0xff] }
0x1a74   : > { %v1715_v15 = vmul.f32 %v1703_v6, %v1680_v12  ;;  %v1711_v17 = vmul.f32 %v1703_v6, %v1676_v14  ;;  %v1741_v49 = vxor.u32 2147483648, %v1740_v48 }
0x1a76   : > { %1712 = vadd.xlane.f32.xlu0 %v1711_v17  ;;  %1716 = vadd.xlane.f32.xlu1 %v1715_v15 }
0x1a7a   : > { %v1691_v18 = vpop.xlane.xlu2 %1690  ;;  %v1687_v20 = vpop.xlane.xlu1 %1686 }
0x1a7b   : > { %v1692_v21 = vsel %vm1668_vm15, %v1691_v18, %v1658_v53  ;;  %v1688_v22 = vsel %vm1668_vm15, %v1687_v20, %v1654_v54 }
0x1a7c   : > { %v1727_v26 = vmul.f32 %v1703_v6, %v1692_v21  ;;  %v1723_v27 = vmul.f32 %v1703_v6, %v1688_v22 }
0x1a7e   : > { %1728 = vadd.xlane.f32.xlu1 %v1727_v26  ;;  %1724 = vadd.xlane.f32.xlu0 %v1723_v27 }
0x1a82   : > { %v1699_v29 = vpop.xlane.xlu1 %1698 }
0x1a83   : > { %v1700_v30 = vsel %vm1668_vm15, %v1699_v29, %v440_v58 }
0x1a84   : > { %v1735_v33 = vmul.f32 %v1703_v6, %v1700_v30 }
0x1a86   : > { %1736 = vadd.xlane.f32.xlu0 %v1735_v33 }
0x1ac5   : > { %v1683_v34 = vpop.xlane.xlu0 %1682 }
0x1ac6   : > { %v1684_v35 = vsel %vm1668_vm15, %v1683_v34, %v1650_v61 }
0x1ac7   : > { %v1719_v37 = vmul.f32 %v1703_v6, %v1684_v35 }
0x1ac9   : > { %1720 = vadd.xlane.f32.xlu2 %v1719_v37 }
0x1acd   : > { %v1671_v38 = vpop.xlane.xlu0 %1670 }
0x1ace   : > { %v1672_v39 = vsel %vm1668_vm15, %v1671_v38, %v1638_v43 }
0x1acf   : > { %v1707_v41 = vmul.f32 %v1703_v6, %v1672_v39 }
0x1ad1   : > { %1708 = vadd.xlane.f32.xlu2 %v1707_v41 }
0x1ad5   : > { %v1695_v42 = vpop.xlane.xlu0 %1694 }
0x1ad6   : > { %v1696_v45 = vsel %vm1668_vm15, %v1695_v42, %v1662_v40 }
0x1ad7   : > { %v1731_v46 = vmul.f32 %v1703_v6, %v1696_v45 }
0x1ad9   : > { %1732 = vadd.xlane.f32.xlu2 %v1731_v46 }
0x1ae9   : > { %v1717_v50 = vpop.xlane.xlu1 %1716  ;;  %v1713_v51 = vpop.xlane.xlu0 %1712 }
0x1aea   : > { %v1718_v10 = vsel %vm1706_vm3, %v1717_v50, %v1680_v12  ;;  %v1714_v52 = vsel %vm1706_vm3, %v1713_v51, %v1676_v14  ;;  %v1778_v14 = vld [vmem:[#allocation2 + $0x3b] ss:$0 sm:$0xff] }
0x1aeb   : > { %v1753_v53 = vmul.f32 %v1741_v49, %v1718_v10  ;;  %v1749_v54 = vmul.f32 %v1741_v49, %v1714_v52  ;;  %v1779_v15 = vxor.u32 2147483648, %v1778_v14 }
0x1aed   : > { %1754 = vadd.xlane.f32.xlu0 %v1753_v53  ;;  %1750 = vadd.xlane.f32.xlu2 %v1749_v54 }
0x1af1   : > { %v1729_v56 = vpop.xlane.xlu1 %1728  ;;  %v1725_v57 = vpop.xlane.xlu0 %1724 }
0x1af2   : > { %v1730_v58 = vsel %vm1706_vm3, %v1729_v56, %v1692_v21  ;;  %v1726_v59 = vsel %vm1706_vm3, %v1725_v57, %v1688_v22 }
0x1af3   : > { %v1765_v60 = vmul.f32 %v1741_v49, %v1730_v58  ;;  %v1761_v61 = vmul.f32 %v1741_v49, %v1726_v59 }
0x1af5   : > { %1766 = vadd.xlane.f32.xlu0 %v1765_v60  ;;  %1762 = vadd.xlane.f32.xlu2 %v1761_v61 }
0x1af9   : > { %v1737_v62 = vpop.xlane.xlu0 %1736 }
0x1afa   : > { %v1738_v63 = vsel %vm1706_vm3, %v1737_v62, %v1700_v30 }
0x1afb   : > { %v1773_v43 = vmul.f32 %v1741_v49, %v1738_v63 }
0x1afd   : > { %1774 = vadd.xlane.f32.xlu2 %v1773_v43 }
0x1b3c   : > { %v1721_v0 = vpop.xlane.xlu2 %1720 }
0x1b3d   : > { %v1722_v1 = vsel %vm1706_vm3, %v1721_v0, %v1684_v35 }
0x1b3e   : > { %v1757_v40 = vmul.f32 %v1741_v49, %v1722_v1 }
0x1b40   : > { %1758 = vadd.xlane.f32.xlu1 %v1757_v40 }
0x1b44   : > { %v1709_v4 = vpop.xlane.xlu2 %1708 }
0x1b45   : > { %v1710_v5 = vsel %vm1706_vm3, %v1709_v4, %v1672_v39 }
0x1b46   : > { %v1745_v6 = vmul.f32 %v1741_v49, %v1710_v5 }
0x1b48   : > { %1746 = vadd.xlane.f32.xlu1 %v1745_v6 }
0x1b4c   : > { %v1733_v11 = vpop.xlane.xlu2 %1732 }
0x1b4d   : > { %v1734_v3 = vsel %vm1706_vm3, %v1733_v11, %v1696_v45 }
0x1b4e   : > { %v1769_v12 = vmul.f32 %v1741_v49, %v1734_v3 }
0x1b50   : > { %1770 = vadd.xlane.f32.xlu1 %v1769_v12 }
0x1b60   : > { %v1751_v17 = vpop.xlane.xlu2 %1750  ;;  %v1755_v18 = vpop.xlane.xlu0 %1754 }
0x1b61   : > { %v1752_v20 = vsel %vm1744_vm8, %v1751_v17, %v1714_v52  ;;  %v1756_v21 = vsel %vm1744_vm8, %v1755_v18, %v1718_v10  ;;  %v1816_v52 = vld [vmem:[#allocation2 + $0x3c] ss:$0 sm:$0xff] }
0x1b62   : > { %v1787_v22 = vmul.f32 %v1779_v15, %v1752_v20  ;;  %v1791_v26 = vmul.f32 %v1779_v15, %v1756_v21  ;;  %v1817_v53 = vxor.u32 2147483648, %v1816_v52 }
0x1b64   : > { %1788 = vadd.xlane.f32.xlu1 %v1787_v22  ;;  %1792 = vadd.xlane.f32.xlu2 %v1791_v26 }
0x1b68   : > { %v1763_v27 = vpop.xlane.xlu2 %1762  ;;  %v1767_v29 = vpop.xlane.xlu0 %1766 }
0x1b69   : > { %v1764_v30 = vsel %vm1744_vm8, %v1763_v27, %v1726_v59  ;;  %v1768_v33 = vsel %vm1744_vm8, %v1767_v29, %v1730_v58 }
0x1b6a   : > { %v1799_v34 = vmul.f32 %v1779_v15, %v1764_v30  ;;  %v1803_v35 = vmul.f32 %v1779_v15, %v1768_v33 }
0x1b6c   : > { %1800 = vadd.xlane.f32.xlu1 %v1799_v34  ;;  %1804 = vadd.xlane.f32.xlu2 %v1803_v35 }
0x1b70   : > { %v1775_v37 = vpop.xlane.xlu2 %1774 }
0x1b71   : > { %v1776_v38 = vsel %vm1744_vm8, %v1775_v37, %v1738_v63 }
0x1b72   : > { %v1811_v39 = vmul.f32 %v1779_v15, %v1776_v38 }
0x1b74   : > { %1812 = vadd.xlane.f32.xlu1 %v1811_v39 }
0x1bb3   : > { %v1759_v41 = vpop.xlane.xlu1 %1758 }
0x1bb4   : > { %v1760_v42 = vsel %vm1744_vm8, %v1759_v41, %v1722_v1 }
0x1bb5   : > { %v1795_v45 = vmul.f32 %v1779_v15, %v1760_v42 }
0x1bb7   : > { %1796 = vadd.xlane.f32.xlu0 %v1795_v45 }
0x1bbb   : > { %v1747_v46 = vpop.xlane.xlu1 %1746 }
0x1bbc   : > { %v1748_v48 = vsel %vm1744_vm8, %v1747_v46, %v1710_v5 }
0x1bbd   : > { %v1783_v49 = vmul.f32 %v1779_v15, %v1748_v48 }
0x1bbf   : > { %1784 = vadd.xlane.f32.xlu0 %v1783_v49 }
0x1bc3   : > { %v1771_v50 = vpop.xlane.xlu1 %1770 }
0x1bc4   : > { %v1772_v51 = vsel %vm1744_vm8, %v1771_v50, %v1734_v3 }
0x1bc5   : > { %v1807_v10 = vmul.f32 %v1779_v15, %v1772_v51 }
0x1bc7   : > { %1808 = vadd.xlane.f32.xlu0 %v1807_v10 }
0x1bd7   : > { %v1789_v54 = vpop.xlane.xlu1 %1788  ;;  %v1793_v56 = vpop.xlane.xlu2 %1792 }
0x1bd8   : > { %v1790_v57 = vsel %vm1782_vm9, %v1789_v54, %v1752_v20  ;;  %v1794_v58 = vsel %vm1782_vm9, %v1793_v56, %v1756_v21  ;;  %v1854_v21 = vld [vmem:[#allocation2 + $0x3d] ss:$0 sm:$0xff] }
0x1bd9   : > { %v1825_v59 = vmul.f32 %v1817_v53, %v1790_v57  ;;  %v1829_v60 = vmul.f32 %v1817_v53, %v1794_v58  ;;  %v1855_v22 = vxor.u32 2147483648, %v1854_v21 }
0x1bdb   : > { %1826 = vadd.xlane.f32.xlu0 %v1825_v59  ;;  %1830 = vadd.xlane.f32.xlu1 %v1829_v60 }
0x1bdf   : > { %v1801_v61 = vpop.xlane.xlu1 %1800  ;;  %v1805_v62 = vpop.xlane.xlu2 %1804 }
0x1be0   : > { %v1802_v63 = vsel %vm1782_vm9, %v1801_v61, %v1764_v30  ;;  %v1806_v43 = vsel %vm1782_vm9, %v1805_v62, %v1768_v33 }
0x1be1   : > { %v1837_v0 = vmul.f32 %v1817_v53, %v1802_v63  ;;  %v1841_v1 = vmul.f32 %v1817_v53, %v1806_v43 }
0x1be3   : > { %1838 = vadd.xlane.f32.xlu0 %v1837_v0  ;;  %1842 = vadd.xlane.f32.xlu1 %v1841_v1 }
0x1be7   : > { %v1813_v40 = vpop.xlane.xlu1 %1812 }
0x1be8   : > { %v1814_v4 = vsel %vm1782_vm9, %v1813_v40, %v1776_v38 }
0x1be9   : > { %v1849_v5 = vmul.f32 %v1817_v53, %v1814_v4 }
0x1beb   : > { %1850 = vadd.xlane.f32.xlu0 %v1849_v5 }
0x1c2a   : > { %v1797_v6 = vpop.xlane.xlu0 %1796 }
0x1c2b   : > { %v1798_v11 = vsel %vm1782_vm9, %v1797_v6, %v1760_v42 }
0x1c2c   : > { %v1833_v3 = vmul.f32 %v1817_v53, %v1798_v11 }
0x1c2e   : > { %1834 = vadd.xlane.f32.xlu2 %v1833_v3 }
0x1c32   : > { %v1785_v12 = vpop.xlane.xlu0 %1784 }
0x1c33   : > { %v1786_v14 = vsel %vm1782_vm9, %v1785_v12, %v1748_v48 }
0x1c34   : > { %v1821_v15 = vmul.f32 %v1817_v53, %v1786_v14 }
0x1c36   : > { %1822 = vadd.xlane.f32.xlu2 %v1821_v15 }
0x1c3a   : > { %v1809_v17 = vpop.xlane.xlu0 %1808 }
0x1c3b   : > { %v1810_v18 = vsel %vm1782_vm9, %v1809_v17, %v1772_v51 }
0x1c3c   : > { %v1845_v20 = vmul.f32 %v1817_v53, %v1810_v18 }
0x1c3e   : > { %1846 = vadd.xlane.f32.xlu2 %v1845_v20 }
0x1c4e   : > { %v1831_v26 = vpop.xlane.xlu1 %1830  ;;  %v1827_v27 = vpop.xlane.xlu0 %1826 }
0x1c4f   : > { %v1832_v29 = vsel %vm1820_vm12, %v1831_v26, %v1794_v58  ;;  %v1828_v30 = vsel %vm1820_vm12, %v1827_v27, %v1790_v57  ;;  %v1892_v58 = vld [vmem:[#allocation2 + $0x3e] ss:$0 sm:$0xff] }
0x1c50   : > { %v1867_v33 = vmul.f32 %v1855_v22, %v1832_v29  ;;  %v1863_v34 = vmul.f32 %v1855_v22, %v1828_v30  ;;  %v1893_v59 = vxor.u32 2147483648, %v1892_v58 }
0x1c52   : > { %1868 = vadd.xlane.f32.xlu0 %v1867_v33  ;;  %1864 = vadd.xlane.f32.xlu2 %v1863_v34 }
0x1c56   : > { %v1843_v35 = vpop.xlane.xlu1 %1842  ;;  %v1839_v37 = vpop.xlane.xlu0 %1838 }
0x1c57   : > { %v1844_v38 = vsel %vm1820_vm12, %v1843_v35, %v1806_v43  ;;  %v1840_v39 = vsel %vm1820_vm12, %v1839_v37, %v1802_v63 }
0x1c58   : > { %v1879_v41 = vmul.f32 %v1855_v22, %v1844_v38  ;;  %v1875_v42 = vmul.f32 %v1855_v22, %v1840_v39 }
0x1c5a   : > { %1880 = vadd.xlane.f32.xlu0 %v1879_v41  ;;  %1876 = vadd.xlane.f32.xlu2 %v1875_v42 }
0x1c5e   : > { %v1851_v45 = vpop.xlane.xlu0 %1850 }
0x1c5f   : > { %v1852_v46 = vsel %vm1820_vm12, %v1851_v45, %v1814_v4 }
0x1c60   : > { %v1887_v48 = vmul.f32 %v1855_v22, %v1852_v46 }
0x1c62   : > { %1888 = vadd.xlane.f32.xlu2 %v1887_v48 }
0x1ca1   : > { %v1835_v49 = vpop.xlane.xlu2 %1834 }
0x1ca2   : > { %v1836_v50 = vsel %vm1820_vm12, %v1835_v49, %v1798_v11 }
0x1ca3   : > { %v1871_v51 = vmul.f32 %v1855_v22, %v1836_v50 }
0x1ca5   : > { %1872 = vadd.xlane.f32.xlu1 %v1871_v51 }
0x1ca9   : > { %v1823_v10 = vpop.xlane.xlu2 %1822 }
0x1caa   : > { %v1824_v52 = vsel %vm1820_vm12, %v1823_v10, %v1786_v14 }
0x1cab   : > { %v1859_v53 = vmul.f32 %v1855_v22, %v1824_v52 }
0x1cad   : > { %1860 = vadd.xlane.f32.xlu1 %v1859_v53 }
0x1cb1   : > { %v1847_v54 = vpop.xlane.xlu2 %1846 }
0x1cb2   : > { %v1848_v56 = vsel %vm1820_vm12, %v1847_v54, %v1810_v18 }
0x1cb3   : > { %v1883_v57 = vmul.f32 %v1855_v22, %v1848_v56 }
0x1cb5   : > { %1884 = vadd.xlane.f32.xlu1 %v1883_v57 }
0x1cc5   : > { %v1865_v60 = vpop.xlane.xlu2 %1864  ;;  %v1869_v61 = vpop.xlane.xlu0 %1868 }
0x1cc6   : > { %v1866_v62 = vsel %vm1858_vm13, %v1865_v60, %v1828_v30  ;;  %v1870_v63 = vsel %vm1858_vm13, %v1869_v61, %v1832_v29  ;;  %v1930_v30 = vld [vmem:[#allocation2 + $0x3f] ss:$0 sm:$0xff] }
0x1cc7   : > { %v1901_v43 = vmul.f32 %v1893_v59, %v1866_v62  ;;  %v1905_v0 = vmul.f32 %v1893_v59, %v1870_v63  ;;  %v1931_v33 = vxor.u32 2147483648, %v1930_v30 }
0x1cc9   : > { %1902 = vadd.xlane.f32.xlu1 %v1901_v43  ;;  %1906 = vadd.xlane.f32.xlu2 %v1905_v0 }
0x1ccd   : > { %v1877_v1 = vpop.xlane.xlu2 %1876  ;;  %v1881_v40 = vpop.xlane.xlu0 %1880 }
0x1cce   : > { %v1878_v4 = vsel %vm1858_vm13, %v1877_v1, %v1840_v39  ;;  %v1882_v5 = vsel %vm1858_vm13, %v1881_v40, %v1844_v38 }
0x1ccf   : > { %v1913_v6 = vmul.f32 %v1893_v59, %v1878_v4  ;;  %v1917_v11 = vmul.f32 %v1893_v59, %v1882_v5 }
0x1cd1   : > { %1914 = vadd.xlane.f32.xlu1 %v1913_v6  ;;  %1918 = vadd.xlane.f32.xlu2 %v1917_v11 }
0x1cd5   : > { %v1889_v3 = vpop.xlane.xlu2 %1888 }
0x1cd6   : > { %v1890_v12 = vsel %vm1858_vm13, %v1889_v3, %v1852_v46 }
0x1cd7   : > { %v1925_v14 = vmul.f32 %v1893_v59, %v1890_v12 }
0x1cd9   : > { %1926 = vadd.xlane.f32.xlu1 %v1925_v14 }
0x1d18   : > { %v1873_v15 = vpop.xlane.xlu1 %1872 }
0x1d19   : > { %v1874_v17 = vsel %vm1858_vm13, %v1873_v15, %v1836_v50 }
0x1d1a   : > { %v1909_v18 = vmul.f32 %v1893_v59, %v1874_v17 }
0x1d1c   : > { %1910 = vadd.xlane.f32.xlu0 %v1909_v18 }
0x1d20   : > { %v1861_v20 = vpop.xlane.xlu1 %1860 }
0x1d21   : > { %v1862_v21 = vsel %vm1858_vm13, %v1861_v20, %v1824_v52 }
0x1d22   : > { %v1897_v22 = vmul.f32 %v1893_v59, %v1862_v21 }
0x1d24   : > { %1898 = vadd.xlane.f32.xlu0 %v1897_v22 }
0x1d28   : > { %v1885_v26 = vpop.xlane.xlu1 %1884 }
0x1d29   : > { %v1886_v27 = vsel %vm1858_vm13, %v1885_v26, %v1848_v56 }
0x1d2a   : > { %v1921_v29 = vmul.f32 %v1893_v59, %v1886_v27 }
0x1d2c   : > { %1922 = vadd.xlane.f32.xlu0 %v1921_v29 }
0x1d3c   : > { %v1903_v34 = vpop.xlane.xlu1 %1902  ;;  %v1907_v35 = vpop.xlane.xlu2 %1906 }
0x1d3d   : > { %v1904_v37 = vsel %vm1896_vm1, %v1903_v34, %v1866_v62  ;;  %v1908_v38 = vsel %vm1896_vm1, %v1907_v35, %v1870_v63 }
0x1d3e   : > { %v1939_v39 = vmul.f32 %v1931_v33, %v1904_v37  ;;  %v1943_v41 = vmul.f32 %v1931_v33, %v1908_v38 }
0x1d40   : > { %1940 = vadd.xlane.f32.xlu0 %v1939_v39  ;;  %1944 = vadd.xlane.f32.xlu1 %v1943_v41 }
0x1d44   : > { %v1915_v42 = vpop.xlane.xlu1 %1914  ;;  %v1919_v45 = vpop.xlane.xlu2 %1918 }
0x1d45   : > { %v1916_v46 = vsel %vm1896_vm1, %v1915_v42, %v1878_v4  ;;  %v1920_v48 = vsel %vm1896_vm1, %v1919_v45, %v1882_v5 }
0x1d46   : > { %v1951_v49 = vmul.f32 %v1931_v33, %v1916_v46  ;;  %v1955_v50 = vmul.f32 %v1931_v33, %v1920_v48 }
0x1d48   : > { %1952 = vadd.xlane.f32.xlu0 %v1951_v49  ;;  %1956 = vadd.xlane.f32.xlu1 %v1955_v50 }
0x1d4c   : > { %v1927_v51 = vpop.xlane.xlu1 %1926 }
0x1d4d   : > { %v1928_v10 = vsel %vm1896_vm1, %v1927_v51, %v1890_v12 }
0x1d4e   : > { %v1963_v52 = vmul.f32 %v1931_v33, %v1928_v10 }
0x1d50   : > { %1964 = vadd.xlane.f32.xlu0 %v1963_v52 }
0x1d8f   : > { %v1911_v53 = vpop.xlane.xlu0 %1910 }
0x1d90   : > { %v1912_v54 = vsel %vm1896_vm1, %v1911_v53, %v1874_v17 }
0x1d91   : > { %v1947_v56 = vmul.f32 %v1931_v33, %v1912_v54 }
0x1d93   : > { %1948 = vadd.xlane.f32.xlu2 %v1947_v56 }
0x1d97   : > { %v1899_v57 = vpop.xlane.xlu0 %1898 }
0x1d98   : > { %v1900_v58 = vsel %vm1896_vm1, %v1899_v57, %v1862_v21 }
0x1d99   : > { %v1935_v59 = vmul.f32 %v1931_v33, %v1900_v58 }
0x1d9b   : > { %1936 = vadd.xlane.f32.xlu2 %v1935_v59 }
0x1d9f   : > { %v1923_v60 = vpop.xlane.xlu0 %1922 }
0x1da0   : > { %v1924_v61 = vsel %vm1896_vm1, %v1923_v60, %v1886_v27 }
0x1da1   : > { %v1959_v62 = vmul.f32 %v1931_v33, %v1924_v61 }
0x1da3   : > { %1960 = vadd.xlane.f32.xlu2 %v1959_v62 }
0x1db3   : > { %v1945_v63 = vpop.xlane.xlu1 %1944  ;;  %v1941_v43 = vpop.xlane.xlu0 %1940 }
0x1db4   : > { %v1946_v0 = vsel %vm1934_vm14, %v1945_v63, %v1908_v38  ;;  %v1942_v1 = vsel %vm1934_vm14, %v1941_v43, %v1904_v37 }
0x1db5   : > { %v2018_v40 = vmul.f32 %v1946_v0, %v2528_v28  ;;  %v1999_v4 = vmul.f32 %v1942_v1, %v2497_v2 }
0x1db7   : > { %v2020_v5 = vsel %vm225_vm6, %v1946_v0, %v2018_v40  ;;  %v2001_v6 = vsel %vm196_vm0, %v1942_v1, %v1999_v4 }
0x1db8   : > { %2178 = vst [vmem:[%s3170_s4 + $0x10] sm:$0xff] %v2020_v5 }
0x1db9   : > { %2176 = vst [vmem:[%s3170_s4 + $0x8] sm:$0xff] %v2001_v6 }
0x1dbb   : > { %v1957_v28 = vpop.xlane.xlu1 %1956  ;;  %v1953_v2 = vpop.xlane.xlu0 %1952 }
0x1dbc   : > { %v1958_v11 = vsel %vm1934_vm14, %v1957_v28, %v1920_v48  ;;  %v1954_v3 = vsel %vm1934_vm14, %v1953_v2, %v1916_v46 }
0x1dbd   : > { %v2075_v16 = vmul.f32 %v1958_v11, %v2744_v44  ;;  %v2056_v12 = vmul.f32 %v1954_v3, %v2633_v47 }
0x1dbf   : > { %v2077_v55 = vsel %vm312_vm10, %v1958_v11, %v2075_v16  ;;  %v2058_v14 = vsel %vm283_vm2, %v1954_v3, %v2056_v12 }
0x1dc0   : > { %2184 = vst [vmem:[%s3170_s4 + $0x28] sm:$0xff] %v2077_v55 }
0x1dc1   : > { %2182 = vst [vmem:[%s3170_s4 + $0x20] sm:$0xff] %v2058_v14 }
0x1dc3   : > { %v1965_v15 = vpop.xlane.xlu0 %1964 }
0x1dc4   : > { %v1966_v17 = vsel %vm1934_vm14, %v1965_v15, %v1928_v10 }
0x1dc5   : > { %v2113_v18 = vmul.f32 %v1966_v17, %v3012_v25 }
0x1dc7   : > { %v2115_v44 = vsel %vm370_vm4, %v1966_v17, %v2113_v18 }
0x1dc8   : > { %2188 = vst [vmem:[%s3170_s4 + $0x38] sm:$0xff] %v2115_v44 }
0x1e06   : > { %v1949_v47 = vpop.xlane.xlu2 %1948 }
0x1e07   : > { %v1950_v31 = vsel %vm1934_vm14, %v1949_v47, %v1912_v54 }
0x1e08   : > { %v2037_v36 = vmul.f32 %v1950_v31, %v2589_v32 }
0x1e0a   : > { %v2039_v20 = vsel %vm254_vm11, %v1950_v31, %v2037_v36 }
0x1e0b   : > { %2180 = vst [vmem:[%s3170_s4 + $0x18] sm:$0xff] %v2039_v20 }
0x1e0e   : > { %v1937_v21 = vpop.xlane.xlu2 %1936 }
0x1e0f   : > { %v1938_v22 = vsel %vm1934_vm14, %v1937_v21, %v1900_v58 }
0x1e10   : > { %v1981_v25 = vmul.f32 %v1938_v22, %v2472_v24 }
0x1e12   : > { %v1983_v7 = vsel %vm167_vm5, %v1938_v22, %v1981_v25 }
0x1e13   : > { %2174 = vst [vmem:[%s3170_s4] sm:$0xff] %v1983_v7 }
0x1e16   : > { %v1961_v26 = vpop.xlane.xlu2 %1960 }
0x1e17   : > { %v1962_v27 = vsel %vm1934_vm14, %v1961_v26, %v1924_v61 }
0x1e18   : > { %v2094_v32 = vmul.f32 %v1962_v27, %v2875_v23 }
0x1e1a   : > { %v2096_v19 = vsel %vm341_vm7, %v1962_v27, %v2094_v32 }
0x1e1b   : > { %2186 = vst [vmem:[%s3170_s4 + $0x30] sm:$0xff] %v2096_v19 }
0x1e1c PF: > { %s7_s10 = sadd.s32 1, %s2391_s10   ;;  %s3231_s6 = smov %s2383_s8 }
0x1e1d   : > { %p4_p6 = scmp.ge.s32.totalorder %s7_s10, 10   ;;  %s3232_s7 = smov %s2387_s9 }
0x1e1e   : > { %s3233_s8 = smov %s3236_s12  ;;  %s3234_s9 = smov %s3240_s13 }
0x1e1f   :  { %6 = sbr.rel (!%p4_p6) target bundleno = 3 (0x3), region = 202 }

// kernel: custom-call.12
= control target key start
LH: loop header
LB: loop body
LE: loop exit
PB: predicated region body
PF: predicated region fallthrough
CT: control target
= control target key end

     0   :  { %s2404_s6 = smov 0   ;;  %s2406_s7 = smov 0   ;;  %s3303_s0 = inlined_call_operand.vmem [shape: f32[4,2,1,64,64], index: 0, kind: input, shape index: {}]   ;;  %s3304_s1 = inlined_call_operand.vmem [shape: f32[4,2,1,64,64], index: 1, kind: output, shape index: {}]  }
   0x1   :  { %s2408_s8 = smov 0   ;;  %s2410_s9 = smov 0  }
   0x2   :  { %s2412_s10 = smov 0  }
   0x3 LB: > { %s2264_s11 = sadd.s32 4294967295, %s2390_s10   ;;  %s36_s12 = sadd.s32 1, %s2382_s8  ;;  %s2390_s10 = sphi %s2412_s10, %s7_s10   ;;  %s2386_s9 = sphi %s2410_s9, %s3310_s9   ;;  %s2382_s8 = sphi %s2408_s8, %s3309_s8   ;;  %s2378_s7 = sphi %s2406_s7, %s3308_s7   ;;  %s2374_s6 = sphi %s2404_s6, %s3307_s6  }
   0x4   : > { %p38_p0 = scmp.ge.s32.totalorder %s36_s12, 2  ;;  %s40_s13 = sadd.s32 1, %s2386_s9 }
   0x5   : > { %p2266_p2 = scmp.ge.s32.totalorder %s2390_s10, 8 }
   0x6   : > { %s3312_s12 = smov (%p38_p0, %s36_s12), 0  ;;  %s3314_s13 = smov (!%p38_p0, %s40_s13), %s2386_s9 }
   0x7   : > { %p42_p1 = scmp.ge.s32.totalorder %s3314_s13, 4  ;;  %54 = sbr.rel (%p2266_p2) target bundleno = 23 (0x17), region = 16 }
   0x8   : > { %s56_s14 = sand.u32 (!%p2266_p2), 1, %s2390_s10   ;;  %s2268_s15 = sshll.u32 (!%p2266_p2), %s2382_s8, 3 }
   0x9   : > { %s3316_s13 = smov (%p42_p1, %s3314_s13), 0  ;;  %s2267_s16 = sshll.u32 (!%p2266_p2), %s56_s14, 6 }
   0xa   : > { %s2269_s17 = sshll.u32 (!%p2266_p2), %s2386_s9, 4  ;;  %s58_s23 = scalar_lea.vmem (!%p2266_p2), [#allocation0], %s2267_s16 }
   0xb   : > { %s65_s18 = sadd.s32 (!%p2266_p2), %s2269_s17, %s2268_s15 }
   0xc   : > { %s2270_s19 = sshll.u32 %s65_s18, 3 }
   0xd   : > { %s67_s22 = scalar_lea.vmem %s3303_s0, %s2270_s19 }
   0xe   : > { %v110_v0 = vld [vmem:[%s67_s22] sm:$0xff]  ;;  %v112_v1 = vld [vmem:[%s67_s22 + $0x8] sm:$0xff]  ;;  %v114_v2 = vld [vmem:[%s67_s22 + $0x10] sm:$0xff] }
   0xf   : > { %111 = vst [vmem:[%s58_s23] sm:$0xff] %v110_v0  ;;  %v116_v3 = vld [vmem:[%s67_s22 + $0x18] sm:$0xff]  ;;  %v118_v4 = vld [vmem:[%s67_s22 + $0x20] sm:$0xff]  ;;  %v120_v5 = vld [vmem:[%s67_s22 + $0x28] sm:$0xff] }
  0x10   : > { %113 = vst [vmem:[%s58_s23 + $0x8] sm:$0xff] %v112_v1  ;;  %v122_v6 = vld [vmem:[%s67_s22 + $0x30] sm:$0xff]  ;;  %v124_v7 = vld [vmem:[%s67_s22 + $0x38] sm:$0xff] }
  0x11   : > { %115 = vst [vmem:[%s58_s23 + $0x10] sm:$0xff] %v114_v2 }
  0x12   : > { %117 = vst [vmem:[%s58_s23 + $0x18] sm:$0xff] %v116_v3 }
  0x13   : > { %119 = vst [vmem:[%s58_s23 + $0x20] sm:$0xff] %v118_v4 }
  0x14   : > { %121 = vst [vmem:[%s58_s23 + $0x28] sm:$0xff] %v120_v5 }
  0x15   : > { %123 = vst [vmem:[%s58_s23 + $0x30] sm:$0xff] %v122_v6 }
  0x16   : > { %125 = vst [vmem:[%s58_s23 + $0x38] sm:$0xff] %v124_v7 }
  0x17 PF: > { %p2271_p3 = scmp.ge.s32.totalorder %s2390_s10, 1  ;;  %p130_p4 = scmp.lt.s32.totalorder %s2390_s10, 9 }
  0x19   : > { %p131_p5 = pnand %p2271_p3, %p130_p4 }
  0x1b   : > { %134 = sbr.rel (%p131_p5) target bundleno = 7686 (0x1e06), region = 54 }
  0x20   : > { %s137_s24 = sand.u32 1, %s2264_s11   ;;  %v148_v8 = vlaneseq  ;;  %v2392_v27 = vmov -1.0   ;;  %s2289_s27 = sshll.u32 %s2374_s6, 3 }
  0x21   : > { %s2272_s25 = sshll.u32 %s137_s24, 6  ;;  %s2290_s28 = sshll.u32 %s2378_s7, 4 }
  0x22   : > { %v2448_v9 = vand.u32 127, %v148_v8  ;;  %v2450_v10 = vshrl.u32 %v148_v8, 7  ;;  %s2453_s26 = scalar_lea.vmem [#allocation0], %s2272_s25  ;;  %s2127_s29 = sadd.s32 %s2290_s28, %s2289_s27 }
  0x23   : > { %v2280_v12 = vld [vmem:[%s2453_s26 + $0x38] sm:$0xff]  ;;  %v2279_v44 = vld [vmem:[%s2453_s26 + $0x30] sm:$0xff]  ;;  %s2291_s30 = sshll.u32 %s2127_s29, 3 }
  0x24   : > { %v356_v11 = vadd.s32 56, %v2450_v10  ;;  %vm150_vm1 = vcmp.lt.s32.totalorder %v2448_v9, 64  ;;  %vm438_vm8 = vcmp.eq.s32.totalorder %v2448_v9, 63  ;;  %vm446_vm10 = vcmp.eq.s32.totalorder %v2448_v9, 62  ;;  %s3242_s4 = scalar_lea.vmem %s3304_s1, %s2291_s30 }
  0x25   : > { %v439_v28 = vsel %vm438_vm8, 1.0, %v2392_v27  ;;  %vm456_vm11 = vcmp.eq.s32.totalorder %v2448_v9, 61  ;;  %v327_v43 = vadd.s32 48, %v2450_v10  ;;  %vm466_vm13 = vcmp.eq.s32.totalorder %v2448_v9, 60 }
  0x26   : > { %vm357_vm0 = vcmp.eq.s32.totalorder %v356_v11, %v2448_v9  ;;  %vm362_vm2 = vcmp.le.s32.totalorder %v356_v11, %v2448_v9  ;;  %vm435_vm9 = vcmp.eq.s32.totalorder %v2448_v9, %v356_v11 }
  0x27   : > { %v359_v13 = vsel %vm357_vm0, %v2280_v12, 0.0  ;;  %vm363_vm3 = vmand %vm362_vm2, %vm150_vm1  ;;  %v440_v29 = vsel %vm435_vm9, %v439_v28, 0.0  ;;  %vm328_vm12 = vcmp.eq.s32.totalorder %v327_v43, %v2448_v9  ;;  %vm333_vm14 = vcmp.le.s32.totalorder %v327_v43, %v2448_v9 }
  0x28   : > { %360 = vadd.xlane.f32.xlu0 %v359_v13  ;;  %v364_v22 = vsel %vm363_vm3, %v2280_v12, 0.0  ;;  %v330_v45 = vsel %vm328_vm12, %v2279_v44, 0.0  ;;  %vm334_vm2 = vmand %vm333_vm14, %vm150_vm1  ;;  %vm428_vm8 = vcmp.eq.s32.totalorder %v2448_v9, %v327_v43  ;;  %vm496_vm9 = vcmp.eq.s32.totalorder %v2448_v9, 57 }
  0x29   : > { %v335_v60 = vsel %vm334_vm2, %v2279_v44, 0.0  ;;  %vm530_vm12 = vcmp.eq.s32.totalorder %v2448_v9, 54  ;;  %vm558_vm14 = vcmp.eq.s32.totalorder %v2448_v9, 52  ;;  %vm586_vm2 = vcmp.eq.s32.totalorder %v2448_v9, 50 }
  0x9b   : > { %v2457_v14 = vpop.xlane.xlu0 %360 }
  0x9c   : > { %2336 = vrcp.f32 %v2457_v14  ;;  %v376_v18 = vand.u32 2147483648, %v2457_v14  ;;  %v374_v20 = vand.u32 2147483647, %v2457_v14  ;;  %vm3305_vm5 = vweird.f32 %v2457_v14 }
  0x9e   : > { %v377_v23 = vor.u32 1.1754944e-38, %v376_v18  ;;  %vm375_vm7 = vcmp.eq.f32.partialorder %v374_v20, 8.507059e+37 }
  0xa2   : > { %v2337_v15 = vpop.eup %2336 }
  0xa3   : > { %v366_v16 = vmul.f32 %v2337_v15, %v2457_v14  ;;  %vm371_vm4 = vweird.f32 %v2337_v15 }
  0xa4   : > { %vm372_vm6 = vmor %vm3305_vm5, %vm371_vm4  ;;  %vm1634_vm5 = vcmp.eq.s32.totalorder %v2448_v9, 8 }
  0xa5   : > { %v367_v17 = vsub.f32 1.0, %v366_v16 }
  0xa7   : > { %v368_v19 = vmul.f32 %v2337_v15, %v367_v17 }
  0xa9   : > { %v369_v21 = vadd.f32 %v2337_v15, %v368_v19 }
  0xab   : > { %v373_v24 = vsel %vm372_vm6, %v2337_v15, %v369_v21  ;;  %vm476_vm6 = vcmp.eq.s32.totalorder %v2448_v9, 59  ;;  %v2393_v15 = vmov 0.0  }
  0xac   : > { %v2470_v25 = vsel %vm375_vm7, %v377_v23, %v373_v24  ;;  %vm486_vm7 = vcmp.eq.s32.totalorder %v2448_v9, 58  ;;  %v429_v16 = vsel %vm428_vm8, -1.0, %v2393_v15 }
  0xad   : > { %v379_v26 = vmul.f32 %v2470_v25, %v364_v22 }
  0xaf   : > { %380 = vst [vmem:[#allocation2 + $0x38] sm:$0xff] %v379_v26 }
  0xb6   : > { %v442_v30 = vld [vmem:[#allocation2 + $0x3e] ss:$0 sm:$0xff]  ;;  %v452_v33 = vld [vmem:[#allocation2 + $0x3d] ss:$0 sm:$0xff]  ;;  %v462_v38 = vld [vmem:[#allocation2 + $0x3c] ss:$0 sm:$0xff] }
  0xb7   : > { %v443_v31 = vxor.u32 2147483648, %v442_v30  ;;  %v453_v35 = vxor.u32 2147483648, %v452_v33  ;;  %v463_v40 = vxor.u32 2147483648, %v462_v38  ;;  %v472_v46 = vld [vmem:[#allocation2 + $0x3b] ss:$0 sm:$0xff] }
  0xb8   : > { %v473_v48 = vxor.u32 2147483648, %v472_v46  ;;  %v482_v0 = vld [vmem:[#allocation2 + $0x3a] ss:$0 sm:$0xff]  ;;  %v492_v5 = vld [vmem:[#allocation2 + $0x39] ss:$0 sm:$0xff] }
  0xb9   : > { %v447_v32 = vmul.f32 %v443_v31, %v440_v29  ;;  %v483_v2 = vxor.u32 2147483648, %v482_v0  ;;  %v493_v7 = vxor.u32 2147483648, %v492_v5  ;;  %v502_v18 = vld [vmem:[#allocation2 + $0x38] ss:$0 sm:$0xff] }
  0xba   : > { %v503_v20 = vxor.u32 2147483648, %v502_v18 }
  0xbb   : > { %448 = vadd.xlane.f32.xlu0 %v447_v32 }
 0x12e   : > { %v449_v34 = vpop.xlane.xlu0 %448 }
 0x12f   : > { %v450_v36 = vsel %vm446_vm10, %v449_v34, %v440_v29  ;;  %vm516_vm10 = vcmp.eq.s32.totalorder %v2448_v9, 55 }
 0x130   : > { %v457_v37 = vmul.f32 %v453_v35, %v450_v36 }
 0x132   : > { %458 = vadd.xlane.f32.xlu1 %v457_v37 }
 0x1a5   : > { %v459_v39 = vpop.xlane.xlu1 %458 }
 0x1a6   : > { %v460_v41 = vsel %vm456_vm11, %v459_v39, %v450_v36  ;;  %vm506_vm11 = vcmp.eq.s32.totalorder %v2448_v9, 56 }
 0x1a7   : > { %v467_v42 = vmul.f32 %v463_v40, %v460_v41 }
 0x1a9   : > { %468 = vadd.xlane.f32.xlu1 %v467_v42 }
 0x1b1   : > { %331 = vadd.xlane.f32.xlu1 %v330_v45 }
 0x21c   : > { %v469_v47 = vpop.xlane.xlu1 %468 }
 0x21d   : > { %v470_v49 = vsel %vm466_vm13, %v469_v47, %v460_v41  ;;  %vm544_vm13 = vcmp.eq.s32.totalorder %v2448_v9, 53 }
 0x21e   : > { %v477_v50 = vmul.f32 %v473_v48, %v470_v49 }
 0x220   : > { %478 = vadd.xlane.f32.xlu2 %v477_v50 }
 0x224   : > { %v2481_v51 = vpop.xlane.xlu1 %331 }
 0x225   : > { %2338 = vrcp.f32 %v2481_v51  ;;  %v347_v54 = vand.u32 2147483648, %v2481_v51  ;;  %vm341_vm15 = vweird.f32 %v2481_v51  ;;  %v345_v56 = vand.u32 2147483647, %v2481_v51 }
 0x227   : > { %v348_v58 = vor.u32 1.1754944e-38, %v347_v54  ;;  %vm346_vm4 = vcmp.eq.f32.partialorder %v345_v56, 8.507059e+37 }
 0x22b   : > { %v2339_v52 = vpop.eup %2338 }
 0x22c   : > { %v337_v53 = vmul.f32 %v2339_v52, %v2481_v51  ;;  %vm342_vm0 = vweird.f32 %v2339_v52 }
 0x22d   : > { %vm343_vm3 = vmor %vm341_vm15, %vm342_vm0  ;;  %vm572_vm0 = vcmp.eq.s32.totalorder %v2448_v9, 51 }
 0x22e   : > { %v338_v55 = vsub.f32 1.0, %v337_v53 }
 0x230   : > { %v339_v57 = vmul.f32 %v2339_v52, %v338_v55 }
 0x232   : > { %v340_v59 = vadd.f32 %v2339_v52, %v339_v57 }
 0x234   : > { %v344_v61 = vsel %vm343_vm3, %v2339_v52, %v340_v59  ;;  %vm600_vm3 = vcmp.eq.s32.totalorder %v2448_v9, 49 }
 0x235   : > { %v2493_v62 = vsel %vm346_vm4, %v348_v58, %v344_v61 }
 0x236   : > { %v350_v63 = vmul.f32 %v2493_v62, %v335_v60 }
 0x238   : > { %351 = vst [vmem:[#allocation2 + $0x30] sm:$0xff] %v350_v63 }
 0x23f   : > { %v512_v11 = vld [vmem:[#allocation2 + $0x37] ss:$0 sm:$0xff]  ;;  %v526_v23 = vld [vmem:[#allocation2 + $0x36] ss:$0 sm:$0xff]  ;;  %v540_v32 = vld [vmem:[#allocation2 + $0x35] ss:$0 sm:$0xff] }
 0x240   : > { %v513_v13 = vxor.u32 2147483648, %v512_v11  ;;  %v527_v24 = vxor.u32 2147483648, %v526_v23  ;;  %v541_v34 = vxor.u32 2147483648, %v540_v32  ;;  %v554_v40 = vld [vmem:[#allocation2 + $0x34] ss:$0 sm:$0xff] }
 0x241   : > { %v555_v42 = vxor.u32 2147483648, %v554_v40  ;;  %v568_v48 = vld [vmem:[#allocation2 + $0x33] ss:$0 sm:$0xff]  ;;  %v582_v57 = vld [vmem:[#allocation2 + $0x32] ss:$0 sm:$0xff] }
 0x242   : > { %v517_v17 = vmul.f32 %v513_v13, %v429_v16  ;;  %v569_v50 = vxor.u32 2147483648, %v568_v48  ;;  %v583_v59 = vxor.u32 2147483648, %v582_v57 }
 0x293   : > { %v479_v1 = vpop.xlane.xlu2 %478 }
 0x294   : > { %v480_v3 = vsel %vm476_vm6, %v479_v1, %v470_v49 }
 0x295   : > { %v487_v4 = vmul.f32 %v483_v2, %v480_v3  ;;  %v596_v2 = vld [vmem:[#allocation2 + $0x31] ss:$0 sm:$0xff] }
 0x297   : > { %488 = vadd.xlane.f32.xlu2 %v487_v4  ;;  %v597_v4 = vxor.u32 2147483648, %v596_v2 }
 0x30a   : > { %v489_v6 = vpop.xlane.xlu2 %488 }
 0x30b   : > { %v490_v8 = vsel %vm486_vm7, %v489_v6, %v480_v3 }
 0x30c   : > { %v497_v12 = vmul.f32 %v493_v7, %v490_v8 }
 0x30e   : > { %498 = vadd.xlane.f32.xlu0 %v497_v12  ;;  %v298_v12 = vadd.s32 40, %v2450_v10 }
 0x310   : > { %vm299_vm4 = vcmp.eq.s32.totalorder %v298_v12, %v2448_v9  ;;  %vm304_vm6 = vcmp.le.s32.totalorder %v298_v12, %v2448_v9 }
 0x316   : > { %518 = vadd.xlane.f32.xlu0 %v517_v17 }
 0x381   : > { %v499_v19 = vpop.xlane.xlu0 %498 }
 0x382   : > { %v500_v21 = vsel %vm496_vm9, %v499_v19, %v490_v8  ;;  %vm305_vm9 = vmand %vm304_vm6, %vm150_vm1  ;;  %vm718_vm6 = vcmp.eq.s32.totalorder %v2448_v9, 42 }
 0x383   : > { %v507_v22 = vmul.f32 %v503_v20, %v500_v21 }
 0x385   : > { %508 = vadd.xlane.f32.xlu2 %v507_v22 }
 0x389   : > { %v519_v26 = vpop.xlane.xlu0 %518 }
 0x38a   : > { %v520_v27 = vsel %vm516_vm10, %v519_v26, %v429_v16  ;;  %v2278_v16 = vld [vmem:[%s2453_s26 + $0x28] sm:$0xff] }
 0x38b   : > { %v531_v28 = vmul.f32 %v527_v24, %v520_v27  ;;  %v301_v20 = vsel %vm299_vm4, %v2278_v16, 0.0  ;;  %vm700_vm4 = vcmp.eq.s32.totalorder %v2448_v9, 43 }
 0x38d   : > { %532 = vadd.xlane.f32.xlu2 %v531_v28 }
 0x3f8   : > { %v509_v29 = vpop.xlane.xlu2 %508 }
 0x3f9   : > { %v510_v30 = vsel %vm506_vm11, %v509_v29, %v500_v21 }
 0x3fa   : > { %v521_v31 = vmul.f32 %v513_v13, %v510_v30  ;;  %v610_v13 = vld [vmem:[#allocation2 + $0x30] ss:$0 sm:$0xff] }
 0x3fb   : > { %v611_v18 = vxor.u32 2147483648, %v610_v13 }
 0x3fc   : > { %522 = vadd.xlane.f32.xlu1 %v521_v31 }
 0x400   : > { %v533_v33 = vpop.xlane.xlu2 %532 }
 0x401   : > { %v534_v35 = vsel %vm530_vm12, %v533_v33, %v520_v27 }
 0x402   : > { %v545_v36 = vmul.f32 %v541_v34, %v534_v35 }
 0x404   : > { %546 = vadd.xlane.f32.xlu1 %v545_v36 }
 0x46f   : > { %v523_v37 = vpop.xlane.xlu1 %522 }
 0x470   : > { %v524_v38 = vsel %vm516_vm10, %v523_v37, %v510_v30 }
 0x471   : > { %v535_v39 = vmul.f32 %v527_v24, %v524_v38 }
 0x473   : > { %536 = vadd.xlane.f32.xlu0 %v535_v39 }
 0x477   : > { %v547_v41 = vpop.xlane.xlu1 %546 }
 0x478   : > { %v548_v43 = vsel %vm544_vm13, %v547_v41, %v534_v35  ;;  %v306_v35 = vsel %vm305_vm9, %v2278_v16, 0.0  ;;  %vm736_vm9 = vcmp.eq.s32.totalorder %v2448_v9, 41 }
 0x479   : > { %v559_v44 = vmul.f32 %v555_v42, %v548_v43 }
 0x47b   : > { %560 = vadd.xlane.f32.xlu0 %v559_v44 }
 0x4e6   : > { %v537_v45 = vpop.xlane.xlu0 %536 }
 0x4e7   : > { %v538_v46 = vsel %vm530_vm12, %v537_v45, %v524_v38  ;;  %vm421_vm12 = vcmp.eq.s32.totalorder %v2448_v9, %v298_v12 }
 0x4e8   : > { %v549_v47 = vmul.f32 %v541_v34, %v538_v46  ;;  %v422_v41 = vsel %vm421_vm12, -1.0, %v2393_v15 }
 0x4ea   : > { %550 = vadd.xlane.f32.xlu2 %v549_v47 }
 0x4ee   : > { %v561_v49 = vpop.xlane.xlu0 %560 }
 0x4ef   : > { %v562_v52 = vsel %vm558_vm14, %v561_v49, %v548_v43 }
 0x4f0   : > { %v573_v53 = vmul.f32 %v569_v50, %v562_v52 }
 0x4f2   : > { %574 = vadd.xlane.f32.xlu2 %v573_v53 }
 0x55d   : > { %v551_v54 = vpop.xlane.xlu2 %550 }
 0x55e   : > { %v552_v55 = vsel %vm544_vm13, %v551_v54, %v538_v46  ;;  %vm614_vm13 = vcmp.eq.s32.totalorder %v2448_v9, 48 }
 0x55f   : > { %v563_v56 = vmul.f32 %v555_v42, %v552_v55 }
 0x561   : > { %564 = vadd.xlane.f32.xlu1 %v563_v56 }
 0x565   : > { %v575_v58 = vpop.xlane.xlu2 %574 }
 0x566   : > { %v576_v60 = vsel %vm572_vm0, %v575_v58, %v562_v52 }
 0x567   : > { %v587_v61 = vmul.f32 %v583_v59, %v576_v60 }
 0x569   : > { %588 = vadd.xlane.f32.xlu1 %v587_v61 }
 0x5d4   : > { %v565_v63 = vpop.xlane.xlu1 %564 }
 0x5d5   : > { %v566_v0 = vsel %vm558_vm14, %v565_v63, %v552_v55  ;;  %vm628_vm14 = vcmp.eq.s32.totalorder %v2448_v9, 47 }
 0x5d6   : > { %v577_v1 = vmul.f32 %v569_v50, %v566_v0 }
 0x5d8   : > { %578 = vadd.xlane.f32.xlu0 %v577_v1 }
 0x5dc   : > { %v589_v3 = vpop.xlane.xlu1 %588 }
 0x5dd   : > { %v590_v5 = vsel %vm586_vm2, %v589_v3, %v576_v60 }
 0x5de   : > { %v601_v6 = vmul.f32 %v597_v4, %v590_v5 }
 0x5e0   : > { %602 = vadd.xlane.f32.xlu0 %v601_v6 }
 0x64b   : > { %v579_v7 = vpop.xlane.xlu0 %578 }
 0x64c   : > { %v580_v8 = vsel %vm572_vm0, %v579_v7, %v566_v0  ;;  %vm646_vm0 = vcmp.eq.s32.totalorder %v2448_v9, 46 }
 0x64d   : > { %v591_v11 = vmul.f32 %v583_v59, %v580_v8 }
 0x64f   : > { %592 = vadd.xlane.f32.xlu2 %v591_v11 }
 0x653   : > { %v603_v17 = vpop.xlane.xlu0 %602 }
 0x654   : > { %v604_v19 = vsel %vm600_vm3, %v603_v17, %v590_v5 }
 0x655   : > { %v615_v21 = vmul.f32 %v611_v18, %v604_v19 }
 0x657   : > { %616 = vadd.xlane.f32.xlu0 %v615_v21  ;;  %302 = vadd.xlane.f32.xlu2 %v301_v20 }
 0x6c2   : > { %v593_v22 = vpop.xlane.xlu2 %592 }
 0x6c3   : > { %v594_v23 = vsel %vm586_vm2, %v593_v22, %v580_v8  ;;  %vm664_vm2 = vcmp.eq.s32.totalorder %v2448_v9, 45 }
 0x6c4   : > { %v605_v24 = vmul.f32 %v597_v4, %v594_v23 }
 0x6c6   : > { %606 = vadd.xlane.f32.xlu1 %v605_v24 }
 0x6ca   : > { %v2538_v26 = vpop.xlane.xlu2 %302  ;;  %v617_v39 = vpop.xlane.xlu0 %616 }
 0x6cb   : > { %2340 = vrcp.f32 %v2538_v26  ;;  %v318_v29 = vand.u32 2147483648, %v2538_v26  ;;  %vm312_vm7 = vweird.f32 %v2538_v26  ;;  %v316_v31 = vand.u32 2147483647, %v2538_v26 }
 0x6cc   : > { %v618_v43 = vsel %vm614_vm13, %v617_v39, %v604_v19 }
 0x6cd   : > { %v319_v33 = vor.u32 1.1754944e-38, %v318_v29  ;;  %vm317_vm11 = vcmp.eq.f32.partialorder %v316_v31, 8.507059e+37 }
 0x6d1   : > { %v2341_v27 = vpop.eup %2340 }
 0x6d2   : > { %v308_v28 = vmul.f32 %v2341_v27, %v2538_v26  ;;  %vm313_vm8 = vweird.f32 %v2341_v27 }
 0x6d3   : > { %vm314_vm10 = vmor %vm312_vm7, %vm313_vm8 }
 0x6d4   : > { %v309_v30 = vsub.f32 1.0, %v308_v28 }
 0x6d6   : > { %v310_v32 = vmul.f32 %v2341_v27, %v309_v30 }
 0x6d8   : > { %v311_v34 = vadd.f32 %v2341_v27, %v310_v32 }
 0x6da   : > { %v315_v36 = vsel %vm314_vm10, %v2341_v27, %v311_v34 }
 0x6db   : > { %v2550_v37 = vsel %vm317_vm11, %v319_v33, %v315_v36 }
 0x6dc   : > { %v321_v38 = vmul.f32 %v2550_v37, %v306_v35 }
 0x6de   : > { %322 = vst [vmem:[#allocation2 + $0x28] sm:$0xff] %v321_v38 }
 0x6e5   : > { %v624_v40 = vld [vmem:[#allocation2 + $0x2f] ss:$0 sm:$0xff]  ;;  %v642_v49 = vld [vmem:[#allocation2 + $0x2e] ss:$0 sm:$0xff]  ;;  %v660_v61 = vld [vmem:[#allocation2 + $0x2d] ss:$0 sm:$0xff] }
 0x6e6   : > { %v625_v42 = vxor.u32 2147483648, %v624_v40  ;;  %v643_v50 = vxor.u32 2147483648, %v642_v49  ;;  %v661_v1 = vxor.u32 2147483648, %v660_v61  ;;  %v678_v11 = vld [vmem:[#allocation2 + $0x2c] ss:$0 sm:$0xff] }
 0x6e7   : > { %v679_v16 = vxor.u32 2147483648, %v678_v11  ;;  %v696_v24 = vld [vmem:[#allocation2 + $0x2b] ss:$0 sm:$0xff]  ;;  %v714_v38 = vld [vmem:[#allocation2 + $0x2a] ss:$0 sm:$0xff] }
 0x6e8   : > { %v633_v44 = vmul.f32 %v625_v42, %v618_v43  ;;  %v629_v45 = vmul.f32 %v625_v42, %v422_v41  ;;  %v697_v29 = vxor.u32 2147483648, %v696_v24  ;;  %v732_v49 = vld [vmem:[#allocation2 + $0x29] ss:$0 sm:$0xff] }
 0x6ea   : > { %634 = vadd.xlane.f32.xlu0 %v633_v44  ;;  %630 = vadd.xlane.f32.xlu2 %v629_v45 }
 0x739   : > { %v607_v46 = vpop.xlane.xlu1 %606 }
 0x73a   : > { %v608_v47 = vsel %vm600_vm3, %v607_v46, %v594_v23  ;;  %vm682_vm3 = vcmp.eq.s32.totalorder %v2448_v9, 44 }
 0x73b   : > { %v619_v48 = vmul.f32 %v611_v18, %v608_v47 }
 0x73d   : > { %620 = vadd.xlane.f32.xlu1 %v619_v48 }
 0x75d   : > { %v635_v52 = vpop.xlane.xlu0 %634  ;;  %v631_v53 = vpop.xlane.xlu2 %630 }
 0x75e   : > { %v636_v54 = vsel %vm628_vm14, %v635_v52, %v618_v43  ;;  %v632_v55 = vsel %vm628_vm14, %v631_v53, %v422_v41  ;;  %v715_v41 = vxor.u32 2147483648, %v714_v38  ;;  %v733_v53 = vxor.u32 2147483648, %v732_v49 }
 0x75f   : > { %v651_v56 = vmul.f32 %v643_v50, %v636_v54  ;;  %v647_v57 = vmul.f32 %v643_v50, %v632_v55 }
 0x761   : > { %652 = vadd.xlane.f32.xlu0 %v651_v56  ;;  %648 = vadd.xlane.f32.xlu2 %v647_v57 }
 0x7b0   : > { %v621_v58 = vpop.xlane.xlu1 %620 }
 0x7b1   : > { %v622_v59 = vsel %vm614_vm13, %v621_v58, %v608_v47  ;;  %v269_v58 = vadd.s32 32, %v2450_v10 }
 0x7b2   : > { %v637_v60 = vmul.f32 %v625_v42, %v622_v59 }
 0x7b3   : > { %vm270_vm8 = vcmp.eq.s32.totalorder %v269_v58, %v2448_v9  ;;  %vm275_vm10 = vcmp.le.s32.totalorder %v269_v58, %v2448_v9 }
 0x7b4   : > { %638 = vadd.xlane.f32.xlu1 %v637_v60  ;;  %vm276_vm13 = vmand %vm275_vm10, %vm150_vm1  ;;  %vm860_vm10 = vcmp.eq.s32.totalorder %v2448_v9, 35 }
 0x7d4   : > { %v653_v63 = vpop.xlane.xlu0 %652  ;;  %v649_v0 = vpop.xlane.xlu2 %648 }
 0x7d5   : > { %v654_v2 = vsel %vm646_vm0, %v653_v63, %v636_v54  ;;  %v650_v3 = vsel %vm646_vm0, %v649_v0, %v632_v55 }
 0x7d6   : > { %v669_v4 = vmul.f32 %v661_v1, %v654_v2  ;;  %v665_v5 = vmul.f32 %v661_v1, %v650_v3 }
 0x7d8   : > { %670 = vadd.xlane.f32.xlu0 %v669_v4  ;;  %666 = vadd.xlane.f32.xlu2 %v665_v5 }
 0x827   : > { %v639_v6 = vpop.xlane.xlu1 %638 }
 0x828   : > { %v640_v7 = vsel %vm628_vm14, %v639_v6, %v622_v59  ;;  %v2277_v59 = vld [vmem:[%s2453_s26 + $0x20] sm:$0xff] }
 0x829   : > { %v655_v8 = vmul.f32 %v643_v50, %v640_v7  ;;  %v272_v60 = vsel %vm270_vm8, %v2277_v59, 0.0  ;;  %vm816_vm8 = vcmp.eq.s32.totalorder %v2448_v9, 37 }
 0x82b   : > { %656 = vadd.xlane.f32.xlu1 %v655_v8 }
 0x84b   : > { %v671_v12 = vpop.xlane.xlu0 %670  ;;  %v667_v13 = vpop.xlane.xlu2 %666 }
 0x84c   : > { %v672_v17 = vsel %vm664_vm2, %v671_v12, %v654_v2  ;;  %v668_v18 = vsel %vm664_vm2, %v667_v13, %v650_v3 }
 0x84d   : > { %v687_v19 = vmul.f32 %v679_v16, %v672_v17  ;;  %v683_v20 = vmul.f32 %v679_v16, %v668_v18 }
 0x84f   : > { %688 = vadd.xlane.f32.xlu0 %v687_v19  ;;  %684 = vadd.xlane.f32.xlu2 %v683_v20  ;;  %v277_v19 = vsel %vm276_vm13, %v2277_v59, 0.0 }
 0x89e   : > { %v657_v21 = vpop.xlane.xlu1 %656 }
 0x89f   : > { %v658_v22 = vsel %vm646_vm0, %v657_v21, %v640_v7 }
 0x8a0   : > { %v673_v23 = vmul.f32 %v661_v1, %v658_v22  ;;  %v750_v1 = vld [vmem:[#allocation2 + $0x28] ss:$0 sm:$0xff] }
 0x8a1   : > { %v751_v3 = vxor.u32 2147483648, %v750_v1 }
 0x8a2   : > { %674 = vadd.xlane.f32.xlu1 %v673_v23 }
 0x8c2   : > { %v689_v27 = vpop.xlane.xlu0 %688  ;;  %v685_v28 = vpop.xlane.xlu2 %684 }
 0x8c3   : > { %v690_v30 = vsel %vm682_vm3, %v689_v27, %v672_v17  ;;  %v686_v31 = vsel %vm682_vm3, %v685_v28, %v668_v18 }
 0x8c4   : > { %v705_v32 = vmul.f32 %v697_v29, %v690_v30  ;;  %v701_v33 = vmul.f32 %v697_v29, %v686_v31 }
 0x8c6   : > { %706 = vadd.xlane.f32.xlu0 %v705_v32  ;;  %702 = vadd.xlane.f32.xlu2 %v701_v33 }
 0x915   : > { %v675_v34 = vpop.xlane.xlu1 %674 }
 0x916   : > { %v676_v35 = vsel %vm664_vm2, %v675_v34, %v658_v22  ;;  %vm414_vm2 = vcmp.eq.s32.totalorder %v2448_v9, %v269_v58 }
 0x917   : > { %v691_v36 = vmul.f32 %v679_v16, %v676_v35  ;;  %v415_v23 = vsel %vm414_vm2, -1.0, %v2393_v15 }
 0x919   : > { %692 = vadd.xlane.f32.xlu1 %v691_v36 }
 0x939   : > { %v707_v39 = vpop.xlane.xlu0 %706  ;;  %v703_v40 = vpop.xlane.xlu2 %702 }
 0x93a   : > { %v708_v42 = vsel %vm700_vm4, %v707_v39, %v690_v30  ;;  %v704_v43 = vsel %vm700_vm4, %v703_v40, %v686_v31 }
 0x93b   : > { %v723_v44 = vmul.f32 %v715_v41, %v708_v42  ;;  %v719_v45 = vmul.f32 %v715_v41, %v704_v43 }
 0x93d   : > { %724 = vadd.xlane.f32.xlu0 %v723_v44  ;;  %720 = vadd.xlane.f32.xlu2 %v719_v45 }
 0x98c   : > { %v693_v46 = vpop.xlane.xlu1 %692 }
 0x98d   : > { %v694_v47 = vsel %vm682_vm3, %v693_v46, %v676_v35  ;;  %vm754_vm3 = vcmp.eq.s32.totalorder %v2448_v9, 40 }
 0x98e   : > { %v709_v48 = vmul.f32 %v697_v29, %v694_v47 }
 0x990   : > { %710 = vadd.xlane.f32.xlu1 %v709_v48 }
 0x9b0   : > { %v725_v50 = vpop.xlane.xlu0 %724  ;;  %v721_v52 = vpop.xlane.xlu2 %720 }
 0x9b1   : > { %v726_v54 = vsel %vm718_vm6, %v725_v50, %v708_v42  ;;  %v722_v55 = vsel %vm718_vm6, %v721_v52, %v704_v43 }
 0x9b2   : > { %v741_v56 = vmul.f32 %v733_v53, %v726_v54  ;;  %v737_v57 = vmul.f32 %v733_v53, %v722_v55 }
 0x9b4   : > { %742 = vadd.xlane.f32.xlu0 %v741_v56  ;;  %738 = vadd.xlane.f32.xlu2 %v737_v57 }
 0x9bc   : > { %273 = vadd.xlane.f32.xlu2 %v272_v60 }
 0xa03   : > { %v711_v61 = vpop.xlane.xlu1 %710 }
 0xa04   : > { %v712_v63 = vsel %vm700_vm4, %v711_v61, %v694_v47  ;;  %vm772_vm4 = vcmp.eq.s32.totalorder %v2448_v9, 39 }
 0xa05   : > { %v727_v0 = vmul.f32 %v715_v41, %v712_v63 }
 0xa07   : > { %728 = vadd.xlane.f32.xlu1 %v727_v0 }
 0xa27   : > { %v739_v2 = vpop.xlane.xlu2 %738  ;;  %v743_v32 = vpop.xlane.xlu0 %742 }
 0xa28   : > { %v740_v4 = vsel %vm736_vm9, %v739_v2, %v722_v55  ;;  %v744_v33 = vsel %vm736_vm9, %v743_v32, %v726_v54 }
 0xa29   : > { %v755_v5 = vmul.f32 %v751_v3, %v740_v4  ;;  %v759_v34 = vmul.f32 %v751_v3, %v744_v33 }
 0xa2b   : > { %756 = vadd.xlane.f32.xlu0 %v755_v5 }
 0xa2f   : > { %v2608_v6 = vpop.xlane.xlu2 %273 }
 0xa30   : > { %2342 = vrcp.f32 %v2608_v6  ;;  %v289_v11 = vand.u32 2147483648, %v2608_v6  ;;  %vm283_vm11 = vweird.f32 %v2608_v6  ;;  %v287_v13 = vand.u32 2147483647, %v2608_v6 }
 0xa32   : > { %v290_v17 = vor.u32 1.1754944e-38, %v289_v11  ;;  %vm288_vm0 = vcmp.eq.f32.partialorder %v287_v13, 8.507059e+37 }
 0xa36   : > { %v2343_v7 = vpop.eup %2342 }
 0xa37   : > { %v279_v8 = vmul.f32 %v2343_v7, %v2608_v6  ;;  %vm284_vm12 = vweird.f32 %v2343_v7 }
 0xa38   : > { %vm285_vm14 = vmor %vm283_vm11, %vm284_vm12  ;;  %vm882_vm12 = vcmp.eq.s32.totalorder %v2448_v9, 34 }
 0xa39   : > { %v280_v12 = vsub.f32 1.0, %v279_v8 }
 0xa3b   : > { %v281_v16 = vmul.f32 %v2343_v7, %v280_v12 }
 0xa3d   : > { %v282_v18 = vadd.f32 %v2343_v7, %v281_v16 }
 0xa3f   : > { %v286_v20 = vsel %vm285_vm14, %v2343_v7, %v282_v18  ;;  %vm904_vm14 = vcmp.eq.s32.totalorder %v2448_v9, 33 }
 0xa40   : > { %v2620_v21 = vsel %vm288_vm0, %v290_v17, %v286_v20 }
 0xa41   : > { %v292_v22 = vmul.f32 %v2620_v21, %v277_v19 }
 0xa43   : > { %293 = vst [vmem:[#allocation2 + $0x20] sm:$0xff] %v292_v22 }
 0xa4a   : > { %v768_v24 = vld [vmem:[#allocation2 + $0x27] ss:$0 sm:$0xff]  ;;  %v790_v39 = vld [vmem:[#allocation2 + $0x26] ss:$0 sm:$0xff]  ;;  %v812_v54 = vld [vmem:[#allocation2 + $0x25] ss:$0 sm:$0xff] }
 0xa4b   : > { %v769_v27 = vxor.u32 2147483648, %v768_v24  ;;  %v791_v40 = vxor.u32 2147483648, %v790_v39  ;;  %v813_v55 = vxor.u32 2147483648, %v812_v54  ;;  %v834_v5 = vld [vmem:[#allocation2 + $0x24] ss:$0 sm:$0xff] }
 0xa4c   : > { %v835_v8 = vxor.u32 2147483648, %v834_v5 }
 0xa4d   : > { %v773_v28 = vmul.f32 %v769_v27, %v415_v23 }
 0xa4f   : > { %774 = vadd.xlane.f32.xlu0 %v773_v28 }
 0xa7a   : > { %v729_v29 = vpop.xlane.xlu1 %728 }
 0xa7b   : > { %v730_v30 = vsel %vm718_vm6, %v729_v29, %v712_v63  ;;  %vm794_vm6 = vcmp.eq.s32.totalorder %v2448_v9, 38 }
 0xa7c   : > { %v745_v31 = vmul.f32 %v733_v53, %v730_v30 }
 0xa7e   : > { %746 = vadd.xlane.f32.xlu1 %v745_v31 }
 0xa86   : > { %760 = vadd.xlane.f32.xlu1 %v759_v34 }
 0xa9e   : > { %v757_v35 = vpop.xlane.xlu0 %756 }
 0xa9f   : > { %v758_v36 = vsel %vm754_vm3, %v757_v35, %v740_v4 }
 0xaa0   : > { %v777_v38 = vmul.f32 %v769_v27, %v758_v36 }
 0xaa2   : > { %778 = vadd.xlane.f32.xlu1 %v777_v38 }
 0xac2   : > { %v775_v41 = vpop.xlane.xlu0 %774 }
 0xac3   : > { %v776_v42 = vsel %vm772_vm4, %v775_v41, %v415_v23 }
 0xac4   : > { %v795_v43 = vmul.f32 %v791_v40, %v776_v42 }
 0xac6   : > { %796 = vadd.xlane.f32.xlu1 %v795_v43 }
 0xaf1   : > { %v747_v44 = vpop.xlane.xlu1 %746 }
 0xaf2   : > { %v748_v45 = vsel %vm736_vm9, %v747_v44, %v730_v30  ;;  %vm838_vm9 = vcmp.eq.s32.totalorder %v2448_v9, 36 }
 0xaf3   : > { %v763_v46 = vmul.f32 %v751_v3, %v748_v45 }
 0xaf5   : > { %764 = vadd.xlane.f32.xlu2 %v763_v46 }
 0xaf9   : > { %v761_v47 = vpop.xlane.xlu1 %760 }
 0xafa   : > { %v762_v48 = vsel %vm754_vm3, %v761_v47, %v744_v33 }
 0xafb   : > { %v781_v49 = vmul.f32 %v769_v27, %v762_v48 }
 0xafd   : > { %782 = vadd.xlane.f32.xlu2 %v781_v49 }
 0xb15   : > { %v779_v50 = vpop.xlane.xlu1 %778 }
 0xb16   : > { %v780_v52 = vsel %vm772_vm4, %v779_v50, %v758_v36 }
 0xb17   : > { %v799_v53 = vmul.f32 %v791_v40, %v780_v52 }
 0xb19   : > { %800 = vadd.xlane.f32.xlu2 %v799_v53 }
 0xb39   : > { %v797_v56 = vpop.xlane.xlu1 %796 }
 0xb3a   : > { %v798_v57 = vsel %vm794_vm6, %v797_v56, %v776_v42  ;;  %v878_v42 = vld [vmem:[#allocation2 + $0x22] ss:$0 sm:$0xff] }
 0xb3b   : > { %v817_v58 = vmul.f32 %v813_v55, %v798_v57  ;;  %v879_v44 = vxor.u32 2147483648, %v878_v42 }
 0xb3d   : > { %818 = vadd.xlane.f32.xlu2 %v817_v58 }
 0xb68   : > { %v765_v59 = vpop.xlane.xlu2 %764 }
 0xb69   : > { %v766_v60 = vsel %vm754_vm3, %v765_v59, %v748_v45 }
 0xb6a   : > { %v785_v61 = vmul.f32 %v769_v27, %v766_v60  ;;  %v856_v27 = vld [vmem:[#allocation2 + $0x23] ss:$0 sm:$0xff] }
 0xb6b   : > { %v857_v29 = vxor.u32 2147483648, %v856_v27 }
 0xb6c   : > { %786 = vadd.xlane.f32.xlu0 %v785_v61 }
 0xb70   : > { %v783_v63 = vpop.xlane.xlu2 %782 }
 0xb71   : > { %v784_v0 = vsel %vm772_vm4, %v783_v63, %v762_v48 }
 0xb72   : > { %v803_v1 = vmul.f32 %v791_v40, %v784_v0 }
 0xb74   : > { %804 = vadd.xlane.f32.xlu0 %v803_v1 }
 0xb8c   : > { %v801_v2 = vpop.xlane.xlu2 %800 }
 0xb8d   : > { %v802_v3 = vsel %vm794_vm6, %v801_v2, %v780_v52 }
 0xb8e   : > { %v821_v4 = vmul.f32 %v813_v55, %v802_v3 }
 0xb90   : > { %822 = vadd.xlane.f32.xlu0 %v821_v4 }
 0xbb0   : > { %v819_v7 = vpop.xlane.xlu2 %818 }
 0xbb1   : > { %v820_v11 = vsel %vm816_vm8, %v819_v7, %v798_v57  ;;  %v900_v57 = vld [vmem:[#allocation2 + $0x21] ss:$0 sm:$0xff] }
 0xbb2   : > { %v839_v12 = vmul.f32 %v835_v8, %v820_v11  ;;  %v901_v59 = vxor.u32 2147483648, %v900_v57 }
 0xbb4   : > { %840 = vadd.xlane.f32.xlu0 %v839_v12  ;;  %v2276_v12 = vld [vmem:[%s2453_s26 + $0x18] sm:$0xff] }
 0xbdf   : > { %v787_v13 = vpop.xlane.xlu0 %786 }
 0xbe0   : > { %v788_v16 = vsel %vm772_vm4, %v787_v13, %v766_v60 }
 0xbe1   : > { %v807_v17 = vmul.f32 %v791_v40, %v788_v16 }
 0xbe3   : > { %808 = vadd.xlane.f32.xlu1 %v807_v17 }
 0xbe7   : > { %v805_v18 = vpop.xlane.xlu0 %804 }
 0xbe8   : > { %v806_v19 = vsel %vm794_vm6, %v805_v18, %v784_v0 }
 0xbe9   : > { %v825_v20 = vmul.f32 %v813_v55, %v806_v19 }
 0xbeb   : > { %826 = vadd.xlane.f32.xlu1 %v825_v20 }
 0xc03   : > { %v823_v22 = vpop.xlane.xlu0 %822 }
 0xc04   : > { %v824_v23 = vsel %vm816_vm8, %v823_v22, %v802_v3 }
 0xc05   : > { %v843_v24 = vmul.f32 %v835_v8, %v824_v23 }
 0xc07   : > { %844 = vadd.xlane.f32.xlu1 %v843_v24  ;;  %v922_v24 = vld [vmem:[#allocation2 + $0x20] ss:$0 sm:$0xff] }
 0xc27   : > { %v841_v28 = vpop.xlane.xlu0 %840 }
 0xc28   : > { %v842_v30 = vsel %vm838_vm9, %v841_v28, %v820_v11  ;;  %v240_v11 = vadd.s32 24, %v2450_v10  ;;  %v923_v28 = vxor.u32 2147483648, %v922_v24 }
 0xc29   : > { %v861_v31 = vmul.f32 %v857_v29, %v842_v30 }
 0xc2a   : > { %vm241_vm13 = vcmp.eq.s32.totalorder %v240_v11, %v2448_v9  ;;  %vm246_vm0 = vcmp.le.s32.totalorder %v240_v11, %v2448_v9 }
 0xc2b   : > { %862 = vadd.xlane.f32.xlu1 %v861_v31  ;;  %v243_v13 = vsel %vm241_vm13, %v2276_v12, 0.0  ;;  %vm247_vm4 = vmand %vm246_vm0, %vm150_vm1  ;;  %vm974_vm13 = vcmp.eq.s32.totalorder %v2448_v9, 30  ;;  %vm1026_vm0 = vcmp.eq.s32.totalorder %v2448_v9, 28 }
 0xc56   : > { %v809_v32 = vpop.xlane.xlu1 %808 }
 0xc57   : > { %v810_v33 = vsel %vm794_vm6, %v809_v32, %v788_v16 }
 0xc58   : > { %v829_v34 = vmul.f32 %v813_v55, %v810_v33 }
 0xc5a   : > { %830 = vadd.xlane.f32.xlu2 %v829_v34 }
 0xc5e   : > { %v827_v35 = vpop.xlane.xlu1 %826 }
 0xc5f   : > { %v828_v36 = vsel %vm816_vm8, %v827_v35, %v806_v19 }
 0xc60   : > { %v847_v38 = vmul.f32 %v835_v8, %v828_v36 }
 0xc62   : > { %848 = vadd.xlane.f32.xlu2 %v847_v38 }
 0xc7a   : > { %v845_v39 = vpop.xlane.xlu1 %844 }
 0xc7b   : > { %v846_v40 = vsel %vm838_vm9, %v845_v39, %v824_v23 }
 0xc7c   : > { %v865_v41 = vmul.f32 %v857_v29, %v846_v40 }
 0xc7e   : > { %866 = vadd.xlane.f32.xlu2 %v865_v41  ;;  %v248_v41 = vsel %vm247_vm4, %v2276_v12, 0.0  ;;  %vm1078_vm4 = vcmp.eq.s32.totalorder %v2448_v9, 26 }
 0xc9e   : > { %v863_v43 = vpop.xlane.xlu1 %862 }
 0xc9f   : > { %v864_v45 = vsel %vm860_vm10, %v863_v43, %v842_v30 }
 0xca0   : > { %v883_v46 = vmul.f32 %v879_v44, %v864_v45 }
 0xca2   : > { %884 = vadd.xlane.f32.xlu2 %v883_v46 }
 0xccd   : > { %v831_v47 = vpop.xlane.xlu2 %830 }
 0xcce   : > { %v832_v48 = vsel %vm816_vm8, %v831_v47, %v810_v33 }
 0xccf   : > { %v851_v49 = vmul.f32 %v835_v8, %v832_v48 }
 0xcd1   : > { %852 = vadd.xlane.f32.xlu0 %v851_v49 }
 0xcd5   : > { %v849_v50 = vpop.xlane.xlu2 %848 }
 0xcd6   : > { %v850_v52 = vsel %vm838_vm9, %v849_v50, %v828_v36 }
 0xcd7   : > { %v869_v53 = vmul.f32 %v857_v29, %v850_v52 }
 0xcd9   : > { %870 = vadd.xlane.f32.xlu0 %v869_v53 }
 0xcf1   : > { %v867_v54 = vpop.xlane.xlu2 %866 }
 0xcf2   : > { %v868_v55 = vsel %vm860_vm10, %v867_v54, %v846_v40 }
 0xcf3   : > { %v887_v56 = vmul.f32 %v879_v44, %v868_v55 }
 0xcf5   : > { %888 = vadd.xlane.f32.xlu0 %v887_v56 }
 0xd15   : > { %v885_v58 = vpop.xlane.xlu2 %884 }
 0xd16   : > { %v886_v60 = vsel %vm882_vm12, %v885_v58, %v864_v45 }
 0xd17   : > { %v905_v61 = vmul.f32 %v901_v59, %v886_v60 }
 0xd19   : > { %906 = vadd.xlane.f32.xlu0 %v905_v61 }
 0xd44   : > { %v853_v63 = vpop.xlane.xlu0 %852 }
 0xd45   : > { %v854_v0 = vsel %vm838_vm9, %v853_v63, %v832_v48  ;;  %vm407_vm9 = vcmp.eq.s32.totalorder %v2448_v9, %v240_v11 }
 0xd46   : > { %v873_v1 = vmul.f32 %v857_v29, %v854_v0  ;;  %v408_v56 = vsel %vm407_vm9, -1.0, %v2393_v15 }
 0xd48   : > { %874 = vadd.xlane.f32.xlu1 %v873_v1 }
 0xd4c   : > { %v871_v2 = vpop.xlane.xlu0 %870 }
 0xd4d   : > { %v872_v3 = vsel %vm860_vm10, %v871_v2, %v850_v52 }
 0xd4e   : > { %v891_v4 = vmul.f32 %v879_v44, %v872_v3 }
 0xd50   : > { %892 = vadd.xlane.f32.xlu1 %v891_v4 }
 0xd68   : > { %v889_v5 = vpop.xlane.xlu0 %888 }
 0xd69   : > { %v890_v7 = vsel %vm882_vm12, %v889_v5, %v868_v55 }
 0xd6a   : > { %v909_v8 = vmul.f32 %v901_v59, %v890_v7 }
 0xd6c   : > { %910 = vadd.xlane.f32.xlu1 %v909_v8 }
 0xd74   : > { %244 = vadd.xlane.f32.xlu1 %v243_v13 }
 0xd8c   : > { %v907_v23 = vpop.xlane.xlu0 %906 }
 0xd8d   : > { %v908_v27 = vsel %vm904_vm14, %v907_v23, %v886_v60 }
 0xd8e   : > { %v927_v29 = vmul.f32 %v923_v28, %v908_v27 }
 0xdbb   : > { %v875_v16 = vpop.xlane.xlu1 %874 }
 0xdbc   : > { %v876_v17 = vsel %vm860_vm10, %v875_v16, %v854_v0  ;;  %vm926_vm10 = vcmp.eq.s32.totalorder %v2448_v9, 32 }
 0xdbd   : > { %v895_v18 = vmul.f32 %v879_v44, %v876_v17 }
 0xdbf   : > { %896 = vadd.xlane.f32.xlu2 %v895_v18 }
 0xdc3   : > { %v893_v19 = vpop.xlane.xlu1 %892 }
 0xdc4   : > { %v894_v20 = vsel %vm882_vm12, %v893_v19, %v872_v3 }
 0xdc5   : > { %v913_v22 = vmul.f32 %v901_v59, %v894_v20 }
 0xdc7   : > { %914 = vadd.xlane.f32.xlu2 %v913_v22 }
 0xdcf   : > { %928 = vadd.xlane.f32.xlu2 %v927_v29 }
 0xddf   : > { %v911_v30 = vpop.xlane.xlu1 %910 }
 0xde0   : > { %v912_v48 = vsel %vm904_vm14, %v911_v30, %v890_v7 }
 0xde1   : > { %v931_v53 = vmul.f32 %v923_v28, %v912_v48 }
 0xde7   : > { %v2696_v31 = vpop.xlane.xlu1 %244 }
 0xde8   : > { %2344 = vrcp.f32 %v2696_v31  ;;  %v260_v34 = vand.u32 2147483648, %v2696_v31  ;;  %vm254_vm2 = vweird.f32 %v2696_v31  ;;  %v258_v36 = vand.u32 2147483647, %v2696_v31 }
 0xdea   : > { %v261_v39 = vor.u32 1.1754944e-38, %v260_v34  ;;  %vm259_vm8 = vcmp.eq.f32.partialorder %v258_v36, 8.507059e+37 }
 0xdee   : > { %v2345_v32 = vpop.eup %2344 }
 0xdef   : > { %v250_v33 = vmul.f32 %v2345_v32, %v2696_v31  ;;  %vm255_vm3 = vweird.f32 %v2345_v32 }
 0xdf0   : > { %vm256_vm6 = vmor %vm254_vm2, %vm255_vm3  ;;  %vm1052_vm3 = vcmp.eq.s32.totalorder %v2448_v9, 27 }
 0xdf1   : > { %v251_v35 = vsub.f32 1.0, %v250_v33 }
 0xdf3   : > { %v252_v38 = vmul.f32 %v2345_v32, %v251_v35 }
 0xdf5   : > { %v253_v40 = vadd.f32 %v2345_v32, %v252_v38 }
 0xdf7   : > { %v257_v42 = vsel %vm256_vm6, %v2345_v32, %v253_v40  ;;  %vm1104_vm6 = vcmp.eq.s32.totalorder %v2448_v9, 25 }
 0xdf8   : > { %v2708_v43 = vsel %vm259_vm8, %v261_v39, %v257_v42 }
 0xdf9   : > { %v263_v44 = vmul.f32 %v2708_v43, %v248_v41 }
 0xdfb   : > { %264 = vst [vmem:[#allocation2 + $0x18] sm:$0xff] %v263_v44 }
 0xe02   : > { %v944_v52 = vld [vmem:[#allocation2 + $0x1f] ss:$0 sm:$0xff]  ;;  %v970_v8 = vld [vmem:[#allocation2 + $0x1e] ss:$0 sm:$0xff]  ;;  %v996_v33 = vld [vmem:[#allocation2 + $0x1d] ss:$0 sm:$0xff] }
 0xe03   : > { %v945_v55 = vxor.u32 2147483648, %v944_v52  ;;  %v971_v11 = vxor.u32 2147483648, %v970_v8  ;;  %v997_v36 = vxor.u32 2147483648, %v996_v33  ;;  %v1048_v8 = vld [vmem:[#allocation2 + $0x1b] ss:$0 sm:$0xff] }
 0xe04   : > { %v1074_v33 = vld [vmem:[#allocation2 + $0x1a] ss:$0 sm:$0xff] }
 0xe05   : > { %v949_v58 = vmul.f32 %v945_v55, %v408_v56 }
 0xe32   : > { %v897_v45 = vpop.xlane.xlu2 %896 }
 0xe33   : > { %v898_v46 = vsel %vm882_vm12, %v897_v45, %v876_v17  ;;  %vm948_vm12 = vcmp.eq.s32.totalorder %v2448_v9, 31 }
 0xe34   : > { %v917_v47 = vmul.f32 %v901_v59, %v898_v46 }
 0xe36   : > { %918 = vadd.xlane.f32.xlu0 %v917_v47 }
 0xe3a   : > { %v915_v49 = vpop.xlane.xlu2 %914 }
 0xe3b   : > { %v916_v50 = vsel %vm904_vm14, %v915_v49, %v894_v20 }
 0xe3c   : > { %v935_v54 = vmul.f32 %v923_v28, %v916_v50 }
 0xe3e   : > { %932 = vadd.xlane.f32.xlu0 %v931_v53  ;;  %936 = vadd.xlane.f32.xlu1 %v935_v54  ;;  %v1022_v53 = vld [vmem:[#allocation2 + $0x1c] ss:$0 sm:$0xff] }
 0xe42   : > { %v929_v57 = vpop.xlane.xlu2 %928 }
 0xe43   : > { %v930_v59 = vsel %vm926_vm10, %v929_v57, %v908_v27 }
 0xe44   : > { %v953_v60 = vmul.f32 %v945_v55, %v930_v59 }
 0xe46   : > { %954 = vadd.xlane.f32.xlu1 %v953_v60  ;;  %950 = vadd.xlane.f32.xlu0 %v949_v58 }
 0xea9   : > { %v919_v61 = vpop.xlane.xlu0 %918 }
 0xeaa   : > { %v920_v63 = vsel %vm904_vm14, %v919_v61, %v898_v46  ;;  %vm1000_vm14 = vcmp.eq.s32.totalorder %v2448_v9, 29 }
 0xeab   : > { %v939_v0 = vmul.f32 %v923_v28, %v920_v63 }
 0xead   : > { %940 = vadd.xlane.f32.xlu2 %v939_v0 }
 0xeb1   : > { %v933_v1 = vpop.xlane.xlu0 %932  ;;  %v937_v2 = vpop.xlane.xlu1 %936 }
 0xeb2   : > { %v934_v3 = vsel %vm926_vm10, %v933_v1, %v912_v48  ;;  %v938_v4 = vsel %vm926_vm10, %v937_v2, %v916_v50 }
 0xeb3   : > { %v957_v5 = vmul.f32 %v945_v55, %v934_v3  ;;  %v961_v7 = vmul.f32 %v945_v55, %v938_v4 }
 0xeb5   : > { %958 = vadd.xlane.f32.xlu2 %v957_v5  ;;  %962 = vadd.xlane.f32.xlu0 %v961_v7 }
 0xeb9   : > { %v951_v12 = vpop.xlane.xlu0 %950  ;;  %v955_v13 = vpop.xlane.xlu1 %954 }
 0xeba   : > { %v952_v16 = vsel %vm948_vm12, %v951_v12, %v408_v56  ;;  %v956_v17 = vsel %vm948_vm12, %v955_v13, %v930_v59  ;;  %v1023_v56 = vxor.u32 2147483648, %v1022_v53  ;;  %v1049_v13 = vxor.u32 2147483648, %v1048_v8  ;;  %v1100_v53 = vld [vmem:[#allocation2 + $0x19] ss:$0 sm:$0xff] }
 0xebb   : > { %v975_v18 = vmul.f32 %v971_v11, %v952_v16  ;;  %v979_v19 = vmul.f32 %v971_v11, %v956_v17  ;;  %v211_v8 = vadd.s32 16, %v2450_v10 }
 0xebd   : > { %976 = vadd.xlane.f32.xlu2 %v975_v18  ;;  %980 = vadd.xlane.f32.xlu0 %v979_v19  ;;  %vm212_vm8 = vcmp.eq.s32.totalorder %v211_v8, %v2448_v9  ;;  %vm217_vm9 = vcmp.le.s32.totalorder %v211_v8, %v2448_v9 }
 0xf20   : > { %v941_v20 = vpop.xlane.xlu2 %940 }
 0xf21   : > { %v942_v22 = vsel %vm926_vm10, %v941_v20, %v920_v63 }
 0xf22   : > { %v965_v23 = vmul.f32 %v945_v55, %v942_v22 }
 0xf24   : > { %966 = vadd.xlane.f32.xlu1 %v965_v23 }
 0xf28   : > { %v959_v24 = vpop.xlane.xlu2 %958  ;;  %v963_v27 = vpop.xlane.xlu0 %962 }
 0xf29   : > { %v960_v28 = vsel %vm948_vm12, %v959_v24, %v934_v3  ;;  %v964_v29 = vsel %vm948_vm12, %v963_v27, %v938_v4 }
 0xf2a   : > { %v983_v30 = vmul.f32 %v971_v11, %v960_v28  ;;  %v987_v32 = vmul.f32 %v971_v11, %v964_v29 }
 0xf2c   : > { %984 = vadd.xlane.f32.xlu1 %v983_v30  ;;  %988 = vadd.xlane.f32.xlu2 %v987_v32 }
 0xf30   : > { %v977_v34 = vpop.xlane.xlu2 %976  ;;  %v981_v35 = vpop.xlane.xlu0 %980 }
 0xf31   : > { %v978_v38 = vsel %vm974_vm13, %v977_v34, %v952_v16  ;;  %v982_v39 = vsel %vm974_vm13, %v981_v35, %v956_v17 }
 0xf32   : > { %v1001_v40 = vmul.f32 %v997_v36, %v978_v38  ;;  %v1005_v41 = vmul.f32 %v997_v36, %v982_v39 }
 0xf34   : > { %1002 = vadd.xlane.f32.xlu1 %v1001_v40  ;;  %1006 = vadd.xlane.f32.xlu2 %v1005_v41 }
 0xf97   : > { %v967_v42 = vpop.xlane.xlu1 %966 }
 0xf98   : > { %v968_v44 = vsel %vm948_vm12, %v967_v42, %v942_v22 }
 0xf99   : > { %v991_v45 = vmul.f32 %v971_v11, %v968_v44 }
 0xf9b   : > { %992 = vadd.xlane.f32.xlu0 %v991_v45 }
 0xf9f   : > { %v989_v46 = vpop.xlane.xlu2 %988  ;;  %v985_v47 = vpop.xlane.xlu1 %984 }
 0xfa0   : > { %v990_v48 = vsel %vm974_vm13, %v989_v46, %v964_v29  ;;  %v986_v49 = vsel %vm974_vm13, %v985_v47, %v960_v28 }
 0xfa1   : > { %v1013_v50 = vmul.f32 %v997_v36, %v990_v48  ;;  %v1009_v52 = vmul.f32 %v997_v36, %v986_v49 }
 0xfa3   : > { %1014 = vadd.xlane.f32.xlu1 %v1013_v50  ;;  %1010 = vadd.xlane.f32.xlu0 %v1009_v52 }
 0xfa7   : > { %v1007_v54 = vpop.xlane.xlu2 %1006  ;;  %v1003_v55 = vpop.xlane.xlu1 %1002 }
 0xfa8   : > { %v1008_v57 = vsel %vm1000_vm14, %v1007_v54, %v982_v39  ;;  %v1004_v58 = vsel %vm1000_vm14, %v1003_v55, %v978_v38 }
 0xfa9   : > { %v1031_v59 = vmul.f32 %v1023_v56, %v1008_v57  ;;  %v1027_v60 = vmul.f32 %v1023_v56, %v1004_v58 }
 0xfab   : > { %1032 = vadd.xlane.f32.xlu1 %v1031_v59  ;;  %1028 = vadd.xlane.f32.xlu0 %v1027_v60 }
0x100e   : > { %v993_v61 = vpop.xlane.xlu0 %992 }
0x100f   : > { %v994_v63 = vsel %vm974_vm13, %v993_v61, %v968_v44  ;;  %vm218_vm13 = vmand %vm217_vm9, %vm150_vm1  ;;  %vm1216_vm9 = vcmp.eq.s32.totalorder %v2448_v9, 21 }
0x1010   : > { %v1017_v0 = vmul.f32 %v997_v36, %v994_v63  ;;  %v1075_v36 = vxor.u32 2147483648, %v1074_v33 }
0x1012   : > { %1018 = vadd.xlane.f32.xlu2 %v1017_v0 }
0x1016   : > { %v1011_v1 = vpop.xlane.xlu0 %1010  ;;  %v1015_v2 = vpop.xlane.xlu1 %1014 }
0x1017   : > { %v1012_v3 = vsel %vm1000_vm14, %v1011_v1, %v986_v49  ;;  %v1016_v4 = vsel %vm1000_vm14, %v1015_v2, %v990_v48 }
0x1018   : > { %v1035_v5 = vmul.f32 %v1023_v56, %v1012_v3  ;;  %v1039_v7 = vmul.f32 %v1023_v56, %v1016_v4 }
0x101a   : > { %1036 = vadd.xlane.f32.xlu2 %v1035_v5  ;;  %1040 = vadd.xlane.f32.xlu0 %v1039_v7 }
0x101e   : > { %v1029_v11 = vpop.xlane.xlu0 %1028  ;;  %v1033_v12 = vpop.xlane.xlu1 %1032 }
0x101f   : > { %v1030_v16 = vsel %vm1026_vm0, %v1029_v11, %v1004_v58  ;;  %v1034_v17 = vsel %vm1026_vm0, %v1033_v12, %v1008_v57  ;;  %v1126_v11 = vld [vmem:[#allocation2 + $0x18] ss:$0 sm:$0xff]  ;;  %v2275_v12 = vld [vmem:[%s2453_s26 + $0x10] sm:$0xff] }
0x1020   : > { %v1053_v18 = vmul.f32 %v1049_v13, %v1030_v16  ;;  %v1057_v19 = vmul.f32 %v1049_v13, %v1034_v17 }
0x1022   : > { %1054 = vadd.xlane.f32.xlu2 %v1053_v18  ;;  %1058 = vadd.xlane.f32.xlu0 %v1057_v19  ;;  %v214_v18 = vsel %vm212_vm8, %v2275_v12, 0.0  ;;  %vm1186_vm8 = vcmp.eq.s32.totalorder %v2448_v9, 22 }
0x1085   : > { %v1019_v20 = vpop.xlane.xlu2 %1018 }
0x1086   : > { %v1020_v22 = vsel %vm1000_vm14, %v1019_v20, %v994_v63 }
0x1087   : > { %v1043_v23 = vmul.f32 %v1023_v56, %v1020_v22  ;;  %v1101_v56 = vxor.u32 2147483648, %v1100_v53 }
0x1089   : > { %1044 = vadd.xlane.f32.xlu1 %v1043_v23 }
0x108d   : > { %v1037_v24 = vpop.xlane.xlu2 %1036  ;;  %v1041_v27 = vpop.xlane.xlu0 %1040 }
0x108e   : > { %v1038_v28 = vsel %vm1026_vm0, %v1037_v24, %v1012_v3  ;;  %v1042_v29 = vsel %vm1026_vm0, %v1041_v27, %v1016_v4 }
0x108f   : > { %v1061_v30 = vmul.f32 %v1049_v13, %v1038_v28  ;;  %v1065_v32 = vmul.f32 %v1049_v13, %v1042_v29 }
0x1091   : > { %1062 = vadd.xlane.f32.xlu1 %v1061_v30  ;;  %1066 = vadd.xlane.f32.xlu2 %v1065_v32 }
0x1095   : > { %v1055_v34 = vpop.xlane.xlu2 %1054  ;;  %v1059_v35 = vpop.xlane.xlu0 %1058 }
0x1096   : > { %v1056_v38 = vsel %vm1052_vm3, %v1055_v34, %v1030_v16  ;;  %v1060_v39 = vsel %vm1052_vm3, %v1059_v35, %v1034_v17  ;;  %v1127_v16 = vxor.u32 2147483648, %v1126_v11 }
0x1097   : > { %v1079_v40 = vmul.f32 %v1075_v36, %v1056_v38  ;;  %v1083_v41 = vmul.f32 %v1075_v36, %v1060_v39 }
0x1099   : > { %1080 = vadd.xlane.f32.xlu1 %v1079_v40  ;;  %1084 = vadd.xlane.f32.xlu2 %v1083_v41 }
0x10fc   : > { %v1045_v42 = vpop.xlane.xlu1 %1044 }
0x10fd   : > { %v1046_v44 = vsel %vm1026_vm0, %v1045_v42, %v1020_v22 }
0x10fe   : > { %v1069_v45 = vmul.f32 %v1049_v13, %v1046_v44 }
0x1100   : > { %1070 = vadd.xlane.f32.xlu0 %v1069_v45 }
0x1104   : > { %v1067_v46 = vpop.xlane.xlu2 %1066  ;;  %v1063_v47 = vpop.xlane.xlu1 %1062 }
0x1105   : > { %v1068_v48 = vsel %vm1052_vm3, %v1067_v46, %v1042_v29  ;;  %v1064_v49 = vsel %vm1052_vm3, %v1063_v47, %v1038_v28  ;;  %v219_v47 = vsel %vm218_vm13, %v2275_v12, 0.0  ;;  %vm1276_vm13 = vcmp.eq.s32.totalorder %v2448_v9, 19 }
0x1106   : > { %v1091_v50 = vmul.f32 %v1075_v36, %v1068_v48  ;;  %v1087_v52 = vmul.f32 %v1075_v36, %v1064_v49 }
0x1108   : > { %1092 = vadd.xlane.f32.xlu1 %v1091_v50  ;;  %1088 = vadd.xlane.f32.xlu0 %v1087_v52 }
0x110c   : > { %v1085_v54 = vpop.xlane.xlu2 %1084  ;;  %v1081_v55 = vpop.xlane.xlu1 %1080 }
0x110d   : > { %v1086_v57 = vsel %vm1078_vm4, %v1085_v54, %v1060_v39  ;;  %v1082_v58 = vsel %vm1078_vm4, %v1081_v55, %v1056_v38 }
0x110e   : > { %v1109_v59 = vmul.f32 %v1101_v56, %v1086_v57  ;;  %v1105_v60 = vmul.f32 %v1101_v56, %v1082_v58 }
0x1110   : > { %1110 = vadd.xlane.f32.xlu1 %v1109_v59  ;;  %1106 = vadd.xlane.f32.xlu0 %v1105_v60 }
0x1173   : > { %v1071_v61 = vpop.xlane.xlu0 %1070 }
0x1174   : > { %v1072_v63 = vsel %vm1052_vm3, %v1071_v61, %v1046_v44  ;;  %vm400_vm3 = vcmp.eq.s32.totalorder %v2448_v9, %v211_v8 }
0x1175   : > { %v1095_v0 = vmul.f32 %v1075_v36, %v1072_v63  ;;  %v401_v54 = vsel %vm400_vm3, -1.0, %v2393_v15  ;;  %vm1336_vm3 = vcmp.eq.s32.totalorder %v2448_v9, 17 }
0x1177   : > { %1096 = vadd.xlane.f32.xlu2 %v1095_v0 }
0x117b   : > { %v1089_v1 = vpop.xlane.xlu0 %1088  ;;  %v1093_v2 = vpop.xlane.xlu1 %1092 }
0x117c   : > { %v1090_v3 = vsel %vm1078_vm4, %v1089_v1, %v1064_v49  ;;  %v1094_v4 = vsel %vm1078_vm4, %v1093_v2, %v1068_v48 }
0x117d   : > { %v1113_v5 = vmul.f32 %v1101_v56, %v1090_v3  ;;  %v1117_v7 = vmul.f32 %v1101_v56, %v1094_v4 }
0x117f   : > { %1114 = vadd.xlane.f32.xlu2 %v1113_v5  ;;  %1118 = vadd.xlane.f32.xlu0 %v1117_v7 }
0x1183   : > { %v1107_v13 = vpop.xlane.xlu0 %1106  ;;  %v1111_v24 = vpop.xlane.xlu1 %1110 }
0x1184   : > { %v1108_v17 = vsel %vm1104_vm6, %v1107_v13, %v1082_v58  ;;  %v1112_v27 = vsel %vm1104_vm6, %v1111_v24, %v1086_v57 }
0x1185   : > { %v1131_v19 = vmul.f32 %v1127_v16, %v1108_v17  ;;  %v1135_v34 = vmul.f32 %v1127_v16, %v1112_v27 }
0x1187   : > { %1132 = vadd.xlane.f32.xlu0 %v1131_v19  ;;  %215 = vadd.xlane.f32.xlu2 %v214_v18 }
0x11ea   : > { %v1097_v20 = vpop.xlane.xlu2 %1096 }
0x11eb   : > { %v1098_v22 = vsel %vm1078_vm4, %v1097_v20, %v1072_v63  ;;  %vm1130_vm4 = vcmp.eq.s32.totalorder %v2448_v9, 24 }
0x11ec   : > { %v1121_v23 = vmul.f32 %v1101_v56, %v1098_v22 }
0x11ee   : > { %1122 = vadd.xlane.f32.xlu1 %v1121_v23 }
0x11f2   : > { %v1115_v28 = vpop.xlane.xlu2 %1114  ;;  %v1119_v29 = vpop.xlane.xlu0 %1118 }
0x11f3   : > { %v1116_v30 = vsel %vm1104_vm6, %v1115_v28, %v1090_v3  ;;  %v1120_v32 = vsel %vm1104_vm6, %v1119_v29, %v1094_v4 }
0x11f4   : > { %v1143_v33 = vmul.f32 %v1127_v16, %v1120_v32  ;;  %v1139_v35 = vmul.f32 %v1127_v16, %v1116_v30 }
0x11f6   : > { %1144 = vadd.xlane.f32.xlu0 %v1143_v33  ;;  %1136 = vadd.xlane.f32.xlu1 %v1135_v34 }
0x11f7   : > { %1140 = vadd.xlane.f32.xlu2 %v1139_v35 }
0x11fa   : > { %v2808_v36 = vpop.xlane.xlu2 %215  ;;  %v1133_v52 = vpop.xlane.xlu0 %1132 }
0x11fb   : > { %2346 = vrcp.f32 %v2808_v36  ;;  %v231_v40 = vand.u32 2147483648, %v2808_v36  ;;  %vm225_vm10 = vweird.f32 %v2808_v36  ;;  %v229_v42 = vand.u32 2147483647, %v2808_v36 }
0x11fc   : > { %v1134_v56 = vsel %vm1130_vm4, %v1133_v52, %v1108_v17 }
0x11fd   : > { %v232_v45 = vor.u32 1.1754944e-38, %v231_v40  ;;  %vm230_vm0 = vcmp.eq.f32.partialorder %v229_v42, 8.507059e+37 }
0x1201   : > { %v2347_v38 = vpop.eup %2346 }
0x1202   : > { %v221_v39 = vmul.f32 %v2347_v38, %v2808_v36  ;;  %vm226_vm12 = vweird.f32 %v2347_v38 }
0x1203   : > { %vm227_vm14 = vmor %vm225_vm10, %vm226_vm12  ;;  %vm1246_vm12 = vcmp.eq.s32.totalorder %v2448_v9, 20 }
0x1204   : > { %v222_v41 = vsub.f32 1.0, %v221_v39 }
0x1206   : > { %v223_v44 = vmul.f32 %v2347_v38, %v222_v41 }
0x1208   : > { %v224_v46 = vadd.f32 %v2347_v38, %v223_v44 }
0x120a   : > { %v228_v48 = vsel %vm227_vm14, %v2347_v38, %v224_v46  ;;  %vm1306_vm14 = vcmp.eq.s32.totalorder %v2448_v9, 18 }
0x120b   : > { %v2820_v49 = vsel %vm230_vm0, %v232_v45, %v228_v48 }
0x120c   : > { %v234_v50 = vmul.f32 %v2820_v49, %v219_v47 }
0x120e   : > { %235 = vst [vmem:[#allocation2 + $0x10] sm:$0xff] %v234_v50 }
0x1215   : > { %v1152_v53 = vld [vmem:[#allocation2 + $0x17] ss:$0 sm:$0xff]  ;;  %v1182_v11 = vld [vmem:[#allocation2 + $0x16] ss:$0 sm:$0xff]  ;;  %v1212_v39 = vld [vmem:[#allocation2 + $0x15] ss:$0 sm:$0xff] }
0x1216   : > { %v1153_v55 = vxor.u32 2147483648, %v1152_v53  ;;  %v1183_v12 = vxor.u32 2147483648, %v1182_v11  ;;  %v1213_v42 = vxor.u32 2147483648, %v1212_v39 }
0x1218   : > { %v1161_v57 = vmul.f32 %v1153_v55, %v1134_v56  ;;  %v1157_v58 = vmul.f32 %v1153_v55, %v401_v54 }
0x121a   : > { %1162 = vadd.xlane.f32.xlu0 %v1161_v57  ;;  %1158 = vadd.xlane.f32.xlu2 %v1157_v58 }
0x1261   : > { %v1123_v59 = vpop.xlane.xlu1 %1122 }
0x1262   : > { %v1124_v60 = vsel %vm1104_vm6, %v1123_v59, %v1098_v22  ;;  %vm1156_vm6 = vcmp.eq.s32.totalorder %v2448_v9, 23 }
0x1263   : > { %v1147_v61 = vmul.f32 %v1127_v16, %v1124_v60 }
0x1265   : > { %1148 = vadd.xlane.f32.xlu1 %v1147_v61 }
0x1269   : > { %v1145_v63 = vpop.xlane.xlu0 %1144  ;;  %v1137_v0 = vpop.xlane.xlu1 %1136 }
0x126a   : > { %v1146_v1 = vsel %vm1130_vm4, %v1145_v63, %v1120_v32  ;;  %v1138_v2 = vsel %vm1130_vm4, %v1137_v0, %v1112_v27  ;;  %v1141_v3 = vpop.xlane.xlu2 %1140  ;;  %v1242_v63 = vld [vmem:[#allocation2 + $0x14] ss:$0 sm:$0xff] }
0x126b   : > { %v1142_v4 = vsel %vm1130_vm4, %v1141_v3, %v1116_v30  ;;  %v1165_v5 = vmul.f32 %v1153_v55, %v1138_v2  ;;  %v1173_v7 = vmul.f32 %v1153_v55, %v1146_v1 }
0x126c   : > { %v1169_v8 = vmul.f32 %v1153_v55, %v1142_v4 }
0x126d   : > { %1166 = vadd.xlane.f32.xlu1 %v1165_v5  ;;  %1174 = vadd.xlane.f32.xlu0 %v1173_v7 }
0x126e   : > { %1170 = vadd.xlane.f32.xlu2 %v1169_v8 }
0x128d   : > { %v1163_v13 = vpop.xlane.xlu0 %1162  ;;  %v1159_v16 = vpop.xlane.xlu2 %1158 }
0x128e   : > { %v1164_v17 = vsel %vm1156_vm6, %v1163_v13, %v1134_v56  ;;  %v1160_v18 = vsel %vm1156_vm6, %v1159_v16, %v401_v54 }
0x128f   : > { %v1191_v19 = vmul.f32 %v1183_v12, %v1164_v17  ;;  %v1187_v20 = vmul.f32 %v1183_v12, %v1160_v18 }
0x1291   : > { %1192 = vadd.xlane.f32.xlu0 %v1191_v19  ;;  %1188 = vadd.xlane.f32.xlu2 %v1187_v20 }
0x12d8   : > { %v1149_v22 = vpop.xlane.xlu1 %1148 }
0x12d9   : > { %v1150_v23 = vsel %vm1130_vm4, %v1149_v22, %v1124_v60 }
0x12da   : > { %v1177_v24 = vmul.f32 %v1153_v55, %v1150_v23 }
0x12dc   : > { %1178 = vadd.xlane.f32.xlu1 %v1177_v24 }
0x12e0   : > { %v1167_v27 = vpop.xlane.xlu1 %1166  ;;  %v1175_v28 = vpop.xlane.xlu0 %1174 }
0x12e1   : > { %v1168_v29 = vsel %vm1156_vm6, %v1167_v27, %v1138_v2  ;;  %v1176_v30 = vsel %vm1156_vm6, %v1175_v28, %v1146_v1  ;;  %v1171_v32 = vpop.xlane.xlu2 %1170  ;;  %v1243_v2 = vxor.u32 2147483648, %v1242_v63  ;;  %v1272_v27 = vld [vmem:[#allocation2 + $0x13] ss:$0 sm:$0xff] }
0x12e2   : > { %v1172_v33 = vsel %vm1156_vm6, %v1171_v32, %v1142_v4  ;;  %v1195_v34 = vmul.f32 %v1183_v12, %v1168_v29  ;;  %v1203_v35 = vmul.f32 %v1183_v12, %v1176_v30  ;;  %v1273_v28 = vxor.u32 2147483648, %v1272_v27 }
0x12e3   : > { %v1199_v38 = vmul.f32 %v1183_v12, %v1172_v33 }
0x12e4   : > { %1196 = vadd.xlane.f32.xlu1 %v1195_v34  ;;  %1204 = vadd.xlane.f32.xlu0 %v1203_v35 }
0x12e5   : > { %1200 = vadd.xlane.f32.xlu2 %v1199_v38 }
0x1304   : > { %v1193_v40 = vpop.xlane.xlu0 %1192  ;;  %v1189_v41 = vpop.xlane.xlu2 %1188 }
0x1305   : > { %v1194_v44 = vsel %vm1186_vm8, %v1193_v40, %v1164_v17  ;;  %v1190_v45 = vsel %vm1186_vm8, %v1189_v41, %v1160_v18 }
0x1306   : > { %v1221_v46 = vmul.f32 %v1213_v42, %v1194_v44  ;;  %v1217_v47 = vmul.f32 %v1213_v42, %v1190_v45 }
0x1308   : > { %1222 = vadd.xlane.f32.xlu0 %v1221_v46  ;;  %1218 = vadd.xlane.f32.xlu2 %v1217_v47 }
0x134f   : > { %v1179_v48 = vpop.xlane.xlu1 %1178 }
0x1350   : > { %v1180_v50 = vsel %vm1156_vm6, %v1179_v48, %v1150_v23 }
0x1351   : > { %v1207_v52 = vmul.f32 %v1183_v12, %v1180_v50 }
0x1353   : > { %1208 = vadd.xlane.f32.xlu1 %v1207_v52 }
0x1357   : > { %v1197_v53 = vpop.xlane.xlu1 %1196  ;;  %v1205_v54 = vpop.xlane.xlu0 %1204 }
0x1358   : > { %v1198_v55 = vsel %vm1186_vm8, %v1197_v53, %v1168_v29  ;;  %v1206_v56 = vsel %vm1186_vm8, %v1205_v54, %v1176_v30  ;;  %v1201_v57 = vpop.xlane.xlu2 %1200  ;;  %v1302_v53 = vld [vmem:[#allocation2 + $0x12] ss:$0 sm:$0xff] }
0x1359   : > { %v1202_v58 = vsel %vm1186_vm8, %v1201_v57, %v1172_v33  ;;  %v1225_v59 = vmul.f32 %v1213_v42, %v1198_v55  ;;  %v1233_v60 = vmul.f32 %v1213_v42, %v1206_v56  ;;  %v1303_v54 = vxor.u32 2147483648, %v1302_v53 }
0x135a   : > { %v1229_v61 = vmul.f32 %v1213_v42, %v1202_v58 }
0x135b   : > { %1226 = vadd.xlane.f32.xlu1 %v1225_v59  ;;  %1234 = vadd.xlane.f32.xlu0 %v1233_v60 }
0x135c   : > { %1230 = vadd.xlane.f32.xlu2 %v1229_v61 }
0x137b   : > { %v1223_v0 = vpop.xlane.xlu0 %1222  ;;  %v1219_v1 = vpop.xlane.xlu2 %1218 }
0x137c   : > { %v1224_v3 = vsel %vm1216_vm9, %v1223_v0, %v1194_v44  ;;  %v1220_v4 = vsel %vm1216_vm9, %v1219_v1, %v1190_v45 }
0x137d   : > { %v1251_v5 = vmul.f32 %v1243_v2, %v1224_v3  ;;  %v1247_v7 = vmul.f32 %v1243_v2, %v1220_v4 }
0x137f   : > { %1252 = vadd.xlane.f32.xlu0 %v1251_v5  ;;  %1248 = vadd.xlane.f32.xlu2 %v1247_v7 }
0x13c6   : > { %v1209_v8 = vpop.xlane.xlu1 %1208 }
0x13c7   : > { %v1210_v11 = vsel %vm1186_vm8, %v1209_v8, %v1180_v50 }
0x13c8   : > { %v1237_v12 = vmul.f32 %v1213_v42, %v1210_v11 }
0x13ca   : > { %1238 = vadd.xlane.f32.xlu1 %v1237_v12 }
0x13ce   : > { %v1227_v13 = vpop.xlane.xlu1 %1226  ;;  %v1235_v16 = vpop.xlane.xlu0 %1234 }
0x13cf   : > { %v1228_v17 = vsel %vm1216_vm9, %v1227_v13, %v1198_v55  ;;  %v1236_v18 = vsel %vm1216_vm9, %v1235_v16, %v1206_v56  ;;  %v1231_v19 = vpop.xlane.xlu2 %1230  ;;  %v1332_v13 = vld [vmem:[#allocation2 + $0x11] ss:$0 sm:$0xff] }
0x13d0   : > { %v1263_v20 = vmul.f32 %v1243_v2, %v1236_v18  ;;  %v1232_v22 = vsel %vm1216_vm9, %v1231_v19, %v1202_v58  ;;  %v1255_v23 = vmul.f32 %v1243_v2, %v1228_v17  ;;  %v1333_v16 = vxor.u32 2147483648, %v1332_v13 }
0x13d1   : > { %v1259_v24 = vmul.f32 %v1243_v2, %v1232_v22 }
0x13d2   : > { %1256 = vadd.xlane.f32.xlu1 %v1255_v23  ;;  %1264 = vadd.xlane.f32.xlu0 %v1263_v20 }
0x13d3   : > { %1260 = vadd.xlane.f32.xlu2 %v1259_v24 }
0x13f2   : > { %v1253_v29 = vpop.xlane.xlu0 %1252  ;;  %v1249_v30 = vpop.xlane.xlu2 %1248 }
0x13f3   : > { %v1254_v32 = vsel %vm1246_vm12, %v1253_v29, %v1224_v3  ;;  %v1250_v33 = vsel %vm1246_vm12, %v1249_v30, %v1220_v4 }
0x13f4   : > { %v1281_v34 = vmul.f32 %v1273_v28, %v1254_v32  ;;  %v1277_v35 = vmul.f32 %v1273_v28, %v1250_v33 }
0x13f6   : > { %1282 = vadd.xlane.f32.xlu0 %v1281_v34  ;;  %1278 = vadd.xlane.f32.xlu2 %v1277_v35 }
0x143d   : > { %v1239_v38 = vpop.xlane.xlu1 %1238 }
0x143e   : > { %v1240_v39 = vsel %vm1216_vm9, %v1239_v38, %v1210_v11 }
0x143f   : > { %v1267_v40 = vmul.f32 %v1243_v2, %v1240_v39 }
0x1441   : > { %1268 = vadd.xlane.f32.xlu1 %v1267_v40 }
0x1445   : > { %v1257_v41 = vpop.xlane.xlu1 %1256  ;;  %v1265_v42 = vpop.xlane.xlu0 %1264 }
0x1446   : > { %v1258_v44 = vsel %vm1246_vm12, %v1257_v41, %v1228_v17  ;;  %v1266_v45 = vsel %vm1246_vm12, %v1265_v42, %v1236_v18  ;;  %v1261_v46 = vpop.xlane.xlu2 %1260  ;;  %v182_v41 = vadd.s32 8, %v2450_v10  ;;  %v2274_v42 = vld [vmem:[%s2453_s26 + $0x8] sm:$0xff] }
0x1447   : > { %v1285_v47 = vmul.f32 %v1273_v28, %v1258_v44  ;;  %v1293_v48 = vmul.f32 %v1273_v28, %v1266_v45  ;;  %v1262_v50 = vsel %vm1246_vm12, %v1261_v46, %v1232_v22 }
0x1448   : > { %v1289_v52 = vmul.f32 %v1273_v28, %v1262_v50  ;;  %vm183_vm0 = vcmp.eq.s32.totalorder %v182_v41, %v2448_v9  ;;  %vm188_vm4 = vcmp.le.s32.totalorder %v182_v41, %v2448_v9 }
0x1449   : > { %1286 = vadd.xlane.f32.xlu1 %v1285_v47  ;;  %1294 = vadd.xlane.f32.xlu0 %v1293_v48  ;;  %vm189_vm9 = vmand %vm188_vm4, %vm150_vm1  ;;  %vm1430_vm4 = vcmp.eq.s32.totalorder %v2448_v9, 14 }
0x144a   : > { %1290 = vadd.xlane.f32.xlu2 %v1289_v52 }
0x1469   : > { %v1283_v55 = vpop.xlane.xlu0 %1282  ;;  %v1279_v56 = vpop.xlane.xlu2 %1278 }
0x146a   : > { %v1284_v57 = vsel %vm1276_vm13, %v1283_v55, %v1254_v32  ;;  %v1280_v58 = vsel %vm1276_vm13, %v1279_v56, %v1250_v33 }
0x146b   : > { %v1311_v59 = vmul.f32 %v1303_v54, %v1284_v57  ;;  %v1307_v60 = vmul.f32 %v1303_v54, %v1280_v58 }
0x146d   : > { %1312 = vadd.xlane.f32.xlu0 %v1311_v59  ;;  %1308 = vadd.xlane.f32.xlu2 %v1307_v60 }
0x14b4   : > { %v1269_v61 = vpop.xlane.xlu1 %1268 }
0x14b5   : > { %v1270_v63 = vsel %vm1246_vm12, %v1269_v61, %v1240_v39 }
0x14b6   : > { %v1297_v0 = vmul.f32 %v1273_v28, %v1270_v63 }
0x14b8   : > { %1298 = vadd.xlane.f32.xlu1 %v1297_v0 }
0x14bc   : > { %v1287_v1 = vpop.xlane.xlu1 %1286  ;;  %v1295_v2 = vpop.xlane.xlu0 %1294 }
0x14bd   : > { %v1288_v3 = vsel %vm1276_vm13, %v1287_v1, %v1258_v44  ;;  %v1296_v4 = vsel %vm1276_vm13, %v1295_v2, %v1266_v45  ;;  %v1291_v5 = vpop.xlane.xlu2 %1290  ;;  %v185_v44 = vsel %vm183_vm0, %v2274_v42, 0.0  ;;  %v1362_v45 = vld [vmem:[#allocation2 + $0x10] ss:$0 sm:$0xff]  ;;  %vm1366_vm0 = vcmp.eq.s32.totalorder %v2448_v9, 16 }
0x14be   : > { %v1315_v7 = vmul.f32 %v1303_v54, %v1288_v3  ;;  %v1323_v8 = vmul.f32 %v1303_v54, %v1296_v4  ;;  %v1292_v11 = vsel %vm1276_vm13, %v1291_v5, %v1262_v50  ;;  %v1363_v46 = vxor.u32 2147483648, %v1362_v45 }
0x14bf   : > { %v1319_v12 = vmul.f32 %v1303_v54, %v1292_v11 }
0x14c0   : > { %1316 = vadd.xlane.f32.xlu1 %v1315_v7  ;;  %1324 = vadd.xlane.f32.xlu0 %v1323_v8 }
0x14c1   : > { %1320 = vadd.xlane.f32.xlu2 %v1319_v12 }
0x14e0   : > { %v1313_v17 = vpop.xlane.xlu0 %1312  ;;  %v1309_v18 = vpop.xlane.xlu2 %1308 }
0x14e1   : > { %v1314_v19 = vsel %vm1306_vm14, %v1313_v17, %v1284_v57  ;;  %v1310_v20 = vsel %vm1306_vm14, %v1309_v18, %v1280_v58  ;;  %v190_v18 = vsel %vm189_vm9, %v2274_v42, 0.0  ;;  %vm1498_vm9 = vcmp.eq.s32.totalorder %v2448_v9, 12 }
0x14e2   : > { %v1341_v22 = vmul.f32 %v1333_v16, %v1314_v19  ;;  %v1337_v23 = vmul.f32 %v1333_v16, %v1310_v20 }
0x14e4   : > { %1342 = vadd.xlane.f32.xlu0 %v1341_v22  ;;  %1338 = vadd.xlane.f32.xlu2 %v1337_v23 }
0x152b   : > { %v1299_v24 = vpop.xlane.xlu1 %1298 }
0x152c   : > { %v1300_v27 = vsel %vm1276_vm13, %v1299_v24, %v1270_v63 }
0x152d   : > { %v1327_v28 = vmul.f32 %v1303_v54, %v1300_v27 }
0x152f   : > { %1328 = vadd.xlane.f32.xlu1 %v1327_v28 }
0x1533   : > { %v1317_v29 = vpop.xlane.xlu1 %1316  ;;  %v1325_v30 = vpop.xlane.xlu0 %1324 }
0x1534   : > { %v1318_v32 = vsel %vm1306_vm14, %v1317_v29, %v1288_v3  ;;  %v1326_v33 = vsel %vm1306_vm14, %v1325_v30, %v1296_v4  ;;  %v1321_v34 = vpop.xlane.xlu2 %1320 }
0x1535   : > { %v1345_v35 = vmul.f32 %v1333_v16, %v1318_v32  ;;  %v1353_v38 = vmul.f32 %v1333_v16, %v1326_v33  ;;  %v1322_v39 = vsel %vm1306_vm14, %v1321_v34, %v1292_v11 }
0x1536   : > { %v1349_v40 = vmul.f32 %v1333_v16, %v1322_v39 }
0x1537   : > { %1346 = vadd.xlane.f32.xlu1 %v1345_v35  ;;  %1354 = vadd.xlane.f32.xlu0 %v1353_v38 }
0x1538   : > { %1350 = vadd.xlane.f32.xlu2 %v1349_v40 }
0x1540   : > { %186 = vadd.xlane.f32.xlu2 %v185_v44 }
0x1557   : > { %v1339_v47 = vpop.xlane.xlu2 %1338  ;;  %v1343_v55 = vpop.xlane.xlu0 %1342 }
0x1558   : > { %v1340_v48 = vsel %vm1336_vm3, %v1339_v47, %v1310_v20  ;;  %v1344_v56 = vsel %vm1336_vm3, %v1343_v55, %v1314_v19 }
0x1559   : > { %v1367_v50 = vmul.f32 %v1363_v46, %v1340_v48  ;;  %v1371_v60 = vmul.f32 %v1363_v46, %v1344_v56 }
0x155b   : > { %1368 = vadd.xlane.f32.xlu0 %v1367_v50 }
0x15a2   : > { %v1329_v52 = vpop.xlane.xlu1 %1328 }
0x15a3   : > { %v1330_v53 = vsel %vm1306_vm14, %v1329_v52, %v1300_v27  ;;  %vm393_vm14 = vcmp.eq.s32.totalorder %v2448_v9, %v182_v41 }
0x15a4   : > { %v1357_v54 = vmul.f32 %v1333_v16, %v1330_v53  ;;  %v394_v27 = vsel %vm393_vm14, -1.0, %v2393_v15  ;;  %vm154_vm14 = vcmp.eq.s32.totalorder %v2450_v10, %v2448_v9 }
0x15a6   : > { %1358 = vadd.xlane.f32.xlu1 %v1357_v54 }
0x15aa   : > { %v1347_v57 = vpop.xlane.xlu1 %1346  ;;  %v1355_v1 = vpop.xlane.xlu0 %1354 }
0x15ab   : > { %v1348_v58 = vsel %vm1336_vm3, %v1347_v57, %v1318_v32  ;;  %v1351_v59 = vpop.xlane.xlu2 %1350  ;;  %v1356_v2 = vsel %vm1336_vm3, %v1355_v1, %v1326_v33 }
0x15ac   : > { %v1375_v61 = vmul.f32 %v1363_v46, %v1348_v58  ;;  %v1352_v63 = vsel %vm1336_vm3, %v1351_v59, %v1322_v39  ;;  %v1383_v4 = vmul.f32 %v1363_v46, %v1356_v2 }
0x15ad   : > { %v1379_v0 = vmul.f32 %v1363_v46, %v1352_v63 }
0x15ae   : > { %1372 = vadd.xlane.f32.xlu1 %v1371_v60  ;;  %1376 = vadd.xlane.f32.xlu2 %v1375_v61 }
0x15af   : > { %1380 = vadd.xlane.f32.xlu0 %v1379_v0 }
0x15b3   : > { %v2930_v3 = vpop.xlane.xlu2 %186 }
0x15b4   : > { %2348 = vrcp.f32 %v2930_v3  ;;  %v202_v8 = vand.u32 2147483648, %v2930_v3  ;;  %vm196_vm6 = vweird.f32 %v2930_v3  ;;  %v200_v12 = vand.u32 2147483647, %v2930_v3 }
0x15b6   : > { %1384 = vadd.xlane.f32.xlu1 %v1383_v4  ;;  %v203_v16 = vor.u32 1.1754944e-38, %v202_v8  ;;  %vm201_vm13 = vcmp.eq.f32.partialorder %v200_v12, 8.507059e+37 }
0x15ba   : > { %v2349_v5 = vpop.eup %2348 }
0x15bb   : > { %v192_v7 = vmul.f32 %v2349_v5, %v2930_v3  ;;  %vm197_vm8 = vweird.f32 %v2349_v5 }
0x15bc   : > { %vm198_vm12 = vmor %vm196_vm6, %vm197_vm8  ;;  %vm1464_vm8 = vcmp.eq.s32.totalorder %v2448_v9, 13 }
0x15bd   : > { %v193_v11 = vsub.f32 1.0, %v192_v7 }
0x15bf   : > { %v194_v13 = vmul.f32 %v2349_v5, %v193_v11 }
0x15c1   : > { %v195_v17 = vadd.f32 %v2349_v5, %v194_v13 }
0x15c3   : > { %v199_v19 = vsel %vm198_vm12, %v2349_v5, %v195_v17  ;;  %vm1532_vm12 = vcmp.eq.s32.totalorder %v2448_v9, 11 }
0x15c4   : > { %v2942_v20 = vsel %vm201_vm13, %v203_v16, %v199_v19  ;;  %vm1566_vm13 = vcmp.eq.s32.totalorder %v2448_v9, 10 }
0x15c5   : > { %v205_v22 = vmul.f32 %v2942_v20, %v190_v18 }
0x15c7   : > { %206 = vst [vmem:[#allocation2 + $0x8] sm:$0xff] %v205_v22 }
0x15ce   : > { %v1369_v23 = vpop.xlane.xlu0 %1368  ;;  %v1392_v24 = vld [vmem:[#allocation2 + $0xf] ss:$0 sm:$0xff]  ;;  %v1460_v19 = vld [vmem:[#allocation2 + $0xd] ss:$0 sm:$0xff] }
0x15cf   : > { %v1370_v28 = vsel %vm1366_vm0, %v1369_v23, %v1340_v48  ;;  %v1393_v29 = vxor.u32 2147483648, %v1392_v24  ;;  %v1461_v22 = vxor.u32 2147483648, %v1460_v19 }
0x15d1   : > { %v1401_v30 = vmul.f32 %v1393_v29, %v1370_v28  ;;  %v1397_v32 = vmul.f32 %v1393_v29, %v394_v27 }
0x15d3   : > { %1402 = vadd.xlane.f32.xlu1 %v1401_v30  ;;  %1398 = vadd.xlane.f32.xlu0 %v1397_v32 }
0x1619   : > { %v1359_v33 = vpop.xlane.xlu1 %1358 }
0x161a   : > { %v1360_v34 = vsel %vm1336_vm3, %v1359_v33, %v1330_v53  ;;  %v1426_v53 = vld [vmem:[#allocation2 + $0xe] ss:$0 sm:$0xff]  ;;  %vm1396_vm3 = vcmp.eq.s32.totalorder %v2448_v9, 15 }
0x161b   : > { %v1387_v35 = vmul.f32 %v1363_v46, %v1360_v34  ;;  %v1427_v54 = vxor.u32 2147483648, %v1426_v53 }
0x161d   : > { %1388 = vadd.xlane.f32.xlu2 %v1387_v35 }
0x1621   : > { %v1373_v38 = vpop.xlane.xlu1 %1372  ;;  %v1377_v39 = vpop.xlane.xlu2 %1376 }
0x1622   : > { %v1374_v40 = vsel %vm1366_vm0, %v1373_v38, %v1344_v56  ;;  %v1381_v41 = vpop.xlane.xlu0 %1380  ;;  %v1378_v42 = vsel %vm1366_vm0, %v1377_v39, %v1348_v58 }
0x1623   : > { %v1405_v44 = vmul.f32 %v1393_v29, %v1374_v40  ;;  %v1382_v45 = vsel %vm1366_vm0, %v1381_v41, %v1352_v63  ;;  %v1409_v47 = vmul.f32 %v1393_v29, %v1378_v42 }
0x1624   : > { %v1413_v48 = vmul.f32 %v1393_v29, %v1382_v45 }
0x1625   : > { %1406 = vadd.xlane.f32.xlu2 %v1405_v44  ;;  %1410 = vadd.xlane.f32.xlu0 %v1409_v47 }
0x1626   : > { %1414 = vadd.xlane.f32.xlu1 %v1413_v48 }
0x1629   : > { %v1385_v46 = vpop.xlane.xlu1 %1384 }
0x162a   : > { %v1386_v50 = vsel %vm1366_vm0, %v1385_v46, %v1356_v2 }
0x162b   : > { %v1417_v52 = vmul.f32 %v1393_v29, %v1386_v50 }
0x162d   : > { %1418 = vadd.xlane.f32.xlu2 %v1417_v52  ;;  %v1494_v52 = vld [vmem:[#allocation2 + $0xc] ss:$0 sm:$0xff] }
0x162e   : > { %v1495_v53 = vxor.u32 2147483648, %v1494_v52 }
0x1646   : > { %v1403_v55 = vpop.xlane.xlu1 %1402  ;;  %v1399_v56 = vpop.xlane.xlu0 %1398 }
0x1647   : > { %v1404_v57 = vsel %vm1396_vm3, %v1403_v55, %v1370_v28  ;;  %v1400_v58 = vsel %vm1396_vm3, %v1399_v56, %v394_v27 }
0x1648   : > { %v1435_v59 = vmul.f32 %v1427_v54, %v1404_v57  ;;  %v1431_v60 = vmul.f32 %v1427_v54, %v1400_v58 }
0x164a   : > { %1436 = vadd.xlane.f32.xlu2 %v1435_v59  ;;  %1432 = vadd.xlane.f32.xlu1 %v1431_v60 }
0x1690   : > { %v1389_v61 = vpop.xlane.xlu2 %1388 }
0x1691   : > { %v1390_v63 = vsel %vm1366_vm0, %v1389_v61, %v1360_v34  ;;  %vm1600_vm0 = vcmp.eq.s32.totalorder %v2448_v9, 9 }
0x1692   : > { %v1421_v0 = vmul.f32 %v1393_v29, %v1390_v63 }
0x1694   : > { %1422 = vadd.xlane.f32.xlu0 %v1421_v0 }
0x1698   : > { %v1411_v1 = vpop.xlane.xlu0 %1410  ;;  %v1407_v2 = vpop.xlane.xlu2 %1406 }
0x1699   : > { %v1415_v4 = vpop.xlane.xlu1 %1414  ;;  %v1412_v5 = vsel %vm1396_vm3, %v1411_v1, %v1378_v42  ;;  %v1408_v7 = vsel %vm1396_vm3, %v1407_v2, %v1374_v40 }
0x169a   : > { %v1416_v8 = vsel %vm1396_vm3, %v1415_v4, %v1382_v45  ;;  %v1443_v11 = vmul.f32 %v1427_v54, %v1412_v5  ;;  %v1439_v12 = vmul.f32 %v1427_v54, %v1408_v7 }
0x169b   : > { %v1447_v13 = vmul.f32 %v1427_v54, %v1416_v8 }
0x169c   : > { %1444 = vadd.xlane.f32.xlu1 %v1443_v11  ;;  %1440 = vadd.xlane.f32.xlu0 %v1439_v12 }
0x169d   : > { %1448 = vadd.xlane.f32.xlu2 %v1447_v13 }
0x16a0   : > { %v1419_v16 = vpop.xlane.xlu2 %1418 }
0x16a1   : > { %v1420_v17 = vsel %vm1396_vm3, %v1419_v16, %v1386_v50 }
0x16a2   : > { %v1451_v18 = vmul.f32 %v1427_v54, %v1420_v17 }
0x16a4   : > { %1452 = vadd.xlane.f32.xlu0 %v1451_v18  ;;  %v1528_v18 = vld [vmem:[#allocation2 + $0xb] ss:$0 sm:$0xff] }
0x16a5   : > { %v1529_v19 = vxor.u32 2147483648, %v1528_v18 }
0x16bd   : > { %v1433_v23 = vpop.xlane.xlu1 %1432  ;;  %v1437_v24 = vpop.xlane.xlu2 %1436 }
0x16be   : > { %v1434_v27 = vsel %vm1430_vm4, %v1433_v23, %v1400_v58  ;;  %v1438_v28 = vsel %vm1430_vm4, %v1437_v24, %v1404_v57 }
0x16bf   : > { %v1465_v29 = vmul.f32 %v1461_v22, %v1434_v27  ;;  %v1469_v30 = vmul.f32 %v1461_v22, %v1438_v28 }
0x16c1   : > { %1466 = vadd.xlane.f32.xlu2 %v1465_v29  ;;  %1470 = vadd.xlane.f32.xlu0 %v1469_v30 }
0x1707   : > { %v1423_v32 = vpop.xlane.xlu0 %1422 }
0x1708   : > { %v1424_v33 = vsel %vm1396_vm3, %v1423_v32, %v1390_v63  ;;  %vm159_vm3 = vcmp.le.s32.totalorder %v2450_v10, %v2448_v9 }
0x1709   : > { %v1455_v34 = vmul.f32 %v1427_v54, %v1424_v33 }
0x170b   : > { %1456 = vadd.xlane.f32.xlu1 %v1455_v34 }
0x170f   : > { %v1445_v35 = vpop.xlane.xlu1 %1444  ;;  %v1441_v38 = vpop.xlane.xlu0 %1440 }
0x1710   : > { %v1446_v39 = vsel %vm1430_vm4, %v1445_v35, %v1412_v5  ;;  %v1442_v40 = vsel %vm1430_vm4, %v1441_v38, %v1408_v7  ;;  %v1449_v41 = vpop.xlane.xlu2 %1448 }
0x1711   : > { %v1477_v42 = vmul.f32 %v1461_v22, %v1446_v39  ;;  %v1473_v44 = vmul.f32 %v1461_v22, %v1442_v40  ;;  %v1450_v45 = vsel %vm1430_vm4, %v1449_v41, %v1416_v8 }
0x1712   : > { %v1481_v47 = vmul.f32 %v1461_v22, %v1450_v45 }
0x1713   : > { %1478 = vadd.xlane.f32.xlu2 %v1477_v42  ;;  %1474 = vadd.xlane.f32.xlu1 %v1473_v44 }
0x1714   : > { %1482 = vadd.xlane.f32.xlu0 %v1481_v47 }
0x1717   : > { %v1453_v48 = vpop.xlane.xlu0 %1452 }
0x1718   : > { %v1454_v46 = vsel %vm1430_vm4, %v1453_v48, %v1420_v17 }
0x1719   : > { %v1485_v50 = vmul.f32 %v1461_v22, %v1454_v46 }
0x171b   : > { %1486 = vadd.xlane.f32.xlu1 %v1485_v50  ;;  %v1562_v50 = vld [vmem:[#allocation2 + $0xa] ss:$0 sm:$0xff] }
0x171c   : > { %v1563_v52 = vxor.u32 2147483648, %v1562_v50 }
0x1734   : > { %v1471_v54 = vpop.xlane.xlu0 %1470  ;;  %v1467_v55 = vpop.xlane.xlu2 %1466 }
0x1735   : > { %v1472_v56 = vsel %vm1464_vm8, %v1471_v54, %v1438_v28  ;;  %v1468_v57 = vsel %vm1464_vm8, %v1467_v55, %v1434_v27 }
0x1736   : > { %v1503_v58 = vmul.f32 %v1495_v53, %v1472_v56  ;;  %v1499_v59 = vmul.f32 %v1495_v53, %v1468_v57 }
0x1738   : > { %1504 = vadd.xlane.f32.xlu1 %v1503_v58  ;;  %1500 = vadd.xlane.f32.xlu0 %v1499_v59 }
0x177e   : > { %v1457_v60 = vpop.xlane.xlu1 %1456 }
0x177f   : > { %v1458_v61 = vsel %vm1430_vm4, %v1457_v60, %v1424_v33 }
0x1780   : > { %v1489_v63 = vmul.f32 %v1461_v22, %v1458_v61 }
0x1782   : > { %1490 = vadd.xlane.f32.xlu2 %v1489_v63 }
0x1786   : > { %v1475_v0 = vpop.xlane.xlu1 %1474  ;;  %v1479_v1 = vpop.xlane.xlu2 %1478 }
0x1787   : > { %v1476_v2 = vsel %vm1464_vm8, %v1475_v0, %v1442_v40  ;;  %v1483_v4 = vpop.xlane.xlu0 %1482  ;;  %v1480_v5 = vsel %vm1464_vm8, %v1479_v1, %v1446_v39 }
0x1788   : > { %v1507_v7 = vmul.f32 %v1495_v53, %v1476_v2  ;;  %v1484_v8 = vsel %vm1464_vm8, %v1483_v4, %v1450_v45  ;;  %v1511_v11 = vmul.f32 %v1495_v53, %v1480_v5 }
0x1789   : > { %v1515_v12 = vmul.f32 %v1495_v53, %v1484_v8 }
0x178a   : > { %1508 = vadd.xlane.f32.xlu2 %v1507_v7  ;;  %1512 = vadd.xlane.f32.xlu0 %v1511_v11 }
0x178b   : > { %1516 = vadd.xlane.f32.xlu1 %v1515_v12 }
0x178e   : > { %v1487_v13 = vpop.xlane.xlu1 %1486 }
0x178f   : > { %v1488_v16 = vsel %vm1464_vm8, %v1487_v13, %v1454_v46 }
0x1790   : > { %v1519_v17 = vmul.f32 %v1495_v53, %v1488_v16 }
0x1792   : > { %1520 = vadd.xlane.f32.xlu2 %v1519_v17  ;;  %v1596_v17 = vld [vmem:[#allocation2 + $0x9] ss:$0 sm:$0xff] }
0x1793   : > { %v1597_v18 = vxor.u32 2147483648, %v1596_v17 }
0x17ab   : > { %v1505_v22 = vpop.xlane.xlu1 %1504  ;;  %v1501_v23 = vpop.xlane.xlu0 %1500 }
0x17ac   : > { %v1506_v24 = vsel %vm1498_vm9, %v1505_v22, %v1472_v56  ;;  %v1502_v27 = vsel %vm1498_vm9, %v1501_v23, %v1468_v57 }
0x17ad   : > { %v1537_v28 = vmul.f32 %v1529_v19, %v1506_v24  ;;  %v1533_v29 = vmul.f32 %v1529_v19, %v1502_v27 }
0x17af   : > { %1538 = vadd.xlane.f32.xlu2 %v1537_v28  ;;  %1534 = vadd.xlane.f32.xlu1 %v1533_v29 }
0x17f5   : > { %v1491_v30 = vpop.xlane.xlu2 %1490 }
0x17f6   : > { %v1492_v32 = vsel %vm1464_vm8, %v1491_v30, %v1458_v61 }
0x17f7   : > { %v1523_v33 = vmul.f32 %v1495_v53, %v1492_v32 }
0x17f9   : > { %1524 = vadd.xlane.f32.xlu0 %v1523_v33 }
0x17fd   : > { %v1513_v34 = vpop.xlane.xlu0 %1512  ;;  %v1509_v35 = vpop.xlane.xlu2 %1508 }
0x17fe   : > { %v1517_v38 = vpop.xlane.xlu1 %1516  ;;  %v1514_v39 = vsel %vm1498_vm9, %v1513_v34, %v1480_v5  ;;  %v1510_v40 = vsel %vm1498_vm9, %v1509_v35, %v1476_v2 }
0x17ff   : > { %v1518_v41 = vsel %vm1498_vm9, %v1517_v38, %v1484_v8  ;;  %v1545_v42 = vmul.f32 %v1529_v19, %v1514_v39  ;;  %v1541_v44 = vmul.f32 %v1529_v19, %v1510_v40 }
0x1800   : > { %v1549_v45 = vmul.f32 %v1529_v19, %v1518_v41 }
0x1801   : > { %1546 = vadd.xlane.f32.xlu1 %v1545_v42  ;;  %1542 = vadd.xlane.f32.xlu0 %v1541_v44 }
0x1802   : > { %1550 = vadd.xlane.f32.xlu2 %v1549_v45  ;;  %v155_v45 = vld [vmem:[%s2453_s26] sm:$0xff] }
0x1803   : > { %v156_v50 = vsel %vm154_vm14, %v155_v45, 0.0  ;;  %vm386_vm14 = vcmp.eq.s32.totalorder %v2448_v9, %v2450_v10 }
0x1805   : > { %v1521_v47 = vpop.xlane.xlu2 %1520 }
0x1806   : > { %v1522_v48 = vsel %vm1498_vm9, %v1521_v47, %v1488_v16 }
0x1807   : > { %v1553_v46 = vmul.f32 %v1529_v19, %v1522_v48 }
0x1809   : > { %1554 = vadd.xlane.f32.xlu0 %v1553_v46 }
0x1822   : > { %v1535_v53 = vpop.xlane.xlu1 %1534  ;;  %v1539_v54 = vpop.xlane.xlu2 %1538 }
0x1823   : > { %v1536_v55 = vsel %vm1532_vm12, %v1535_v53, %v1502_v27  ;;  %v1540_v56 = vsel %vm1532_vm12, %v1539_v54, %v1506_v24 }
0x1824   : > { %v1567_v57 = vmul.f32 %v1563_v52, %v1536_v55  ;;  %v1571_v58 = vmul.f32 %v1563_v52, %v1540_v56 }
0x1826   : > { %1568 = vadd.xlane.f32.xlu2 %v1567_v57  ;;  %1572 = vadd.xlane.f32.xlu0 %v1571_v58 }
0x186c   : > { %v1525_v59 = vpop.xlane.xlu0 %1524 }
0x186d   : > { %v1526_v60 = vsel %vm1498_vm9, %v1525_v59, %v1492_v32  ;;  %vm160_vm9 = vmand %vm159_vm3, %vm150_vm1  ;;  %vm1668_vm1 = vcmp.eq.s32.totalorder %v2448_v9, 7  ;;  %vm1782_vm3 = vcmp.eq.s32.totalorder %v2448_v9, 4 }
0x186e   : > { %v1557_v61 = vmul.f32 %v1529_v19, %v1526_v60 }
0x1870   : > { %1558 = vadd.xlane.f32.xlu1 %v1557_v61 }
0x1874   : > { %v1547_v63 = vpop.xlane.xlu1 %1546  ;;  %v1543_v0 = vpop.xlane.xlu0 %1542 }
0x1875   : > { %v1548_v1 = vsel %vm1532_vm12, %v1547_v63, %v1514_v39  ;;  %v1544_v2 = vsel %vm1532_vm12, %v1543_v0, %v1510_v40  ;;  %v1551_v4 = vpop.xlane.xlu2 %1550 }
0x1876   : > { %v1579_v5 = vmul.f32 %v1563_v52, %v1548_v1  ;;  %v1575_v7 = vmul.f32 %v1563_v52, %v1544_v2  ;;  %v1552_v8 = vsel %vm1532_vm12, %v1551_v4, %v1518_v41 }
0x1877   : > { %v1583_v11 = vmul.f32 %v1563_v52, %v1552_v8 }
0x1878   : > { %1580 = vadd.xlane.f32.xlu2 %v1579_v5  ;;  %1576 = vadd.xlane.f32.xlu1 %v1575_v7 }
0x1879   : > { %1584 = vadd.xlane.f32.xlu0 %v1583_v11 }
0x187c   : > { %v1555_v12 = vpop.xlane.xlu0 %1554 }
0x187d   : > { %v1556_v13 = vsel %vm1532_vm12, %v1555_v12, %v1522_v48 }
0x187e   : > { %v1587_v16 = vmul.f32 %v1563_v52, %v1556_v13 }
0x1880   : > { %1588 = vadd.xlane.f32.xlu1 %v1587_v16 }
0x1899   : > { %v1573_v19 = vpop.xlane.xlu0 %1572  ;;  %v1569_v22 = vpop.xlane.xlu2 %1568 }
0x189a   : > { %v1574_v23 = vsel %vm1566_vm13, %v1573_v19, %v1540_v56  ;;  %v1570_v24 = vsel %vm1566_vm13, %v1569_v22, %v1536_v55 }
0x189b   : > { %v1605_v27 = vmul.f32 %v1597_v18, %v1574_v23  ;;  %v1601_v28 = vmul.f32 %v1597_v18, %v1570_v24 }
0x189d   : > { %1606 = vadd.xlane.f32.xlu1 %v1605_v27  ;;  %1602 = vadd.xlane.f32.xlu0 %v1601_v28 }
0x18e3   : > { %v1559_v29 = vpop.xlane.xlu1 %1558 }
0x18e4   : > { %v1560_v30 = vsel %vm1532_vm12, %v1559_v29, %v1526_v60 }
0x18e5   : > { %v1591_v32 = vmul.f32 %v1563_v52, %v1560_v30  ;;  %v1630_v52 = vld [vmem:[#allocation2 + $0x8] ss:$0 sm:$0xff] }
0x18e6   : > { %v3054_v53 = vxor.u32 2147483648, %v1630_v52 }
0x18e7   : > { %1592 = vadd.xlane.f32.xlu2 %v1591_v32  ;;  %v161_v32 = vsel %vm160_vm9, %v155_v45, 0.0  ;;  %vm1858_vm9 = vcmp.eq.s32.totalorder %v2448_v9, 2 }
0x18eb   : > { %v1577_v33 = vpop.xlane.xlu1 %1576  ;;  %v1581_v34 = vpop.xlane.xlu2 %1580 }
0x18ec   : > { %v1578_v35 = vsel %vm1566_vm13, %v1577_v33, %v1544_v2  ;;  %v1585_v38 = vpop.xlane.xlu0 %1584  ;;  %v1582_v39 = vsel %vm1566_vm13, %v1581_v34, %v1548_v1 }
0x18ed   : > { %v1609_v40 = vmul.f32 %v1597_v18, %v1578_v35  ;;  %v1586_v41 = vsel %vm1566_vm13, %v1585_v38, %v1552_v8  ;;  %v1613_v42 = vmul.f32 %v1597_v18, %v1582_v39 }
0x18ee   : > { %v1617_v44 = vmul.f32 %v1597_v18, %v1586_v41 }
0x18ef   : > { %1610 = vadd.xlane.f32.xlu2 %v1609_v40  ;;  %1614 = vadd.xlane.f32.xlu0 %v1613_v42 }
0x18f0   : > { %1618 = vadd.xlane.f32.xlu1 %v1617_v44 }
0x18f3   : > { %v1589_v47 = vpop.xlane.xlu1 %1588 }
0x18f4   : > { %v1590_v48 = vsel %vm1566_vm13, %v1589_v47, %v1556_v13 }
0x18f5   : > { %v1621_v46 = vmul.f32 %v1597_v18, %v1590_v48 }
0x18f7   : > { %1622 = vadd.xlane.f32.xlu2 %v1621_v46 }
0x18f8   : > { %157 = vadd.xlane.f32.xlu1 %v156_v50 }
0x1910   : > { %v1603_v54 = vpop.xlane.xlu0 %1602  ;;  %v1607_v58 = vpop.xlane.xlu1 %1606 }
0x1911   : > { %v1604_v55 = vsel %vm1600_vm0, %v1603_v54, %v1570_v24  ;;  %v1608_v61 = vsel %vm1600_vm0, %v1607_v58, %v1574_v23 }
0x1912   : > { %v1635_v56 = vmul.f32 %v3054_v53, %v1604_v55  ;;  %v1639_v5 = vmul.f32 %v3054_v53, %v1608_v61 }
0x1914   : > { %1636 = vadd.xlane.f32.xlu2 %v1635_v56 }
0x195a   : > { %v1593_v57 = vpop.xlane.xlu2 %1592 }
0x195b   : > { %v1594_v59 = vsel %vm1566_vm13, %v1593_v57, %v1560_v30 }
0x195c   : > { %v1625_v60 = vmul.f32 %v1597_v18, %v1594_v59 }
0x195e   : > { %1626 = vadd.xlane.f32.xlu0 %v1625_v60 }
0x1962   : > { %v1615_v63 = vpop.xlane.xlu0 %1614  ;;  %v1611_v0 = vpop.xlane.xlu2 %1610 }
0x1963   : > { %v1619_v1 = vpop.xlane.xlu1 %1618  ;;  %v1616_v2 = vsel %vm1600_vm0, %v1615_v63, %v1582_v39  ;;  %v1612_v4 = vsel %vm1600_vm0, %v1611_v0, %v1578_v35  ;;  %v387_v39 = vsel %vm386_vm14, -1.0, %v2393_v15 }
0x1964   : > { %v1647_v7 = vmul.f32 %v3054_v53, %v1616_v2  ;;  %v1643_v8 = vmul.f32 %v3054_v53, %v1612_v4  ;;  %v1620_v11 = vsel %vm1600_vm0, %v1619_v1, %v1586_v41 }
0x1965   : > { %v1651_v17 = vmul.f32 %v3054_v53, %v1620_v11 }
0x1966   : > { %1648 = vadd.xlane.f32.xlu2 %v1647_v7  ;;  %1640 = vadd.xlane.f32.xlu0 %v1639_v5 }
0x1967   : > { %1644 = vadd.xlane.f32.xlu1 %v1643_v8 }
0x196a   : > { %v1623_v12 = vpop.xlane.xlu2 %1622 }
0x196b   : > { %v1624_v13 = vsel %vm1600_vm0, %v1623_v12, %v1590_v48  ;;  %v3074_v16 = vpop.xlane.xlu1 %157 }
0x196c   : > { %v1655_v18 = vmul.f32 %v3054_v53, %v1624_v13  ;;  %2350 = vrcp.f32 %v3074_v16  ;;  %v173_v23 = vand.u32 2147483648, %v3074_v16  ;;  %vm167_vm4 = vweird.f32 %v3074_v16 }
0x196d   : > { %v171_v27 = vand.u32 2147483647, %v3074_v16 }
0x196e   : > { %1652 = vadd.xlane.f32.xlu0 %v1651_v17  ;;  %v174_v29 = vor.u32 1.1754944e-38, %v173_v23 }
0x196f   : > { %1656 = vadd.xlane.f32.xlu1 %v1655_v18  ;;  %vm172_vm13 = vcmp.eq.f32.partialorder %v171_v27, 8.507059e+37 }
0x1972   : > { %v2351_v19 = vpop.eup %2350 }
0x1973   : > { %v163_v22 = vmul.f32 %v2351_v19, %v3074_v16  ;;  %vm168_vm8 = vweird.f32 %v2351_v19 }
0x1974   : > { %vm169_vm12 = vmor %vm167_vm4, %vm168_vm8  ;;  %vm1820_vm8 = vcmp.eq.s32.totalorder %v2448_v9, 3 }
0x1975   : > { %v164_v24 = vsub.f32 1.0, %v163_v22 }
0x1977   : > { %v165_v28 = vmul.f32 %v2351_v19, %v164_v24 }
0x1979   : > { %v166_v30 = vadd.f32 %v2351_v19, %v165_v28 }
0x197b   : > { %v170_v33 = vsel %vm169_vm12, %v2351_v19, %v166_v30  ;;  %vm1896_vm12 = vcmp.eq.s32.totalorder %v2448_v9, 1 }
0x197c   : > { %v3089_v34 = vsel %vm172_vm13, %v174_v29, %v170_v33  ;;  %vm1933_vm13 = vcmp.eq.s32.totalorder %v2448_v9, 0 }
0x197d   : > { %v176_v35 = vmul.f32 %v3089_v34, %v161_v32 }
0x197f   : > { %177 = vst [vmem:[#allocation2] sm:$0xff] %v176_v35 }
0x1986   : > { %v1664_v38 = vld [vmem:[#allocation2 + $0x7] ss:$0 sm:$0xff]  ;;  %v1702_v1 = vld [vmem:[#allocation2 + $0x6] ss:$0 sm:$0xff] }
0x1987   : > { %v1637_v40 = vpop.xlane.xlu2 %1636  ;;  %v1665_v41 = vxor.u32 2147483648, %v1664_v38 }
0x1988   : > { %v1638_v42 = vsel %vm1634_vm5, %v1637_v40, %v1604_v55 }
0x1989   : > { %v1673_v44 = vmul.f32 %v1665_v41, %v1638_v42  ;;  %v1669_v45 = vmul.f32 %v1665_v41, %v387_v39 }
0x198b   : > { %1674 = vadd.xlane.f32.xlu1 %v1673_v44  ;;  %1670 = vadd.xlane.f32.xlu0 %v1669_v45 }
0x19d1   : > { %v1627_v47 = vpop.xlane.xlu0 %1626 }
0x19d2   : > { %v1628_v48 = vsel %vm1600_vm0, %v1627_v47, %v1594_v59  ;;  %vm1744_vm0 = vcmp.eq.s32.totalorder %v2448_v9, 5 }
0x19d3   : > { %v1659_v10 = vmul.f32 %v3054_v53, %v1628_v48 }
0x19d5   : > { %1660 = vadd.xlane.f32.xlu2 %v1659_v10 }
0x19d9   : > { %v1641_v46 = vpop.xlane.xlu0 %1640  ;;  %v1649_v50 = vpop.xlane.xlu2 %1648 }
0x19da   : > { %v1642_v15 = vsel %vm1634_vm5, %v1641_v46, %v1608_v61  ;;  %v1650_v52 = vsel %vm1634_vm5, %v1649_v50, %v1616_v2  ;;  %v1645_v54 = vpop.xlane.xlu1 %1644  ;;  %v1703_v2 = vxor.u32 2147483648, %v1702_v1 }
0x19db   : > { %v1677_v55 = vmul.f32 %v1665_v41, %v1642_v15  ;;  %v1685_v56 = vmul.f32 %v1665_v41, %v1650_v52  ;;  %v1646_v57 = vsel %vm1634_vm5, %v1645_v54, %v1612_v4 }
0x19dc   : > { %v1681_v58 = vmul.f32 %v1665_v41, %v1646_v57 }
0x19dd   : > { %1678 = vadd.xlane.f32.xlu2 %v1677_v55  ;;  %1686 = vadd.xlane.f32.xlu1 %v1685_v56 }
0x19de   : > { %1682 = vadd.xlane.f32.xlu0 %v1681_v58 }
0x19e1   : > { %v1653_v53 = vpop.xlane.xlu0 %1652 }
0x19e2   : > { %v1654_v59 = vsel %vm1634_vm5, %v1653_v53, %v1620_v11  ;;  %v1657_v60 = vpop.xlane.xlu1 %1656 }
0x19e3   : > { %v1689_v63 = vmul.f32 %v1665_v41, %v1654_v59  ;;  %v1658_v61 = vsel %vm1634_vm5, %v1657_v60, %v1624_v13 }
0x19e4   : > { %v1693_v0 = vmul.f32 %v1665_v41, %v1658_v61 }
0x19e5   : > { %1690 = vadd.xlane.f32.xlu2 %v1689_v63 }
0x19e6   : > { %1694 = vadd.xlane.f32.xlu0 %v1693_v0 }
0x19fe   : > { %v1671_v4 = vpop.xlane.xlu0 %1670  ;;  %v1675_v5 = vpop.xlane.xlu1 %1674 }
0x19ff   : > { %v1672_v7 = vsel %vm1668_vm1, %v1671_v4, %v387_v39  ;;  %v1676_v8 = vsel %vm1668_vm1, %v1675_v5, %v1638_v42  ;;  %v1740_v42 = vld [vmem:[#allocation2 + $0x5] ss:$0 sm:$0xff] }
0x1a00   : > { %v1707_v11 = vmul.f32 %v1703_v2, %v1672_v7  ;;  %v1711_v12 = vmul.f32 %v1703_v2, %v1676_v8  ;;  %v1741_v44 = vxor.u32 2147483648, %v1740_v42 }
0x1a02   : > { %1708 = vadd.xlane.f32.xlu2 %v1707_v11  ;;  %1712 = vadd.xlane.f32.xlu0 %v1711_v12 }
0x1a48   : > { %v1661_v13 = vpop.xlane.xlu2 %1660 }
0x1a49   : > { %v1662_v17 = vsel %vm1634_vm5, %v1661_v13, %v1628_v48  ;;  %vm1706_vm5 = vcmp.eq.s32.totalorder %v2448_v9, 6 }
0x1a4a   : > { %v1697_v18 = vmul.f32 %v1665_v41, %v1662_v17 }
0x1a4c   : > { %1698 = vadd.xlane.f32.xlu1 %v1697_v18 }
0x1a50   : > { %v1679_v19 = vpop.xlane.xlu2 %1678  ;;  %v1687_v22 = vpop.xlane.xlu1 %1686 }
0x1a51   : > { %v1680_v23 = vsel %vm1668_vm1, %v1679_v19, %v1642_v15  ;;  %v1683_v24 = vpop.xlane.xlu0 %1682  ;;  %v1688_v27 = vsel %vm1668_vm1, %v1687_v22, %v1650_v52 }
0x1a52   : > { %v1715_v28 = vmul.f32 %v1703_v2, %v1680_v23  ;;  %v1684_v29 = vsel %vm1668_vm1, %v1683_v24, %v1646_v57  ;;  %v1723_v30 = vmul.f32 %v1703_v2, %v1688_v27 }
0x1a53   : > { %v1719_v32 = vmul.f32 %v1703_v2, %v1684_v29 }
0x1a54   : > { %1716 = vadd.xlane.f32.xlu1 %v1715_v28  ;;  %1724 = vadd.xlane.f32.xlu0 %v1723_v30 }
0x1a55   : > { %1720 = vadd.xlane.f32.xlu2 %v1719_v32 }
0x1a58   : > { %v1691_v33 = vpop.xlane.xlu2 %1690 }
0x1a59   : > { %v1692_v35 = vsel %vm1668_vm1, %v1691_v33, %v1654_v59  ;;  %v1695_v38 = vpop.xlane.xlu0 %1694 }
0x1a5a   : > { %v1727_v39 = vmul.f32 %v1703_v2, %v1692_v35  ;;  %v1696_v40 = vsel %vm1668_vm1, %v1695_v38, %v1658_v61 }
0x1a5b   : > { %v1731_v41 = vmul.f32 %v1703_v2, %v1696_v40 }
0x1a5c   : > { %1728 = vadd.xlane.f32.xlu1 %v1727_v39 }
0x1a5d   : > { %1732 = vadd.xlane.f32.xlu2 %v1731_v41 }
0x1a75   : > { %v1709_v45 = vpop.xlane.xlu2 %1708  ;;  %v1713_v47 = vpop.xlane.xlu0 %1712 }
0x1a76   : > { %v1710_v48 = vsel %vm1706_vm5, %v1709_v45, %v1672_v7  ;;  %v1714_v10 = vsel %vm1706_vm5, %v1713_v47, %v1676_v8  ;;  %v1778_v8 = vld [vmem:[#allocation2 + $0x4] ss:$0 sm:$0xff] }
0x1a77   : > { %v1745_v46 = vmul.f32 %v1741_v44, %v1710_v48  ;;  %v1749_v50 = vmul.f32 %v1741_v44, %v1714_v10  ;;  %v1779_v11 = vxor.u32 2147483648, %v1778_v8 }
0x1a79   : > { %1746 = vadd.xlane.f32.xlu1 %v1745_v46  ;;  %1750 = vadd.xlane.f32.xlu2 %v1749_v50 }
0x1abf   : > { %v1699_v15 = vpop.xlane.xlu1 %1698 }
0x1ac0   : > { %v1700_v52 = vsel %vm1668_vm1, %v1699_v15, %v1662_v17 }
0x1ac1   : > { %v1735_v54 = vmul.f32 %v1703_v2, %v1700_v52 }
0x1ac3   : > { %1736 = vadd.xlane.f32.xlu0 %v1735_v54 }
0x1ac7   : > { %v1725_v55 = vpop.xlane.xlu0 %1724  ;;  %v1717_v56 = vpop.xlane.xlu1 %1716 }
0x1ac8   : > { %v1721_v57 = vpop.xlane.xlu2 %1720  ;;  %v1726_v58 = vsel %vm1706_vm5, %v1725_v55, %v1688_v27  ;;  %v1718_v53 = vsel %vm1706_vm5, %v1717_v56, %v1680_v23 }
0x1ac9   : > { %v1722_v59 = vsel %vm1706_vm5, %v1721_v57, %v1684_v29  ;;  %v1761_v60 = vmul.f32 %v1741_v44, %v1726_v58  ;;  %v1753_v63 = vmul.f32 %v1741_v44, %v1718_v53 }
0x1aca   : > { %v1757_v61 = vmul.f32 %v1741_v44, %v1722_v59 }
0x1acb   : > { %1762 = vadd.xlane.f32.xlu2 %v1761_v60  ;;  %1754 = vadd.xlane.f32.xlu0 %v1753_v63 }
0x1acc   : > { %1758 = vadd.xlane.f32.xlu1 %v1757_v61 }
0x1acf   : > { %v1729_v0 = vpop.xlane.xlu1 %1728 }
0x1ad0   : > { %v1733_v1 = vpop.xlane.xlu2 %1732  ;;  %v1730_v2 = vsel %vm1706_vm5, %v1729_v0, %v1692_v35 }
0x1ad1   : > { %v1734_v4 = vsel %vm1706_vm5, %v1733_v1, %v1696_v40  ;;  %v1765_v5 = vmul.f32 %v1741_v44, %v1730_v2 }
0x1ad2   : > { %v1769_v7 = vmul.f32 %v1741_v44, %v1734_v4 }
0x1ad3   : > { %1766 = vadd.xlane.f32.xlu0 %v1765_v5 }
0x1ad4   : > { %1770 = vadd.xlane.f32.xlu1 %v1769_v7 }
0x1aec   : > { %v1751_v12 = vpop.xlane.xlu2 %1750  ;;  %v1747_v13 = vpop.xlane.xlu1 %1746 }
0x1aed   : > { %v1752_v17 = vsel %vm1744_vm0, %v1751_v12, %v1714_v10  ;;  %v1748_v18 = vsel %vm1744_vm0, %v1747_v13, %v1710_v48  ;;  %v1816_v10 = vld [vmem:[#allocation2 + $0x3] ss:$0 sm:$0xff] }
0x1aee   : > { %v1787_v19 = vmul.f32 %v1779_v11, %v1752_v17  ;;  %v1783_v22 = vmul.f32 %v1779_v11, %v1748_v18  ;;  %v1817_v46 = vxor.u32 2147483648, %v1816_v10 }
0x1af0   : > { %1788 = vadd.xlane.f32.xlu1 %v1787_v19  ;;  %1784 = vadd.xlane.f32.xlu0 %v1783_v22 }
0x1b36   : > { %v1737_v23 = vpop.xlane.xlu0 %1736 }
0x1b37   : > { %v1738_v24 = vsel %vm1706_vm5, %v1737_v23, %v1700_v52 }
0x1b38   : > { %v1773_v27 = vmul.f32 %v1741_v44, %v1738_v24 }
0x1b3a   : > { %1774 = vadd.xlane.f32.xlu2 %v1773_v27 }
0x1b3e   : > { %v1763_v28 = vpop.xlane.xlu2 %1762  ;;  %v1755_v29 = vpop.xlane.xlu0 %1754 }
0x1b3f   : > { %v1764_v30 = vsel %vm1744_vm0, %v1763_v28, %v1726_v58  ;;  %v1756_v32 = vsel %vm1744_vm0, %v1755_v29, %v1718_v53  ;;  %v1759_v33 = vpop.xlane.xlu1 %1758 }
0x1b40   : > { %v1799_v35 = vmul.f32 %v1779_v11, %v1764_v30  ;;  %v1791_v38 = vmul.f32 %v1779_v11, %v1756_v32  ;;  %v1760_v39 = vsel %vm1744_vm0, %v1759_v33, %v1722_v59 }
0x1b41   : > { %v1795_v40 = vmul.f32 %v1779_v11, %v1760_v39 }
0x1b42   : > { %1800 = vadd.xlane.f32.xlu1 %v1799_v35  ;;  %1792 = vadd.xlane.f32.xlu2 %v1791_v38 }
0x1b43   : > { %1796 = vadd.xlane.f32.xlu0 %v1795_v40 }
0x1b46   : > { %v1767_v41 = vpop.xlane.xlu0 %1766 }
0x1b47   : > { %v1768_v42 = vsel %vm1744_vm0, %v1767_v41, %v1730_v2  ;;  %v1771_v44 = vpop.xlane.xlu1 %1770 }
0x1b48   : > { %v1803_v45 = vmul.f32 %v1779_v11, %v1768_v42  ;;  %v1772_v47 = vsel %vm1744_vm0, %v1771_v44, %v1734_v4 }
0x1b49   : > { %v1807_v48 = vmul.f32 %v1779_v11, %v1772_v47 }
0x1b4a   : > { %1804 = vadd.xlane.f32.xlu2 %v1803_v45 }
0x1b4b   : > { %1808 = vadd.xlane.f32.xlu0 %v1807_v48 }
0x1b63   : > { %v1785_v50 = vpop.xlane.xlu0 %1784  ;;  %v1789_v15 = vpop.xlane.xlu1 %1788 }
0x1b64   : > { %v1786_v52 = vsel %vm1782_vm3, %v1785_v50, %v1748_v18  ;;  %v1790_v54 = vsel %vm1782_vm3, %v1789_v15, %v1752_v17  ;;  %v1854_v18 = vld [vmem:[#allocation2 + $0x2] ss:$0 sm:$0xff] }
0x1b65   : > { %v1821_v55 = vmul.f32 %v1817_v46, %v1786_v52  ;;  %v1825_v56 = vmul.f32 %v1817_v46, %v1790_v54  ;;  %v1855_v19 = vxor.u32 2147483648, %v1854_v18 }
0x1b67   : > { %1822 = vadd.xlane.f32.xlu2 %v1821_v55  ;;  %1826 = vadd.xlane.f32.xlu0 %v1825_v56 }
0x1bad   : > { %v1775_v57 = vpop.xlane.xlu2 %1774 }
0x1bae   : > { %v1776_v58 = vsel %vm1744_vm0, %v1775_v57, %v1738_v24 }
0x1baf   : > { %v1811_v53 = vmul.f32 %v1779_v11, %v1776_v58 }
0x1bb1   : > { %1812 = vadd.xlane.f32.xlu1 %v1811_v53 }
0x1bb5   : > { %v1793_v59 = vpop.xlane.xlu2 %1792  ;;  %v1801_v60 = vpop.xlane.xlu1 %1800 }
0x1bb6   : > { %v1794_v63 = vsel %vm1782_vm3, %v1793_v59, %v1756_v32  ;;  %v1797_v61 = vpop.xlane.xlu0 %1796  ;;  %v1802_v0 = vsel %vm1782_vm3, %v1801_v60, %v1764_v30 }
0x1bb7   : > { %v1829_v1 = vmul.f32 %v1817_v46, %v1794_v63  ;;  %v1798_v2 = vsel %vm1782_vm3, %v1797_v61, %v1760_v39  ;;  %v1837_v4 = vmul.f32 %v1817_v46, %v1802_v0 }
0x1bb8   : > { %v1833_v5 = vmul.f32 %v1817_v46, %v1798_v2 }
0x1bb9   : > { %1830 = vadd.xlane.f32.xlu1 %v1829_v1  ;;  %1838 = vadd.xlane.f32.xlu0 %v1837_v4 }
0x1bba   : > { %1834 = vadd.xlane.f32.xlu2 %v1833_v5 }
0x1bbd   : > { %v1805_v7 = vpop.xlane.xlu2 %1804 }
0x1bbe   : > { %v1806_v8 = vsel %vm1782_vm3, %v1805_v7, %v1768_v42  ;;  %v1809_v11 = vpop.xlane.xlu0 %1808 }
0x1bbf   : > { %v1841_v12 = vmul.f32 %v1817_v46, %v1806_v8  ;;  %v1810_v13 = vsel %vm1782_vm3, %v1809_v11, %v1772_v47 }
0x1bc0   : > { %v1845_v17 = vmul.f32 %v1817_v46, %v1810_v13 }
0x1bc1   : > { %1842 = vadd.xlane.f32.xlu1 %v1841_v12 }
0x1bc2   : > { %1846 = vadd.xlane.f32.xlu2 %v1845_v17 }
0x1bda   : > { %v1823_v22 = vpop.xlane.xlu2 %1822  ;;  %v1827_v23 = vpop.xlane.xlu0 %1826 }
0x1bdb   : > { %v1824_v24 = vsel %vm1820_vm8, %v1823_v22, %v1786_v52  ;;  %v1828_v27 = vsel %vm1820_vm8, %v1827_v23, %v1790_v54  ;;  %v1892_v54 = vld [vmem:[#allocation2 + $0x1] ss:$0 sm:$0xff] }
0x1bdc   : > { %v1859_v28 = vmul.f32 %v1855_v19, %v1824_v24  ;;  %v1863_v29 = vmul.f32 %v1855_v19, %v1828_v27  ;;  %v1893_v55 = vxor.u32 2147483648, %v1892_v54 }
0x1bde   : > { %1860 = vadd.xlane.f32.xlu1 %v1859_v28  ;;  %1864 = vadd.xlane.f32.xlu2 %v1863_v29 }
0x1c24   : > { %v1813_v30 = vpop.xlane.xlu1 %1812 }
0x1c25   : > { %v1814_v32 = vsel %vm1782_vm3, %v1813_v30, %v1776_v58 }
0x1c26   : > { %v1849_v33 = vmul.f32 %v1817_v46, %v1814_v32 }
0x1c28   : > { %1850 = vadd.xlane.f32.xlu0 %v1849_v33 }
0x1c2c   : > { %v1839_v35 = vpop.xlane.xlu0 %1838  ;;  %v1831_v38 = vpop.xlane.xlu1 %1830 }
0x1c2d   : > { %v1835_v39 = vpop.xlane.xlu2 %1834  ;;  %v1840_v40 = vsel %vm1820_vm8, %v1839_v35, %v1802_v0  ;;  %v1832_v41 = vsel %vm1820_vm8, %v1831_v38, %v1794_v63 }
0x1c2e   : > { %v1836_v42 = vsel %vm1820_vm8, %v1835_v39, %v1798_v2  ;;  %v1875_v44 = vmul.f32 %v1855_v19, %v1840_v40  ;;  %v1867_v45 = vmul.f32 %v1855_v19, %v1832_v41 }
0x1c2f   : > { %v1871_v47 = vmul.f32 %v1855_v19, %v1836_v42 }
0x1c30   : > { %1876 = vadd.xlane.f32.xlu2 %v1875_v44  ;;  %1868 = vadd.xlane.f32.xlu0 %v1867_v45 }
0x1c31   : > { %1872 = vadd.xlane.f32.xlu1 %v1871_v47 }
0x1c34   : > { %v1843_v48 = vpop.xlane.xlu1 %1842 }
0x1c35   : > { %v1847_v10 = vpop.xlane.xlu2 %1846  ;;  %v1844_v46 = vsel %vm1820_vm8, %v1843_v48, %v1806_v8 }
0x1c36   : > { %v1848_v50 = vsel %vm1820_vm8, %v1847_v10, %v1810_v13  ;;  %v1879_v15 = vmul.f32 %v1855_v19, %v1844_v46 }
0x1c37   : > { %v1883_v52 = vmul.f32 %v1855_v19, %v1848_v50 }
0x1c38   : > { %1880 = vadd.xlane.f32.xlu0 %v1879_v15 }
0x1c39   : > { %1884 = vadd.xlane.f32.xlu1 %v1883_v52 }
0x1c51   : > { %v1865_v56 = vpop.xlane.xlu2 %1864  ;;  %v1861_v57 = vpop.xlane.xlu1 %1860 }
0x1c52   : > { %v1866_v58 = vsel %vm1858_vm9, %v1865_v56, %v1828_v27  ;;  %v1862_v53 = vsel %vm1858_vm9, %v1861_v57, %v1824_v24  ;;  %v1929_v27 = vld [vmem:[#allocation2] ss:$0 sm:$0xff] }
0x1c53   : > { %v1901_v59 = vmul.f32 %v1893_v55, %v1866_v58  ;;  %v1897_v60 = vmul.f32 %v1893_v55, %v1862_v53  ;;  %v1930_v28 = vxor.u32 2147483648, %v1929_v27 }
0x1c55   : > { %1902 = vadd.xlane.f32.xlu1 %v1901_v59  ;;  %1898 = vadd.xlane.f32.xlu0 %v1897_v60 }
0x1c9b   : > { %v1851_v63 = vpop.xlane.xlu0 %1850 }
0x1c9c   : > { %v1852_v61 = vsel %vm1820_vm8, %v1851_v63, %v1814_v32 }
0x1c9d   : > { %v1887_v0 = vmul.f32 %v1855_v19, %v1852_v61 }
0x1c9f   : > { %1888 = vadd.xlane.f32.xlu2 %v1887_v0 }
0x1ca3   : > { %v1877_v1 = vpop.xlane.xlu2 %1876  ;;  %v1869_v2 = vpop.xlane.xlu0 %1868 }
0x1ca4   : > { %v1878_v4 = vsel %vm1858_vm9, %v1877_v1, %v1840_v40  ;;  %v1870_v5 = vsel %vm1858_vm9, %v1869_v2, %v1832_v41  ;;  %v1873_v7 = vpop.xlane.xlu1 %1872 }
0x1ca5   : > { %v1913_v8 = vmul.f32 %v1893_v55, %v1878_v4  ;;  %v1905_v11 = vmul.f32 %v1893_v55, %v1870_v5  ;;  %v1874_v12 = vsel %vm1858_vm9, %v1873_v7, %v1836_v42 }
0x1ca6   : > { %v1909_v13 = vmul.f32 %v1893_v55, %v1874_v12 }
0x1ca7   : > { %1914 = vadd.xlane.f32.xlu1 %v1913_v8  ;;  %1906 = vadd.xlane.f32.xlu2 %v1905_v11 }
0x1ca8   : > { %1910 = vadd.xlane.f32.xlu0 %v1909_v13 }
0x1cab   : > { %v1881_v17 = vpop.xlane.xlu0 %1880 }
0x1cac   : > { %v1882_v18 = vsel %vm1858_vm9, %v1881_v17, %v1844_v46  ;;  %v1885_v19 = vpop.xlane.xlu1 %1884 }
0x1cad   : > { %v1917_v22 = vmul.f32 %v1893_v55, %v1882_v18  ;;  %v1886_v23 = vsel %vm1858_vm9, %v1885_v19, %v1848_v50 }
0x1cae   : > { %v1921_v24 = vmul.f32 %v1893_v55, %v1886_v23 }
0x1caf   : > { %1918 = vadd.xlane.f32.xlu2 %v1917_v22 }
0x1cb0   : > { %1922 = vadd.xlane.f32.xlu0 %v1921_v24 }
0x1cc8   : > { %v1899_v29 = vpop.xlane.xlu0 %1898  ;;  %v1903_v30 = vpop.xlane.xlu1 %1902 }
0x1cc9   : > { %v1900_v32 = vsel %vm1896_vm12, %v1899_v29, %v1862_v53  ;;  %v1904_v33 = vsel %vm1896_vm12, %v1903_v30, %v1866_v58 }
0x1cca   : > { %v1934_v35 = vmul.f32 %v1930_v28, %v1900_v32  ;;  %v1938_v38 = vmul.f32 %v1930_v28, %v1904_v33 }
0x1ccc   : > { %1935 = vadd.xlane.f32.xlu2 %v1934_v35  ;;  %1939 = vadd.xlane.f32.xlu0 %v1938_v38 }
0x1d12   : > { %v1889_v39 = vpop.xlane.xlu2 %1888 }
0x1d13   : > { %v1890_v40 = vsel %vm1858_vm9, %v1889_v39, %v1852_v61 }
0x1d14   : > { %v1925_v41 = vmul.f32 %v1893_v55, %v1890_v40 }
0x1d16   : > { %1926 = vadd.xlane.f32.xlu1 %v1925_v41 }
0x1d1a   : > { %v1907_v42 = vpop.xlane.xlu2 %1906  ;;  %v1915_v44 = vpop.xlane.xlu1 %1914 }
0x1d1b   : > { %v1908_v45 = vsel %vm1896_vm12, %v1907_v42, %v1870_v5  ;;  %v1911_v47 = vpop.xlane.xlu0 %1910  ;;  %v1916_v48 = vsel %vm1896_vm12, %v1915_v44, %v1878_v4 }
0x1d1c   : > { %v1942_v10 = vmul.f32 %v1930_v28, %v1908_v45  ;;  %v1912_v46 = vsel %vm1896_vm12, %v1911_v47, %v1874_v12  ;;  %v1950_v50 = vmul.f32 %v1930_v28, %v1916_v48 }
0x1d1d   : > { %v1946_v15 = vmul.f32 %v1930_v28, %v1912_v46 }
0x1d1e   : > { %1943 = vadd.xlane.f32.xlu1 %v1942_v10  ;;  %1951 = vadd.xlane.f32.xlu0 %v1950_v50 }
0x1d1f   : > { %1947 = vadd.xlane.f32.xlu2 %v1946_v15 }
0x1d22   : > { %v1919_v52 = vpop.xlane.xlu2 %1918 }
0x1d23   : > { %v1920_v54 = vsel %vm1896_vm12, %v1919_v52, %v1882_v18  ;;  %v1923_v55 = vpop.xlane.xlu0 %1922 }
0x1d24   : > { %v1954_v56 = vmul.f32 %v1930_v28, %v1920_v54  ;;  %v1924_v57 = vsel %vm1896_vm12, %v1923_v55, %v1886_v23 }
0x1d25   : > { %v1958_v58 = vmul.f32 %v1930_v28, %v1924_v57 }
0x1d26   : > { %1955 = vadd.xlane.f32.xlu1 %v1954_v56 }
0x1d27   : > { %1959 = vadd.xlane.f32.xlu2 %v1958_v58 }
0x1d3f   : > { %v1936_v53 = vpop.xlane.xlu2 %1935  ;;  %v1940_v59 = vpop.xlane.xlu0 %1939 }
0x1d40   : > { %v1937_v60 = vsel %vm1933_vm13, %v1936_v53, %v1900_v32  ;;  %v1941_v63 = vsel %vm1933_vm13, %v1940_v59, %v1904_v33 }
0x1d41   : > { %v1980_v61 = vmul.f32 %v1937_v60, %v3089_v34  ;;  %v1998_v0 = vmul.f32 %v1941_v63, %v2942_v20 }
0x1d43   : > { %v1982_v1 = vsel %vm167_vm4, %v1937_v60, %v1980_v61  ;;  %v2000_v2 = vsel %vm196_vm6, %v1941_v63, %v1998_v0 }
0x1d44   : > { %2173 = vst [vmem:[%s3242_s4] sm:$0xff] %v1982_v1 }
0x1d45   : > { %2175 = vst [vmem:[%s3242_s4 + $0x8] sm:$0xff] %v2000_v2 }
0x1d89   : > { %v1927_v4 = vpop.xlane.xlu1 %1926 }
0x1d8a   : > { %v1928_v20 = vsel %vm1896_vm12, %v1927_v4, %v1890_v40 }
0x1d8b   : > { %v1962_v34 = vmul.f32 %v1930_v28, %v1928_v20 }
0x1d8d   : > { %1963 = vadd.xlane.f32.xlu0 %v1962_v34 }
0x1d91   : > { %v1952_v5 = vpop.xlane.xlu0 %1951  ;;  %v1944_v7 = vpop.xlane.xlu1 %1943 }
0x1d92   : > { %v1948_v16 = vpop.xlane.xlu2 %1947  ;;  %v1953_v8 = vsel %vm1933_vm13, %v1952_v5, %v1916_v48  ;;  %v1945_v3 = vsel %vm1933_vm13, %v1944_v7, %v1908_v45 }
0x1d93   : > { %v1949_v11 = vsel %vm1933_vm13, %v1948_v16, %v1912_v46  ;;  %v2055_v12 = vmul.f32 %v1953_v8, %v2620_v21  ;;  %v2017_v13 = vmul.f32 %v1945_v3, %v2820_v49 }
0x1d94   : > { %v2036_v17 = vmul.f32 %v1949_v11, %v2708_v43 }
0x1d95   : > { %v2057_v18 = vsel %vm283_vm11, %v1953_v8, %v2055_v12  ;;  %v2019_v22 = vsel %vm225_vm10, %v1945_v3, %v2017_v13  ;;  %vm3306_vm11 = vweird.f32 %v2457_v14 }
0x1d96   : > { %v2038_v19 = vsel %vm254_vm2, %v1949_v11, %v2036_v17  ;;  %2181 = vst [vmem:[%s3242_s4 + $0x20] sm:$0xff] %v2057_v18 }
0x1d97   : > { %2179 = vst [vmem:[%s3242_s4 + $0x18] sm:$0xff] %v2038_v19 }
0x1d98   : > { %2177 = vst [vmem:[%s3242_s4 + $0x10] sm:$0xff] %v2019_v22 }
0x1d99   : > { %v1956_v23 = vpop.xlane.xlu1 %1955 }
0x1d9a   : > { %v1960_v21 = vpop.xlane.xlu2 %1959  ;;  %v1957_v49 = vsel %vm1933_vm13, %v1956_v23, %v1920_v54 }
0x1d9b   : > { %v1961_v6 = vsel %vm1933_vm13, %v1960_v21, %v1924_v57  ;;  %v2074_v43 = vmul.f32 %v1957_v49, %v2550_v37 }
0x1d9c   : > { %v2093_v31 = vmul.f32 %v1961_v6, %v2493_v62 }
0x1d9d   : > { %v2076_v36 = vsel %vm312_vm7, %v1957_v49, %v2074_v43 }
0x1d9e   : > { %v2095_v24 = vsel %vm341_vm15, %v1961_v6, %v2093_v31  ;;  %2183 = vst [vmem:[%s3242_s4 + $0x28] sm:$0xff] %v2076_v36 }
0x1d9f   : > { %2185 = vst [vmem:[%s3242_s4 + $0x30] sm:$0xff] %v2095_v24 }
0x1e00   : > { %v1964_v27 = vpop.xlane.xlu0 %1963 }
0x1e01   : > { %v1965_v28 = vsel %vm1933_vm13, %v1964_v27, %v1928_v20 }
0x1e02   : > { %v2112_v29 = vmul.f32 %v1965_v28, %v2470_v25 }
0x1e04   : > { %v2114_v30 = vsel %vm3306_vm11, %v1965_v28, %v2112_v29 }
0x1e05   : > { %2187 = vst [vmem:[%s3242_s4 + $0x38] sm:$0xff] %v2114_v30 }
0x1e06 PF: > { %s7_s10 = sadd.s32 1, %s2390_s10   ;;  %s3307_s6 = smov %s2382_s8 }
0x1e07   : > { %p4_p6 = scmp.ge.s32.totalorder %s7_s10, 10   ;;  %s3308_s7 = smov %s2386_s9 }
0x1e08   : > { %s3309_s8 = smov %s3312_s12  ;;  %s3310_s9 = smov %s3316_s13 }
0x1e09   :  { %6 = sbr.rel (!%p4_p6) target bundleno = 3 (0x3), region = 201 }

// kernel: bifi_tdm_forward.1
= control target key start
LH: loop header
LB: loop body
LE: loop exit
PB: predicated region body
PF: predicated region fallthrough
CT: control target
= control target key end

     0   :  { %s712_s12 = smov 0   ;;  %s850_s0 = inlined_call_operand.vmem [shape: f32[2,100,64], index: 0, kind: input, shape index: {}]   ;;  %s851_s1 = inlined_call_operand.vmem [shape: f32[4,64,128], index: 1, kind: input, shape index: {}]   ;;  %s852_s2 = inlined_call_operand.vmem [shape: f32[4,4,128], index: 2, kind: input, shape index: {}]   ;;  %s853_s3 = inlined_call_operand.vmem [shape: f32[4,4,2], index: 3, kind: output, shape index: {}]  }
   0x1 LB: > { %s618_s13 = sadd.s32 4294967295, %s688_s12   ;;  %p628_p0 = scmp.ge.s32.totalorder %s688_s12, 1  ;;  %s688_s12 = sphi %s712_s12, %s13_s12  }
   0x2   : > { %p204_p1 = scmp.lt.s32.totalorder %s688_s12, 5 }
   0x4   : > { %p205_p2 = pnand %p628_p0, %p204_p1 }
   0x5   : > { %p277_p3 = scmp.lt.s32.totalorder (!%p205_p2), %s618_s13, 3  ;;  %p248_p4 = scmp.lt.s32.totalorder (!%p205_p2), %s618_s13, 0 }
   0x6   : > { %208 = sbr.rel (%p205_p2) target bundleno = 586 (0x24a), region = 32  ;;  %s249_s14 = ssub.s32 (!%p205_p2), 0, %s618_s13 }
   0x7   : > { %s629_s16 = smin.u32 (!%p205_p2), %s618_s13, %s249_s14  ;;  %s690_s28 = smov (!%p205_p2), 64  }
   0x8   : > { %s251_s18 = sand.u32 (!%p205_p2), 1, %s629_s16  }
   0x9   : > { %s252_s22 = ssub.s32 (!%p205_p2), 0, %s251_s18 }
   0xb   : > { %s720_s15 = scalar_select %p277_p3, %s618_s13, 3  ;;  %vm312_vm0 = vcmask 523264   ;;  %vm500_vm1 = vcmask 1043456   ;;  %v486_v51 = vlaneseq  ;;  %vm496_vm5 = vcmask 818176  }
   0xc   : > { %s855_s22 = smov (!%p248_p4, %s252_s22), %s251_s18  ;;  %vm526_vm6 = vcmask 519168   ;;  %vm537_vm7 = vcmask 7168   ;;  %vm539_vm8 = vcmask 11264  }
   0xd   : > { %s654_s17 = sshll.u32 %s720_s15, 6  ;;  %p631_p5 = scmp.lt.s32.totalorder %s855_s22, 0  ;;  %v489_v61 = vshrl.u32 %v486_v51, 7 }
   0xe   : > { %s726_s21 = scalar_lea.vmem %s851_s1, %s654_s17  ;;  %s258_s23 = sadd.s32 2, %s855_s22 }
   0xf   : > { %v310_v0 = vld [vmem:[%s726_s21 + $0x38] sm:$0xff]  ;;  %v309_v1 = vld [vmem:[%s726_s21 + $0x30] sm:$0xff]  ;;  %v308_v2 = vld [vmem:[%s726_s21 + $0x28] sm:$0xff]  ;;  %s857_s23 = smov (!%p631_p5, %s258_s23), %s855_s22  ;;  %s635_s29 = sshll.u32 %s720_s15, 2 }
  0x10   : > { %656 = vmatpush.msra.mxu3 %v310_v0  ;;  %655 = vmatpush.msra.mxu2 %v310_v0  ;;  %v307_v3 = vld [vmem:[%s726_s21 + $0x20] sm:$0xff]  ;;  %v306_v4 = vld [vmem:[%s726_s21 + $0x18] sm:$0xff]  ;;  %p260_p6 = scmp.lt.s32.totalorder %s857_s23, 1  ;;  %v305_v5 = vld [vmem:[%s726_s21 + $0x10] sm:$0xff]  ;;  %s285_s5 = scalar_lea.vmem %s852_s2, %s635_s29 }
  0x11   : > { %360 = vmatpush.msra.mxu0 %v310_v0  ;;  %v304_v6 = vld [vmem:[%s726_s21 + $0x8] sm:$0xff]  ;;  %v303_v7 = vld [vmem:[%s726_s21] sm:$0xff]  ;;  %s289_s8 = scalar_lea.vmem %s853_s3, %s635_s29 }
  0x12   : > { %658 = vmatpush.msra.mxu3 %v309_v1  ;;  %657 = vmatpush.msra.mxu2 %v309_v1  ;;  %s859_s23 = smov (!%p260_p6, %s857_s23), 1 }
  0x13   : > { %361 = vmatpush.msra.mxu0 %v309_v1  ;;  %s671_s24 = smul.u32 104, %s859_s23 }
  0x14   : > { %660 = vmatpush.msra.mxu3 %v308_v2  ;;  %659 = vmatpush.msra.mxu2 %v308_v2 }
  0x15   : > { %362 = vmatpush.msra.mxu0 %v308_v2  ;;  %s739_s27 = scalar_lea.vmem %s850_s0, %s671_s24 }
  0x16   : > { %662 = vmatpush.msra.mxu3 %v307_v3  ;;  %661 = vmatpush.msra.mxu2 %v307_v3  ;;  %v742_v8 = vld [vmem:[%s739_s27 + $0x40] sm:$0xff]  ;;  %v300_v11 = vld [vmem:[%s739_s27 + $0x50] sm:$0xff]  ;;  %v301_v13 = vld [vmem:[%s739_s27 + $0x58] sm:$0xff] }
  0x17   : > { %363 = vmatpush.msra.mxu0 %v307_v3  ;;  %v745_v9 = vld [vmem:[%s739_s27 + $0x60] sm:$0xf]  ;;  %428 = vrot.lane.b32.xlu1 %v300_v11, %s690_s28  ;;  %v299_v14 = vld [vmem:[%s739_s27 + $0x48] sm:$0xff]  ;;  %v297_v17 = vld [vmem:[%s739_s27 + $0x38] sm:$0xff] }
  0x18   : > { %664 = vmatpush.msra.mxu3 %v306_v4  ;;  %663 = vmatpush.msra.mxu2 %v306_v4  ;;  %v750_v10 = vld [vmem:[%s739_s27 + $0x20] sm:$0xff]  ;;  %v768_v15 = vld [vmem:[%s739_s27 + $0x28] sm:$0xff]  ;;  %v296_v18 = vld [vmem:[%s739_s27 + $0x30] sm:$0xff] }
  0x19   : > { %364 = vmatpush.msra.mxu0 %v306_v4  ;;  %432 = vrot.lane.b32.xlu0 %v745_v9, %s690_s28  ;;  %v754_v12 = vld [vmem:[%s739_s27] sm:$0xff]  ;;  %v772_v16 = vld [vmem:[%s739_s27 + $0x8] sm:$0xff]  ;;  %v785_v19 = vld [vmem:[%s739_s27 + $0x10] sm:$0xff] }
  0x1a   : > { %666 = vmatpush.msra.mxu3 %v305_v5  ;;  %665 = vmatpush.msra.mxu2 %v305_v5  ;;  %v796_v20 = vld [vmem:[%s739_s27 + $0x18] sm:$0xff] }
  0x1b   : > { %365 = vmatpush.msra.mxu0 %v305_v5  ;;  %424 = vrot.lane.b32.xlu2 %v742_v8, %s690_s28  ;;  %v490_v5 = vmul.u32 25, %v489_v61 }
  0x1c   : > { %668 = vmatpush.msra.mxu3 %v304_v6  ;;  %667 = vmatpush.msra.mxu2 %v304_v6 }
  0x1d   : > { %366 = vmatpush.msra.mxu0 %v304_v6 }
  0x1e   : > { %670 = vmatpush.msra.mxu3 %v303_v7  ;;  %669 = vmatpush.msra.mxu2 %v303_v7 }
  0x1f   : > { %645 = vmatmul.msk.f32.vlgmr.msra.gmra.mxu3 %vm312_vm0, %v742_v8  ;;  %641 = vmatmul.msk.f32.vlgmr.msra.gmra.mxu2 %vm312_vm0, %v750_v10 }
  0x20   : > { %367 = vmatpush.msra.mxu0 %v303_v7  ;;  %426 = vrot.lane.b32.xlu1 %v299_v14, %s690_s28 }
  0x21   : > { %637 = vmatmul.msk.f32.vlgmr.msra.gmra.mxu0 %vm312_vm0, %v754_v12  ;;  %430 = vrot.lane.b32.xlu0 %v301_v13, %s690_s28 }
  0x23   : > { %422 = vrot.lane.b32.xlu2 %v297_v17, %s690_s28 }
  0x27   : > { %646 = vmatmul.msk.f32.gmra.mxu3 %vm312_vm0, %v299_v14  ;;  %642 = vmatmul.msk.f32.gmra.mxu2 %vm312_vm0, %v768_v15 }
  0x28   : > { %418 = vrot.lane.b32.xlu1 %v768_v15, %s690_s28 }
  0x29   : > { %638 = vmatmul.msk.f32.gmra.mxu0 %vm312_vm0, %v772_v16  ;;  %420 = vrot.lane.b32.xlu0 %v296_v18, %s690_s28 }
  0x2b   : > { %416 = vrot.lane.b32.xlu2 %v750_v10, %s690_s28 }
  0x2f   : > { %647 = vmatmul.msk.f32.gmra.mxu3 %vm312_vm0, %v300_v11  ;;  %643 = vmatmul.msk.f32.gmra.mxu2 %vm312_vm0, %v296_v18 }
  0x30   : > { %412 = vrot.lane.b32.xlu1 %v785_v19, %s690_s28 }
  0x31   : > { %639 = vmatmul.msk.f32.gmra.mxu0 %vm312_vm0, %v785_v19  ;;  %414 = vrot.lane.b32.xlu0 %v796_v20, %s690_s28 }
  0x33   : > { %410 = vrot.lane.b32.xlu2 %v772_v16, %s690_s28 }
  0x37   : > { %648 = vmatmul.msk.f32.gmra.mxu3 %vm312_vm0, %v301_v13  ;;  %644 = vmatmul.msk.f32.gmra.mxu2 %vm312_vm0, %v297_v17 }
  0x39   : > { %640 = vmatmul.msk.f32.gmra.mxu0 %vm312_vm0, %v796_v20  ;;  %408 = vrot.lane.b32.xlu0 %v754_v12, %s690_s28 }
  0x3f   : > { %649 = vmatmul.msk.f32.gmra.mxu3 %vm312_vm0, %v745_v9 }
  0x75   : > { %v425_v30 = vpop.permute.xlu2 %424 }
  0x76   : > { %v455_v46 = vsel %vm312_vm0, %v742_v8, %v425_v30 }
  0x7d   : > { %v423_v33 = vpop.permute.xlu2 %422 }
  0x7e   : > { %v454_v53 = vsel %vm312_vm0, %v297_v17, %v423_v33  ;;  %v487_v17 = vand.u32 127, %v486_v51 }
  0x80   : > { %vm491_vm2 = vcmp.ge.s32.totalorder %v487_v17, %v490_v5 }
  0x85   : > { %v417_v56 = vpop.permute.xlu2 %416 }
  0x86   : > { %v451_v1 = vsel %vm312_vm0, %v750_v10, %v417_v56 }
  0x89   : > { %v429_v28 = vpop.permute.xlu1 %428 }
  0x8a   : > { %v457_v38 = vsel %vm312_vm0, %v300_v11, %v429_v28 }
  0x8b   : > { %v433_v24 = vpop.permute.xlu0 %432 }
  0x8c   : > { %v459_v40 = vsel %vm312_vm0, %v745_v9, %v433_v24 }
  0x8d   : > { %v411_v9 = vpop.permute.xlu2 %410 }
  0x92   : > { %v427_v35 = vpop.permute.xlu1 %426 }
  0x93   : > { %v431_v29 = vpop.permute.xlu0 %430  ;;  %v456_v43 = vsel %vm312_vm0, %v299_v14, %v427_v35 }
  0x94   : > { %v458_v37 = vsel %vm312_vm0, %v301_v13, %v431_v29  ;;  %v691_v29 = vmov 0.0  }
  0x9a   : > { %v419_v50 = vpop.permute.xlu1 %418 }
  0x9b   : > { %v421_v36 = vpop.permute.xlu0 %420  ;;  %v452_v62 = vsel %vm312_vm0, %v768_v15, %v419_v50 }
  0x9c   : > { %v453_v58 = vsel %vm312_vm0, %v296_v18, %v421_v36  ;;  %v492_v18 = vadd.s32 25, %v490_v5 }
  0x9e   : > { %v812_v26 = vpop.f32.mrf.mxu0  ;;  %vm493_vm3 = vcmp.lt.s32.totalorder %v487_v17, %v492_v18 }
  0x9f   : > { %vm494_vm4 = vmand %vm491_vm2, %vm493_vm3 }
  0xa0   : > { %v495_v30 = vsel %vm494_vm4, 0.04, %v691_v29 }
  0xa2   : > { %v393_v21 = vpop.f32.mrf.mxu3  ;;  %v381_v23 = vpop.f32.mrf.mxu2 }
  0xa3   : > { %v468_v54 = vsub.f32 %v393_v21, %v455_v46  ;;  %v415_v57 = vpop.permute.xlu0 %414  ;;  %v413_v3 = vpop.permute.xlu1 %412  ;;  %v464_v11 = vsub.f32 %v381_v23, %v451_v1  ;;  %v448_v21 = vsel %vm312_vm0, %v772_v16, %v411_v9 }
  0xa4   : > { %v450_v7 = vsel %vm312_vm0, %v796_v20, %v415_v57  ;;  %v449_v13 = vsel %vm312_vm0, %v785_v19, %v413_v3 }
  0xa5   : > { %v481_v63 = vmul.f32 %v468_v54, %v468_v54 }
  0xa6   : > { %v814_v32 = vpop.f32.mrf.mxu0 }
  0xa7   : > { %v461_v23 = vsub.f32 %v814_v32, %v448_v21 }
  0xa9   : > { %v474_v16 = vmul.f32 %v461_v23, %v461_v23 }
  0xaa   : > { %v396_v22 = vpop.f32.mrf.mxu3  ;;  %v384_v27 = vpop.f32.mrf.mxu2 }
  0xab   : > { %v469_v48 = vsub.f32 %v396_v22, %v456_v43  ;;  %v465_v4 = vsub.f32 %v384_v27, %v452_v62  ;;  %v409_v14 = vpop.permute.xlu0 %408  ;;  %v477_v22 = vmul.f32 %v464_v11, %v464_v11 }
  0xac   : > { %v447_v20 = vsel %vm312_vm0, %v754_v12, %v409_v14  ;;  %v311_v12 = vld [vmem:[%s285_s5] sm:$0xf] }
  0xad   : > { %v482_v59 = vmul.f32 %v469_v48, %v469_v48  ;;  %v478_v10 = vmul.f32 %v465_v4, %v465_v4  ;;  %v460_v27 = vsub.f32 %v812_v26, %v447_v20 }
  0xae   : > { %v375_v47 = vpop.f32.mrf.mxu0 }
  0xaf   : > { %v462_v24 = vsub.f32 %v375_v47, %v449_v13  ;;  %v473_v28 = vmul.f32 %v460_v27, %v460_v27 }
  0xb1   : > { %v475_v19 = vmul.f32 %v462_v24, %v462_v24 }
  0xb2   : > { %v399_v25 = vpop.f32.mrf.mxu3  ;;  %v387_v34 = vpop.f32.mrf.mxu2 }
  0xb3   : > { %v470_v44 = vsub.f32 %v399_v25, %v457_v38  ;;  %v466_v0 = vsub.f32 %v387_v34, %v453_v58 }
  0xb5   : > { %v483_v55 = vmul.f32 %v470_v44, %v470_v44  ;;  %v479_v8 = vmul.f32 %v466_v0, %v466_v0 }
  0xb6   : > { %v378_v6 = vpop.f32.mrf.mxu0 }
  0xb7   : > { %v463_v15 = vsub.f32 %v378_v6, %v450_v7 }
  0xb9   : > { %v476_v25 = vmul.f32 %v463_v15, %v463_v15 }
  0xba   : > { %v402_v31 = vpop.f32.mrf.mxu3  ;;  %v390_v52 = vpop.f32.mrf.mxu2 }
  0xbb   : > { %v471_v41 = vsub.f32 %v402_v31, %v458_v37  ;;  %v467_v60 = vsub.f32 %v390_v52, %v454_v53  ;;  %v524_v31 = vmul.f32 %v311_v12, %v311_v12 }
  0xbd   : > { %v484_v49 = vmul.f32 %v471_v41, %v471_v41  ;;  %v480_v2 = vmul.f32 %v467_v60, %v467_v60 }
  0xc2   : > { %v405_v39 = vpop.f32.mrf.mxu3 }
  0xc3   : > { %v472_v42 = vsub.f32 %v405_v39, %v459_v40 }
  0xc5   : > { %v485_v45 = vmul.f32 %v472_v42, %v472_v42 }
  0xc7   : > { %650 = vmatpush.msk.msra.mxu1 %vm500_vm1, %v485_v45 }
  0xc9   : > { %508 = vmatpush.msra.mxu1 %v484_v49 }
  0xcb   : > { %509 = vmatpush.msra.mxu1 %v483_v55 }
  0xcd   : > { %510 = vmatpush.msra.mxu1 %v482_v59 }
  0xcf   : > { %511 = vmatpush.msra.mxu1 %v481_v63 }
  0xd1   : > { %512 = vmatpush.msra.mxu1 %v480_v2 }
  0xd3   : > { %513 = vmatpush.msra.mxu1 %v479_v8 }
  0xd5   : > { %514 = vmatpush.msra.mxu1 %v478_v10 }
  0xd7   : > { %515 = vmatpush.msra.mxu1 %v477_v22 }
  0xd9   : > { %516 = vmatpush.msra.mxu1 %v476_v25 }
  0xdb   : > { %517 = vmatpush.msra.mxu1 %v475_v19 }
  0xdd   : > { %518 = vmatpush.msra.mxu1 %v474_v16 }
  0xdf   : > { %519 = vmatpush.msra.mxu1 %v473_v28 }
  0xe0   : > { %651 = vmatmul.msk.f32.vlgmr.msra.gmra.mxu1 %vm496_vm5, %v495_v30 }
 0x15d   : > { %v521_v32 = vpop.f32.mrf.mxu1 }
 0x15e   : > { %v525_v26 = vmul.f32 %v524_v31, %v521_v32 }
 0x160   : > { %531 = vrot.lane.b32.xlu1 %v525_v26, %s690_s28  ;;  %v527_v33 = vsel %vm526_vm6, %v525_v26, 0.0 }
 0x161   : > { %528 = vadd.xlane.f32.xlu2 %v527_v33 }
 0x1d2   : > { %v532_v34 = vpop.permute.xlu1 %531 }
 0x1d3   : > { %v534_v35 = vsel %vm526_vm6, %v532_v34, 0.0 }
 0x1d4   : > { %535 = vadd.xlane.f32.xlu0 %v534_v35  ;;  %v529_v36 = vpop.xlane.xlu2 %528 }
 0x247   : > { %v536_v37 = vpop.xlane.xlu0 %535 }
 0x248   : > { %v538_v38 = vsel %vm537_vm7, %v529_v36, %v536_v37 }
 0x249   : > { %540 = vst.msk [vmem:[%s289_s8] sm:$0xf] %vm539_vm8, %v538_v38 }
 0x24a PF: > { %s13_s12 = sadd.s32 1, %s688_s12  }
 0x24b   : > { %p10_p7 = scmp.ge.s32.totalorder %s13_s12, 6  }
 0x24d   :  { %12 = sbr.rel (!%p10_p7) target bundleno = 1 (0x1), region = 68 }

</bundles_post_ra>
